<compile_context>
chip_gen: v7x
topology: tpu7x:2x2x1
jax: 0.10.0
libtpu: 0.0.40
codegen_flags: <defaults>
</compile_context>

<pallas_src>
import jax
import jax.numpy as jnp
from jax.experimental import pallas as pl
from jax.experimental.pallas import tpu as pltpu


def _round_up(x, m):
    return (x + m - 1) // m * m


# ----------------------------------------------------------------------------
# Pallas kernels
# ----------------------------------------------------------------------------
def conv_relu_pool_kernel(cols_ref, w_ref, b_ref, o_ref):
    """Fused Conv2d (im2col matmul) + 2x2 MaxPool + bias + ReLU for a batch tile.

    cols_ref: (bt, 4, Ppad, K)   K = KH*KW*Cin, axis 1 = 2x2 pool quadrants
    w_ref:    (K, Cpad)          Cpad = Cout zero-padded to 128 (lane-dense)
    b_ref:    (1, Cpad)
    o_ref:    (bt, Ppad, Cpad)
    """
    bt, nq, ppad, k = cols_ref.shape
    cpad = w_ref.shape[1]
    # Fold batch tile + quadrants + pooled-spatial into M: one big MXU matmul
    # (Ppad is a multiple of 8 so this reshape is sublane-tile aligned).
    cols = cols_ref[...].reshape(bt * nq * ppad, k)
    z = jnp.dot(cols, w_ref[...], preferred_element_type=jnp.float32)
    z = z.reshape(bt, nq, ppad, cpad)
    z = jnp.max(z, axis=1)                      # 2x2 max-pool over quadrants
    z = jnp.maximum(z + b_ref[...], 0.0)        # bias + ReLU once (exact)
    o_ref[...] = z.astype(o_ref.dtype)


def mlp_head_kernel(x_ref, w1_ref, b1_ref, w2_ref, b2_ref, o_ref, acc_ref):
    """fc1 (Linear + Dropout[eval] + ReLU) -> fc2 (Linear + Softmax(dim=1)).

    The hidden dim is chunked over grid axis 0 so the fc1 weight stream is
    pipelined; fc2 partial products accumulate in acc_ref, softmax at the end.
    """
    d = pl.program_id(0)

    @pl.when(d == 0)
    def _():
        acc_ref[...] = jnp.zeros_like(acc_ref)

    h = jnp.dot(x_ref[...], w1_ref[...],
                preferred_element_type=jnp.float32) + b1_ref[...]
    # TODO(synk): nn.Dropout(p=0.5) is the identity at inference; training-mode
    # random masking / rescaling is not implemented here.
    h = jnp.maximum(h, 0.0)
    acc_ref[...] += jnp.dot(h, w2_ref[...], preferred_element_type=jnp.float32)

    @pl.when(d == pl.num_programs(0) - 1)
    def _():
        logits = acc_ref[...] + b2_ref[...]
        z = logits - jnp.max(logits, axis=1, keepdims=True)
        e = jnp.exp(z)
        o_ref[...] = (e / jnp.sum(e, axis=1, keepdims=True)).astype(o_ref.dtype)


# ----------------------------------------------------------------------------
# Glue (reshapes / im2col / parameter setup) in plain JAX
# ----------------------------------------------------------------------------
def im2col_pool_quadrants(x_nhwc, kh, kw, pad):
    """(B, H, W, Cin) -> (B, 4, (H//2)*(W//2), kh*kw*Cin) for stride-1 'same' conv."""
    # TODO(synk): at large batch the im2col could be fused into the Pallas conv
    # kernel (DMA the padded activation tile, build shifted views in VMEM) to
    # avoid ~25x HBM amplification; kept host-side here for simplicity.
    B, H, W, Cin = x_nhwc.shape
    xp = jnp.pad(x_nhwc, ((0, 0), (pad, pad), (pad, pad), (0, 0)))
    patches = [xp[:, i:i + H, j:j + W, :] for i in range(kh) for j in range(kw)]
    cols = jnp.stack(patches, axis=3)                       # (B, H, W, kh*kw, Cin)
    cols = cols.reshape(B, H, W, kh * kw * Cin)
    cols = cols.reshape(B, H // 2, 2, W // 2, 2, kh * kw * Cin)
    cols = cols.transpose(0, 2, 4, 1, 3, 5)                 # (B, 2, 2, PH, PW, K)
    return cols.reshape(B, 4, (H // 2) * (W // 2), kh * kw * Cin)


def conv_relu_pool(x_nhwc, w, b, *, ksize=5, pad=2):
    B, H, W, Cin = x_nhwc.shape
    K, Cout = w.shape
    PH, PW = H // 2, W // 2
    P = PH * PW
    Ppad = _round_up(P, 8)            # sublane-aligned pooled-spatial axis
    Cpad = _round_up(Cout, 128)       # lane-dense output stores
    bt = min(8, B)                    # images per grid step
    Bpad = _round_up(B, bt)

    cols = im2col_pool_quadrants(x_nhwc, ksize, ksize, pad)   # (B, 4, P, K)
    cols = jnp.pad(cols, ((0, Bpad - B), (0, 0), (0, Ppad - P), (0, 0)))
    w_p = jnp.pad(w, ((0, 0), (0, Cpad - Cout)))
    b_p = jnp.pad(b, ((0, 0), (0, Cpad - Cout)))

    out = pl.pallas_call(
        conv_relu_pool_kernel,
        out_shape=jax.ShapeDtypeStruct((Bpad, Ppad, Cpad), jnp.float32),
        grid=(Bpad // bt,),
        in_specs=[
            pl.BlockSpec((bt, 4, Ppad, K), lambda i: (i, 0, 0, 0)),
            pl.BlockSpec((K, Cpad), lambda i: (0, 0)),
            pl.BlockSpec((1, Cpad), lambda i: (0, 0)),
        ],
        out_specs=pl.BlockSpec((bt, Ppad, Cpad), lambda i: (i, 0, 0)),
        compiler_params=pltpu.CompilerParams(
            dimension_semantics=("parallel",),
            vmem_limit_bytes=32 * 1024 * 1024),
    )(cols, w_p, b_p)

    out = out[:B, :P, :Cout].reshape(B, PH, PW, Cout)
    return out


def mlp_head(x, w1, b1, w2, b2, *, dh_chunk=256):
    B, Din = x.shape
    Dh = w1.shape[1]
    Dout = w2.shape[1]
    Dh_pad = _round_up(Dh, dh_chunk)              # 1000 -> 1024 (multiple of 128)

    w1p = jnp.pad(w1, ((0, 0), (0, Dh_pad - Dh)))           # zero cols -> h=0
    b1p = jnp.pad(b1, ((0, 0), (0, Dh_pad - Dh)))
    w2p = jnp.pad(w2, ((0, Dh_pad - Dh), (0, 0)))           # zero rows -> +0

    n_chunks = Dh_pad // dh_chunk
    return pl.pallas_call(
        mlp_head_kernel,
        out_shape=jax.ShapeDtypeStruct((B, Dout), jnp.float32),
        grid=(n_chunks,),
        in_specs=[
            pl.BlockSpec((B, Din), lambda d: (0, 0)),
            pl.BlockSpec((Din, dh_chunk), lambda d: (0, d)),
            pl.BlockSpec((1, dh_chunk), lambda d: (0, d)),
            pl.BlockSpec((dh_chunk, Dout), lambda d: (d, 0)),
            pl.BlockSpec((1, Dout), lambda d: (0, 0)),
        ],
        out_specs=pl.BlockSpec((B, Dout), lambda d: (0, 0)),
        scratch_shapes=[pltpu.VMEM((B, Dout), jnp.float32)],
        compiler_params=pltpu.CompilerParams(
            dimension_semantics=("arbitrary",),
            vmem_limit_bytes=32 * 1024 * 1024),
    )(x, w1p, b1p, w2p, b2)


def net_forward(x_nchw, params):
    x = jnp.transpose(x_nchw, (0, 2, 3, 1))                   # NCHW -> NHWC
    x = conv_relu_pool(x, params["w1"], params["b1"])         # (B, 14, 14, 32)
    x = conv_relu_pool(x, params["w2"], params["b2"])         # (B, 7, 7, 64)
    B = x.shape[0]
    # match torch: x.view(B, -1) on an NCHW (B, 64, 7, 7) tensor
    x = jnp.transpose(x, (0, 3, 1, 2)).reshape(B, 64 * 7 * 7)
    return mlp_head(x, params["wf1"], params["bf1"], params["wf2"], params["bf2"])


def init_params(key):
    ks = jax.random.split(key, 8)

    def u(k, shape, fan_in):
        bound = 1.0 / jnp.sqrt(jnp.float32(fan_in))
        return jax.random.uniform(k, shape, jnp.float32, -bound, bound)

    p = {}
    # conv1: Conv2d(1, 32, 5x5) — weight stored as (KH*KW*Cin, Cout)
    p["w1"] = u(ks[0], (5 * 5 * 1, 32), 5 * 5 * 1)
    p["b1"] = u(ks[1], (1, 32), 5 * 5 * 1)
    # conv2: Conv2d(32, 64, 5x5)
    p["w2"] = u(ks[2], (5 * 5 * 32, 64), 5 * 5 * 32)
    p["b2"] = u(ks[3], (1, 64), 5 * 5 * 32)
    # fc1: Linear(64*7*7, 1000) — weight stored as (in, out)
    p["wf1"] = u(ks[4], (64 * 7 * 7, 1000), 64 * 7 * 7)
    p["bf1"] = u(ks[5], (1, 1000), 64 * 7 * 7)
    # fc2: Linear(1000, 10)
    p["wf2"] = u(ks[6], (1000, 10), 1000)
    p["bf2"] = u(ks[7], (1, 10), 1000)
    return p


if __name__ == "__main__":
    key = jax.random.PRNGKey(0)
    pkey, xkey = jax.random.split(key)
    params = init_params(pkey)
    # MNIST-shaped input (the flatten to 64*7*7 fixes spatial size at 28x28); batch=2.
    x = jax.random.normal(xkey, (2, 1, 28, 28), jnp.float32)   # NCHW, like PyTorch
    out = jax.jit(net_forward)(x, params)
    out = jax.block_until_ready(out)
    assert out.shape == (2, 10), out.shape
    assert bool(jnp.all(jnp.isfinite(out)))
    assert bool(jnp.allclose(jnp.sum(out, axis=1), 1.0, atol=1e-5))  # softmax rows
    print("KERNEL_OK")
</pallas_src>

<mosaic_0001>
module attributes {stable_mosaic.version = 11 : i64} {
  func.func @conv_relu_pool_kernel(%arg0: i32, %arg1: memref<2x4x200x25xf32, #tpu.memory_space<vmem>>, %arg2: memref<25x128xf32, #tpu.memory_space<vmem>>, %arg3: memref<1x128xf32, #tpu.memory_space<vmem>>, %arg4: memref<2x200x128xf32, #tpu.memory_space<vmem>>) attributes {dimension_semantics = [#tpu.dimension_semantics<parallel>], iteration_bounds = array<i64: 1>, scalar_prefetch = 0 : i64, scratch_operands = 0 : i64, tpu.core_type = #tpu.core_type<tc>, window_params = [{transform_indices = @transform_0, window_bounds = array<i64: 2, 4, 200, 25>}, {pipeline_mode = #tpu.pipeline_mode<synchronous>, transform_indices = @transform_1, window_bounds = array<i64: 25, 128>}, {pipeline_mode = #tpu.pipeline_mode<synchronous>, transform_indices = @transform_2, window_bounds = array<i64: 1, 128>}, {transform_indices = @transform_3, window_bounds = array<i64: 2, 200, 128>}]} {
    %c0 = arith.constant 0 : index
    %c0_0 = arith.constant 0 : index
    %c0_1 = arith.constant 0 : index
    %c0_2 = arith.constant 0 : index
    %0 = vector.load %arg1[%c0, %c0_0, %c0_1, %c0_2] : memref<2x4x200x25xf32, #tpu.memory_space<vmem>>, vector<2x4x200x25xf32>
    %1 = vector.shape_cast %0 : vector<2x4x200x25xf32> to vector<1600x25xf32>
    %c0_3 = arith.constant 0 : index
    %c0_4 = arith.constant 0 : index
    %2 = vector.load %arg2[%c0_3, %c0_4] : memref<25x128xf32, #tpu.memory_space<vmem>>, vector<25x128xf32>
    %cst = arith.constant dense<0.000000e+00> : vector<1600x128xf32>
    %3 = tpu.matmul %1, %2, %cst {dimension_numbers = #tpu.dot_dimension_numbers<[1], [0], [0], [1], [0, 0, 1, 1], [], []>} : vector<1600x25xf32>, vector<25x128xf32>, vector<1600x128xf32> -> vector<1600x128xf32>
    %4 = vector.shape_cast %3 : vector<1600x128xf32> to vector<2x4x200x128xf32>
    %cst_5 = arith.constant dense<0xFF800000> : vector<2x200x128xf32>
    %5 = vector.multi_reduction <maximumf>, %4, %cst_5 [1] : vector<2x4x200x128xf32> to vector<2x200x128xf32>
    %c0_6 = arith.constant 0 : index
    %c0_7 = arith.constant 0 : index
    %6 = vector.load %arg3[%c0_6, %c0_7] : memref<1x128xf32, #tpu.memory_space<vmem>>, vector<1x128xf32>
    %7 = vector.shape_cast %6 : vector<1x128xf32> to vector<1x1x128xf32>
    %8 = vector.broadcast %7 : vector<1x1x128xf32> to vector<2x200x128xf32>
    %9 = arith.addf %5, %8 : vector<2x200x128xf32>
    %cst_8 = arith.constant 0.000000e+00 : f32
    %10 = vector.broadcast %cst_8 : f32 to vector<2x200x128xf32>
    %11 = arith.maximumf %9, %10 : vector<2x200x128xf32>
    %c0_9 = arith.constant 0 : index
    %c0_10 = arith.constant 0 : index
    %c0_11 = arith.constant 0 : index
    %12 = vector.load %arg4[%c0_9, %c0_10, %c0_11] : memref<2x200x128xf32, #tpu.memory_space<vmem>>, vector<2x200x128xf32>
    tpu.vector_store %arg4[%c0_9, %c0_10, %c0_11], %11 {strides = array<i32>} : memref<2x200x128xf32, #tpu.memory_space<vmem>>, vector<2x200x128xf32>,
    return
  }
  func.func @transform_0(%arg0: i32) -> (i32, i32, i32, i32) {
    %c0_i32 = arith.constant 0 : i32
    %c0_i32_0 = arith.constant 0 : i32
    %c0_i32_1 = arith.constant 0 : i32
    %c0_i32_2 = arith.constant 0 : i32
    return %arg0, %c0_i32, %c0_i32_0, %c0_i32_1 : i32, i32, i32, i32
  }
  func.func @transform_1(%arg0: i32) -> (i32, i32) {
    %c0_i32 = arith.constant 0 : i32
    %c0_i32_0 = arith.constant 0 : i32
    %c0_i32_1 = arith.constant 0 : i32
    return %c0_i32, %c0_i32_0 : i32, i32
  }
  func.func @transform_2(%arg0: i32) -> (i32, i32) {
    %c0_i32 = arith.constant 0 : i32
    %c0_i32_0 = arith.constant 0 : i32
    %c0_i32_1 = arith.constant 0 : i32
    return %c0_i32, %c0_i32_0 : i32, i32
  }
  func.func @transform_3(%arg0: i32) -> (i32, i32, i32) {
    %c0_i32 = arith.constant 0 : i32
    %c0_i32_0 = arith.constant 0 : i32
    %c0_i32_1 = arith.constant 0 : i32
    return %arg0, %c0_i32, %c0_i32_0 : i32, i32, i32
  }
}

module attributes {stable_mosaic.version = 11 : i64} {
  func.func @conv_relu_pool_kernel(%arg0: i32, %arg1: memref<2x4x56x800xf32, #tpu.memory_space<vmem>>, %arg2: memref<800x128xf32, #tpu.memory_space<vmem>>, %arg3: memref<1x128xf32, #tpu.memory_space<vmem>>, %arg4: memref<2x56x128xf32, #tpu.memory_space<vmem>>) attributes {dimension_semantics = [#tpu.dimension_semantics<parallel>], iteration_bounds = array<i64: 1>, scalar_prefetch = 0 : i64, scratch_operands = 0 : i64, tpu.core_type = #tpu.core_type<tc>, window_params = [{transform_indices = @transform_0, window_bounds = array<i64: 2, 4, 56, 800>}, {pipeline_mode = #tpu.pipeline_mode<synchronous>, transform_indices = @transform_1, window_bounds = array<i64: 800, 128>}, {pipeline_mode = #tpu.pipeline_mode<synchronous>, transform_indices = @transform_2, window_bounds = array<i64: 1, 128>}, {transform_indices = @transform_3, window_bounds = array<i64: 2, 56, 128>}]} {
    %c0 = arith.constant 0 : index
    %c0_0 = arith.constant 0 : index
    %c0_1 = arith.constant 0 : index
    %c0_2 = arith.constant 0 : index
    %0 = vector.load %arg1[%c0, %c0_0, %c0_1, %c0_2] : memref<2x4x56x800xf32, #tpu.memory_space<vmem>>, vector<2x4x56x800xf32>
    %1 = vector.shape_cast %0 : vector<2x4x56x800xf32> to vector<448x800xf32>
    %c0_3 = arith.constant 0 : index
    %c0_4 = arith.constant 0 : index
    %2 = vector.load %arg2[%c0_3, %c0_4] : memref<800x128xf32, #tpu.memory_space<vmem>>, vector<800x128xf32>
    %cst = arith.constant dense<0.000000e+00> : vector<448x128xf32>
    %3 = tpu.matmul %1, %2, %cst {dimension_numbers = #tpu.dot_dimension_numbers<[1], [0], [0], [1], [0, 0, 1, 1], [], []>} : vector<448x800xf32>, vector<800x128xf32>, vector<448x128xf32> -> vector<448x128xf32>
    %4 = vector.shape_cast %3 : vector<448x128xf32> to vector<2x4x56x128xf32>
    %cst_5 = arith.constant dense<0xFF800000> : vector<2x56x128xf32>
    %5 = vector.multi_reduction <maximumf>, %4, %cst_5 [1] : vector<2x4x56x128xf32> to vector<2x56x128xf32>
    %c0_6 = arith.constant 0 : index
    %c0_7 = arith.constant 0 : index
    %6 = vector.load %arg3[%c0_6, %c0_7] : memref<1x128xf32, #tpu.memory_space<vmem>>, vector<1x128xf32>
    %7 = vector.shape_cast %6 : vector<1x128xf32> to vector<1x1x128xf32>
    %8 = vector.broadcast %7 : vector<1x1x128xf32> to vector<2x56x128xf32>
    %9 = arith.addf %5, %8 : vector<2x56x128xf32>
    %cst_8 = arith.constant 0.000000e+00 : f32
    %10 = vector.broadcast %cst_8 : f32 to vector<2x56x128xf32>
    %11 = arith.maximumf %9, %10 : vector<2x56x128xf32>
    %c0_9 = arith.constant 0 : index
    %c0_10 = arith.constant 0 : index
    %c0_11 = arith.constant 0 : index
    %12 = vector.load %arg4[%c0_9, %c0_10, %c0_11] : memref<2x56x128xf32, #tpu.memory_space<vmem>>, vector<2x56x128xf32>
    tpu.vector_store %arg4[%c0_9, %c0_10, %c0_11], %11 {strides = array<i32>} : memref<2x56x128xf32, #tpu.memory_space<vmem>>, vector<2x56x128xf32>,
    return
  }
  func.func @transform_0(%arg0: i32) -> (i32, i32, i32, i32) {
    %c0_i32 = arith.constant 0 : i32
    %c0_i32_0 = arith.constant 0 : i32
    %c0_i32_1 = arith.constant 0 : i32
    %c0_i32_2 = arith.constant 0 : i32
    return %arg0, %c0_i32, %c0_i32_0, %c0_i32_1 : i32, i32, i32, i32
  }
  func.func @transform_1(%arg0: i32) -> (i32, i32) {
    %c0_i32 = arith.constant 0 : i32
    %c0_i32_0 = arith.constant 0 : i32
    %c0_i32_1 = arith.constant 0 : i32
    return %c0_i32, %c0_i32_0 : i32, i32
  }
  func.func @transform_2(%arg0: i32) -> (i32, i32) {
    %c0_i32 = arith.constant 0 : i32
    %c0_i32_0 = arith.constant 0 : i32
    %c0_i32_1 = arith.constant 0 : i32
    return %c0_i32, %c0_i32_0 : i32, i32
  }
  func.func @transform_3(%arg0: i32) -> (i32, i32, i32) {
    %c0_i32 = arith.constant 0 : i32
    %c0_i32_0 = arith.constant 0 : i32
    %c0_i32_1 = arith.constant 0 : i32
    return %arg0, %c0_i32, %c0_i32_0 : i32, i32, i32
  }
}

module attributes {stable_mosaic.version = 11 : i64} {
  func.func @mlp_head_kernel(%arg0: i32, %arg1: memref<2x3136xf32, #tpu.memory_space<vmem>>, %arg2: memref<3136x256xf32, #tpu.memory_space<vmem>>, %arg3: memref<1x256xf32, #tpu.memory_space<vmem>>, %arg4: memref<256x10xf32, #tpu.memory_space<vmem>>, %arg5: memref<1x10xf32, #tpu.memory_space<vmem>>, %arg6: memref<2x10xf32, #tpu.memory_space<vmem>>, %arg7: memref<2x10xf32, #tpu.memory_space<vmem>>) attributes {dimension_semantics = [#tpu.dimension_semantics<arbitrary>], iteration_bounds = array<i64: 4>, scalar_prefetch = 0 : i64, scratch_operands = 1 : i64, tpu.core_type = #tpu.core_type<tc>, window_params = [{pipeline_mode = #tpu.pipeline_mode<synchronous>, transform_indices = @transform_0, window_bounds = array<i64: 2, 3136>}, {transform_indices = @transform_1, window_bounds = array<i64: 3136, 256>}, {transform_indices = @transform_2, window_bounds = array<i64: 1, 256>}, {transform_indices = @transform_3, window_bounds = array<i64: 256, 10>}, {pipeline_mode = #tpu.pipeline_mode<synchronous>, transform_indices = @transform_4, window_bounds = array<i64: 1, 10>}, {pipeline_mode = #tpu.pipeline_mode<synchronous>, transform_indices = @transform_5, window_bounds = array<i64: 2, 10>}]} {
    %c0_i32 = arith.constant 0 : i32
    %0 = arith.cmpi eq, %arg0, %c0_i32 : i32
    %1 = arith.extui %0 : i1 to i32
    %c0_i32_0 = arith.constant 0 : i32
    %2 = arith.cmpi ne, %1, %c0_i32_0 : i32
    scf.if %2 {
      %cst_15 = arith.constant 0.000000e+00 : f32
      %19 = vector.broadcast %cst_15 : f32 to vector<2x10xf32>
      %c0_16 = arith.constant 0 : index
      %c0_17 = arith.constant 0 : index
      %20 = vector.load %arg7[%c0_16, %c0_17] : memref<2x10xf32, #tpu.memory_space<vmem>>, vector<2x10xf32>
      tpu.vector_store %arg7[%c0_16, %c0_17], %19 {strides = array<i32>} : memref<2x10xf32, #tpu.memory_space<vmem>>, vector<2x10xf32>,
    } else {
    }
    %c0 = arith.constant 0 : index
    %c0_1 = arith.constant 0 : index
    %3 = vector.load %arg1[%c0, %c0_1] : memref<2x3136xf32, #tpu.memory_space<vmem>>, vector<2x3136xf32>
    %c0_2 = arith.constant 0 : index
    %c0_3 = arith.constant 0 : index
    %4 = vector.load %arg2[%c0_2, %c0_3] : memref<3136x256xf32, #tpu.memory_space<vmem>>, vector<3136x256xf32>
    %cst = arith.constant dense<0.000000e+00> : vector<2x256xf32>
    %5 = tpu.matmul %3, %4, %cst {dimension_numbers = #tpu.dot_dimension_numbers<[1], [0], [0], [1], [0, 0, 1, 1], [], []>} : vector<2x3136xf32>, vector<3136x256xf32>, vector<2x256xf32> -> vector<2x256xf32>
    %c0_4 = arith.constant 0 : index
    %c0_5 = arith.constant 0 : index
    %6 = vector.load %arg3[%c0_4, %c0_5] : memref<1x256xf32, #tpu.memory_space<vmem>>, vector<1x256xf32>
    %7 = vector.broadcast %6 : vector<1x256xf32> to vector<2x256xf32>
    %8 = arith.addf %5, %7 : vector<2x256xf32>
    %cst_6 = arith.constant 0.000000e+00 : f32
    %9 = vector.broadcast %cst_6 : f32 to vector<2x256xf32>
    %10 = arith.maximumf %8, %9 : vector<2x256xf32>
    %c0_7 = arith.constant 0 : index
    %c0_8 = arith.constant 0 : index
    %11 = vector.load %arg7[%c0_7, %c0_8] : memref<2x10xf32, #tpu.memory_space<vmem>>, vector<2x10xf32>
    %c0_9 = arith.constant 0 : index
    %c0_10 = arith.constant 0 : index
    %12 = vector.load %arg4[%c0_9, %c0_10] : memref<256x10xf32, #tpu.memory_space<vmem>>, vector<256x10xf32>
    %cst_11 = arith.constant dense<0.000000e+00> : vector<2x10xf32>
    %13 = tpu.matmul %10, %12, %cst_11 {dimension_numbers = #tpu.dot_dimension_numbers<[1], [0], [0], [1], [0, 0, 1, 1], [], []>} : vector<2x256xf32>, vector<256x10xf32>, vector<2x10xf32> -> vector<2x10xf32>
    %14 = arith.addf %11, %13 : vector<2x10xf32>
    %c0_12 = arith.constant 0 : index
    %c0_13 = arith.constant 0 : index
    %15 = vector.load %arg7[%c0_12, %c0_13] : memref<2x10xf32, #tpu.memory_space<vmem>>, vector<2x10xf32>
    tpu.vector_store %arg7[%c0_12, %c0_13], %14 {strides = array<i32>} : memref<2x10xf32, #tpu.memory_space<vmem>>, vector<2x10xf32>,
    %c3_i32 = arith.constant 3 : i32
    %16 = arith.cmpi eq, %arg0, %c3_i32 : i32
    %17 = arith.extui %16 : i1 to i32
    %c0_i32_14 = arith.constant 0 : i32
    %18 = arith.cmpi ne, %17, %c0_i32_14 : i32
    scf.if %18 {
      %c0_15 = arith.constant 0 : index
      %c0_16 = arith.constant 0 : index
      %19 = vector.load %arg7[%c0_15, %c0_16] : memref<2x10xf32, #tpu.memory_space<vmem>>, vector<2x10xf32>
      %c0_17 = arith.constant 0 : index
      %c0_18 = arith.constant 0 : index
      %20 = vector.load %arg5[%c0_17, %c0_18] : memref<1x10xf32, #tpu.memory_space<vmem>>, vector<1x10xf32>
      %21 = vector.broadcast %20 : vector<1x10xf32> to vector<2x10xf32>
      %22 = arith.addf %19, %21 : vector<2x10xf32>
      %cst_19 = arith.constant dense<0xFF800000> : vector<2xf32>
      %23 = vector.multi_reduction <maximumf>, %22, %cst_19 [1] : vector<2x10xf32> to vector<2xf32>
      %24 = vector.shape_cast %23 : vector<2xf32> to vector<2x1xf32>
      %25 = vector.broadcast %24 : vector<2x1xf32> to vector<2x10xf32>
      %26 = arith.subf %22, %25 : vector<2x10xf32>
      %27 = math.exp %26 : vector<2x10xf32>
      %cst_20 = arith.constant dense<0.000000e+00> : vector<2xf32>
      %28 = vector.multi_reduction <add>, %27, %cst_20 [1] : vector<2x10xf32> to vector<2xf32>
      %29 = vector.shape_cast %28 : vector<2xf32> to vector<2x1xf32>
      %30 = vector.broadcast %29 : vector<2x1xf32> to vector<2x10xf32>
      %31 = arith.divf %27, %30 : vector<2x10xf32>
      %c0_21 = arith.constant 0 : index
      %c0_22 = arith.constant 0 : index
      %32 = vector.load %arg6[%c0_21, %c0_22] : memref<2x10xf32, #tpu.memory_space<vmem>>, vector<2x10xf32>
      tpu.vector_store %arg6[%c0_21, %c0_22], %31 {strides = array<i32>} : memref<2x10xf32, #tpu.memory_space<vmem>>, vector<2x10xf32>,
    } else {
    }
    return
  }
  func.func @transform_0(%arg0: i32) -> (i32, i32) {
    %c0_i32 = arith.constant 0 : i32
    %c0_i32_0 = arith.constant 0 : i32
    %c0_i32_1 = arith.constant 0 : i32
    return %c0_i32, %c0_i32_0 : i32, i32
  }
  func.func @transform_1(%arg0: i32) -> (i32, i32) {
    %c0_i32 = arith.constant 0 : i32
    %c0_i32_0 = arith.constant 0 : i32
    return %c0_i32, %arg0 : i32, i32
  }
  func.func @transform_2(%arg0: i32) -> (i32, i32) {
    %c0_i32 = arith.constant 0 : i32
    %c0_i32_0 = arith.constant 0 : i32
    return %c0_i32, %arg0 : i32, i32
  }
  func.func @transform_3(%arg0: i32) -> (i32, i32) {
    %c0_i32 = arith.constant 0 : i32
    %c0_i32_0 = arith.constant 0 : i32
    return %arg0, %c0_i32 : i32, i32
  }
  func.func @transform_4(%arg0: i32) -> (i32, i32) {
    %c0_i32 = arith.constant 0 : i32
    %c0_i32_0 = arith.constant 0 : i32
    %c0_i32_1 = arith.constant 0 : i32
    return %c0_i32, %c0_i32_0 : i32, i32
  }
  func.func @transform_5(%arg0: i32) -> (i32, i32) {
    %c0_i32 = arith.constant 0 : i32
    %c0_i32_0 = arith.constant 0 : i32
    %c0_i32_1 = arith.constant 0 : i32
    return %c0_i32, %c0_i32_0 : i32, i32
  }
}

</mosaic_0001>

<bundles_post_ra>
// kernel: net_forward.3
= control target key start
LH: loop header
LB: loop body
LE: loop exit
PB: predicated region body
PF: predicated region fallthrough
CT: control target
= control target key end

     0   :  { %vm819_vm0 = vcmask 1040384   ;;  %vm218_vm1 = vcmask 203776   ;;  %vm2928_vm2 = vmmov 1   ;;  %s4566_s1 = inlined_call_operand.vmem [shape: f32[25,128], index: 1, kind: input, shape index: {}]   ;;  %s4567_s0 = inlined_call_operand.vmem [shape: f32[2,4,200,25], index: 0, kind: input, shape index: {}]   ;;  %s4568_s2 = inlined_call_operand.vmem [shape: f32[1,128], index: 2, kind: input, shape index: {}]   ;;  %s4569_s3 = inlined_call_operand.vmem [shape: f32[2,200,128], index: 3, kind: output, shape index: {}]  }
   0x1   :  { %v214_v0 = vld [vmem:[%s4566_s1] sm:$0xff]  ;;  %v215_v1 = vld [vmem:[%s4566_s1 + $0x8] sm:$0xff]  ;;  %v216_v2 = vld [vmem:[%s4566_s1 + $0x10] sm:$0xff] }
   0x2   :  { %v2913_v3 = vpack.c.bf16 %v215_v1, %v214_v0  ;;  %v217_v4 = vld [vmem:[%s4566_s1 + $0x18] sm:$0x1]  ;;  %v14_v5 = vld [vmem:[%s4567_s0] sm:$0xff]  ;;  %vm2918_vm3 = vmpackc.low %vm819_vm0, %vm2928_vm2 }
   0x3   :  { %v2917_v6 = vpack.c.bf16 %v217_v4, %v216_v2  ;;  %2613 = vmatprep.mubr.msk.f32.mxu0 %vm218_vm1, %v14_v5  ;;  %v114_v7 = vld [vmem:[%s4567_s0 + $0x320] sm:$0xff]  ;;  %v15_v8 = vld [vmem:[%s4567_s0 + $0x8] sm:$0xff]  ;;  %v16_v10 = vld [vmem:[%s4567_s0 + $0x10] sm:$0xff] }
   0x4   :  { %2914 = vmatprep.subr.bf16.mxu0 %v2913_v3  ;;  %2923 = vmatprep.subr.bf16.mxu1 %v2913_v3  ;;  %v115_v9 = vld [vmem:[%s4567_s0 + $0x328] sm:$0xff]  ;;  %v116_v11 = vld [vmem:[%s4567_s0 + $0x330] sm:$0xff]  ;;  %v17_v12 = vld [vmem:[%s4567_s0 + $0x18] sm:$0xff] }
   0x5   :  { %2916 = vmatpush3.bf16.msra.mxu0 %v2913_v3  ;;  %2925 = vmatpush3.bf16.msra.mxu1 %v2913_v3  ;;  %v117_v13 = vld [vmem:[%s4567_s0 + $0x338] sm:$0xff]  ;;  %v18_v14 = vld [vmem:[%s4567_s0 + $0x20] sm:$0xff]  ;;  %v19_v16 = vld [vmem:[%s4567_s0 + $0x28] sm:$0xff] }
   0x6   :  { %2919 = vmatprep.subr.msk.bf16.mxu0 %vm2918_vm3, %v2917_v6  ;;  %2924 = vmatprep.subr.msk.bf16.mxu1 %vm2918_vm3, %v2917_v6  ;;  %v118_v15 = vld [vmem:[%s4567_s0 + $0x340] sm:$0xff]  ;;  %v119_v17 = vld [vmem:[%s4567_s0 + $0x348] sm:$0xff]  ;;  %v20_v18 = vld [vmem:[%s4567_s0 + $0x30] sm:$0xff] }
   0x7   :  { %2763 = vmatprep.mubr.msk.f32.mxu1 %vm218_vm1, %v114_v7  ;;  %v120_v19 = vld [vmem:[%s4567_s0 + $0x350] sm:$0xff]  ;;  %v21_v20 = vld [vmem:[%s4567_s0 + $0x38] sm:$0xff]  ;;  %v22_v22 = vld [vmem:[%s4567_s0 + $0x40] sm:$0xff] }
   0x8   :  { %v121_v21 = vld [vmem:[%s4567_s0 + $0x358] sm:$0xff]  ;;  %v122_v23 = vld [vmem:[%s4567_s0 + $0x360] sm:$0xff]  ;;  %v23_v24 = vld [vmem:[%s4567_s0 + $0x48] sm:$0xff] }
   0x9   :  { %2922 = vmatpush3.bf16.msk.msra.mxu0 %vm2918_vm3, %v2917_v6  ;;  %2926 = vmatpush3.bf16.msk.msra.mxu1 %vm2918_vm3, %v2917_v6  ;;  %v123_v25 = vld [vmem:[%s4567_s0 + $0x368] sm:$0xff]  ;;  %v24_v26 = vld [vmem:[%s4567_s0 + $0x50] sm:$0xff]  ;;  %v25_v28 = vld [vmem:[%s4567_s0 + $0x58] sm:$0xff] }
   0xa   :  { %v124_v27 = vld [vmem:[%s4567_s0 + $0x370] sm:$0xff]  ;;  %v125_v29 = vld [vmem:[%s4567_s0 + $0x378] sm:$0xff]  ;;  %v26_v30 = vld [vmem:[%s4567_s0 + $0x60] sm:$0xff] }
   0xb   :  { %v126_v31 = vld [vmem:[%s4567_s0 + $0x380] sm:$0xff]  ;;  %v27_v32 = vld [vmem:[%s4567_s0 + $0x68] sm:$0xff]  ;;  %v28_v34 = vld [vmem:[%s4567_s0 + $0x70] sm:$0xff] }
   0xc   :  { %2614 = vmatmul.mubr.msk.f32.vlgmr.msra.gmra.mrb[0].mxu0 %vm218_vm1, %v15_v8  ;;  %2764 = vmatmul.mubr.msk.f32.vlgmr.msra.gmra.mrb[0].mxu1 %vm218_vm1, %v115_v9  ;;  %v127_v33 = vld [vmem:[%s4567_s0 + $0x388] sm:$0xff]  ;;  %v128_v35 = vld [vmem:[%s4567_s0 + $0x390] sm:$0xff]  ;;  %v29_v36 = vld [vmem:[%s4567_s0 + $0x78] sm:$0xff] }
   0xd   :  { %2616 = vmatprep.mubr.msk.f32.mxu0 %vm218_vm1, %v16_v10  ;;  %2766 = vmatprep.mubr.msk.f32.mxu1 %vm218_vm1, %v116_v11  ;;  %v129_v37 = vld [vmem:[%s4567_s0 + $0x398] sm:$0xff]  ;;  %v30_v38 = vld [vmem:[%s4567_s0 + $0x80] sm:$0xff]  ;;  %v31_v40 = vld [vmem:[%s4567_s0 + $0x88] sm:$0xff] }
   0xe   :  { %v130_v39 = vld [vmem:[%s4567_s0 + $0x3a0] sm:$0xff]  ;;  %v131_v41 = vld [vmem:[%s4567_s0 + $0x3a8] sm:$0xff]  ;;  %v32_v42 = vld [vmem:[%s4567_s0 + $0x90] sm:$0xff] }
   0xf   :  { %v132_v43 = vld [vmem:[%s4567_s0 + $0x3b0] sm:$0xff]  ;;  %v33_v44 = vld [vmem:[%s4567_s0 + $0x98] sm:$0xff]  ;;  %v34_v46 = vld [vmem:[%s4567_s0 + $0xa0] sm:$0xff] }
  0x10   :  { %2617 = vmatmul.mubr.msk.f32.gmra.mrb[2].mxu0 %vm218_vm1, %v17_v12  ;;  %2767 = vmatmul.mubr.msk.f32.gmra.mrb[2].mxu1 %vm218_vm1, %v117_v13  ;;  %v133_v45 = vld [vmem:[%s4567_s0 + $0x3b8] sm:$0xff]  ;;  %v134_v47 = vld [vmem:[%s4567_s0 + $0x3c0] sm:$0xff]  ;;  %v35_v48 = vld [vmem:[%s4567_s0 + $0xa8] sm:$0xff] }
  0x11   :  { %2619 = vmatprep.mubr.msk.f32.mxu0 %vm218_vm1, %v18_v14  ;;  %2769 = vmatprep.mubr.msk.f32.mxu1 %vm218_vm1, %v118_v15  ;;  %v135_v49 = vld [vmem:[%s4567_s0 + $0x3c8] sm:$0xff]  ;;  %v36_v50 = vld [vmem:[%s4567_s0 + $0xb0] sm:$0xff]  ;;  %v37_v52 = vld [vmem:[%s4567_s0 + $0xb8] sm:$0xff] }
  0x12   :  { %v136_v51 = vld [vmem:[%s4567_s0 + $0x3d0] sm:$0xff]  ;;  %v137_v53 = vld [vmem:[%s4567_s0 + $0x3d8] sm:$0xff]  ;;  %v38_v54 = vld [vmem:[%s4567_s0 + $0xc0] sm:$0xff] }
  0x13   :  { %v138_v55 = vld [vmem:[%s4567_s0 + $0x3e0] sm:$0xff]  ;;  %v39_v56 = vld [vmem:[%s4567_s0 + $0xc8] sm:$0xff]  ;;  %v40_v58 = vld [vmem:[%s4567_s0 + $0xd0] sm:$0xff] }
  0x14   :  { %2620 = vmatmul.mubr.msk.f32.gmra.mrb[4].mxu0 %vm218_vm1, %v19_v16  ;;  %2770 = vmatmul.mubr.msk.f32.gmra.mrb[4].mxu1 %vm218_vm1, %v119_v17  ;;  %v139_v57 = vld [vmem:[%s4567_s0 + $0x3e8] sm:$0xff]  ;;  %v140_v59 = vld [vmem:[%s4567_s0 + $0x3f0] sm:$0xff]  ;;  %v41_v60 = vld [vmem:[%s4567_s0 + $0xd8] sm:$0xff] }
  0x15   :  { %2622 = vmatprep.mubr.msk.f32.mxu0 %vm218_vm1, %v20_v18  ;;  %2772 = vmatprep.mubr.msk.f32.mxu1 %vm218_vm1, %v120_v19  ;;  %v141_v61 = vld [vmem:[%s4567_s0 + $0x3f8] sm:$0xff]  ;;  %v42_v62 = vld [vmem:[%s4567_s0 + $0xe0] sm:$0xff]  ;;  %v43_v0 = vld [vmem:[%s4567_s0 + $0xe8] sm:$0xff] }
  0x16   :  { %v142_v63 = vld [vmem:[%s4567_s0 + $0x400] sm:$0xff]  ;;  %v143_v1 = vld [vmem:[%s4567_s0 + $0x408] sm:$0xff]  ;;  %v44_v2 = vld [vmem:[%s4567_s0 + $0xf0] sm:$0xff] }
  0x17   :  { %v144_v3 = vld [vmem:[%s4567_s0 + $0x410] sm:$0xff]  ;;  %v45_v4 = vld [vmem:[%s4567_s0 + $0xf8] sm:$0xff]  ;;  %v46_v6 = vld [vmem:[%s4567_s0 + $0x100] sm:$0xff] }
  0x18   :  { %2623 = vmatmul.mubr.msk.f32.gmra.mrb[6].mxu0 %vm218_vm1, %v21_v20  ;;  %2773 = vmatmul.mubr.msk.f32.gmra.mrb[6].mxu1 %vm218_vm1, %v121_v21  ;;  %v145_v5 = vld [vmem:[%s4567_s0 + $0x418] sm:$0xff]  ;;  %v146_v7 = vld [vmem:[%s4567_s0 + $0x420] sm:$0xff]  ;;  %v47_v8 = vld [vmem:[%s4567_s0 + $0x108] sm:$0xff] }
  0x19   :  { %2625 = vmatprep.mubr.msk.f32.mxu0 %vm218_vm1, %v22_v22  ;;  %2775 = vmatprep.mubr.msk.f32.mxu1 %vm218_vm1, %v122_v23  ;;  %v147_v9 = vld [vmem:[%s4567_s0 + $0x428] sm:$0xff]  ;;  %v48_v10 = vld [vmem:[%s4567_s0 + $0x110] sm:$0xff]  ;;  %v49_v12 = vld [vmem:[%s4567_s0 + $0x118] sm:$0xff] }
  0x1a   :  { %v148_v11 = vld [vmem:[%s4567_s0 + $0x430] sm:$0xff]  ;;  %v149_v13 = vld [vmem:[%s4567_s0 + $0x438] sm:$0xff]  ;;  %v50_v14 = vld [vmem:[%s4567_s0 + $0x120] sm:$0xff] }
  0x1b   :  { %v150_v15 = vld [vmem:[%s4567_s0 + $0x440] sm:$0xff]  ;;  %v51_v16 = vld [vmem:[%s4567_s0 + $0x128] sm:$0xff]  ;;  %v52_v18 = vld [vmem:[%s4567_s0 + $0x130] sm:$0xff] }
  0x1c   :  { %2626 = vmatmul.mubr.msk.f32.gmra.mrb[8].mxu0 %vm218_vm1, %v23_v24  ;;  %2776 = vmatmul.mubr.msk.f32.gmra.mrb[8].mxu1 %vm218_vm1, %v123_v25  ;;  %v151_v17 = vld [vmem:[%s4567_s0 + $0x448] sm:$0xff]  ;;  %v152_v19 = vld [vmem:[%s4567_s0 + $0x450] sm:$0xff]  ;;  %v53_v20 = vld [vmem:[%s4567_s0 + $0x138] sm:$0xff] }
  0x1d   :  { %2628 = vmatprep.mubr.msk.f32.mxu0 %vm218_vm1, %v24_v26  ;;  %2778 = vmatprep.mubr.msk.f32.mxu1 %vm218_vm1, %v124_v27  ;;  %v153_v21 = vld [vmem:[%s4567_s0 + $0x458] sm:$0xff]  ;;  %v54_v22 = vld [vmem:[%s4567_s0 + $0x140] sm:$0xff]  ;;  %v55_v24 = vld [vmem:[%s4567_s0 + $0x148] sm:$0xff] }
  0x1e   :  { %v154_v23 = vld [vmem:[%s4567_s0 + $0x460] sm:$0xff]  ;;  %v155_v25 = vld [vmem:[%s4567_s0 + $0x468] sm:$0xff]  ;;  %v56_v26 = vld [vmem:[%s4567_s0 + $0x150] sm:$0xff] }
  0x1f   :  { %v156_v27 = vld [vmem:[%s4567_s0 + $0x470] sm:$0xff] }
  0x20   :  { %2629 = vmatmul.mubr.msk.f32.gmra.mrb[10].mxu0 %vm218_vm1, %v25_v28  ;;  %2779 = vmatmul.mubr.msk.f32.gmra.mrb[10].mxu1 %vm218_vm1, %v125_v29  ;;  %v57_v28 = vld [vmem:[%s4567_s0 + $0x158] sm:$0xff] }
  0x21   :  { %2631 = vmatprep.mubr.msk.f32.mxu0 %vm218_vm1, %v26_v30  ;;  %2781 = vmatprep.mubr.msk.f32.mxu1 %vm218_vm1, %v126_v31  ;;  %v157_v29 = vld [vmem:[%s4567_s0 + $0x478] sm:$0xff]  ;;  %v58_v30 = vld [vmem:[%s4567_s0 + $0x160] sm:$0xff] }
  0x22   :  { %v158_v31 = vld [vmem:[%s4567_s0 + $0x480] sm:$0xff] }
  0x24   :  { %2632 = vmatmul.mubr.msk.f32.gmra.mrb[12].mxu0 %vm218_vm1, %v27_v32  ;;  %2782 = vmatmul.mubr.msk.f32.gmra.mrb[12].mxu1 %vm218_vm1, %v127_v33  ;;  %v59_v32 = vld [vmem:[%s4567_s0 + $0x168] sm:$0xff] }
  0x25   :  { %2634 = vmatprep.mubr.msk.f32.mxu0 %vm218_vm1, %v28_v34  ;;  %2784 = vmatprep.mubr.msk.f32.mxu1 %vm218_vm1, %v128_v35  ;;  %v159_v33 = vld [vmem:[%s4567_s0 + $0x488] sm:$0xff]  ;;  %v60_v34 = vld [vmem:[%s4567_s0 + $0x170] sm:$0xff] }
  0x26   :  { %v160_v35 = vld [vmem:[%s4567_s0 + $0x490] sm:$0xff] }
  0x28   :  { %2635 = vmatmul.mubr.msk.f32.gmra.mrb[14].mxu0 %vm218_vm1, %v29_v36  ;;  %2785 = vmatmul.mubr.msk.f32.gmra.mrb[14].mxu1 %vm218_vm1, %v129_v37  ;;  %v61_v36 = vld [vmem:[%s4567_s0 + $0x178] sm:$0xff] }
  0x29   :  { %2637 = vmatprep.mubr.msk.f32.mxu0 %vm218_vm1, %v30_v38  ;;  %2787 = vmatprep.mubr.msk.f32.mxu1 %vm218_vm1, %v130_v39  ;;  %v161_v37 = vld [vmem:[%s4567_s0 + $0x498] sm:$0xff]  ;;  %v62_v38 = vld [vmem:[%s4567_s0 + $0x180] sm:$0xff] }
  0x2a   :  { %v162_v39 = vld [vmem:[%s4567_s0 + $0x4a0] sm:$0xff] }
  0x2c   :  { %2638 = vmatmul.mubr.msk.f32.gmra.mrb[16].mxu0 %vm218_vm1, %v31_v40  ;;  %2788 = vmatmul.mubr.msk.f32.gmra.mrb[16].mxu1 %vm218_vm1, %v131_v41  ;;  %v63_v40 = vld [vmem:[%s4567_s0 + $0x188] sm:$0xff] }
  0x2d   :  { %2640 = vmatprep.mubr.msk.f32.mxu0 %vm218_vm1, %v32_v42  ;;  %2790 = vmatprep.mubr.msk.f32.mxu1 %vm218_vm1, %v132_v43  ;;  %v163_v41 = vld [vmem:[%s4567_s0 + $0x4a8] sm:$0xff]  ;;  %v64_v42 = vld [vmem:[%s4567_s0 + $0x190] sm:$0xff] }
  0x2e   :  { %v164_v43 = vld [vmem:[%s4567_s0 + $0x4b0] sm:$0xff] }
  0x30   :  { %2641 = vmatmul.mubr.msk.f32.gmra.mrb[18].mxu0 %vm218_vm1, %v33_v44  ;;  %2791 = vmatmul.mubr.msk.f32.gmra.mrb[18].mxu1 %vm218_vm1, %v133_v45  ;;  %v65_v44 = vld [vmem:[%s4567_s0 + $0x198] sm:$0xff] }
  0x31   :  { %2643 = vmatprep.mubr.msk.f32.mxu0 %vm218_vm1, %v34_v46  ;;  %2793 = vmatprep.mubr.msk.f32.mxu1 %vm218_vm1, %v134_v47  ;;  %v165_v45 = vld [vmem:[%s4567_s0 + $0x4b8] sm:$0xff]  ;;  %v66_v46 = vld [vmem:[%s4567_s0 + $0x1a0] sm:$0xff] }
  0x32   :  { %v166_v47 = vld [vmem:[%s4567_s0 + $0x4c0] sm:$0xff] }
  0x34   :  { %2644 = vmatmul.mubr.msk.f32.gmra.mrb[20].mxu0 %vm218_vm1, %v35_v48  ;;  %2794 = vmatmul.mubr.msk.f32.gmra.mrb[20].mxu1 %vm218_vm1, %v135_v49  ;;  %v67_v48 = vld [vmem:[%s4567_s0 + $0x1a8] sm:$0xff] }
  0x35   :  { %2646 = vmatprep.mubr.msk.f32.mxu0 %vm218_vm1, %v36_v50  ;;  %2796 = vmatprep.mubr.msk.f32.mxu1 %vm218_vm1, %v136_v51  ;;  %v167_v49 = vld [vmem:[%s4567_s0 + $0x4c8] sm:$0xff]  ;;  %v68_v50 = vld [vmem:[%s4567_s0 + $0x1b0] sm:$0xff] }
  0x36   :  { %v168_v51 = vld [vmem:[%s4567_s0 + $0x4d0] sm:$0xff] }
  0x38   :  { %2647 = vmatmul.mubr.msk.f32.gmra.mrb[22].mxu0 %vm218_vm1, %v37_v52  ;;  %2797 = vmatmul.mubr.msk.f32.gmra.mrb[22].mxu1 %vm218_vm1, %v137_v53  ;;  %v69_v52 = vld [vmem:[%s4567_s0 + $0x1b8] sm:$0xff] }
  0x39   :  { %2649 = vmatprep.mubr.msk.f32.mxu0 %vm218_vm1, %v38_v54  ;;  %2799 = vmatprep.mubr.msk.f32.mxu1 %vm218_vm1, %v138_v55  ;;  %v169_v53 = vld [vmem:[%s4567_s0 + $0x4d8] sm:$0xff]  ;;  %v70_v54 = vld [vmem:[%s4567_s0 + $0x1c0] sm:$0xff] }
  0x3a   :  { %v170_v55 = vld [vmem:[%s4567_s0 + $0x4e0] sm:$0xff] }
  0x3c   :  { %2650 = vmatmul.mubr.msk.f32.gmra.mrb[24].mxu0 %vm218_vm1, %v39_v56  ;;  %2800 = vmatmul.mubr.msk.f32.gmra.mrb[24].mxu1 %vm218_vm1, %v139_v57  ;;  %v71_v56 = vld [vmem:[%s4567_s0 + $0x1c8] sm:$0xff] }
  0x3d   :  { %2652 = vmatprep.mubr.msk.f32.mxu0 %vm218_vm1, %v40_v58  ;;  %2802 = vmatprep.mubr.msk.f32.mxu1 %vm218_vm1, %v140_v59  ;;  %v171_v57 = vld [vmem:[%s4567_s0 + $0x4e8] sm:$0xff]  ;;  %v72_v58 = vld [vmem:[%s4567_s0 + $0x1d0] sm:$0xff] }
  0x3e   :  { %v172_v59 = vld [vmem:[%s4567_s0 + $0x4f0] sm:$0xff] }
  0x40   :  { %2653 = vmatmul.mubr.msk.f32.gmra.mrb[26].mxu0 %vm218_vm1, %v41_v60  ;;  %2803 = vmatmul.mubr.msk.f32.gmra.mrb[26].mxu1 %vm218_vm1, %v141_v61  ;;  %v73_v60 = vld [vmem:[%s4567_s0 + $0x1d8] sm:$0xff] }
  0x41   :  { %2655 = vmatprep.mubr.msk.f32.mxu0 %vm218_vm1, %v42_v62  ;;  %2805 = vmatprep.mubr.msk.f32.mxu1 %vm218_vm1, %v142_v63  ;;  %v173_v61 = vld [vmem:[%s4567_s0 + $0x4f8] sm:$0xff]  ;;  %v74_v62 = vld [vmem:[%s4567_s0 + $0x1e0] sm:$0xff] }
  0x42   :  { %v174_v63 = vld [vmem:[%s4567_s0 + $0x500] sm:$0xff] }
  0x44   :  { %2656 = vmatmul.mubr.msk.f32.gmra.mrb[28].mxu0 %vm218_vm1, %v43_v0  ;;  %2806 = vmatmul.mubr.msk.f32.gmra.mrb[28].mxu1 %vm218_vm1, %v143_v1  ;;  %v75_v0 = vld [vmem:[%s4567_s0 + $0x1e8] sm:$0xff] }
  0x45   :  { %2658 = vmatprep.mubr.msk.f32.mxu0 %vm218_vm1, %v44_v2  ;;  %2808 = vmatprep.mubr.msk.f32.mxu1 %vm218_vm1, %v144_v3  ;;  %v175_v1 = vld [vmem:[%s4567_s0 + $0x508] sm:$0xff]  ;;  %v76_v2 = vld [vmem:[%s4567_s0 + $0x1f0] sm:$0xff] }
  0x46   :  { %v176_v3 = vld [vmem:[%s4567_s0 + $0x510] sm:$0xff] }
  0x48   :  { %2659 = vmatmul.mubr.msk.f32.gmra.mrb[30].mxu0 %vm218_vm1, %v45_v4  ;;  %2809 = vmatmul.mubr.msk.f32.gmra.mrb[30].mxu1 %vm218_vm1, %v145_v5  ;;  %v77_v4 = vld [vmem:[%s4567_s0 + $0x1f8] sm:$0xff] }
  0x49   :  { %2661 = vmatprep.mubr.msk.f32.mxu0 %vm218_vm1, %v46_v6  ;;  %2811 = vmatprep.mubr.msk.f32.mxu1 %vm218_vm1, %v146_v7  ;;  %v177_v5 = vld [vmem:[%s4567_s0 + $0x518] sm:$0xff]  ;;  %v78_v6 = vld [vmem:[%s4567_s0 + $0x200] sm:$0xff] }
  0x4a   :  { %v178_v7 = vld [vmem:[%s4567_s0 + $0x520] sm:$0xff] }
  0x4c   :  { %2662 = vmatmul.mubr.msk.f32.gmra.mrb[32].mxu0 %vm218_vm1, %v47_v8  ;;  %2812 = vmatmul.mubr.msk.f32.gmra.mrb[32].mxu1 %vm218_vm1, %v147_v9  ;;  %v79_v8 = vld [vmem:[%s4567_s0 + $0x208] sm:$0xff] }
  0x4d   :  { %2664 = vmatprep.mubr.msk.f32.mxu0 %vm218_vm1, %v48_v10  ;;  %2814 = vmatprep.mubr.msk.f32.mxu1 %vm218_vm1, %v148_v11  ;;  %v179_v9 = vld [vmem:[%s4567_s0 + $0x528] sm:$0xff]  ;;  %v80_v10 = vld [vmem:[%s4567_s0 + $0x210] sm:$0xff] }
  0x4e   :  { %v180_v11 = vld [vmem:[%s4567_s0 + $0x530] sm:$0xff] }
  0x50   :  { %2665 = vmatmul.mubr.msk.f32.gmra.mrb[34].mxu0 %vm218_vm1, %v49_v12  ;;  %2815 = vmatmul.mubr.msk.f32.gmra.mrb[34].mxu1 %vm218_vm1, %v149_v13  ;;  %v81_v12 = vld [vmem:[%s4567_s0 + $0x218] sm:$0xff] }
  0x51   :  { %2667 = vmatprep.mubr.msk.f32.mxu0 %vm218_vm1, %v50_v14  ;;  %2817 = vmatprep.mubr.msk.f32.mxu1 %vm218_vm1, %v150_v15  ;;  %v181_v13 = vld [vmem:[%s4567_s0 + $0x538] sm:$0xff]  ;;  %v82_v14 = vld [vmem:[%s4567_s0 + $0x220] sm:$0xff] }
  0x52   :  { %v182_v15 = vld [vmem:[%s4567_s0 + $0x540] sm:$0xff] }
  0x54   :  { %2668 = vmatmul.mubr.msk.f32.gmra.mrb[36].mxu0 %vm218_vm1, %v51_v16  ;;  %2818 = vmatmul.mubr.msk.f32.gmra.mrb[36].mxu1 %vm218_vm1, %v151_v17  ;;  %v83_v16 = vld [vmem:[%s4567_s0 + $0x228] sm:$0xff] }
  0x55   :  { %2670 = vmatprep.mubr.msk.f32.mxu0 %vm218_vm1, %v52_v18  ;;  %2820 = vmatprep.mubr.msk.f32.mxu1 %vm218_vm1, %v152_v19  ;;  %v183_v17 = vld [vmem:[%s4567_s0 + $0x548] sm:$0xff]  ;;  %v84_v18 = vld [vmem:[%s4567_s0 + $0x230] sm:$0xff] }
  0x56   :  { %v184_v19 = vld [vmem:[%s4567_s0 + $0x550] sm:$0xff] }
  0x58   :  { %2671 = vmatmul.mubr.msk.f32.gmra.mrb[38].mxu0 %vm218_vm1, %v53_v20  ;;  %2821 = vmatmul.mubr.msk.f32.gmra.mrb[38].mxu1 %vm218_vm1, %v153_v21  ;;  %v85_v20 = vld [vmem:[%s4567_s0 + $0x238] sm:$0xff] }
  0x59   :  { %2673 = vmatprep.mubr.msk.f32.mxu0 %vm218_vm1, %v54_v22  ;;  %2823 = vmatprep.mubr.msk.f32.mxu1 %vm218_vm1, %v154_v23  ;;  %v185_v21 = vld [vmem:[%s4567_s0 + $0x558] sm:$0xff]  ;;  %v86_v22 = vld [vmem:[%s4567_s0 + $0x240] sm:$0xff] }
  0x5a   :  { %v186_v23 = vld [vmem:[%s4567_s0 + $0x560] sm:$0xff] }
  0x5c   :  { %2674 = vmatmul.mubr.msk.f32.gmra.mrb[40].mxu0 %vm218_vm1, %v55_v24  ;;  %2824 = vmatmul.mubr.msk.f32.gmra.mrb[40].mxu1 %vm218_vm1, %v155_v25  ;;  %v87_v24 = vld [vmem:[%s4567_s0 + $0x248] sm:$0xff] }
  0x5d   :  { %2676 = vmatprep.mubr.msk.f32.mxu0 %vm218_vm1, %v56_v26  ;;  %2826 = vmatprep.mubr.msk.f32.mxu1 %vm218_vm1, %v156_v27  ;;  %v187_v25 = vld [vmem:[%s4567_s0 + $0x568] sm:$0xff]  ;;  %v88_v26 = vld [vmem:[%s4567_s0 + $0x250] sm:$0xff] }
  0x5e   :  { %v188_v27 = vld [vmem:[%s4567_s0 + $0x570] sm:$0xff] }
  0x60   :  { %2677 = vmatmul.mubr.msk.f32.gmra.mrb[42].mxu0 %vm218_vm1, %v57_v28  ;;  %2827 = vmatmul.mubr.msk.f32.gmra.mrb[42].mxu1 %vm218_vm1, %v157_v29  ;;  %v89_v28 = vld [vmem:[%s4567_s0 + $0x258] sm:$0xff] }
  0x61   :  { %2679 = vmatprep.mubr.msk.f32.mxu0 %vm218_vm1, %v58_v30  ;;  %2829 = vmatprep.mubr.msk.f32.mxu1 %vm218_vm1, %v158_v31  ;;  %v189_v29 = vld [vmem:[%s4567_s0 + $0x578] sm:$0xff]  ;;  %v90_v30 = vld [vmem:[%s4567_s0 + $0x260] sm:$0xff] }
  0x62   :  { %v190_v31 = vld [vmem:[%s4567_s0 + $0x580] sm:$0xff] }
  0x64   :  { %2680 = vmatmul.mubr.msk.f32.gmra.mrb[44].mxu0 %vm218_vm1, %v59_v32  ;;  %2830 = vmatmul.mubr.msk.f32.gmra.mrb[44].mxu1 %vm218_vm1, %v159_v33  ;;  %v91_v32 = vld [vmem:[%s4567_s0 + $0x268] sm:$0xff] }
  0x65   :  { %2682 = vmatprep.mubr.msk.f32.mxu0 %vm218_vm1, %v60_v34  ;;  %2832 = vmatprep.mubr.msk.f32.mxu1 %vm218_vm1, %v160_v35  ;;  %v191_v33 = vld [vmem:[%s4567_s0 + $0x588] sm:$0xff]  ;;  %v92_v34 = vld [vmem:[%s4567_s0 + $0x270] sm:$0xff] }
  0x66   :  { %v192_v35 = vld [vmem:[%s4567_s0 + $0x590] sm:$0xff] }
  0x68   :  { %2683 = vmatmul.mubr.msk.f32.gmra.mrb[46].mxu0 %vm218_vm1, %v61_v36  ;;  %2833 = vmatmul.mubr.msk.f32.gmra.mrb[46].mxu1 %vm218_vm1, %v161_v37  ;;  %v93_v36 = vld [vmem:[%s4567_s0 + $0x278] sm:$0xff] }
  0x69   :  { %2685 = vmatprep.mubr.msk.f32.mxu0 %vm218_vm1, %v62_v38  ;;  %2835 = vmatprep.mubr.msk.f32.mxu1 %vm218_vm1, %v162_v39  ;;  %v193_v37 = vld [vmem:[%s4567_s0 + $0x598] sm:$0xff]  ;;  %v94_v38 = vld [vmem:[%s4567_s0 + $0x280] sm:$0xff] }
  0x6a   :  { %v194_v39 = vld [vmem:[%s4567_s0 + $0x5a0] sm:$0xff] }
  0x6c   :  { %2686 = vmatmul.mubr.msk.f32.gmra.mrb[48].mxu0 %vm218_vm1, %v63_v40  ;;  %2836 = vmatmul.mubr.msk.f32.gmra.mrb[48].mxu1 %vm218_vm1, %v163_v41  ;;  %v95_v40 = vld [vmem:[%s4567_s0 + $0x288] sm:$0xff] }
  0x6d   :  { %2688 = vmatprep.mubr.msk.f32.mxu0 %vm218_vm1, %v64_v42  ;;  %2838 = vmatprep.mubr.msk.f32.mxu1 %vm218_vm1, %v164_v43  ;;  %v195_v41 = vld [vmem:[%s4567_s0 + $0x5a8] sm:$0xff]  ;;  %v96_v42 = vld [vmem:[%s4567_s0 + $0x290] sm:$0xff] }
  0x6e   :  { %v196_v43 = vld [vmem:[%s4567_s0 + $0x5b0] sm:$0xff] }
  0x70   :  { %2689 = vmatmul.mubr.msk.f32.gmra.mrb[50].mxu0 %vm218_vm1, %v65_v44  ;;  %2839 = vmatmul.mubr.msk.f32.gmra.mrb[50].mxu1 %vm218_vm1, %v165_v45  ;;  %v97_v44 = vld [vmem:[%s4567_s0 + $0x298] sm:$0xff] }
  0x71   :  { %2691 = vmatprep.mubr.msk.f32.mxu0 %vm218_vm1, %v66_v46  ;;  %2841 = vmatprep.mubr.msk.f32.mxu1 %vm218_vm1, %v166_v47  ;;  %v197_v45 = vld [vmem:[%s4567_s0 + $0x5b8] sm:$0xff]  ;;  %v98_v46 = vld [vmem:[%s4567_s0 + $0x2a0] sm:$0xff] }
  0x72   :  { %v198_v47 = vld [vmem:[%s4567_s0 + $0x5c0] sm:$0xff] }
  0x74   :  { %2692 = vmatmul.mubr.msk.f32.gmra.mrb[52].mxu0 %vm218_vm1, %v67_v48  ;;  %2842 = vmatmul.mubr.msk.f32.gmra.mrb[52].mxu1 %vm218_vm1, %v167_v49  ;;  %v99_v48 = vld [vmem:[%s4567_s0 + $0x2a8] sm:$0xff] }
  0x75   :  { %2694 = vmatprep.mubr.msk.f32.mxu0 %vm218_vm1, %v68_v50  ;;  %2844 = vmatprep.mubr.msk.f32.mxu1 %vm218_vm1, %v168_v51  ;;  %v199_v49 = vld [vmem:[%s4567_s0 + $0x5c8] sm:$0xff]  ;;  %v100_v50 = vld [vmem:[%s4567_s0 + $0x2b0] sm:$0xff] }
  0x76   :  { %v200_v51 = vld [vmem:[%s4567_s0 + $0x5d0] sm:$0xff] }
  0x78   :  { %2695 = vmatmul.mubr.msk.f32.gmra.mrb[54].mxu0 %vm218_vm1, %v69_v52  ;;  %2845 = vmatmul.mubr.msk.f32.gmra.mrb[54].mxu1 %vm218_vm1, %v169_v53  ;;  %v101_v52 = vld [vmem:[%s4567_s0 + $0x2b8] sm:$0xff] }
  0x79   :  { %2697 = vmatprep.mubr.msk.f32.mxu0 %vm218_vm1, %v70_v54  ;;  %2847 = vmatprep.mubr.msk.f32.mxu1 %vm218_vm1, %v170_v55  ;;  %v201_v53 = vld [vmem:[%s4567_s0 + $0x5d8] sm:$0xff]  ;;  %v102_v54 = vld [vmem:[%s4567_s0 + $0x2c0] sm:$0xff] }
  0x7a   :  { %v202_v55 = vld [vmem:[%s4567_s0 + $0x5e0] sm:$0xff] }
  0x7c   :  { %2698 = vmatmul.mubr.msk.f32.gmra.mrb[56].mxu0 %vm218_vm1, %v71_v56  ;;  %2848 = vmatmul.mubr.msk.f32.gmra.mrb[56].mxu1 %vm218_vm1, %v171_v57  ;;  %v103_v56 = vld [vmem:[%s4567_s0 + $0x2c8] sm:$0xff] }
  0x7d   :  { %2700 = vmatprep.mubr.msk.f32.mxu0 %vm218_vm1, %v72_v58  ;;  %2850 = vmatprep.mubr.msk.f32.mxu1 %vm218_vm1, %v172_v59  ;;  %v203_v57 = vld [vmem:[%s4567_s0 + $0x5e8] sm:$0xff]  ;;  %v104_v58 = vld [vmem:[%s4567_s0 + $0x2d0] sm:$0xff] }
  0x7e   :  { %v204_v59 = vld [vmem:[%s4567_s0 + $0x5f0] sm:$0xff] }
  0x80   :  { %2701 = vmatmul.mubr.msk.f32.gmra.mrb[58].mxu0 %vm218_vm1, %v73_v60  ;;  %2851 = vmatmul.mubr.msk.f32.gmra.mrb[58].mxu1 %vm218_vm1, %v173_v61  ;;  %v105_v60 = vld [vmem:[%s4567_s0 + $0x2d8] sm:$0xff] }
  0x81   :  { %2703 = vmatprep.mubr.msk.f32.mxu0 %vm218_vm1, %v74_v62  ;;  %2853 = vmatprep.mubr.msk.f32.mxu1 %vm218_vm1, %v174_v63  ;;  %v205_v61 = vld [vmem:[%s4567_s0 + $0x5f8] sm:$0xff]  ;;  %v106_v62 = vld [vmem:[%s4567_s0 + $0x2e0] sm:$0xff] }
  0x82   :  { %v206_v63 = vld [vmem:[%s4567_s0 + $0x600] sm:$0xff] }
  0x84   :  { %2704 = vmatmul.mubr.msk.f32.gmra.mrb[60].mxu0 %vm218_vm1, %v75_v0  ;;  %2854 = vmatmul.mubr.msk.f32.gmra.mrb[60].mxu1 %vm218_vm1, %v175_v1  ;;  %v107_v0 = vld [vmem:[%s4567_s0 + $0x2e8] sm:$0xff] }
  0x85   :  { %2706 = vmatprep.mubr.msk.f32.mxu0 %vm218_vm1, %v76_v2  ;;  %2856 = vmatprep.mubr.msk.f32.mxu1 %vm218_vm1, %v176_v3  ;;  %v207_v1 = vld [vmem:[%s4567_s0 + $0x608] sm:$0xff]  ;;  %v108_v2 = vld [vmem:[%s4567_s0 + $0x2f0] sm:$0xff] }
  0x86   :  { %v208_v3 = vld [vmem:[%s4567_s0 + $0x610] sm:$0xff] }
  0x88   :  { %2707 = vmatmul.mubr.msk.f32.gmra.mrb[62].mxu0 %vm218_vm1, %v77_v4  ;;  %2857 = vmatmul.mubr.msk.f32.gmra.mrb[62].mxu1 %vm218_vm1, %v177_v5  ;;  %v109_v4 = vld [vmem:[%s4567_s0 + $0x2f8] sm:$0xff] }
  0x89   :  { %2709 = vmatprep.mubr.msk.f32.mxu0 %vm218_vm1, %v78_v6  ;;  %2859 = vmatprep.mubr.msk.f32.mxu1 %vm218_vm1, %v178_v7  ;;  %v209_v5 = vld [vmem:[%s4567_s0 + $0x618] sm:$0xff]  ;;  %v110_v6 = vld [vmem:[%s4567_s0 + $0x300] sm:$0xff] }
  0x8a   :  { %v210_v7 = vld [vmem:[%s4567_s0 + $0x620] sm:$0xff] }
  0x8c   :  { %2710 = vmatmul.mubr.msk.f32.gmra.mrb[64].mxu0 %vm218_vm1, %v79_v8  ;;  %2860 = vmatmul.mubr.msk.f32.gmra.mrb[64].mxu1 %vm218_vm1, %v179_v9  ;;  %v111_v8 = vld [vmem:[%s4567_s0 + $0x308] sm:$0xff] }
  0x8d   :  { %2712 = vmatprep.mubr.msk.f32.mxu0 %vm218_vm1, %v80_v10  ;;  %2862 = vmatprep.mubr.msk.f32.mxu1 %vm218_vm1, %v180_v11  ;;  %v211_v9 = vld [vmem:[%s4567_s0 + $0x628] sm:$0xff]  ;;  %v112_v10 = vld [vmem:[%s4567_s0 + $0x310] sm:$0xff] }
  0x8e   :  { %v212_v11 = vld [vmem:[%s4567_s0 + $0x630] sm:$0xff] }
  0x90   :  { %2713 = vmatmul.mubr.msk.f32.gmra.mrb[66].mxu0 %vm218_vm1, %v81_v12  ;;  %2863 = vmatmul.mubr.msk.f32.gmra.mrb[66].mxu1 %vm218_vm1, %v181_v13  ;;  %v113_v12 = vld [vmem:[%s4567_s0 + $0x318] sm:$0xff] }
  0x91   :  { %2715 = vmatprep.mubr.msk.f32.mxu0 %vm218_vm1, %v82_v14  ;;  %2865 = vmatprep.mubr.msk.f32.mxu1 %vm218_vm1, %v182_v15  ;;  %v213_v13 = vld [vmem:[%s4567_s0 + $0x638] sm:$0xff] }
  0x94   :  { %2716 = vmatmul.mubr.msk.f32.gmra.mrb[68].mxu0 %vm218_vm1, %v83_v16  ;;  %2866 = vmatmul.mubr.msk.f32.gmra.mrb[68].mxu1 %vm218_vm1, %v183_v17 }
  0x95   :  { %2718 = vmatprep.mubr.msk.f32.mxu0 %vm218_vm1, %v84_v18  ;;  %2868 = vmatprep.mubr.msk.f32.mxu1 %vm218_vm1, %v184_v19 }
  0x98   :  { %2719 = vmatmul.mubr.msk.f32.gmra.mrb[70].mxu0 %vm218_vm1, %v85_v20  ;;  %2869 = vmatmul.mubr.msk.f32.gmra.mrb[70].mxu1 %vm218_vm1, %v185_v21 }
  0x99   :  { %2721 = vmatprep.mubr.msk.f32.mxu0 %vm218_vm1, %v86_v22  ;;  %2871 = vmatprep.mubr.msk.f32.mxu1 %vm218_vm1, %v186_v23 }
  0x9c   :  { %2722 = vmatmul.mubr.msk.f32.gmra.mrb[72].mxu0 %vm218_vm1, %v87_v24  ;;  %2872 = vmatmul.mubr.msk.f32.gmra.mrb[72].mxu1 %vm218_vm1, %v187_v25 }
  0x9d   :  { %2724 = vmatprep.mubr.msk.f32.mxu0 %vm218_vm1, %v88_v26  ;;  %2874 = vmatprep.mubr.msk.f32.mxu1 %vm218_vm1, %v188_v27 }
  0xa0   :  { %2725 = vmatmul.mubr.msk.f32.gmra.mrb[74].mxu0 %vm218_vm1, %v89_v28  ;;  %2875 = vmatmul.mubr.msk.f32.gmra.mrb[74].mxu1 %vm218_vm1, %v189_v29 }
  0xa1   :  { %2727 = vmatprep.mubr.msk.f32.mxu0 %vm218_vm1, %v90_v30  ;;  %2877 = vmatprep.mubr.msk.f32.mxu1 %vm218_vm1, %v190_v31 }
  0xa4   :  { %2728 = vmatmul.mubr.msk.f32.gmra.mrb[76].mxu0 %vm218_vm1, %v91_v32  ;;  %2878 = vmatmul.mubr.msk.f32.gmra.mrb[76].mxu1 %vm218_vm1, %v191_v33 }
  0xa5   :  { %2730 = vmatprep.mubr.msk.f32.mxu0 %vm218_vm1, %v92_v34  ;;  %2880 = vmatprep.mubr.msk.f32.mxu1 %vm218_vm1, %v192_v35 }
  0xa8   :  { %2731 = vmatmul.mubr.msk.f32.gmra.mrb[78].mxu0 %vm218_vm1, %v93_v36  ;;  %2881 = vmatmul.mubr.msk.f32.gmra.mrb[78].mxu1 %vm218_vm1, %v193_v37 }
  0xa9   :  { %2733 = vmatprep.mubr.msk.f32.mxu0 %vm218_vm1, %v94_v38  ;;  %2883 = vmatprep.mubr.msk.f32.mxu1 %vm218_vm1, %v194_v39 }
  0xac   :  { %2734 = vmatmul.mubr.msk.f32.gmra.mrb[80].mxu0 %vm218_vm1, %v95_v40  ;;  %2884 = vmatmul.mubr.msk.f32.gmra.mrb[80].mxu1 %vm218_vm1, %v195_v41 }
  0xad   :  { %2736 = vmatprep.mubr.msk.f32.mxu0 %vm218_vm1, %v96_v42  ;;  %2886 = vmatprep.mubr.msk.f32.mxu1 %vm218_vm1, %v196_v43 }
  0xb0   :  { %2737 = vmatmul.mubr.msk.f32.gmra.mrb[82].mxu0 %vm218_vm1, %v97_v44  ;;  %2887 = vmatmul.mubr.msk.f32.gmra.mrb[82].mxu1 %vm218_vm1, %v197_v45 }
  0xb1   :  { %2739 = vmatprep.mubr.msk.f32.mxu0 %vm218_vm1, %v98_v46  ;;  %2889 = vmatprep.mubr.msk.f32.mxu1 %vm218_vm1, %v198_v47 }
  0xb4   :  { %2740 = vmatmul.mubr.msk.f32.gmra.mrb[84].mxu0 %vm218_vm1, %v99_v48  ;;  %2890 = vmatmul.mubr.msk.f32.gmra.mrb[84].mxu1 %vm218_vm1, %v199_v49 }
  0xb5   :  { %2742 = vmatprep.mubr.msk.f32.mxu0 %vm218_vm1, %v100_v50  ;;  %2892 = vmatprep.mubr.msk.f32.mxu1 %vm218_vm1, %v200_v51 }
  0xb8   :  { %2743 = vmatmul.mubr.msk.f32.gmra.mrb[86].mxu0 %vm218_vm1, %v101_v52  ;;  %2893 = vmatmul.mubr.msk.f32.gmra.mrb[86].mxu1 %vm218_vm1, %v201_v53 }
  0xb9   :  { %2745 = vmatprep.mubr.msk.f32.mxu0 %vm218_vm1, %v102_v54  ;;  %2895 = vmatprep.mubr.msk.f32.mxu1 %vm218_vm1, %v202_v55 }
  0xbc   :  { %2746 = vmatmul.mubr.msk.f32.gmra.mrb[88].mxu0 %vm218_vm1, %v103_v56  ;;  %2896 = vmatmul.mubr.msk.f32.gmra.mrb[88].mxu1 %vm218_vm1, %v203_v57 }
  0xbd   :  { %2748 = vmatprep.mubr.msk.f32.mxu0 %vm218_vm1, %v104_v58  ;;  %2898 = vmatprep.mubr.msk.f32.mxu1 %vm218_vm1, %v204_v59 }
  0xc0   :  { %2749 = vmatmul.mubr.msk.f32.gmra.mrb[90].mxu0 %vm218_vm1, %v105_v60  ;;  %2899 = vmatmul.mubr.msk.f32.gmra.mrb[90].mxu1 %vm218_vm1, %v205_v61 }
  0xc1   :  { %2751 = vmatprep.mubr.msk.f32.mxu0 %vm218_vm1, %v106_v62  ;;  %2901 = vmatprep.mubr.msk.f32.mxu1 %vm218_vm1, %v206_v63 }
  0xc4   :  { %2752 = vmatmul.mubr.msk.f32.gmra.mrb[92].mxu0 %vm218_vm1, %v107_v0  ;;  %2902 = vmatmul.mubr.msk.f32.gmra.mrb[92].mxu1 %vm218_vm1, %v207_v1 }
  0xc5   :  { %2754 = vmatprep.mubr.msk.f32.mxu0 %vm218_vm1, %v108_v2  ;;  %2904 = vmatprep.mubr.msk.f32.mxu1 %vm218_vm1, %v208_v3 }
  0xc8   :  { %2755 = vmatmul.mubr.msk.f32.gmra.mrb[94].mxu0 %vm218_vm1, %v109_v4  ;;  %2905 = vmatmul.mubr.msk.f32.gmra.mrb[94].mxu1 %vm218_vm1, %v209_v5 }
  0xc9   :  { %2757 = vmatprep.mubr.msk.f32.mxu0 %vm218_vm1, %v110_v6  ;;  %2907 = vmatprep.mubr.msk.f32.mxu1 %vm218_vm1, %v210_v7 }
  0xcc   :  { %2758 = vmatmul.mubr.msk.f32.gmra.mrb[96].mxu0 %vm218_vm1, %v111_v8  ;;  %2908 = vmatmul.mubr.msk.f32.gmra.mrb[96].mxu1 %vm218_vm1, %v211_v9 }
  0xcd   :  { %2760 = vmatprep.mubr.msk.f32.mxu0 %vm218_vm1, %v112_v10  ;;  %2910 = vmatprep.mubr.msk.f32.mxu1 %vm218_vm1, %v212_v11 }
  0xd0   :  { %2761 = vmatmul.mubr.msk.f32.gmra.mrb[98].mxu0 %vm218_vm1, %v113_v12  ;;  %2911 = vmatmul.mubr.msk.f32.gmra.mrb[98].mxu1 %vm218_vm1, %v213_v13 }
  0xdf   :  { %v3761_v14 = vpop.f32.mrb[0].mxu0  ;;  %v3763_v15 = vpop.f32.mrb[0].mxu1 }
  0xe0   :  { %v3765_v16 = vpop.f32.mrb[1].mxu0  ;;  %v3767_v17 = vpop.f32.mrb[1].mxu1 }
  0xe3   :  { %v3769_v18 = vpop.f32.mrb[2].mxu0  ;;  %v3771_v19 = vpop.f32.mrb[2].mxu1 }
  0xe4   :  { %v3773_v20 = vpop.f32.mrb[3].mxu0  ;;  %v3775_v21 = vpop.f32.mrb[3].mxu1 }
  0xe5   :  { %4618 = vst [vmem:[#allocation2_spill] sm:$0xff] %v3775_v21 }
  0xe7   :  { %v3777_v22 = vpop.f32.mrb[4].mxu0  ;;  %v3779_v23 = vpop.f32.mrb[4].mxu1 }
  0xe8   :  { %v3781_v24 = vpop.f32.mrb[5].mxu0  ;;  %v3783_v25 = vpop.f32.mrb[5].mxu1 }
  0xe9   :  { %4619 = vst [vmem:[#allocation3_spill] sm:$0xff] %v3781_v24  ;;  %4620 = vst [vmem:[#allocation4_spill] sm:$0xff] %v3783_v25 }
  0xeb   :  { %v3785_v26 = vpop.f32.mrb[6].mxu0  ;;  %v3787_v27 = vpop.f32.mrb[6].mxu1 }
  0xec   :  { %v3789_v28 = vpop.f32.mrb[7].mxu0  ;;  %v3791_v29 = vpop.f32.mrb[7].mxu1 }
  0xed   :  { %4621 = vst [vmem:[#allocation5_spill] sm:$0xff] %v3789_v28  ;;  %4622 = vst [vmem:[#allocation6_spill] sm:$0xff] %v3791_v29 }
  0xef   :  { %v3793_v30 = vpop.f32.mrb[8].mxu0  ;;  %v3795_v31 = vpop.f32.mrb[8].mxu1 }
  0xf0   :  { %v3797_v32 = vpop.f32.mrb[9].mxu0  ;;  %v3799_v33 = vpop.f32.mrb[9].mxu1 }
  0xf1   :  { %4623 = vst [vmem:[#allocation7_spill] sm:$0xff] %v3797_v32  ;;  %4624 = vst [vmem:[#allocation8_spill] sm:$0xff] %v3799_v33 }
  0xf3   :  { %v3801_v34 = vpop.f32.mrb[10].mxu0  ;;  %v3803_v35 = vpop.f32.mrb[10].mxu1 }
  0xf4   :  { %v3805_v36 = vpop.f32.mrb[11].mxu0  ;;  %v3807_v37 = vpop.f32.mrb[11].mxu1 }
  0xf5   :  { %4625 = vst [vmem:[#allocation9_spill] sm:$0xff] %v3805_v36  ;;  %4626 = vst [vmem:[#allocation10_spill] sm:$0xff] %v3807_v37 }
  0xf7   :  { %v3809_v38 = vpop.f32.mrb[12].mxu0  ;;  %v3811_v39 = vpop.f32.mrb[12].mxu1 }
  0xf8   :  { %v3813_v40 = vpop.f32.mrb[13].mxu0  ;;  %v3815_v41 = vpop.f32.mrb[13].mxu1 }
  0xf9   :  { %4627 = vst [vmem:[#allocation11_spill] sm:$0xff] %v3813_v40  ;;  %4628 = vst [vmem:[#allocation12_spill] sm:$0xff] %v3815_v41 }
  0xfb   :  { %v3817_v42 = vpop.f32.mrb[14].mxu0  ;;  %v3819_v43 = vpop.f32.mrb[14].mxu1 }
  0xfc   :  { %v3821_v44 = vpop.f32.mrb[15].mxu0  ;;  %v3823_v45 = vpop.f32.mrb[15].mxu1 }
  0xfd   :  { %4629 = vst [vmem:[#allocation13_spill] sm:$0xff] %v3821_v44  ;;  %4630 = vst [vmem:[#allocation14_spill] sm:$0xff] %v3823_v45 }
  0xff   :  { %v3825_v46 = vpop.f32.mrb[16].mxu0  ;;  %v3827_v47 = vpop.f32.mrb[16].mxu1 }
 0x100   :  { %v3829_v48 = vpop.f32.mrb[17].mxu0  ;;  %v3831_v49 = vpop.f32.mrb[17].mxu1 }
 0x101   :  { %4631 = vst [vmem:[#allocation15_spill] sm:$0xff] %v3829_v48  ;;  %4632 = vst [vmem:[#allocation16_spill] sm:$0xff] %v3831_v49 }
 0x103   :  { %v3833_v50 = vpop.f32.mrb[18].mxu0  ;;  %v3835_v51 = vpop.f32.mrb[18].mxu1 }
 0x104   :  { %v3837_v52 = vpop.f32.mrb[19].mxu0  ;;  %v3839_v53 = vpop.f32.mrb[19].mxu1 }
 0x105   :  { %4633 = vst [vmem:[#allocation17_spill] sm:$0xff] %v3837_v52  ;;  %4634 = vst [vmem:[#allocation18_spill] sm:$0xff] %v3839_v53 }
 0x107   :  { %v3841_v54 = vpop.f32.mrb[20].mxu0  ;;  %v3843_v55 = vpop.f32.mrb[20].mxu1 }
 0x108   :  { %4635 = vst [vmem:[#allocation19_spill] sm:$0xff] %v3843_v55  ;;  %v3845_v56 = vpop.f32.mrb[21].mxu0  ;;  %v3847_v57 = vpop.f32.mrb[21].mxu1 }
 0x109   :  { %4636 = vst [vmem:[#allocation20_spill] sm:$0xff] %v3845_v56  ;;  %4637 = vst [vmem:[#allocation21_spill] sm:$0xff] %v3847_v57 }
 0x10b   :  { %v3849_v58 = vpop.f32.mrb[22].mxu0  ;;  %v3851_v59 = vpop.f32.mrb[22].mxu1 }
 0x10c   :  { %v3853_v60 = vpop.f32.mrb[23].mxu0  ;;  %v3855_v61 = vpop.f32.mrb[23].mxu1 }
 0x10d   :  { %4638 = vst [vmem:[#allocation22_spill] sm:$0xff] %v3853_v60  ;;  %4639 = vst [vmem:[#allocation23_spill] sm:$0xff] %v3855_v61 }
 0x10f   :  { %v3857_v62 = vpop.f32.mrb[24].mxu0  ;;  %v3859_v63 = vpop.f32.mrb[24].mxu1 }
 0x110   :  { %v3865_v2 = vpop.f32.mrb[25].mxu0  ;;  %v3867_v3 = vpop.f32.mrb[25].mxu1  ;;  %v4668_v10 = vmax.f32 %v3765_v16, %v3857_v62  ;;  %v4669_v11 = vmax.f32 %v3767_v17, %v3859_v63  ;;  %v4673_v63 = vld [vmem:[#allocation2_spill] sm:$0xff] }
 0x111   :  { %4640 = vst [vmem:[#allocation24_spill] sm:$0xff] %v3865_v2  ;;  %4641 = vst [vmem:[#allocation25_spill] sm:$0xff] %v3867_v3 }
 0x113   :  { %v3869_v4 = vpop.f32.mrb[26].mxu0  ;;  %v3871_v5 = vpop.f32.mrb[26].mxu1 }
 0x114   :  { %4642 = vst [vmem:[#allocation26_spill] sm:$0xff] %v3871_v5  ;;  %v3877_v8 = vpop.f32.mrb[27].mxu0  ;;  %v3879_v9 = vpop.f32.mrb[27].mxu1  ;;  %v4672_v62 = vmax.f32 %v3773_v20, %v3869_v4 }
 0x115   :  { %v4667_v7 = vmax.f32 %v3763_v15, %v3879_v9 }
 0x117   :  { %v3885_v12 = vpop.f32.mrb[28].mxu0  ;;  %v3887_v13 = vpop.f32.mrb[28].mxu1 }
 0x118   :  { %4643 = vst [vmem:[#allocation27_spill] sm:$0xff] %v3885_v12  ;;  %4644 = vst [vmem:[#allocation28_spill] sm:$0xff] %v3887_v13  ;;  %v3893_v1 = vpop.f32.mrb[29].mxu0  ;;  %v3895_v0 = vpop.f32.mrb[29].mxu1 }
 0x11b   :  { %v3901_v5 = vpop.f32.mrb[30].mxu0  ;;  %v3903_v21 = vpop.f32.mrb[30].mxu1 }
 0x11c   :  { %4645 = vst [vmem:[#allocation29_spill] sm:$0xff] %v3901_v5  ;;  %4646 = vst [vmem:[#allocation30_spill] sm:$0xff] %v3903_v21  ;;  %v3909_v13 = vpop.f32.mrb[31].mxu0  ;;  %v3911_v25 = vpop.f32.mrb[31].mxu1 }
 0x11f   :  { %v3917_v12 = vpop.f32.mrb[32].mxu0  ;;  %v3919_v24 = vpop.f32.mrb[32].mxu1 }
 0x120   :  { %4647 = vst [vmem:[#allocation31_spill] sm:$0xff] %v3917_v12  ;;  %4648 = vst [vmem:[#allocation32_spill] sm:$0xff] %v3919_v24  ;;  %v3925_v21 = vpop.f32.mrb[33].mxu0  ;;  %v3927_v29 = vpop.f32.mrb[33].mxu1 }
 0x123   :  { %v3933_v5 = vpop.f32.mrb[34].mxu0  ;;  %v3935_v28 = vpop.f32.mrb[34].mxu1 }
 0x124   :  { %4649 = vst [vmem:[#allocation33_spill] sm:$0xff] %v3933_v5  ;;  %4650 = vst [vmem:[#allocation34_spill] sm:$0xff] %v3935_v28  ;;  %v3941_v24 = vpop.f32.mrb[35].mxu0  ;;  %v3943_v33 = vpop.f32.mrb[35].mxu1 }
 0x127   :  { %v3949_v12 = vpop.f32.mrb[36].mxu0  ;;  %v3951_v32 = vpop.f32.mrb[36].mxu1 }
 0x128   :  { %4651 = vst [vmem:[#allocation35_spill] sm:$0xff] %v3949_v12  ;;  %4652 = vst [vmem:[#allocation36_spill] sm:$0xff] %v3951_v32  ;;  %v3957_v28 = vpop.f32.mrb[37].mxu0  ;;  %v3959_v37 = vpop.f32.mrb[37].mxu1 }
 0x12b   :  { %v3965_v5 = vpop.f32.mrb[38].mxu0  ;;  %v3967_v36 = vpop.f32.mrb[38].mxu1 }
 0x12c   :  { %4653 = vst [vmem:[#allocation37_spill] sm:$0xff] %v3965_v5  ;;  %4654 = vst [vmem:[#allocation38_spill] sm:$0xff] %v3967_v36  ;;  %v3973_v32 = vpop.f32.mrb[39].mxu0  ;;  %v3975_v41 = vpop.f32.mrb[39].mxu1 }
 0x12f   :  { %v3981_v12 = vpop.f32.mrb[40].mxu0  ;;  %v3983_v40 = vpop.f32.mrb[40].mxu1 }
 0x130   :  { %4655 = vst [vmem:[#allocation39_spill] sm:$0xff] %v3981_v12  ;;  %4656 = vst [vmem:[#allocation40_spill] sm:$0xff] %v3983_v40  ;;  %v3989_v36 = vpop.f32.mrb[41].mxu0  ;;  %v3991_v45 = vpop.f32.mrb[41].mxu1 }
 0x133   :  { %v3997_v5 = vpop.f32.mrb[42].mxu0  ;;  %v3999_v44 = vpop.f32.mrb[42].mxu1 }
 0x134   :  { %4657 = vst [vmem:[#allocation41_spill] sm:$0xff] %v3997_v5  ;;  %4658 = vst [vmem:[#allocation42_spill] sm:$0xff] %v3999_v44  ;;  %v4005_v40 = vpop.f32.mrb[43].mxu0  ;;  %v4007_v49 = vpop.f32.mrb[43].mxu1 }
 0x137   :  { %v4013_v12 = vpop.f32.mrb[44].mxu0  ;;  %v4015_v48 = vpop.f32.mrb[44].mxu1 }
 0x138   :  { %4659 = vst [vmem:[#allocation43_spill] sm:$0xff] %v4013_v12  ;;  %4660 = vst [vmem:[#allocation44_spill] sm:$0xff] %v4015_v48  ;;  %v4021_v44 = vpop.f32.mrb[45].mxu0  ;;  %v4023_v53 = vpop.f32.mrb[45].mxu1 }
 0x13b   :  { %v4029_v5 = vpop.f32.mrb[46].mxu0  ;;  %v4031_v52 = vpop.f32.mrb[46].mxu1 }
 0x13c   :  { %4661 = vst [vmem:[#allocation45_spill] sm:$0xff] %v4029_v5  ;;  %4662 = vst [vmem:[#allocation46_spill] sm:$0xff] %v4031_v52  ;;  %v4037_v48 = vpop.f32.mrb[47].mxu0  ;;  %v4039_v57 = vpop.f32.mrb[47].mxu1 }
 0x13d   :  { %4663 = vst [vmem:[#allocation47_spill] sm:$0xff] %v4039_v57  ;;  %v4666_v57 = vmax.f32 %v3761_v14, %v3877_v8 }
 0x13f   :  { %v4045_v12 = vpop.f32.mrb[48].mxu0  ;;  %v4047_v56 = vpop.f32.mrb[48].mxu1 }
 0x140   :  { %4664 = vst [vmem:[#allocation48_spill] sm:$0xff] %v4045_v12  ;;  %4665 = vst [vmem:[#allocation49_spill] sm:$0xff] %v4047_v56  ;;  %v4053_v52 = vpop.f32.mrb[49].mxu0  ;;  %v4055_v61 = vpop.f32.mrb[49].mxu1 }
 0x143   :  { %v2690_v5 = vpop.f32.mrb[50].mxu0  ;;  %v2840_v60 = vpop.f32.mrb[50].mxu1 }
 0x144   :  { %v4064_v55 = vmax.f32 %v4666_v57, %v2690_v5  ;;  %v4069_v6 = vmax.f32 %v4667_v7, %v2840_v60  ;;  %v1139_v56 = vpop.f32.mrb[51].mxu0  ;;  %v1639_v3 = vpop.f32.mrb[51].mxu1  ;;  %v4670_v5 = vmax.f32 %v3769_v18, %v3893_v1  ;;  %v4671_v60 = vmax.f32 %v3771_v19, %v3895_v0 }
 0x145   :  { %v4074_v12 = vmax.f32 %v4668_v10, %v1139_v56  ;;  %v4079_v2 = vmax.f32 %v4669_v11, %v1639_v3  ;;  %v4674_v3 = vld [vmem:[#allocation26_spill] sm:$0xff]  ;;  %v4676_v10 = vmax.f32 %v3777_v22, %v3909_v13  ;;  %v4677_v0 = vmax.f32 %v3779_v23, %v3911_v25 }
 0x146   :  { %v4675_v8 = vmax.f32 %v4673_v63, %v4674_v3  ;;  %v4684_v3 = vmax.f32 %v3785_v26, %v3925_v21  ;;  %v4685_v25 = vmax.f32 %v3787_v27, %v3927_v29  ;;  %v4693_v29 = vmax.f32 %v3795_v31, %v3943_v33 }
 0x147   :  { %v2693_v14 = vpop.f32.mrb[52].mxu0  ;;  %v2843_v57 = vpop.f32.mrb[52].mxu1  ;;  %v4701_v33 = vmax.f32 %v3803_v35, %v3959_v37  ;;  %v4709_v37 = vmax.f32 %v3811_v39, %v3975_v41  ;;  %v4717_v41 = vmax.f32 %v3819_v43, %v3991_v45  ;;  %v4725_v45 = vmax.f32 %v3827_v47, %v4007_v49 }
 0x148   :  { %v4084_v15 = vmax.f32 %v4670_v5, %v2693_v14  ;;  %v4089_v7 = vmax.f32 %v4671_v60, %v2843_v57  ;;  %v1149_v16 = vpop.f32.mrb[53].mxu0  ;;  %v1649_v56 = vpop.f32.mrb[53].mxu1  ;;  %v4678_v14 = vld [vmem:[#allocation3_spill] sm:$0xff]  ;;  %v4733_v49 = vmax.f32 %v3835_v51, %v4023_v53 }
 0x149   :  { %v4094_v17 = vmax.f32 %v4672_v62, %v1149_v16  ;;  %v4099_v9 = vmax.f32 %v4675_v8, %v1649_v56  ;;  %v4679_v57 = vld [vmem:[#allocation27_spill] sm:$0xff]  ;;  %v4681_v16 = vld [vmem:[#allocation4_spill] sm:$0xff] }
 0x14a   :  { %v4680_v5 = vmax.f32 %v4678_v14, %v4679_v57  ;;  %v4682_v56 = vld [vmem:[#allocation28_spill] sm:$0xff]  ;;  %v4690_v57 = vld [vmem:[#allocation30_spill] sm:$0xff]  ;;  %v4741_v53 = vld [vmem:[#allocation19_spill] sm:$0xff] }
 0x14b   :  { %v2696_v18 = vpop.f32.mrb[54].mxu0  ;;  %v2846_v1 = vpop.f32.mrb[54].mxu1  ;;  %v4683_v62 = vmax.f32 %v4681_v16, %v4682_v56  ;;  %v4692_v56 = vmax.f32 %v3793_v30, %v3941_v24 }
 0x14c   :  { %v4104_v19 = vmax.f32 %v4676_v10, %v2696_v18  ;;  %v4109_v11 = vmax.f32 %v4677_v0, %v2846_v1  ;;  %v1159_v20 = vpop.f32.mrb[55].mxu0  ;;  %v1659_v4 = vpop.f32.mrb[55].mxu1  ;;  %v4686_v10 = vld [vmem:[#allocation5_spill] sm:$0xff] }
 0x14d   :  { %v4114_v60 = vmax.f32 %v4680_v5, %v1159_v20  ;;  %v4119_v63 = vmax.f32 %v4683_v62, %v1659_v4  ;;  %v4687_v0 = vld [vmem:[#allocation29_spill] sm:$0xff]  ;;  %v4689_v4 = vld [vmem:[#allocation6_spill] sm:$0xff] }
 0x14e   :  { %v4688_v20 = vmax.f32 %v4686_v10, %v4687_v0  ;;  %v4691_v5 = vmax.f32 %v4689_v4, %v4690_v57  ;;  %v4698_v0 = vld [vmem:[#allocation32_spill] sm:$0xff]  ;;  %v4700_v57 = vmax.f32 %v3801_v34, %v3957_v28 }
 0x14f   :  { %v2699_v22 = vpop.f32.mrb[56].mxu0  ;;  %v2849_v13 = vpop.f32.mrb[56].mxu1 }
 0x150   :  { %v4124_v23 = vmax.f32 %v4684_v3, %v2699_v22  ;;  %v4129_v8 = vmax.f32 %v4685_v25, %v2849_v13  ;;  %v1169_v18 = vpop.f32.mrb[57].mxu0  ;;  %v1669_v1 = vpop.f32.mrb[57].mxu1  ;;  %v4694_v3 = vld [vmem:[#allocation7_spill] sm:$0xff] }
 0x151   :  { %v4134_v14 = vmax.f32 %v4688_v20, %v1169_v18  ;;  %v4139_v16 = vmax.f32 %v4691_v5, %v1669_v1  ;;  %v4695_v25 = vld [vmem:[#allocation31_spill] sm:$0xff]  ;;  %v4697_v1 = vld [vmem:[#allocation8_spill] sm:$0xff] }
 0x152   :  { %v4696_v18 = vmax.f32 %v4694_v3, %v4695_v25  ;;  %v4699_v20 = vmax.f32 %v4697_v1, %v4698_v0  ;;  %v4706_v25 = vld [vmem:[#allocation34_spill] sm:$0xff]  ;;  %v4708_v0 = vmax.f32 %v3809_v38, %v3973_v32 }
 0x153   :  { %v2702_v21 = vpop.f32.mrb[58].mxu0  ;;  %v2852_v26 = vpop.f32.mrb[58].mxu1 }
 0x154   :  { %v4144_v27 = vmax.f32 %v4692_v56, %v2702_v21  ;;  %v4149_v62 = vmax.f32 %v4693_v29, %v2852_v26  ;;  %v1179_v22 = vpop.f32.mrb[59].mxu0  ;;  %v1679_v13 = vpop.f32.mrb[59].mxu1  ;;  %v4702_v56 = vld [vmem:[#allocation9_spill] sm:$0xff] }
 0x155   :  { %v4154_v10 = vmax.f32 %v4696_v18, %v1179_v22  ;;  %v4159_v4 = vmax.f32 %v4699_v20, %v1679_v13  ;;  %v4703_v29 = vld [vmem:[#allocation33_spill] sm:$0xff]  ;;  %v4705_v13 = vld [vmem:[#allocation10_spill] sm:$0xff] }
 0x156   :  { %v4704_v22 = vmax.f32 %v4702_v56, %v4703_v29  ;;  %v4707_v18 = vmax.f32 %v4705_v13, %v4706_v25  ;;  %v4714_v29 = vld [vmem:[#allocation36_spill] sm:$0xff]  ;;  %v4716_v25 = vmax.f32 %v3817_v42, %v3989_v36 }
 0x157   :  { %v2705_v24 = vpop.f32.mrb[60].mxu0  ;;  %v2855_v30 = vpop.f32.mrb[60].mxu1 }
 0x158   :  { %v4164_v31 = vmax.f32 %v4700_v57, %v2705_v24  ;;  %v4169_v5 = vmax.f32 %v4701_v33, %v2855_v30  ;;  %v1189_v21 = vpop.f32.mrb[61].mxu0  ;;  %v1689_v26 = vpop.f32.mrb[61].mxu1  ;;  %v4710_v57 = vld [vmem:[#allocation11_spill] sm:$0xff] }
 0x159   :  { %v4174_v3 = vmax.f32 %v4704_v22, %v1189_v21  ;;  %v4179_v1 = vmax.f32 %v4707_v18, %v1689_v26  ;;  %v4711_v33 = vld [vmem:[#allocation35_spill] sm:$0xff]  ;;  %v4713_v26 = vld [vmem:[#allocation12_spill] sm:$0xff] }
 0x15a   :  { %v4712_v21 = vmax.f32 %v4710_v57, %v4711_v33  ;;  %v4715_v22 = vmax.f32 %v4713_v26, %v4714_v29  ;;  %v4722_v33 = vld [vmem:[#allocation38_spill] sm:$0xff]  ;;  %v4724_v29 = vmax.f32 %v3825_v46, %v4005_v40 }
 0x15b   :  { %v2708_v28 = vpop.f32.mrb[62].mxu0  ;;  %v2858_v34 = vpop.f32.mrb[62].mxu1 }
 0x15c   :  { %v4184_v35 = vmax.f32 %v4708_v0, %v2708_v28  ;;  %v4189_v20 = vmax.f32 %v4709_v37, %v2858_v34  ;;  %v1199_v24 = vpop.f32.mrb[63].mxu0  ;;  %v1699_v30 = vpop.f32.mrb[63].mxu1  ;;  %v4718_v0 = vld [vmem:[#allocation13_spill] sm:$0xff] }
 0x15d   :  { %v4194_v56 = vmax.f32 %v4712_v21, %v1199_v24  ;;  %v4199_v13 = vmax.f32 %v4715_v22, %v1699_v30  ;;  %v4719_v37 = vld [vmem:[#allocation37_spill] sm:$0xff]  ;;  %v4721_v30 = vld [vmem:[#allocation14_spill] sm:$0xff] }
 0x15e   :  { %v4720_v24 = vmax.f32 %v4718_v0, %v4719_v37  ;;  %v4723_v21 = vmax.f32 %v4721_v30, %v4722_v33  ;;  %v4730_v37 = vld [vmem:[#allocation40_spill] sm:$0xff]  ;;  %v4732_v33 = vmax.f32 %v3833_v50, %v4021_v44 }
 0x15f   :  { %v2711_v32 = vpop.f32.mrb[64].mxu0  ;;  %v2861_v38 = vpop.f32.mrb[64].mxu1 }
 0x160   :  { %v4204_v39 = vmax.f32 %v4716_v25, %v2711_v32  ;;  %v4209_v18 = vmax.f32 %v4717_v41, %v2861_v38  ;;  %v1209_v28 = vpop.f32.mrb[65].mxu0  ;;  %v1709_v34 = vpop.f32.mrb[65].mxu1  ;;  %v4726_v25 = vld [vmem:[#allocation15_spill] sm:$0xff] }
 0x161   :  { %v4214_v57 = vmax.f32 %v4720_v24, %v1209_v28  ;;  %v4219_v26 = vmax.f32 %v4723_v21, %v1709_v34  ;;  %v4727_v41 = vld [vmem:[#allocation39_spill] sm:$0xff]  ;;  %v4729_v34 = vld [vmem:[#allocation16_spill] sm:$0xff] }
 0x162   :  { %v4728_v28 = vmax.f32 %v4726_v25, %v4727_v41  ;;  %v4731_v24 = vmax.f32 %v4729_v34, %v4730_v37  ;;  %v4738_v41 = vld [vmem:[#allocation42_spill] sm:$0xff]  ;;  %v4740_v37 = vmax.f32 %v3841_v54, %v4037_v48 }
 0x163   :  { %v2714_v36 = vpop.f32.mrb[66].mxu0  ;;  %v2864_v42 = vpop.f32.mrb[66].mxu1 }
 0x164   :  { %v4224_v43 = vmax.f32 %v4724_v29, %v2714_v36  ;;  %v4229_v22 = vmax.f32 %v4725_v45, %v2864_v42  ;;  %v1219_v32 = vpop.f32.mrb[67].mxu0  ;;  %v1719_v38 = vpop.f32.mrb[67].mxu1  ;;  %v4734_v29 = vld [vmem:[#allocation17_spill] sm:$0xff] }
 0x165   :  { %v4234_v0 = vmax.f32 %v4728_v28, %v1219_v32  ;;  %v4239_v30 = vmax.f32 %v4731_v24, %v1719_v38  ;;  %v4735_v45 = vld [vmem:[#allocation41_spill] sm:$0xff]  ;;  %v4737_v38 = vld [vmem:[#allocation18_spill] sm:$0xff]  ;;  %v4742_v24 = vld [vmem:[#allocation47_spill] sm:$0xff] }
 0x166   :  { %v4736_v32 = vmax.f32 %v4734_v29, %v4735_v45  ;;  %v4739_v28 = vmax.f32 %v4737_v38, %v4738_v41  ;;  %v4746_v29 = vld [vmem:[#allocation43_spill] sm:$0xff]  ;;  %v4749_v38 = vld [vmem:[#allocation44_spill] sm:$0xff] }
 0x167   :  { %v2717_v40 = vpop.f32.mrb[68].mxu0  ;;  %v2867_v46 = vpop.f32.mrb[68].mxu1 }
 0x168   :  { %v4244_v47 = vmax.f32 %v4732_v33, %v2717_v40  ;;  %v4249_v21 = vmax.f32 %v4733_v49, %v2867_v46  ;;  %v1229_v36 = vpop.f32.mrb[69].mxu0  ;;  %v1729_v42 = vpop.f32.mrb[69].mxu1  ;;  %v4743_v40 = vmax.f32 %v4741_v53, %v4742_v24 }
 0x169   :  { %v4254_v25 = vmax.f32 %v4736_v32, %v1229_v36  ;;  %v4259_v34 = vmax.f32 %v4739_v28, %v1729_v42  ;;  %v4745_v36 = vld [vmem:[#allocation20_spill] sm:$0xff]  ;;  %v4748_v42 = vld [vmem:[#allocation21_spill] sm:$0xff] }
 0x16a   :  { %v4747_v45 = vmax.f32 %v4745_v36, %v4746_v29  ;;  %v4750_v41 = vmax.f32 %v4748_v42, %v4749_v38  ;;  %v4756_v36 = vld [vmem:[#allocation45_spill] sm:$0xff]  ;;  %v4759_v42 = vld [vmem:[#allocation46_spill] sm:$0xff] }
 0x16b   :  { %v2720_v44 = vpop.f32.mrb[70].mxu0  ;;  %v2870_v50 = vpop.f32.mrb[70].mxu1 }
 0x16c   :  { %v4264_v51 = vmax.f32 %v4740_v37, %v2720_v44  ;;  %v4269_v46 = vmax.f32 %v4743_v40, %v2870_v50  ;;  %v1239_v33 = vpop.f32.mrb[71].mxu0  ;;  %v1739_v49 = vpop.f32.mrb[71].mxu1  ;;  %v4751_v44 = vmax.f32 %v3849_v58, %v4053_v52  ;;  %v4753_v50 = vmax.f32 %v3851_v59, %v4055_v61  ;;  %v4304_v58 = vld [vmem:[%s4568_s2] ss:$0 sm:$0xff] }
 0x16d   :  { %v4274_v32 = vmax.f32 %v4747_v45, %v1239_v33  ;;  %v4279_v28 = vmax.f32 %v4750_v41, %v1739_v49  ;;  %v4755_v33 = vld [vmem:[#allocation22_spill] sm:$0xff]  ;;  %v4758_v49 = vld [vmem:[#allocation23_spill] sm:$0xff] }
 0x16e   :  { %4744 = vst [vmem:[#allocation2_spill] sm:$0xff] %v4269_v46  ;;  %v4757_v29 = vmax.f32 %v4755_v33, %v4756_v36  ;;  %v4760_v38 = vmax.f32 %v4758_v49, %v4759_v42 }
 0x16f   :  { %v2723_v48 = vpop.f32.mrb[72].mxu0  ;;  %v2873_v54 = vpop.f32.mrb[72].mxu1 }
 0x170   :  { %v4284_v37 = vmax.f32 %v4751_v44, %v2723_v48  ;;  %v4289_v53 = vmax.f32 %v4753_v50, %v2873_v54  ;;  %v1249_v24 = vpop.f32.mrb[73].mxu0  ;;  %v1749_v40 = vpop.f32.mrb[73].mxu1  ;;  %v4761_v50 = vld [vmem:[#allocation24_spill] sm:$0xff] }
 0x171   :  { %v4294_v45 = vmax.f32 %v4757_v29, %v1249_v24  ;;  %v4299_v41 = vmax.f32 %v4760_v38, %v1749_v40  ;;  %v4762_v24 = vld [vmem:[#allocation48_spill] sm:$0xff]  ;;  %v4764_v40 = vld [vmem:[#allocation25_spill] sm:$0xff] }
 0x172   :  { %4752 = vst [vmem:[#allocation26_spill] sm:$0xff] %v4284_v37  ;;  %4754 = vst [vmem:[#allocation3_spill] sm:$0xff] %v4289_v53  ;;  %v4763_v33 = vmax.f32 %v4761_v50, %v4762_v24  ;;  %v4765_v29 = vld [vmem:[#allocation49_spill] sm:$0xff] }
 0x173   :  { %v2726_v52 = vpop.f32.mrb[74].mxu0  ;;  %v2876_v59 = vpop.f32.mrb[74].mxu1  ;;  %v4766_v49 = vmax.f32 %v4764_v40, %v4765_v29 }
 0x174   :  { %v1890_v61 = vmax.f32 %v4074_v12, %v2726_v52  ;;  %v1965_v48 = vmax.f32 %v4079_v2, %v2876_v59  ;;  %v1259_v54 = vpop.f32.mrb[75].mxu0  ;;  %v1759_v44 = vpop.f32.mrb[75].mxu1 }
 0x175   :  { %v4311_v36 = vmax.f32 %v4763_v33, %v1259_v54  ;;  %v4316_v42 = vmax.f32 %v4766_v49, %v1759_v44 }
 0x176   :  { %v2045_v38 = vadd.f32 %v4304_v58, %v1890_v61  ;;  %v2070_v53 = vadd.f32 %v4304_v58, %v1965_v48 }
 0x177   :  { %v2729_v37 = vpop.f32.mrb[76].mxu0  ;;  %v2879_v12 = vpop.f32.mrb[76].mxu1 }
 0x178   :  { %v2095_v52 = vmax.f32 %v2045_v38, 0.0  ;;  %v2120_v2 = vmax.f32 %v2070_v53, 0.0  ;;  %v1896_v59 = vmax.f32 %v4094_v17, %v2729_v37  ;;  %v1971_v46 = vmax.f32 %v4099_v9, %v2879_v12  ;;  %v1269_v50 = vpop.f32.mrb[77].mxu0  ;;  %v1769_v54 = vpop.f32.mrb[77].mxu1 }
 0x179   :  { %v1893_v24 = vmax.f32 %v4064_v55, %v1269_v50  ;;  %v1968_v33 = vmax.f32 %v4069_v6, %v1769_v54 }
 0x17a   :  { %2145 = vst [vmem:[%s4569_s3] sm:$0xff] %v2095_v52  ;;  %2170 = vst [vmem:[%s4569_s3 + $0xc8] sm:$0xff] %v2120_v2  ;;  %v2047_v53 = vadd.f32 %v4304_v58, %v1896_v59  ;;  %v2072_v17 = vadd.f32 %v4304_v58, %v1971_v46 }
 0x17b   :  { %v2046_v9 = vadd.f32 %v4304_v58, %v1893_v24  ;;  %v2071_v37 = vadd.f32 %v4304_v58, %v1968_v33  ;;  %v2732_v61 = vpop.f32.mrb[78].mxu0  ;;  %v2882_v55 = vpop.f32.mrb[78].mxu1 }
 0x17c   :  { %v2097_v48 = vmax.f32 %v2047_v53, 0.0  ;;  %v2122_v6 = vmax.f32 %v2072_v17, 0.0  ;;  %v1902_v44 = vmax.f32 %v4114_v60, %v2732_v61  ;;  %v1977_v40 = vmax.f32 %v4119_v63, %v2882_v55  ;;  %v1279_v29 = vpop.f32.mrb[79].mxu0  ;;  %v1779_v49 = vpop.f32.mrb[79].mxu1 }
 0x17d   :  { %v2096_v38 = vmax.f32 %v2046_v9, 0.0  ;;  %v2121_v12 = vmax.f32 %v2071_v37, 0.0  ;;  %v1899_v52 = vmax.f32 %v4084_v15, %v1279_v29  ;;  %v1974_v46 = vmax.f32 %v4089_v7, %v1779_v49 }
 0x17e   :  { %2147 = vst [vmem:[%s4569_s3 + $0x10] sm:$0xff] %v2097_v48  ;;  %2172 = vst [vmem:[%s4569_s3 + $0xd8] sm:$0xff] %v2122_v6  ;;  %v2049_v60 = vadd.f32 %v4304_v58, %v1902_v44  ;;  %v2074_v63 = vadd.f32 %v4304_v58, %v1977_v40 }
 0x17f   :  { %2146 = vst [vmem:[%s4569_s3 + $0x8] sm:$0xff] %v2096_v38  ;;  %2171 = vst [vmem:[%s4569_s3 + $0xd0] sm:$0xff] %v2121_v12  ;;  %v2048_v15 = vadd.f32 %v4304_v58, %v1899_v52  ;;  %v2073_v7 = vadd.f32 %v4304_v58, %v1974_v46  ;;  %v2735_v2 = vpop.f32.mrb[80].mxu0  ;;  %v2885_v59 = vpop.f32.mrb[80].mxu1 }
 0x180   :  { %v2099_v50 = vmax.f32 %v2049_v60, 0.0  ;;  %v2124_v54 = vmax.f32 %v2074_v63, 0.0  ;;  %v1908_v24 = vmax.f32 %v4134_v14, %v2735_v2  ;;  %v1983_v33 = vmax.f32 %v4139_v16, %v2885_v59  ;;  %v1289_v53 = vpop.f32.mrb[81].mxu0  ;;  %v1789_v17 = vpop.f32.mrb[81].mxu1 }
 0x181   :  { %v2098_v9 = vmax.f32 %v2048_v15, 0.0  ;;  %v2123_v37 = vmax.f32 %v2073_v7, 0.0  ;;  %v1905_v61 = vmax.f32 %v4104_v19, %v1289_v53  ;;  %v1980_v55 = vmax.f32 %v4109_v11, %v1789_v17 }
 0x182   :  { %2149 = vst [vmem:[%s4569_s3 + $0x20] sm:$0xff] %v2099_v50  ;;  %2174 = vst [vmem:[%s4569_s3 + $0xe8] sm:$0xff] %v2124_v54  ;;  %v2051_v14 = vadd.f32 %v4304_v58, %v1908_v24  ;;  %v2076_v16 = vadd.f32 %v4304_v58, %v1983_v33 }
 0x183   :  { %2148 = vst [vmem:[%s4569_s3 + $0x18] sm:$0xff] %v2098_v9  ;;  %2173 = vst [vmem:[%s4569_s3 + $0xe0] sm:$0xff] %v2123_v37  ;;  %v2050_v19 = vadd.f32 %v4304_v58, %v1905_v61  ;;  %v2075_v11 = vadd.f32 %v4304_v58, %v1980_v55  ;;  %v2738_v48 = vpop.f32.mrb[82].mxu0  ;;  %v2888_v6 = vpop.f32.mrb[82].mxu1 }
 0x184   :  { %v2101_v44 = vmax.f32 %v2051_v14, 0.0  ;;  %v2126_v40 = vmax.f32 %v2076_v16, 0.0  ;;  %v1914_v29 = vmax.f32 %v4154_v10, %v2738_v48  ;;  %v1989_v49 = vmax.f32 %v4159_v4, %v2888_v6  ;;  %v1299_v38 = vpop.f32.mrb[83].mxu0  ;;  %v1799_v12 = vpop.f32.mrb[83].mxu1 }
 0x185   :  { %v2100_v52 = vmax.f32 %v2050_v19, 0.0  ;;  %v2125_v46 = vmax.f32 %v2075_v11, 0.0  ;;  %v1911_v60 = vmax.f32 %v4124_v23, %v1299_v38  ;;  %v1986_v63 = vmax.f32 %v4129_v8, %v1799_v12 }
 0x186   :  { %2151 = vst [vmem:[%s4569_s3 + $0x30] sm:$0xff] %v2101_v44  ;;  %2176 = vst [vmem:[%s4569_s3 + $0xf8] sm:$0xff] %v2126_v40  ;;  %v2053_v10 = vadd.f32 %v4304_v58, %v1914_v29  ;;  %v2078_v4 = vadd.f32 %v4304_v58, %v1989_v49 }
 0x187   :  { %2150 = vst [vmem:[%s4569_s3 + $0x28] sm:$0xff] %v2100_v52  ;;  %2175 = vst [vmem:[%s4569_s3 + $0xf0] sm:$0xff] %v2125_v46  ;;  %v2052_v23 = vadd.f32 %v4304_v58, %v1911_v60  ;;  %v2077_v8 = vadd.f32 %v4304_v58, %v1986_v63  ;;  %v2741_v15 = vpop.f32.mrb[84].mxu0  ;;  %v2891_v7 = vpop.f32.mrb[84].mxu1 }
 0x188   :  { %v2103_v2 = vmax.f32 %v2053_v10, 0.0  ;;  %v2128_v59 = vmax.f32 %v2078_v4, 0.0  ;;  %v1920_v50 = vmax.f32 %v4174_v3, %v2741_v15  ;;  %v1995_v54 = vmax.f32 %v4179_v1, %v2891_v7  ;;  %v1309_v24 = vpop.f32.mrb[85].mxu0  ;;  %v1809_v33 = vpop.f32.mrb[85].mxu1 }
 0x189   :  { %v2102_v53 = vmax.f32 %v2052_v23, 0.0  ;;  %v2127_v17 = vmax.f32 %v2077_v8, 0.0  ;;  %v1917_v9 = vmax.f32 %v4144_v27, %v1309_v24  ;;  %v1992_v37 = vmax.f32 %v4149_v62, %v1809_v33 }
 0x18a   :  { %2153 = vst [vmem:[%s4569_s3 + $0x40] sm:$0xff] %v2103_v2  ;;  %2178 = vst [vmem:[%s4569_s3 + $0x108] sm:$0xff] %v2128_v59  ;;  %v2055_v3 = vadd.f32 %v4304_v58, %v1920_v50  ;;  %v2080_v1 = vadd.f32 %v4304_v58, %v1995_v54 }
 0x18b   :  { %2152 = vst [vmem:[%s4569_s3 + $0x38] sm:$0xff] %v2102_v53  ;;  %2177 = vst [vmem:[%s4569_s3 + $0x100] sm:$0xff] %v2127_v17  ;;  %v2054_v27 = vadd.f32 %v4304_v58, %v1917_v9  ;;  %v2079_v62 = vadd.f32 %v4304_v58, %v1992_v37  ;;  %v2744_v61 = vpop.f32.mrb[86].mxu0  ;;  %v2894_v55 = vpop.f32.mrb[86].mxu1 }
 0x18c   :  { %v2105_v14 = vmax.f32 %v2055_v3, 0.0  ;;  %v2130_v16 = vmax.f32 %v2080_v1, 0.0  ;;  %v1926_v19 = vmax.f32 %v4194_v56, %v2744_v61  ;;  %v2001_v11 = vmax.f32 %v4199_v13, %v2894_v55  ;;  %v1319_v48 = vpop.f32.mrb[87].mxu0  ;;  %v1819_v6 = vpop.f32.mrb[87].mxu1 }
 0x18d   :  { %v2104_v44 = vmax.f32 %v2054_v27, 0.0  ;;  %v2129_v40 = vmax.f32 %v2079_v62, 0.0  ;;  %v1923_v29 = vmax.f32 %v4164_v31, %v1319_v48  ;;  %v1998_v49 = vmax.f32 %v4169_v5, %v1819_v6 }
 0x18e   :  { %2155 = vst [vmem:[%s4569_s3 + $0x50] sm:$0xff] %v2105_v14  ;;  %2180 = vst [vmem:[%s4569_s3 + $0x118] sm:$0xff] %v2130_v16  ;;  %v2057_v56 = vadd.f32 %v4304_v58, %v1926_v19  ;;  %v2082_v13 = vadd.f32 %v4304_v58, %v2001_v11 }
 0x18f   :  { %2154 = vst [vmem:[%s4569_s3 + $0x48] sm:$0xff] %v2104_v44  ;;  %2179 = vst [vmem:[%s4569_s3 + $0x110] sm:$0xff] %v2129_v40  ;;  %v2056_v31 = vadd.f32 %v4304_v58, %v1923_v29  ;;  %v2081_v5 = vadd.f32 %v4304_v58, %v1998_v49  ;;  %v2747_v38 = vpop.f32.mrb[88].mxu0  ;;  %v2897_v12 = vpop.f32.mrb[88].mxu1 }
 0x190   :  { %v2107_v52 = vmax.f32 %v2057_v56, 0.0  ;;  %v2132_v46 = vmax.f32 %v2082_v13, 0.0  ;;  %v1932_v60 = vmax.f32 %v4214_v57, %v2747_v38  ;;  %v2007_v63 = vmax.f32 %v4219_v26, %v2897_v12  ;;  %v1329_v10 = vpop.f32.mrb[89].mxu0  ;;  %v1829_v4 = vpop.f32.mrb[89].mxu1 }
 0x191   :  { %v2106_v23 = vmax.f32 %v2056_v31, 0.0  ;;  %v2131_v8 = vmax.f32 %v2081_v5, 0.0  ;;  %v1929_v15 = vmax.f32 %v4184_v35, %v1329_v10  ;;  %v2004_v7 = vmax.f32 %v4189_v20, %v1829_v4 }
 0x192   :  { %2157 = vst [vmem:[%s4569_s3 + $0x60] sm:$0xff] %v2107_v52  ;;  %2182 = vst [vmem:[%s4569_s3 + $0x128] sm:$0xff] %v2132_v46  ;;  %v2059_v57 = vadd.f32 %v4304_v58, %v1932_v60  ;;  %v2084_v26 = vadd.f32 %v4304_v58, %v2007_v63 }
 0x193   :  { %2156 = vst [vmem:[%s4569_s3 + $0x58] sm:$0xff] %v2106_v23  ;;  %2181 = vst [vmem:[%s4569_s3 + $0x120] sm:$0xff] %v2131_v8  ;;  %v2058_v35 = vadd.f32 %v4304_v58, %v1929_v15  ;;  %v2083_v20 = vadd.f32 %v4304_v58, %v2004_v7  ;;  %v2750_v2 = vpop.f32.mrb[90].mxu0  ;;  %v2900_v59 = vpop.f32.mrb[90].mxu1 }
 0x194   :  { %v2109_v50 = vmax.f32 %v2059_v57, 0.0  ;;  %v2134_v54 = vmax.f32 %v2084_v26, 0.0  ;;  %v1938_v24 = vmax.f32 %v4234_v0, %v2750_v2  ;;  %v2013_v33 = vmax.f32 %v4239_v30, %v2900_v59  ;;  %v1339_v53 = vpop.f32.mrb[91].mxu0  ;;  %v1839_v17 = vpop.f32.mrb[91].mxu1  ;;  %v4767_v59 = vld [vmem:[#allocation2_spill] sm:$0xff] }
 0x195   :  { %v2108_v9 = vmax.f32 %v2058_v35, 0.0  ;;  %v2133_v37 = vmax.f32 %v2083_v20, 0.0  ;;  %v1935_v3 = vmax.f32 %v4204_v39, %v1339_v53  ;;  %v2010_v1 = vmax.f32 %v4209_v18, %v1839_v17 }
 0x196   :  { %2159 = vst [vmem:[%s4569_s3 + $0x70] sm:$0xff] %v2109_v50  ;;  %2184 = vst [vmem:[%s4569_s3 + $0x138] sm:$0xff] %v2134_v54  ;;  %v2061_v0 = vadd.f32 %v4304_v58, %v1938_v24  ;;  %v2086_v30 = vadd.f32 %v4304_v58, %v2013_v33 }
 0x197   :  { %2158 = vst [vmem:[%s4569_s3 + $0x68] sm:$0xff] %v2108_v9  ;;  %2183 = vst [vmem:[%s4569_s3 + $0x130] sm:$0xff] %v2133_v37  ;;  %v2060_v39 = vadd.f32 %v4304_v58, %v1935_v3  ;;  %v2085_v18 = vadd.f32 %v4304_v58, %v2010_v1  ;;  %v2753_v27 = vpop.f32.mrb[92].mxu0  ;;  %v2903_v62 = vpop.f32.mrb[92].mxu1 }
 0x198   :  { %v2111_v61 = vmax.f32 %v2061_v0, 0.0  ;;  %v2136_v55 = vmax.f32 %v2086_v30, 0.0  ;;  %v1944_v14 = vmax.f32 %v4254_v25, %v2753_v27  ;;  %v2019_v16 = vmax.f32 %v4259_v34, %v2903_v62  ;;  %v1349_v19 = vpop.f32.mrb[93].mxu0  ;;  %v1849_v11 = vpop.f32.mrb[93].mxu1  ;;  %v4769_v27 = vld [vmem:[#allocation3_spill] sm:$0xff] }
 0x199   :  { %v2110_v48 = vmax.f32 %v2060_v39, 0.0  ;;  %v2135_v6 = vmax.f32 %v2085_v18, 0.0  ;;  %v1941_v44 = vmax.f32 %v4224_v43, %v1349_v19  ;;  %v2016_v40 = vmax.f32 %v4229_v22, %v1849_v11  ;;  %v4768_v39 = vld [vmem:[#allocation26_spill] sm:$0xff] }
 0x19a   :  { %2161 = vst [vmem:[%s4569_s3 + $0x80] sm:$0xff] %v2111_v61  ;;  %2186 = vst [vmem:[%s4569_s3 + $0x148] sm:$0xff] %v2136_v55  ;;  %v2063_v25 = vadd.f32 %v4304_v58, %v1944_v14  ;;  %v2088_v34 = vadd.f32 %v4304_v58, %v2019_v16 }
 0x19b   :  { %2160 = vst [vmem:[%s4569_s3 + $0x78] sm:$0xff] %v2110_v48  ;;  %2185 = vst [vmem:[%s4569_s3 + $0x140] sm:$0xff] %v2135_v6  ;;  %v2062_v43 = vadd.f32 %v4304_v58, %v1941_v44  ;;  %v2087_v22 = vadd.f32 %v4304_v58, %v2016_v40  ;;  %v2756_v29 = vpop.f32.mrb[94].mxu0  ;;  %v2906_v49 = vpop.f32.mrb[94].mxu1 }
 0x19c   :  { %v2113_v56 = vmax.f32 %v2063_v25, 0.0  ;;  %v2138_v13 = vmax.f32 %v2088_v34, 0.0  ;;  %v1950_v31 = vmax.f32 %v4274_v32, %v2756_v29  ;;  %v2025_v5 = vmax.f32 %v4279_v28, %v2906_v49  ;;  %v1359_v38 = vpop.f32.mrb[95].mxu0  ;;  %v1859_v12 = vpop.f32.mrb[95].mxu1 }
 0x19d   :  { %v2112_v52 = vmax.f32 %v2062_v43, 0.0  ;;  %v2137_v46 = vmax.f32 %v2087_v22, 0.0  ;;  %v1947_v60 = vmax.f32 %v4244_v47, %v1359_v38  ;;  %v2022_v63 = vmax.f32 %v4249_v21, %v1859_v12 }
 0x19e   :  { %2163 = vst [vmem:[%s4569_s3 + $0x90] sm:$0xff] %v2113_v56  ;;  %2188 = vst [vmem:[%s4569_s3 + $0x158] sm:$0xff] %v2138_v13  ;;  %v2065_v32 = vadd.f32 %v4304_v58, %v1950_v31  ;;  %v2090_v28 = vadd.f32 %v4304_v58, %v2025_v5 }
 0x19f   :  { %2162 = vst [vmem:[%s4569_s3 + $0x88] sm:$0xff] %v2112_v52  ;;  %2187 = vst [vmem:[%s4569_s3 + $0x150] sm:$0xff] %v2137_v46  ;;  %v2064_v47 = vadd.f32 %v4304_v58, %v1947_v60  ;;  %v2089_v21 = vadd.f32 %v4304_v58, %v2022_v63  ;;  %v2759_v10 = vpop.f32.mrb[96].mxu0  ;;  %v2909_v4 = vpop.f32.mrb[96].mxu1 }
 0x1a0   :  { %v2115_v23 = vmax.f32 %v2065_v32, 0.0  ;;  %v2140_v8 = vmax.f32 %v2090_v28, 0.0  ;;  %v1956_v15 = vmax.f32 %v4294_v45, %v2759_v10  ;;  %v2031_v7 = vmax.f32 %v4299_v41, %v2909_v4  ;;  %v1369_v57 = vpop.f32.mrb[97].mxu0  ;;  %v1869_v26 = vpop.f32.mrb[97].mxu1 }
 0x1a1   :  { %v2114_v35 = vmax.f32 %v2064_v47, 0.0  ;;  %v2139_v20 = vmax.f32 %v2089_v21, 0.0  ;;  %v1953_v2 = vmax.f32 %v4264_v51, %v1369_v57  ;;  %v2028_v50 = vmax.f32 %v4767_v59, %v1869_v26 }
 0x1a2   :  { %2165 = vst [vmem:[%s4569_s3 + $0xa0] sm:$0xff] %v2115_v23  ;;  %2190 = vst [vmem:[%s4569_s3 + $0x168] sm:$0xff] %v2140_v8  ;;  %v2067_v45 = vadd.f32 %v4304_v58, %v1956_v15  ;;  %v2092_v41 = vadd.f32 %v4304_v58, %v2031_v7 }
 0x1a3   :  { %2164 = vst [vmem:[%s4569_s3 + $0x98] sm:$0xff] %v2114_v35  ;;  %2189 = vst [vmem:[%s4569_s3 + $0x160] sm:$0xff] %v2139_v20  ;;  %v2066_v51 = vadd.f32 %v4304_v58, %v1953_v2  ;;  %v2091_v54 = vadd.f32 %v4304_v58, %v2028_v50  ;;  %v2762_v24 = vpop.f32.mrb[98].mxu0  ;;  %v2912_v33 = vpop.f32.mrb[98].mxu1 }
 0x1a4   :  { %v2117_v53 = vmax.f32 %v2067_v45, 0.0  ;;  %v2142_v17 = vmax.f32 %v2092_v41, 0.0  ;;  %v1962_v9 = vmax.f32 %v4311_v36, %v2762_v24  ;;  %v2037_v37 = vmax.f32 %v4316_v42, %v2912_v33  ;;  %v1379_v3 = vpop.f32.mrb[99].mxu0  ;;  %v1879_v1 = vpop.f32.mrb[99].mxu1 }
 0x1a5   :  { %v2116_v0 = vmax.f32 %v2066_v51, 0.0  ;;  %v2141_v30 = vmax.f32 %v2091_v54, 0.0  ;;  %v1959_v18 = vmax.f32 %v4768_v39, %v1379_v3  ;;  %v2034_v62 = vmax.f32 %v4769_v27, %v1879_v1 }
 0x1a6   :  { %2167 = vst [vmem:[%s4569_s3 + $0xb0] sm:$0xff] %v2117_v53  ;;  %2192 = vst [vmem:[%s4569_s3 + $0x178] sm:$0xff] %v2142_v17  ;;  %v2069_v36 = vadd.f32 %v4304_v58, %v1962_v9  ;;  %v2094_v42 = vadd.f32 %v4304_v58, %v2037_v37 }
 0x1a7   :  { %2166 = vst [vmem:[%s4569_s3 + $0xa8] sm:$0xff] %v2116_v0  ;;  %2191 = vst [vmem:[%s4569_s3 + $0x170] sm:$0xff] %v2141_v30  ;;  %v2068_v61 = vadd.f32 %v4304_v58, %v1959_v18  ;;  %v2093_v55 = vadd.f32 %v4304_v58, %v2034_v62 }
 0x1a8   :  { %v2119_v14 = vmax.f32 %v2069_v36, 0.0  ;;  %v2144_v16 = vmax.f32 %v2094_v42, 0.0 }
 0x1a9   :  { %v2118_v19 = vmax.f32 %v2068_v61, 0.0  ;;  %v2143_v11 = vmax.f32 %v2093_v55, 0.0 }
 0x1aa   :  { %2169 = vst [vmem:[%s4569_s3 + $0xc0] sm:$0xff] %v2119_v14  ;;  %2194 = vst [vmem:[%s4569_s3 + $0x188] sm:$0xff] %v2144_v16 }
 0x1ab   :  { %2168 = vst [vmem:[%s4569_s3 + $0xb8] sm:$0xff] %v2118_v19  ;;  %2193 = vst [vmem:[%s4569_s3 + $0x180] sm:$0xff] %v2143_v11 }

// kernel: net_forward.4
= control target key start
LH: loop header
LB: loop body
LE: loop exit
PB: predicated region body
PF: predicated region fallthrough
CT: control target
= control target key end

     0   :  { %v2712_v0 = vmov 0.0|0.0   ;;  %vm506_vm0 = vcmask 261120   ;;  %s4782_s1 = inlined_call_operand.vmem [shape: f32[800,128], index: 1, kind: input, shape index: {}]   ;;  %s4783_s0 = inlined_call_operand.vmem [shape: f32[2,4,56,800], index: 0, kind: input, shape index: {}]   ;;  %s4784_s2 = inlined_call_operand.vmem [shape: f32[1,128], index: 2, kind: input, shape index: {}]   ;;  %s4785_s3 = inlined_call_operand.vmem [shape: f32[2,56,128], index: 3, kind: output, shape index: {}]  }
   0x1   :  { %2359 = vmatprep.subr.bf16.mxu1 %v2712_v0  ;;  %2407 = vmatprep.subr.bf16.mxu0 %v2712_v0  ;;  %v406_v1 = vld [vmem:[%s4782_s1] sm:$0xff]  ;;  %v407_v2 = vld [vmem:[%s4782_s1 + $0x8] sm:$0xff]  ;;  %v408_v6 = vld [vmem:[%s4782_s1 + $0x10] sm:$0xff] }
   0x2   :  { %v438_v3 = vld [vmem:[%s4782_s1 + $0x100] sm:$0xff]  ;;  %v2360_v4 = vpack.c.bf16 %v407_v2, %v406_v1  ;;  %v439_v5 = vld [vmem:[%s4782_s1 + $0x108] sm:$0xff]  ;;  %v409_v7 = vld [vmem:[%s4782_s1 + $0x18] sm:$0xff] }
   0x3   :  { %v2753_v8 = vpack.c.bf16 %v439_v5, %v438_v3  ;;  %v440_v9 = vld [vmem:[%s4782_s1 + $0x110] sm:$0xff]  ;;  %v441_v10 = vld [vmem:[%s4782_s1 + $0x118] sm:$0xff]  ;;  %v2363_v11 = vpack.c.bf16 %v409_v7, %v408_v6  ;;  %v410_v13 = vld [vmem:[%s4782_s1 + $0x20] sm:$0xff] }
   0x4   :  { %2361 = vmatpush1.bf16.msra.mxu1 %v2360_v4  ;;  %v2763_v12 = vpack.c.bf16 %v441_v10, %v440_v9  ;;  %v411_v14 = vld [vmem:[%s4782_s1 + $0x28] sm:$0xff]  ;;  %v442_v15 = vld [vmem:[%s4782_s1 + $0x120] sm:$0xff]  ;;  %v412_v19 = vld [vmem:[%s4782_s1 + $0x30] sm:$0xff] }
   0x5   :  { %2409 = vmatpush1.bf16.msra.mxu0 %v2753_v8  ;;  %2362 = vmatprep.subr.bf16.mxu1 %v2712_v0  ;;  %v443_v16 = vld [vmem:[%s4782_s1 + $0x128] sm:$0xff]  ;;  %v2366_v17 = vpack.c.bf16 %v411_v14, %v410_v13  ;;  %v413_v20 = vld [vmem:[%s4782_s1 + $0x38] sm:$0xff]  ;;  %v444_v21 = vld [vmem:[%s4782_s1 + $0x130] sm:$0xff] }
   0x6   :  { %2410 = vmatprep.subr.bf16.mxu0 %v2712_v0  ;;  %v2780_v18 = vpack.c.bf16 %v443_v16, %v442_v15  ;;  %v445_v22 = vld [vmem:[%s4782_s1 + $0x138] sm:$0xff]  ;;  %v2369_v23 = vpack.c.bf16 %v413_v20, %v412_v19  ;;  %v414_v25 = vld [vmem:[%s4782_s1 + $0x40] sm:$0xff]  ;;  %v415_v26 = vld [vmem:[%s4782_s1 + $0x48] sm:$0xff] }
   0x7   :  { %v2797_v24 = vpack.c.bf16 %v445_v22, %v444_v21  ;;  %v446_v27 = vld [vmem:[%s4782_s1 + $0x140] sm:$0xff]  ;;  %v447_v28 = vld [vmem:[%s4782_s1 + $0x148] sm:$0xff]  ;;  %v2372_v29 = vpack.c.bf16 %v415_v26, %v414_v25  ;;  %v416_v31 = vld [vmem:[%s4782_s1 + $0x50] sm:$0xff] }
   0x8   :  { %2364 = vmatpush1.bf16.msra.mxu1 %v2363_v11  ;;  %v2814_v30 = vpack.c.bf16 %v447_v28, %v446_v27  ;;  %v417_v32 = vld [vmem:[%s4782_s1 + $0x58] sm:$0xff]  ;;  %v448_v33 = vld [vmem:[%s4782_s1 + $0x150] sm:$0xff]  ;;  %v418_v37 = vld [vmem:[%s4782_s1 + $0x60] sm:$0xff] }
   0x9   :  { %2412 = vmatpush1.bf16.msra.mxu0 %v2763_v12  ;;  %2365 = vmatprep.subr.bf16.mxu1 %v2712_v0  ;;  %v449_v34 = vld [vmem:[%s4782_s1 + $0x158] sm:$0xff]  ;;  %v2375_v35 = vpack.c.bf16 %v417_v32, %v416_v31  ;;  %v419_v38 = vld [vmem:[%s4782_s1 + $0x68] sm:$0xff]  ;;  %v450_v39 = vld [vmem:[%s4782_s1 + $0x160] sm:$0xff] }
   0xa   :  { %2413 = vmatprep.subr.bf16.mxu0 %v2712_v0  ;;  %v2831_v36 = vpack.c.bf16 %v449_v34, %v448_v33  ;;  %v451_v40 = vld [vmem:[%s4782_s1 + $0x168] sm:$0xff]  ;;  %v17_v42 = vld [vmem:[%s4783_s0 + $0x18] sm:$0xff]  ;;  %v2378_v43 = vpack.c.bf16 %v419_v38, %v418_v37  ;;  %v420_v45 = vld [vmem:[%s4782_s1 + $0x70] sm:$0xff] }
   0xb   :  { %v15_v41 = vld [vmem:[%s4783_s0 + $0x8] sm:$0xff]  ;;  %1084 = vmatprep.mubr.f32.mxu0 %v17_v42  ;;  %v2854_v44 = vpack.c.bf16 %v451_v40, %v450_v39  ;;  %v421_v46 = vld [vmem:[%s4782_s1 + $0x78] sm:$0xff]  ;;  %v452_v47 = vld [vmem:[%s4782_s1 + $0x170] sm:$0xff] }
   0xc   :  { %2367 = vmatpush1.bf16.msra.mxu1 %v2366_v17  ;;  %739 = vmatprep.mubr.f32.mxu1 %v15_v41  ;;  %v453_v48 = vld [vmem:[%s4782_s1 + $0x178] sm:$0xff]  ;;  %v2381_v49 = vpack.c.bf16 %v421_v46, %v420_v45  ;;  %v422_v51 = vld [vmem:[%s4782_s1 + $0x80] sm:$0xff]  ;;  %v423_v52 = vld [vmem:[%s4782_s1 + $0x88] sm:$0xff] }
   0xd   :  { %2415 = vmatpush1.bf16.msra.mxu0 %v2780_v18  ;;  %2368 = vmatprep.subr.bf16.mxu1 %v2712_v0  ;;  %v2871_v50 = vpack.c.bf16 %v453_v48, %v452_v47  ;;  %v454_v53 = vld [vmem:[%s4782_s1 + $0x180] sm:$0xff]  ;;  %v455_v54 = vld [vmem:[%s4782_s1 + $0x188] sm:$0xff]  ;;  %v2384_v55 = vpack.c.bf16 %v423_v52, %v422_v51  ;;  %v424_v57 = vld [vmem:[%s4782_s1 + $0x90] sm:$0xff] }
   0xe   :  { %2416 = vmatprep.subr.bf16.mxu0 %v2712_v0  ;;  %v2888_v56 = vpack.c.bf16 %v455_v54, %v454_v53  ;;  %v425_v58 = vld [vmem:[%s4782_s1 + $0x98] sm:$0xff]  ;;  %v456_v59 = vld [vmem:[%s4782_s1 + $0x190] sm:$0xff]  ;;  %v426_v63 = vld [vmem:[%s4782_s1 + $0xa0] sm:$0xff] }
   0xf   :  { %v457_v60 = vld [vmem:[%s4782_s1 + $0x198] sm:$0xff]  ;;  %v2387_v61 = vpack.c.bf16 %v425_v58, %v424_v57  ;;  %v427_v1 = vld [vmem:[%s4782_s1 + $0xa8] sm:$0xff]  ;;  %v458_v2 = vld [vmem:[%s4782_s1 + $0x1a0] sm:$0xff] }
  0x10   :  { %2370 = vmatpush1.bf16.msra.mxu1 %v2369_v23  ;;  %v2905_v62 = vpack.c.bf16 %v457_v60, %v456_v59  ;;  %v459_v3 = vld [vmem:[%s4782_s1 + $0x1a8] sm:$0xff]  ;;  %v2390_v4 = vpack.c.bf16 %v427_v1, %v426_v63  ;;  %v428_v6 = vld [vmem:[%s4782_s1 + $0xb0] sm:$0xff]  ;;  %v429_v7 = vld [vmem:[%s4782_s1 + $0xb8] sm:$0xff] }
  0x11   :  { %2418 = vmatpush1.bf16.msra.mxu0 %v2797_v24  ;;  %2371 = vmatprep.subr.bf16.mxu1 %v2712_v0  ;;  %v2922_v5 = vpack.c.bf16 %v459_v3, %v458_v2  ;;  %v460_v9 = vld [vmem:[%s4782_s1 + $0x1b0] sm:$0xff]  ;;  %v461_v10 = vld [vmem:[%s4782_s1 + $0x1b8] sm:$0xff]  ;;  %v2393_v11 = vpack.c.bf16 %v429_v7, %v428_v6  ;;  %v430_v14 = vld [vmem:[%s4782_s1 + $0xc0] sm:$0xff] }
  0x12   :  { %2419 = vmatprep.subr.bf16.mxu0 %v2712_v0  ;;  %v2939_v13 = vpack.c.bf16 %v461_v10, %v460_v9  ;;  %v431_v15 = vld [vmem:[%s4782_s1 + $0xc8] sm:$0xff]  ;;  %v462_v16 = vld [vmem:[%s4782_s1 + $0x1c0] sm:$0xff]  ;;  %v432_v21 = vld [vmem:[%s4782_s1 + $0xd0] sm:$0xff] }
  0x13   :  { %v463_v17 = vld [vmem:[%s4782_s1 + $0x1c8] sm:$0xff]  ;;  %v2396_v19 = vpack.c.bf16 %v431_v15, %v430_v14  ;;  %v433_v22 = vld [vmem:[%s4782_s1 + $0xd8] sm:$0xff]  ;;  %v464_v23 = vld [vmem:[%s4782_s1 + $0x1d0] sm:$0xff] }
  0x14   :  { %2373 = vmatpush1.bf16.msra.mxu1 %v2372_v29  ;;  %v2956_v20 = vpack.c.bf16 %v463_v17, %v462_v16  ;;  %v465_v25 = vld [vmem:[%s4782_s1 + $0x1d8] sm:$0xff]  ;;  %v2399_v26 = vpack.c.bf16 %v433_v22, %v432_v21  ;;  %v434_v28 = vld [vmem:[%s4782_s1 + $0xe0] sm:$0xff]  ;;  %v435_v29 = vld [vmem:[%s4782_s1 + $0xe8] sm:$0xff] }
  0x15   :  { %2421 = vmatpush1.bf16.msra.mxu0 %v2814_v30  ;;  %2374 = vmatprep.subr.bf16.mxu1 %v2712_v0  ;;  %v2973_v27 = vpack.c.bf16 %v465_v25, %v464_v23  ;;  %v466_v31 = vld [vmem:[%s4782_s1 + $0x1e0] sm:$0xff]  ;;  %v467_v32 = vld [vmem:[%s4782_s1 + $0x1e8] sm:$0xff]  ;;  %v2402_v33 = vpack.c.bf16 %v435_v29, %v434_v28  ;;  %v437_v37 = vld [vmem:[%s4782_s1 + $0xf8] sm:$0xff] }
  0x16   :  { %2422 = vmatprep.subr.bf16.mxu0 %v2712_v0  ;;  %v2990_v34 = vpack.c.bf16 %v467_v32, %v466_v31  ;;  %v468_v38 = vld [vmem:[%s4782_s1 + $0x1f0] sm:$0xff]  ;;  %v469_v39 = vld [vmem:[%s4782_s1 + $0x1f8] sm:$0xff]  ;;  %v470_v42 = vld [vmem:[%s4782_s1 + $0x200] sm:$0xff] }
  0x17   :  { %v3007_v41 = vpack.c.bf16 %v469_v39, %v468_v38  ;;  %v14_v45 = vld [vmem:[%s4783_s0] sm:$0xff]  ;;  %v16_v46 = vld [vmem:[%s4783_s0 + $0x10] sm:$0xff]  ;;  %v473_v51 = vld [vmem:[%s4782_s1 + $0x218] sm:$0xff] }
  0x18   :  { %2376 = vmatpush1.bf16.msra.mxu1 %v2375_v35  ;;  %v436_v35 = vld [vmem:[%s4782_s1 + $0xf0] sm:$0xff]  ;;  %v22_v48 = vld [vmem:[%s4783_s0 + $0x40] sm:$0xff]  ;;  %v21_v53 = vld [vmem:[%s4783_s0 + $0x38] sm:$0xff] }
  0x19   :  { %2424 = vmatpush1.bf16.msra.mxu0 %v2831_v36  ;;  %2377 = vmatprep.subr.bf16.mxu1 %v2712_v0  ;;  %v2405_v40 = vpack.c.bf16 %v437_v37, %v436_v35  ;;  %v24_v52 = vld [vmem:[%s4783_s0 + $0x50] sm:$0xff]  ;;  %v23_v54 = vld [vmem:[%s4783_s0 + $0x48] sm:$0xff]  ;;  %v474_v58 = vld [vmem:[%s4782_s1 + $0x220] sm:$0xff] }
  0x1a   :  { %2425 = vmatprep.subr.bf16.mxu0 %v2712_v0  ;;  %v475_v59 = vld [vmem:[%s4782_s1 + $0x228] sm:$0xff]  ;;  %v28_v60 = vld [vmem:[%s4783_s0 + $0x70] sm:$0xff]  ;;  %v38_v2 = vld [vmem:[%s4783_s0 + $0xc0] sm:$0xff] }
  0x1b   :  { %v36_v63 = vld [vmem:[%s4783_s0 + $0xb0] sm:$0xff]  ;;  %v2462_v1 = vpack.c.bf16 %v475_v59, %v474_v58  ;;  %v35_v6 = vld [vmem:[%s4783_s0 + $0xa8] sm:$0xff]  ;;  %v45_v10 = vld [vmem:[%s4783_s0 + $0xf8] sm:$0xff] }
  0x1c   :  { %2379 = vmatpush1.bf16.msra.mxu1 %v2378_v43  ;;  %v471_v43 = vld [vmem:[%s4782_s1 + $0x208] sm:$0xff]  ;;  %v476_v3 = vld [vmem:[%s4782_s1 + $0x230] sm:$0xff]  ;;  %v42_v15 = vld [vmem:[%s4783_s0 + $0xe0] sm:$0xff] }
  0x1d   :  { %2427 = vmatpush1.bf16.msra.mxu0 %v2854_v44  ;;  %2380 = vmatprep.subr.bf16.mxu1 %v2712_v0  ;;  %v2456_v47 = vpack.c.bf16 %v471_v43, %v470_v42  ;;  %v43_v7 = vld [vmem:[%s4783_s0 + $0xe8] sm:$0xff]  ;;  %v50_v16 = vld [vmem:[%s4783_s0 + $0x120] sm:$0xff]  ;;  %v480_v21 = vld [vmem:[%s4782_s1 + $0x250] sm:$0xff] }
  0x1e   :  { %2428 = vmatprep.subr.bf16.mxu0 %v2712_v0  ;;  %v479_v14 = vld [vmem:[%s4782_s1 + $0x248] sm:$0xff]  ;;  %v481_v22 = vld [vmem:[%s4782_s1 + $0x258] sm:$0xff]  ;;  %v482_v29 = vld [vmem:[%s4782_s1 + $0x260] sm:$0xff] }
  0x1f   :  { %v49_v23 = vld [vmem:[%s4783_s0 + $0x118] sm:$0xff]  ;;  %v59_v28 = vld [vmem:[%s4783_s0 + $0x168] sm:$0xff]  ;;  %v56_v32 = vld [vmem:[%s4783_s0 + $0x150] sm:$0xff] }
  0x20   :  { %2382 = vmatpush1.bf16.msra.mxu1 %v2381_v49  ;;  %v472_v49 = vld [vmem:[%s4782_s1 + $0x210] sm:$0xff]  ;;  %v57_v25 = vld [vmem:[%s4783_s0 + $0x158] sm:$0xff]  ;;  %v483_v31 = vld [vmem:[%s4782_s1 + $0x268] sm:$0xff] }
  0x21   :  { %2430 = vmatpush1.bf16.msra.mxu0 %v2871_v50  ;;  %2383 = vmatprep.subr.bf16.mxu1 %v2712_v0  ;;  %v2459_v57 = vpack.c.bf16 %v473_v51, %v472_v49  ;;  %v2474_v35 = vpack.c.bf16 %v483_v31, %v482_v29  ;;  %v66_v37 = vld [vmem:[%s4783_s0 + $0x1a0] sm:$0xff]  ;;  %v484_v38 = vld [vmem:[%s4782_s1 + $0x270] sm:$0xff]  ;;  %v485_v39 = vld [vmem:[%s4782_s1 + $0x278] sm:$0xff] }
  0x22   :  { %2431 = vmatprep.subr.bf16.mxu0 %v2712_v0  ;;  %v71_v42 = vld [vmem:[%s4783_s0 + $0x1c8] sm:$0xff]  ;;  %v2477_v43 = vpack.c.bf16 %v485_v39, %v484_v38  ;;  %v72_v49 = vld [vmem:[%s4783_s0 + $0x1d0] sm:$0xff]  ;;  %v78_v51 = vld [vmem:[%s4783_s0 + $0x200] sm:$0xff] }
  0x23   :  { %v87_v58 = vld [vmem:[%s4783_s0 + $0x248] sm:$0xff]  ;;  %v490_v59 = vld [vmem:[%s4782_s1 + $0x2a0] sm:$0xff]  ;;  %v120_v31 = vld [vmem:[%s4783_s0 + $0x350] sm:$0xff] }
  0x24   :  { %2385 = vmatpush1.bf16.msra.mxu1 %v2384_v55  ;;  %v29_v55 = vld [vmem:[%s4783_s0 + $0x78] sm:$0xff]  ;;  %v114_v29 = vld [vmem:[%s4783_s0 + $0x320] sm:$0xff]  ;;  %v127_v38 = vld [vmem:[%s4783_s0 + $0x388] sm:$0xff] }
  0x25   :  { %2433 = vmatpush1.bf16.msra.mxu0 %v2888_v56  ;;  %2386 = vmatprep.subr.bf16.mxu1 %v2712_v0  ;;  %v129_v39 = vld [vmem:[%s4783_s0 + $0x398] sm:$0xff] }
  0x26   :  { %2434 = vmatprep.subr.bf16.mxu0 %v2712_v0 }
  0x28   :  { %2388 = vmatpush1.bf16.msra.mxu1 %v2387_v61  ;;  %v30_v61 = vld [vmem:[%s4783_s0 + $0x80] sm:$0xff] }
  0x29   :  { %2436 = vmatpush1.bf16.msra.mxu0 %v2905_v62  ;;  %2389 = vmatprep.subr.bf16.mxu1 %v2712_v0 }
  0x2a   :  { %2437 = vmatprep.subr.bf16.mxu0 %v2712_v0 }
  0x2c   :  { %2391 = vmatpush1.bf16.msra.mxu1 %v2390_v4  ;;  %v477_v4 = vld [vmem:[%s4782_s1 + $0x238] sm:$0xff] }
  0x2d   :  { %2439 = vmatpush1.bf16.msra.mxu0 %v2922_v5  ;;  %2392 = vmatprep.subr.bf16.mxu1 %v2712_v0  ;;  %v2465_v9 = vpack.c.bf16 %v477_v4, %v476_v3  ;;  %v492_v3 = vld [vmem:[%s4782_s1 + $0x2b0] sm:$0xff]  ;;  %v493_v4 = vld [vmem:[%s4782_s1 + $0x2b8] sm:$0xff] }
  0x2e   :  { %2440 = vmatprep.subr.bf16.mxu0 %v2712_v0 }
  0x30   :  { %2394 = vmatpush1.bf16.msra.mxu1 %v2393_v11  ;;  %v478_v11 = vld [vmem:[%s4782_s1 + $0x240] sm:$0xff] }
  0x31   :  { %2442 = vmatpush1.bf16.msra.mxu0 %v2939_v13  ;;  %2395 = vmatprep.subr.bf16.mxu1 %v2712_v0  ;;  %v2468_v17 = vpack.c.bf16 %v479_v14, %v478_v11  ;;  %v495_v11 = vld [vmem:[%s4782_s1 + $0x2c8] sm:$0xff]  ;;  %v98_v14 = vld [vmem:[%s4783_s0 + $0x2a0] sm:$0xff] }
  0x32   :  { %2443 = vmatprep.subr.bf16.mxu0 %v2712_v0 }
  0x34   :  { %2397 = vmatpush1.bf16.msra.mxu1 %v2396_v19  ;;  %v52_v19 = vld [vmem:[%s4783_s0 + $0x130] sm:$0xff] }
  0x35   :  { %2445 = vmatpush1.bf16.msra.mxu0 %v2956_v20  ;;  %2398 = vmatprep.subr.bf16.mxu1 %v2712_v0 }
  0x36   :  { %2446 = vmatprep.subr.bf16.mxu0 %v2712_v0 }
  0x38   :  { %2400 = vmatpush1.bf16.msra.mxu1 %v2399_v26  ;;  %v2471_v26 = vpack.c.bf16 %v481_v22, %v480_v21  ;;  %v105_v21 = vld [vmem:[%s4783_s0 + $0x2d8] sm:$0xff]  ;;  %v107_v22 = vld [vmem:[%s4783_s0 + $0x2e8] sm:$0xff] }
  0x39   :  { %2448 = vmatpush1.bf16.msra.mxu0 %v2973_v27  ;;  %2401 = vmatprep.subr.bf16.mxu1 %v2712_v0 }
  0x3a   :  { %2449 = vmatprep.subr.bf16.mxu0 %v2712_v0 }
  0x3c   :  { %2403 = vmatpush1.bf16.msra.mxu1 %v2402_v33  ;;  %v64_v33 = vld [vmem:[%s4783_s0 + $0x190] sm:$0xff] }
  0x3d   :  { %2451 = vmatpush1.bf16.msra.mxu0 %v2990_v34  ;;  %2404 = vmatprep.subr.bf16.mxu1 %v2712_v0 }
  0x3e   :  { %2452 = vmatprep.subr.bf16.mxu0 %v2712_v0 }
  0x40   :  { %2406 = vmatpush1.bf16.msra.mxu1 %v2405_v40  ;;  %v63_v40 = vld [vmem:[%s4783_s0 + $0x188] sm:$0xff] }
  0x41   :  { %2454 = vmatpush1.bf16.msra.mxu0 %v3007_v41  ;;  %2511 = vmatprep.subr.bf16.mxu1 %v2712_v0 }
  0x42   :  { %2455 = vmatprep.subr.bf16.mxu0 %v2712_v0 }
  0x43   :  { %740 = vmatmul.mubr.f32.vlgmr.msra.gmra.mrb[0].mxu1 %v14_v45  ;;  %v73_v45 = vld [vmem:[%s4783_s0 + $0x1d8] sm:$0xff] }
  0x44   :  { %1085 = vmatmul.mubr.f32.vlgmr.msra.gmra.mrb[0].mxu0 %v16_v46  ;;  %2527 = vmatpush1.bf16.msra.mxu1 %v2753_v8  ;;  %v31_v8 = vld [vmem:[%s4783_s0 + $0x88] sm:$0xff]  ;;  %v486_v46 = vld [vmem:[%s4782_s1 + $0x280] sm:$0xff] }
  0x45   :  { %2457 = vmatpush1.bf16.msra.mxu0 %v2456_v47  ;;  %744 = vmatprep.mubr.f32.mxu1 %v22_v48  ;;  %v487_v47 = vld [vmem:[%s4782_s1 + $0x288] sm:$0xff]  ;;  %v70_v48 = vld [vmem:[%s4783_s0 + $0x1c0] sm:$0xff] }
  0x46   :  { %1089 = vmatprep.mubr.f32.mxu0 %v24_v52  ;;  %2458 = vmatprep.subr.bf16.mxu0 %v2712_v0  ;;  %v80_v52 = vld [vmem:[%s4783_s0 + $0x210] sm:$0xff] }
  0x47   :  { %745 = vmatmul.mubr.f32.gmra.mrb[2].mxu1 %v21_v53  ;;  %2512 = vmatprep.subr.bf16.mxu1 %v2712_v0  ;;  %v488_v53 = vld [vmem:[%s4782_s1 + $0x290] sm:$0xff] }
  0x48   :  { %1090 = vmatmul.mubr.f32.gmra.mrb[2].mxu0 %v23_v54  ;;  %749 = vmatprep.mubr.f32.mxu1 %v29_v55  ;;  %v489_v54 = vld [vmem:[%s4782_s1 + $0x298] sm:$0xff] }
  0x49   :  { %1094 = vmatprep.mubr.f32.mxu0 %v31_v8  ;;  %2460 = vmatpush1.bf16.msra.mxu0 %v2459_v57  ;;  %v77_v55 = vld [vmem:[%s4783_s0 + $0x1f8] sm:$0xff]  ;;  %v79_v57 = vld [vmem:[%s4783_s0 + $0x208] sm:$0xff] }
  0x4a   :  { %2528 = vmatpush1.bf16.msra.mxu1 %v2763_v12  ;;  %2461 = vmatprep.subr.bf16.mxu0 %v2712_v0  ;;  %v37_v12 = vld [vmem:[%s4783_s0 + $0xb8] sm:$0xff] }
  0x4b   :  { %750 = vmatmul.mubr.f32.gmra.mrb[4].mxu1 %v28_v60  ;;  %2513 = vmatprep.subr.bf16.mxu1 %v2712_v0  ;;  %v85_v8 = vld [vmem:[%s4783_s0 + $0x238] sm:$0xff]  ;;  %v491_v60 = vld [vmem:[%s4782_s1 + $0x2a8] sm:$0xff] }
  0x4c   :  { %1095 = vmatmul.mubr.f32.gmra.mrb[4].mxu0 %v30_v61  ;;  %754 = vmatprep.mubr.f32.mxu1 %v36_v63  ;;  %v84_v61 = vld [vmem:[%s4783_s0 + $0x230] sm:$0xff]  ;;  %v86_v63 = vld [vmem:[%s4783_s0 + $0x240] sm:$0xff] }
  0x4d   :  { %1099 = vmatprep.mubr.f32.mxu0 %v38_v2  ;;  %2463 = vmatpush1.bf16.msra.mxu0 %v2462_v1  ;;  %v92_v1 = vld [vmem:[%s4783_s0 + $0x270] sm:$0xff]  ;;  %v94_v2 = vld [vmem:[%s4783_s0 + $0x280] sm:$0xff] }
  0x4e   :  { %2529 = vmatpush1.bf16.msra.mxu1 %v2780_v18  ;;  %2464 = vmatprep.subr.bf16.mxu0 %v2712_v0  ;;  %v44_v18 = vld [vmem:[%s4783_s0 + $0xf0] sm:$0xff] }
  0x4f   :  { %755 = vmatmul.mubr.f32.gmra.mrb[6].mxu1 %v35_v6  ;;  %2514 = vmatprep.subr.bf16.mxu1 %v2712_v0  ;;  %v91_v6 = vld [vmem:[%s4783_s0 + $0x268] sm:$0xff] }
  0x50   :  { %1100 = vmatmul.mubr.f32.gmra.mrb[6].mxu0 %v37_v12  ;;  %759 = vmatprep.mubr.f32.mxu1 %v43_v7  ;;  %v93_v12 = vld [vmem:[%s4783_s0 + $0x278] sm:$0xff]  ;;  %v99_v7 = vld [vmem:[%s4783_s0 + $0x2a8] sm:$0xff] }
  0x51   :  { %1104 = vmatprep.mubr.f32.mxu0 %v45_v10  ;;  %2466 = vmatpush1.bf16.msra.mxu0 %v2465_v9  ;;  %v101_v9 = vld [vmem:[%s4783_s0 + $0x2b8] sm:$0xff]  ;;  %v494_v10 = vld [vmem:[%s4782_s1 + $0x2c0] sm:$0xff] }
  0x52   :  { %2467 = vmatprep.subr.bf16.mxu0 %v2712_v0  ;;  %2530 = vmatpush1.bf16.msra.mxu1 %v2797_v24  ;;  %v51_v24 = vld [vmem:[%s4783_s0 + $0x128] sm:$0xff] }
  0x53   :  { %760 = vmatmul.mubr.f32.gmra.mrb[8].mxu1 %v42_v15  ;;  %2515 = vmatprep.subr.bf16.mxu1 %v2712_v0  ;;  %v100_v15 = vld [vmem:[%s4783_s0 + $0x2b0] sm:$0xff] }
  0x54   :  { %1105 = vmatmul.mubr.f32.gmra.mrb[8].mxu0 %v44_v18  ;;  %764 = vmatprep.mubr.f32.mxu1 %v50_v16  ;;  %v106_v18 = vld [vmem:[%s4783_s0 + $0x2e0] sm:$0xff]  ;;  %v108_v16 = vld [vmem:[%s4783_s0 + $0x2f0] sm:$0xff] }
  0x55   :  { %1109 = vmatprep.mubr.f32.mxu0 %v52_v19  ;;  %2469 = vmatpush1.bf16.msra.mxu0 %v2468_v17  ;;  %v496_v17 = vld [vmem:[%s4782_s1 + $0x2d0] sm:$0xff]  ;;  %v497_v19 = vld [vmem:[%s4782_s1 + $0x2d8] sm:$0xff] }
  0x56   :  { %2470 = vmatprep.subr.bf16.mxu0 %v2712_v0  ;;  %2531 = vmatpush1.bf16.msra.mxu1 %v2814_v30  ;;  %v58_v30 = vld [vmem:[%s4783_s0 + $0x160] sm:$0xff] }
  0x57   :  { %765 = vmatmul.mubr.f32.gmra.mrb[10].mxu1 %v49_v23  ;;  %2516 = vmatprep.subr.bf16.mxu1 %v2712_v0  ;;  %v113_v23 = vld [vmem:[%s4783_s0 + $0x318] sm:$0xff] }
  0x58   :  { %1110 = vmatmul.mubr.f32.gmra.mrb[10].mxu0 %v51_v24  ;;  %769 = vmatprep.mubr.f32.mxu1 %v57_v25  ;;  %v115_v24 = vld [vmem:[%s4783_s0 + $0x328] sm:$0xff]  ;;  %v498_v25 = vld [vmem:[%s4782_s1 + $0x2e0] sm:$0xff] }
  0x59   :  { %1114 = vmatprep.mubr.f32.mxu0 %v59_v28  ;;  %2472 = vmatpush1.bf16.msra.mxu0 %v2471_v26  ;;  %v499_v26 = vld [vmem:[%s4782_s1 + $0x2e8] sm:$0xff]  ;;  %v112_v28 = vld [vmem:[%s4783_s0 + $0x310] sm:$0xff] }
  0x5a   :  { %2473 = vmatprep.subr.bf16.mxu0 %v2712_v0  ;;  %2532 = vmatpush1.bf16.msra.mxu1 %v2831_v36  ;;  %v65_v36 = vld [vmem:[%s4783_s0 + $0x198] sm:$0xff] }
  0x5b   :  { %770 = vmatmul.mubr.f32.gmra.mrb[12].mxu1 %v56_v32  ;;  %2517 = vmatprep.subr.bf16.mxu1 %v2712_v0  ;;  %v122_v32 = vld [vmem:[%s4783_s0 + $0x360] sm:$0xff] }
  0x5c   :  { %1115 = vmatmul.mubr.f32.gmra.mrb[12].mxu0 %v58_v30  ;;  %774 = vmatprep.mubr.f32.mxu1 %v64_v33  ;;  %v500_v30 = vld [vmem:[%s4782_s1 + $0x2f0] sm:$0xff]  ;;  %v501_v33 = vld [vmem:[%s4782_s1 + $0x2f8] sm:$0xff] }
  0x5d   :  { %1119 = vmatprep.mubr.f32.mxu0 %v66_v37  ;;  %2475 = vmatpush1.bf16.msra.mxu0 %v2474_v35  ;;  %v119_v35 = vld [vmem:[%s4783_s0 + $0x348] sm:$0xff]  ;;  %v121_v37 = vld [vmem:[%s4783_s0 + $0x358] sm:$0xff] }
  0x5e   :  { %2476 = vmatprep.subr.bf16.mxu0 %v2712_v0  ;;  %2533 = vmatpush1.bf16.msra.mxu1 %v2854_v44  ;;  %v2480_v44 = vpack.c.bf16 %v487_v47, %v486_v46  ;;  %v140_v46 = vld [vmem:[%s4783_s0 + $0x3f0] sm:$0xff]  ;;  %v142_v47 = vld [vmem:[%s4783_s0 + $0x400] sm:$0xff] }
  0x5f   :  { %775 = vmatmul.mubr.f32.gmra.mrb[14].mxu1 %v63_v40  ;;  %2518 = vmatprep.subr.bf16.mxu1 %v2712_v0  ;;  %v126_v40 = vld [vmem:[%s4783_s0 + $0x380] sm:$0xff] }
  0x60   :  { %1120 = vmatmul.mubr.f32.gmra.mrb[14].mxu0 %v65_v36  ;;  %779 = vmatprep.mubr.f32.mxu1 %v71_v42  ;;  %v128_v36 = vld [vmem:[%s4783_s0 + $0x390] sm:$0xff]  ;;  %v134_v42 = vld [vmem:[%s4783_s0 + $0x3c0] sm:$0xff] }
  0x61   :  { %1124 = vmatprep.mubr.f32.mxu0 %v73_v45  ;;  %2478 = vmatpush1.bf16.msra.mxu0 %v2477_v43  ;;  %v135_v43 = vld [vmem:[%s4783_s0 + $0x3c8] sm:$0xff]  ;;  %v141_v45 = vld [vmem:[%s4783_s0 + $0x3f8] sm:$0xff] }
  0x62   :  { %2479 = vmatprep.subr.bf16.mxu0 %v2712_v0  ;;  %2534 = vmatpush1.bf16.msra.mxu1 %v2871_v50  ;;  %v2483_v50 = vpack.c.bf16 %v489_v54, %v488_v53  ;;  %v157_v53 = vld [vmem:[%s4783_s0 + $0x478] sm:$0xff]  ;;  %v154_v54 = vld [vmem:[%s4783_s0 + $0x460] sm:$0xff] }
  0x63   :  { %780 = vmatmul.mubr.f32.gmra.mrb[16].mxu1 %v70_v48  ;;  %2519 = vmatprep.subr.bf16.mxu1 %v2712_v0  ;;  %v148_v48 = vld [vmem:[%s4783_s0 + $0x430] sm:$0xff] }
  0x64   :  { %1125 = vmatmul.mubr.f32.gmra.mrb[16].mxu0 %v72_v49  ;;  %784 = vmatprep.mubr.f32.mxu1 %v78_v51  ;;  %v150_v49 = vld [vmem:[%s4783_s0 + $0x440] sm:$0xff]  ;;  %v147_v51 = vld [vmem:[%s4783_s0 + $0x428] sm:$0xff] }
  0x65   :  { %1129 = vmatprep.mubr.f32.mxu0 %v80_v52  ;;  %2481 = vmatpush1.bf16.msra.mxu0 %v2480_v44  ;;  %v149_v44 = vld [vmem:[%s4783_s0 + $0x438] sm:$0xff]  ;;  %v155_v52 = vld [vmem:[%s4783_s0 + $0x468] sm:$0xff] }
  0x66   :  { %2482 = vmatprep.subr.bf16.mxu0 %v2712_v0  ;;  %2535 = vmatpush1.bf16.msra.mxu1 %v2888_v56  ;;  %v2486_v56 = vpack.c.bf16 %v491_v60, %v490_v59  ;;  %v169_v59 = vld [vmem:[%s4783_s0 + $0x4d8] sm:$0xff]  ;;  %v171_v60 = vld [vmem:[%s4783_s0 + $0x4e8] sm:$0xff] }
  0x67   :  { %785 = vmatmul.mubr.f32.gmra.mrb[18].mxu1 %v77_v55  ;;  %2520 = vmatprep.subr.bf16.mxu1 %v2712_v0  ;;  %v156_v55 = vld [vmem:[%s4783_s0 + $0x470] sm:$0xff] }
  0x68   :  { %1130 = vmatmul.mubr.f32.gmra.mrb[18].mxu0 %v79_v57  ;;  %789 = vmatprep.mubr.f32.mxu1 %v85_v8  ;;  %v162_v57 = vld [vmem:[%s4783_s0 + $0x4a0] sm:$0xff]  ;;  %v164_v8 = vld [vmem:[%s4783_s0 + $0x4b0] sm:$0xff] }
  0x69   :  { %1134 = vmatprep.mubr.f32.mxu0 %v87_v58  ;;  %2484 = vmatpush1.bf16.msra.mxu0 %v2483_v50  ;;  %v161_v50 = vld [vmem:[%s4783_s0 + $0x498] sm:$0xff]  ;;  %v163_v58 = vld [vmem:[%s4783_s0 + $0x4a8] sm:$0xff] }
  0x6a   :  { %2485 = vmatprep.subr.bf16.mxu0 %v2712_v0  ;;  %2536 = vmatpush1.bf16.msra.mxu1 %v2905_v62  ;;  %v2489_v62 = vpack.c.bf16 %v493_v4, %v492_v3  ;;  %v177_v3 = vld [vmem:[%s4783_s0 + $0x518] sm:$0xff]  ;;  %v183_v4 = vld [vmem:[%s4783_s0 + $0x548] sm:$0xff] }
  0x6b   :  { %790 = vmatmul.mubr.f32.gmra.mrb[20].mxu1 %v84_v61  ;;  %2521 = vmatprep.subr.bf16.mxu1 %v2712_v0  ;;  %v168_v61 = vld [vmem:[%s4783_s0 + $0x4d0] sm:$0xff] }
  0x6c   :  { %1135 = vmatmul.mubr.f32.gmra.mrb[20].mxu0 %v86_v63  ;;  %794 = vmatprep.mubr.f32.mxu1 %v92_v1  ;;  %v170_v63 = vld [vmem:[%s4783_s0 + $0x4e0] sm:$0xff]  ;;  %v176_v1 = vld [vmem:[%s4783_s0 + $0x510] sm:$0xff] }
  0x6d   :  { %1139 = vmatprep.mubr.f32.mxu0 %v94_v2  ;;  %2487 = vmatpush1.bf16.msra.mxu0 %v2486_v56  ;;  %v178_v56 = vld [vmem:[%s4783_s0 + $0x520] sm:$0xff]  ;;  %v175_v2 = vld [vmem:[%s4783_s0 + $0x508] sm:$0xff] }
  0x6e   :  { %2488 = vmatprep.subr.bf16.mxu0 %v2712_v0  ;;  %2537 = vmatpush1.bf16.msra.mxu1 %v2922_v5  ;;  %v2492_v5 = vpack.c.bf16 %v495_v11, %v494_v10  ;;  %v189_v10 = vld [vmem:[%s4783_s0 + $0x578] sm:$0xff]  ;;  %v502_v11 = vld [vmem:[%s4782_s1 + $0x300] sm:$0xff] }
  0x6f   :  { %795 = vmatmul.mubr.f32.gmra.mrb[22].mxu1 %v91_v6  ;;  %2522 = vmatprep.subr.bf16.mxu1 %v2712_v0  ;;  %v185_v6 = vld [vmem:[%s4783_s0 + $0x558] sm:$0xff] }
  0x70   :  { %1140 = vmatmul.mubr.f32.gmra.mrb[22].mxu0 %v93_v12  ;;  %799 = vmatprep.mubr.f32.mxu1 %v99_v7  ;;  %v182_v12 = vld [vmem:[%s4783_s0 + $0x540] sm:$0xff]  ;;  %v184_v7 = vld [vmem:[%s4783_s0 + $0x550] sm:$0xff] }
  0x71   :  { %1144 = vmatprep.mubr.f32.mxu0 %v101_v9  ;;  %2490 = vmatpush1.bf16.msra.mxu0 %v2489_v62  ;;  %v190_v62 = vld [vmem:[%s4783_s0 + $0x580] sm:$0xff]  ;;  %v192_v9 = vld [vmem:[%s4783_s0 + $0x590] sm:$0xff] }
  0x72   :  { %2491 = vmatprep.subr.bf16.mxu0 %v2712_v0  ;;  %2538 = vmatpush1.bf16.msra.mxu1 %v2939_v13  ;;  %v2495_v13 = vpack.c.bf16 %v497_v19, %v496_v17  ;;  %v196_v17 = vld [vmem:[%s4783_s0 + $0x5b0] sm:$0xff]  ;;  %v198_v19 = vld [vmem:[%s4783_s0 + $0x5c0] sm:$0xff] }
  0x73   :  { %800 = vmatmul.mubr.f32.gmra.mrb[24].mxu1 %v98_v14  ;;  %2523 = vmatprep.subr.bf16.mxu1 %v2712_v0  ;;  %v503_v14 = vld [vmem:[%s4782_s1 + $0x308] sm:$0xff] }
  0x74   :  { %1145 = vmatmul.mubr.f32.gmra.mrb[24].mxu0 %v100_v15  ;;  %804 = vmatprep.mubr.f32.mxu1 %v106_v18  ;;  %v191_v15 = vld [vmem:[%s4783_s0 + $0x588] sm:$0xff]  ;;  %v197_v18 = vld [vmem:[%s4783_s0 + $0x5b8] sm:$0xff] }
  0x75   :  { %1149 = vmatprep.mubr.f32.mxu0 %v108_v16  ;;  %2493 = vmatpush1.bf16.msra.mxu0 %v2492_v5  ;;  %v3470_v5 = vpack.c.bf16 %v503_v14, %v502_v11  ;;  %v199_v16 = vld [vmem:[%s4783_s0 + $0x5c8] sm:$0xff]  ;;  %v302_v11 = vld [vmem:[%s4783_s0 + $0x900] sm:$0xff]  ;;  %v304_v14 = vld [vmem:[%s4783_s0 + $0x910] sm:$0xff] }
  0x76   :  { %2494 = vmatprep.subr.bf16.mxu0 %v2712_v0  ;;  %2539 = vmatpush1.bf16.msra.mxu1 %v2956_v20  ;;  %v2498_v20 = vpack.c.bf16 %v499_v26, %v498_v25  ;;  %v213_v25 = vld [vmem:[%s4783_s0 + $0x638] sm:$0xff]  ;;  %v210_v26 = vld [vmem:[%s4783_s0 + $0x620] sm:$0xff] }
  0x77   :  { %805 = vmatmul.mubr.f32.gmra.mrb[26].mxu1 %v105_v21  ;;  %2524 = vmatprep.subr.bf16.mxu1 %v2712_v0  ;;  %v204_v21 = vld [vmem:[%s4783_s0 + $0x5f0] sm:$0xff] }
  0x78   :  { %1150 = vmatmul.mubr.f32.gmra.mrb[26].mxu0 %v107_v22  ;;  %809 = vmatprep.mubr.f32.mxu1 %v113_v23  ;;  %v206_v22 = vld [vmem:[%s4783_s0 + $0x600] sm:$0xff]  ;;  %v203_v23 = vld [vmem:[%s4783_s0 + $0x5e8] sm:$0xff] }
  0x79   :  { %1154 = vmatprep.mubr.f32.mxu0 %v115_v24  ;;  %2496 = vmatpush1.bf16.msra.mxu0 %v2495_v13  ;;  %v205_v13 = vld [vmem:[%s4783_s0 + $0x5f8] sm:$0xff]  ;;  %v211_v24 = vld [vmem:[%s4783_s0 + $0x628] sm:$0xff] }
  0x7a   :  { %2497 = vmatprep.subr.bf16.mxu0 %v2712_v0  ;;  %2540 = vmatpush1.bf16.msra.mxu1 %v2973_v27  ;;  %v2501_v27 = vpack.c.bf16 %v501_v33, %v500_v30  ;;  %v225_v30 = vld [vmem:[%s4783_s0 + $0x698] sm:$0xff]  ;;  %v227_v33 = vld [vmem:[%s4783_s0 + $0x6a8] sm:$0xff] }
  0x7b   :  { %810 = vmatmul.mubr.f32.gmra.mrb[28].mxu1 %v112_v28  ;;  %2525 = vmatprep.subr.bf16.mxu1 %v2712_v0  ;;  %v212_v28 = vld [vmem:[%s4783_s0 + $0x630] sm:$0xff] }
  0x7c   :  { %1155 = vmatmul.mubr.f32.gmra.mrb[28].mxu0 %v114_v29  ;;  %814 = vmatprep.mubr.f32.mxu1 %v120_v31  ;;  %v218_v29 = vld [vmem:[%s4783_s0 + $0x660] sm:$0xff]  ;;  %v220_v31 = vld [vmem:[%s4783_s0 + $0x670] sm:$0xff] }
  0x7d   :  { %1159 = vmatprep.mubr.f32.mxu0 %v122_v32  ;;  %2499 = vmatpush1.bf16.msra.mxu0 %v2498_v20  ;;  %v217_v20 = vld [vmem:[%s4783_s0 + $0x658] sm:$0xff]  ;;  %v219_v32 = vld [vmem:[%s4783_s0 + $0x668] sm:$0xff] }
  0x7e   :  { %2500 = vmatprep.subr.bf16.mxu0 %v2712_v0  ;;  %2541 = vmatpush1.bf16.msra.mxu1 %v2990_v34  ;;  %v133_v34 = vld [vmem:[%s4783_s0 + $0x3b8] sm:$0xff] }
  0x7f   :  { %815 = vmatmul.mubr.f32.gmra.mrb[30].mxu1 %v119_v35  ;;  %2526 = vmatprep.subr.bf16.mxu1 %v2712_v0  ;;  %v136_v0 = vld [vmem:[%s4783_s0 + $0x3d0] sm:$0xff] }
  0x80   :  { %1160 = vmatmul.mubr.f32.gmra.mrb[30].mxu0 %v121_v37  ;;  %819 = vmatprep.mubr.f32.mxu1 %v127_v38  ;;  %v224_v35 = vld [vmem:[%s4783_s0 + $0x690] sm:$0xff]  ;;  %v226_v37 = vld [vmem:[%s4783_s0 + $0x6a0] sm:$0xff] }
  0x81   :  { %1164 = vmatprep.mubr.f32.mxu0 %v129_v39  ;;  %2502 = vmatpush1.bf16.msra.mxu0 %v2501_v27  ;;  %v232_v38 = vld [vmem:[%s4783_s0 + $0x6d0] sm:$0xff]  ;;  %v234_v27 = vld [vmem:[%s4783_s0 + $0x6e0] sm:$0xff]  ;;  %v231_v39 = vld [vmem:[%s4783_s0 + $0x6c8] sm:$0xff] }
  0x82   :  { %2542 = vmatpush1.bf16.msra.mxu1 %v3007_v41  ;;  %v143_v41 = vld [vmem:[%s4783_s0 + $0x408] sm:$0xff] }
  0x83   :  { %820 = vmatmul.mubr.f32.gmra.mrb[32].mxu1 %v126_v40  ;;  %2504 = vmatprep.subr.bf16.mxu1 %v3470_v5  ;;  %v233_v40 = vld [vmem:[%s4783_s0 + $0x6d8] sm:$0xff] }
  0x84   :  { %1165 = vmatmul.mubr.f32.gmra.mrb[32].mxu0 %v128_v36  ;;  %824 = vmatprep.mubr.f32.mxu1 %v134_v42  ;;  %v239_v36 = vld [vmem:[%s4783_s0 + $0x708] sm:$0xff]  ;;  %v241_v42 = vld [vmem:[%s4783_s0 + $0x718] sm:$0xff] }
  0x85   :  { %1169 = vmatprep.mubr.f32.mxu0 %v136_v0  ;;  %v238_v0 = vld [vmem:[%s4783_s0 + $0x700] sm:$0xff] }
  0x87   :  { %825 = vmatmul.mubr.f32.gmra.mrb[34].mxu1 %v133_v34  ;;  %v240_v34 = vld [vmem:[%s4783_s0 + $0x710] sm:$0xff] }
  0x88   :  { %1170 = vmatmul.mubr.f32.gmra.mrb[34].mxu0 %v135_v43  ;;  %829 = vmatprep.mubr.f32.mxu1 %v141_v45  ;;  %v246_v43 = vld [vmem:[%s4783_s0 + $0x740] sm:$0xff]  ;;  %v248_v45 = vld [vmem:[%s4783_s0 + $0x750] sm:$0xff] }
  0x89   :  { %1174 = vmatprep.mubr.f32.mxu0 %v143_v41  ;;  %v245_v41 = vld [vmem:[%s4783_s0 + $0x738] sm:$0xff] }
  0x8b   :  { %830 = vmatmul.mubr.f32.gmra.mrb[36].mxu1 %v140_v46  ;;  %v247_v46 = vld [vmem:[%s4783_s0 + $0x748] sm:$0xff] }
  0x8c   :  { %1175 = vmatmul.mubr.f32.gmra.mrb[36].mxu0 %v142_v47  ;;  %834 = vmatprep.mubr.f32.mxu1 %v148_v48  ;;  %v253_v47 = vld [vmem:[%s4783_s0 + $0x778] sm:$0xff]  ;;  %v255_v48 = vld [vmem:[%s4783_s0 + $0x788] sm:$0xff] }
  0x8d   :  { %1179 = vmatprep.mubr.f32.mxu0 %v150_v49  ;;  %v252_v49 = vld [vmem:[%s4783_s0 + $0x770] sm:$0xff] }
  0x8f   :  { %835 = vmatmul.mubr.f32.gmra.mrb[38].mxu1 %v147_v51  ;;  %v254_v51 = vld [vmem:[%s4783_s0 + $0x780] sm:$0xff] }
  0x90   :  { %1180 = vmatmul.mubr.f32.gmra.mrb[38].mxu0 %v149_v44  ;;  %839 = vmatprep.mubr.f32.mxu1 %v155_v52  ;;  %v260_v44 = vld [vmem:[%s4783_s0 + $0x7b0] sm:$0xff]  ;;  %v262_v52 = vld [vmem:[%s4783_s0 + $0x7c0] sm:$0xff] }
  0x91   :  { %1184 = vmatprep.mubr.f32.mxu0 %v157_v53  ;;  %v259_v53 = vld [vmem:[%s4783_s0 + $0x7a8] sm:$0xff] }
  0x93   :  { %840 = vmatmul.mubr.f32.gmra.mrb[40].mxu1 %v154_v54  ;;  %v261_v54 = vld [vmem:[%s4783_s0 + $0x7b8] sm:$0xff] }
  0x94   :  { %1185 = vmatmul.mubr.f32.gmra.mrb[40].mxu0 %v156_v55  ;;  %844 = vmatprep.mubr.f32.mxu1 %v162_v57  ;;  %v267_v55 = vld [vmem:[%s4783_s0 + $0x7e8] sm:$0xff]  ;;  %v269_v57 = vld [vmem:[%s4783_s0 + $0x7f8] sm:$0xff] }
  0x95   :  { %1189 = vmatprep.mubr.f32.mxu0 %v164_v8  ;;  %v266_v8 = vld [vmem:[%s4783_s0 + $0x7e0] sm:$0xff] }
  0x97   :  { %845 = vmatmul.mubr.f32.gmra.mrb[42].mxu1 %v161_v50  ;;  %v268_v50 = vld [vmem:[%s4783_s0 + $0x7f0] sm:$0xff] }
  0x98   :  { %1190 = vmatmul.mubr.f32.gmra.mrb[42].mxu0 %v163_v58  ;;  %849 = vmatprep.mubr.f32.mxu1 %v169_v59  ;;  %v274_v58 = vld [vmem:[%s4783_s0 + $0x820] sm:$0xff]  ;;  %v276_v59 = vld [vmem:[%s4783_s0 + $0x830] sm:$0xff] }
  0x99   :  { %1194 = vmatprep.mubr.f32.mxu0 %v171_v60  ;;  %v273_v60 = vld [vmem:[%s4783_s0 + $0x818] sm:$0xff] }
  0x9b   :  { %850 = vmatmul.mubr.f32.gmra.mrb[44].mxu1 %v168_v61  ;;  %v275_v61 = vld [vmem:[%s4783_s0 + $0x828] sm:$0xff] }
  0x9c   :  { %1195 = vmatmul.mubr.f32.gmra.mrb[44].mxu0 %v170_v63  ;;  %854 = vmatprep.mubr.f32.mxu1 %v176_v1  ;;  %v281_v63 = vld [vmem:[%s4783_s0 + $0x858] sm:$0xff]  ;;  %v283_v1 = vld [vmem:[%s4783_s0 + $0x868] sm:$0xff] }
  0x9d   :  { %1199 = vmatprep.mubr.f32.mxu0 %v178_v56  ;;  %v280_v56 = vld [vmem:[%s4783_s0 + $0x850] sm:$0xff] }
  0x9f   :  { %855 = vmatmul.mubr.f32.gmra.mrb[46].mxu1 %v175_v2  ;;  %v282_v2 = vld [vmem:[%s4783_s0 + $0x860] sm:$0xff] }
  0xa0   :  { %1200 = vmatmul.mubr.f32.gmra.mrb[46].mxu0 %v177_v3  ;;  %859 = vmatprep.mubr.f32.mxu1 %v183_v4  ;;  %v288_v3 = vld [vmem:[%s4783_s0 + $0x890] sm:$0xff]  ;;  %v290_v4 = vld [vmem:[%s4783_s0 + $0x8a0] sm:$0xff] }
  0xa1   :  { %1204 = vmatprep.mubr.f32.mxu0 %v185_v6  ;;  %v287_v6 = vld [vmem:[%s4783_s0 + $0x888] sm:$0xff] }
  0xa3   :  { %860 = vmatmul.mubr.f32.gmra.mrb[48].mxu1 %v182_v12  ;;  %v289_v12 = vld [vmem:[%s4783_s0 + $0x898] sm:$0xff] }
  0xa4   :  { %1205 = vmatmul.mubr.f32.gmra.mrb[48].mxu0 %v184_v7  ;;  %864 = vmatprep.mubr.f32.mxu1 %v190_v62  ;;  %v295_v7 = vld [vmem:[%s4783_s0 + $0x8c8] sm:$0xff]  ;;  %v297_v62 = vld [vmem:[%s4783_s0 + $0x8d8] sm:$0xff] }
  0xa5   :  { %1209 = vmatprep.mubr.f32.mxu0 %v192_v9  ;;  %v294_v9 = vld [vmem:[%s4783_s0 + $0x8c0] sm:$0xff] }
  0xa7   :  { %865 = vmatmul.mubr.f32.gmra.mrb[50].mxu1 %v189_v10  ;;  %v296_v10 = vld [vmem:[%s4783_s0 + $0x8d0] sm:$0xff] }
  0xa8   :  { %1210 = vmatmul.mubr.f32.gmra.mrb[50].mxu0 %v191_v15  ;;  %869 = vmatprep.mubr.f32.mxu1 %v197_v18  ;;  %v301_v15 = vld [vmem:[%s4783_s0 + $0x8f8] sm:$0xff]  ;;  %v303_v18 = vld [vmem:[%s4783_s0 + $0x908] sm:$0xff] }
  0xa9   :  { %1214 = vmatprep.mubr.f32.mxu0 %v199_v16  ;;  %v309_v16 = vld [vmem:[%s4783_s0 + $0x938] sm:$0xff] }
  0xab   :  { %870 = vmatmul.mubr.f32.gmra.mrb[52].mxu1 %v196_v17  ;;  %v19_v17 = vld [vmem:[%s4783_s0 + $0x28] sm:$0xff] }
  0xac   :  { %1215 = vmatmul.mubr.f32.gmra.mrb[52].mxu0 %v198_v19  ;;  %874 = vmatprep.mubr.f32.mxu1 %v204_v21  ;;  %v308_v19 = vld [vmem:[%s4783_s0 + $0x930] sm:$0xff]  ;;  %v18_v21 = vld [vmem:[%s4783_s0 + $0x20] sm:$0xff] }
  0xad   :  { %1219 = vmatprep.mubr.f32.mxu0 %v206_v22  ;;  %v316_v22 = vld [vmem:[%s4783_s0 + $0x970] sm:$0xff] }
  0xaf   :  { %875 = vmatmul.mubr.f32.gmra.mrb[54].mxu1 %v203_v23  ;;  %v26_v23 = vld [vmem:[%s4783_s0 + $0x60] sm:$0xff] }
  0xb0   :  { %1220 = vmatmul.mubr.f32.gmra.mrb[54].mxu0 %v205_v13  ;;  %879 = vmatprep.mubr.f32.mxu1 %v211_v24  ;;  %v315_v13 = vld [vmem:[%s4783_s0 + $0x968] sm:$0xff]  ;;  %v25_v24 = vld [vmem:[%s4783_s0 + $0x58] sm:$0xff] }
  0xb1   :  { %1224 = vmatprep.mubr.f32.mxu0 %v213_v25  ;;  %v323_v25 = vld [vmem:[%s4783_s0 + $0x9a8] sm:$0xff] }
  0xb3   :  { %880 = vmatmul.mubr.f32.gmra.mrb[56].mxu1 %v210_v26  ;;  %v33_v26 = vld [vmem:[%s4783_s0 + $0x98] sm:$0xff] }
  0xb4   :  { %1225 = vmatmul.mubr.f32.gmra.mrb[56].mxu0 %v212_v28  ;;  %884 = vmatprep.mubr.f32.mxu1 %v218_v29  ;;  %v322_v28 = vld [vmem:[%s4783_s0 + $0x9a0] sm:$0xff]  ;;  %v32_v29 = vld [vmem:[%s4783_s0 + $0x90] sm:$0xff] }
  0xb5   :  { %1229 = vmatprep.mubr.f32.mxu0 %v220_v31  ;;  %v330_v31 = vld [vmem:[%s4783_s0 + $0x9e0] sm:$0xff] }
  0xb7   :  { %885 = vmatmul.mubr.f32.gmra.mrb[58].mxu1 %v217_v20  ;;  %v40_v20 = vld [vmem:[%s4783_s0 + $0xd0] sm:$0xff] }
  0xb8   :  { %1230 = vmatmul.mubr.f32.gmra.mrb[58].mxu0 %v219_v32  ;;  %889 = vmatprep.mubr.f32.mxu1 %v225_v30  ;;  %v329_v32 = vld [vmem:[%s4783_s0 + $0x9d8] sm:$0xff]  ;;  %v39_v30 = vld [vmem:[%s4783_s0 + $0xc8] sm:$0xff] }
  0xb9   :  { %1234 = vmatprep.mubr.f32.mxu0 %v227_v33  ;;  %v337_v33 = vld [vmem:[%s4783_s0 + $0xa18] sm:$0xff] }
  0xbb   :  { %890 = vmatmul.mubr.f32.gmra.mrb[60].mxu1 %v224_v35  ;;  %v47_v35 = vld [vmem:[%s4783_s0 + $0x108] sm:$0xff] }
  0xbc   :  { %1235 = vmatmul.mubr.f32.gmra.mrb[60].mxu0 %v226_v37  ;;  %894 = vmatprep.mubr.f32.mxu1 %v232_v38  ;;  %v336_v37 = vld [vmem:[%s4783_s0 + $0xa10] sm:$0xff]  ;;  %v46_v38 = vld [vmem:[%s4783_s0 + $0x100] sm:$0xff] }
  0xbd   :  { %1239 = vmatprep.mubr.f32.mxu0 %v234_v27  ;;  %v344_v27 = vld [vmem:[%s4783_s0 + $0xa50] sm:$0xff] }
  0xbf   :  { %895 = vmatmul.mubr.f32.gmra.mrb[62].mxu1 %v231_v39  ;;  %v54_v39 = vld [vmem:[%s4783_s0 + $0x140] sm:$0xff] }
  0xc0   :  { %1240 = vmatmul.mubr.f32.gmra.mrb[62].mxu0 %v233_v40  ;;  %899 = vmatprep.mubr.f32.mxu1 %v239_v36  ;;  %v343_v40 = vld [vmem:[%s4783_s0 + $0xa48] sm:$0xff]  ;;  %v53_v36 = vld [vmem:[%s4783_s0 + $0x138] sm:$0xff] }
  0xc1   :  { %1244 = vmatprep.mubr.f32.mxu0 %v241_v42  ;;  %v351_v42 = vld [vmem:[%s4783_s0 + $0xa88] sm:$0xff] }
  0xc3   :  { %900 = vmatmul.mubr.f32.gmra.mrb[64].mxu1 %v238_v0  ;;  %v61_v0 = vld [vmem:[%s4783_s0 + $0x178] sm:$0xff] }
  0xc4   :  { %1245 = vmatmul.mubr.f32.gmra.mrb[64].mxu0 %v240_v34  ;;  %904 = vmatprep.mubr.f32.mxu1 %v246_v43  ;;  %v350_v34 = vld [vmem:[%s4783_s0 + $0xa80] sm:$0xff]  ;;  %v60_v43 = vld [vmem:[%s4783_s0 + $0x170] sm:$0xff] }
  0xc5   :  { %1249 = vmatprep.mubr.f32.mxu0 %v248_v45  ;;  %v358_v45 = vld [vmem:[%s4783_s0 + $0xac0] sm:$0xff] }
  0xc7   :  { %905 = vmatmul.mubr.f32.gmra.mrb[66].mxu1 %v245_v41  ;;  %v68_v41 = vld [vmem:[%s4783_s0 + $0x1b0] sm:$0xff] }
  0xc8   :  { %1250 = vmatmul.mubr.f32.gmra.mrb[66].mxu0 %v247_v46  ;;  %909 = vmatprep.mubr.f32.mxu1 %v253_v47  ;;  %v357_v46 = vld [vmem:[%s4783_s0 + $0xab8] sm:$0xff]  ;;  %v67_v47 = vld [vmem:[%s4783_s0 + $0x1a8] sm:$0xff] }
  0xc9   :  { %1254 = vmatprep.mubr.f32.mxu0 %v255_v48  ;;  %v365_v48 = vld [vmem:[%s4783_s0 + $0xaf8] sm:$0xff] }
  0xcb   :  { %910 = vmatmul.mubr.f32.gmra.mrb[68].mxu1 %v252_v49  ;;  %v75_v49 = vld [vmem:[%s4783_s0 + $0x1e8] sm:$0xff] }
  0xcc   :  { %1255 = vmatmul.mubr.f32.gmra.mrb[68].mxu0 %v254_v51  ;;  %914 = vmatprep.mubr.f32.mxu1 %v260_v44  ;;  %v364_v51 = vld [vmem:[%s4783_s0 + $0xaf0] sm:$0xff]  ;;  %v74_v44 = vld [vmem:[%s4783_s0 + $0x1e0] sm:$0xff] }
  0xcd   :  { %1259 = vmatprep.mubr.f32.mxu0 %v262_v52  ;;  %v372_v52 = vld [vmem:[%s4783_s0 + $0xb30] sm:$0xff] }
  0xcf   :  { %915 = vmatmul.mubr.f32.gmra.mrb[70].mxu1 %v259_v53  ;;  %v82_v53 = vld [vmem:[%s4783_s0 + $0x220] sm:$0xff] }
  0xd0   :  { %1260 = vmatmul.mubr.f32.gmra.mrb[70].mxu0 %v261_v54  ;;  %919 = vmatprep.mubr.f32.mxu1 %v267_v55  ;;  %v371_v54 = vld [vmem:[%s4783_s0 + $0xb28] sm:$0xff]  ;;  %v81_v55 = vld [vmem:[%s4783_s0 + $0x218] sm:$0xff] }
  0xd1   :  { %1264 = vmatprep.mubr.f32.mxu0 %v269_v57  ;;  %v379_v57 = vld [vmem:[%s4783_s0 + $0xb68] sm:$0xff] }
  0xd3   :  { %920 = vmatmul.mubr.f32.gmra.mrb[72].mxu1 %v266_v8  ;;  %v89_v8 = vld [vmem:[%s4783_s0 + $0x258] sm:$0xff] }
  0xd4   :  { %1265 = vmatmul.mubr.f32.gmra.mrb[72].mxu0 %v268_v50  ;;  %924 = vmatprep.mubr.f32.mxu1 %v274_v58  ;;  %v378_v50 = vld [vmem:[%s4783_s0 + $0xb60] sm:$0xff]  ;;  %v88_v58 = vld [vmem:[%s4783_s0 + $0x250] sm:$0xff] }
  0xd5   :  { %1269 = vmatprep.mubr.f32.mxu0 %v276_v59  ;;  %v386_v59 = vld [vmem:[%s4783_s0 + $0xba0] sm:$0xff] }
  0xd7   :  { %925 = vmatmul.mubr.f32.gmra.mrb[74].mxu1 %v273_v60  ;;  %v96_v60 = vld [vmem:[%s4783_s0 + $0x290] sm:$0xff] }
  0xd8   :  { %1270 = vmatmul.mubr.f32.gmra.mrb[74].mxu0 %v275_v61  ;;  %929 = vmatprep.mubr.f32.mxu1 %v281_v63  ;;  %v385_v61 = vld [vmem:[%s4783_s0 + $0xb98] sm:$0xff]  ;;  %v95_v63 = vld [vmem:[%s4783_s0 + $0x288] sm:$0xff] }
  0xd9   :  { %1274 = vmatprep.mubr.f32.mxu0 %v283_v1  ;;  %v393_v1 = vld [vmem:[%s4783_s0 + $0xbd8] sm:$0xff] }
  0xdb   :  { %930 = vmatmul.mubr.f32.gmra.mrb[76].mxu1 %v280_v56 }
  0xdc   :  { %1275 = vmatmul.mubr.f32.gmra.mrb[76].mxu0 %v282_v2  ;;  %934 = vmatprep.mubr.f32.mxu1 %v288_v3  ;;  %v103_v2 = vld [vmem:[%s4783_s0 + $0x2c8] sm:$0xff] }
  0xdd   :  { %1279 = vmatprep.mubr.f32.mxu0 %v290_v4  ;;  %v392_v4 = vld [vmem:[%s4783_s0 + $0xbd0] sm:$0xff] }
  0xdf   :  { %935 = vmatmul.mubr.f32.gmra.mrb[78].mxu1 %v287_v6  ;;  %v102_v6 = vld [vmem:[%s4783_s0 + $0x2c0] sm:$0xff] }
  0xe0   :  { %1280 = vmatmul.mubr.f32.gmra.mrb[78].mxu0 %v289_v12  ;;  %939 = vmatprep.mubr.f32.mxu1 %v295_v7  ;;  %v400_v12 = vld [vmem:[%s4783_s0 + $0xc10] sm:$0xff] }
  0xe1   :  { %1284 = vmatprep.mubr.f32.mxu0 %v297_v62  ;;  %v110_v62 = vld [vmem:[%s4783_s0 + $0x300] sm:$0xff] }
  0xe3   :  { %940 = vmatmul.mubr.f32.gmra.mrb[80].mxu1 %v294_v9 }
  0xe4   :  { %1285 = vmatmul.mubr.f32.gmra.mrb[80].mxu0 %v296_v10  ;;  %944 = vmatprep.mubr.f32.mxu1 %v302_v11  ;;  %v399_v10 = vld [vmem:[%s4783_s0 + $0xc08] sm:$0xff]  ;;  %v109_v11 = vld [vmem:[%s4783_s0 + $0x2f8] sm:$0xff] }
  0xe5   :  { %1289 = vmatprep.mubr.f32.mxu0 %v304_v14  ;;  %v311_v14 = vld [vmem:[%s4783_s0 + $0x948] sm:$0xff] }
  0xe7   :  { %945 = vmatmul.mubr.f32.gmra.mrb[82].mxu1 %v301_v15 }
  0xe8   :  { %1290 = vmatmul.mubr.f32.gmra.mrb[82].mxu0 %v303_v18  ;;  %949 = vmatprep.mubr.f32.mxu1 %v309_v16  ;;  %v117_v18 = vld [vmem:[%s4783_s0 + $0x338] sm:$0xff] }
  0xe9   :  { %1429 = vmatprep.mubr.f32.mxu0 %v19_v17  ;;  %v504_v17 = vld [vmem:[%s4782_s1 + $0x310] sm:$0xff] }
  0xeb   :  { %950 = vmatmul.mubr.f32.gmra.mrb[84].mxu1 %v308_v19  ;;  %v505_v19 = vld [vmem:[%s4782_s1 + $0x318] sm:$0xff] }
  0xec   :  { %1430 = vmatmul.mubr.f32.vlgmr.msra.gmra.mrb[0].mxu0 %v18_v21  ;;  %954 = vmatprep.mubr.f32.mxu1 %v316_v22  ;;  %v310_v21 = vld [vmem:[%s4783_s0 + $0x940] sm:$0xff]  ;;  %v116_v22 = vld [vmem:[%s4783_s0 + $0x330] sm:$0xff] }
  0xed   :  { %1434 = vmatprep.mubr.f32.mxu0 %v26_v23 }
  0xef   :  { %955 = vmatmul.mubr.f32.gmra.mrb[86].mxu1 %v315_v13  ;;  %v318_v13 = vld [vmem:[%s4783_s0 + $0x980] sm:$0xff] }
  0xf0   :  { %1435 = vmatmul.mubr.f32.gmra.mrb[2].mxu0 %v25_v24  ;;  %959 = vmatprep.mubr.f32.mxu1 %v323_v25  ;;  %v124_v24 = vld [vmem:[%s4783_s0 + $0x370] sm:$0xff]  ;;  %v2507_v25 = vpack.c.bf16 %v505_v19, %v504_v17  ;;  %v187_v17 = vld [vmem:[%s4783_s0 + $0x568] sm:$0xff] }
  0xf1   :  { %1439 = vmatprep.mubr.f32.mxu0 %v33_v26 }
  0xf3   :  { %960 = vmatmul.mubr.f32.gmra.mrb[88].mxu1 %v322_v28  ;;  %v317_v28 = vld [vmem:[%s4783_s0 + $0x978] sm:$0xff] }
  0xf4   :  { %1440 = vmatmul.mubr.f32.gmra.mrb[4].mxu0 %v32_v29  ;;  %964 = vmatprep.mubr.f32.mxu1 %v330_v31  ;;  %v123_v29 = vld [vmem:[%s4783_s0 + $0x368] sm:$0xff]  ;;  %v325_v31 = vld [vmem:[%s4783_s0 + $0x9b8] sm:$0xff] }
  0xf5   :  { %1444 = vmatprep.mubr.f32.mxu0 %v40_v20 }
  0xf7   :  { %965 = vmatmul.mubr.f32.gmra.mrb[90].mxu1 %v329_v32 }
  0xf8   :  { %1445 = vmatmul.mubr.f32.gmra.mrb[6].mxu0 %v39_v30  ;;  %969 = vmatprep.mubr.f32.mxu1 %v337_v33  ;;  %v324_v30 = vld [vmem:[%s4783_s0 + $0x9b0] sm:$0xff]  ;;  %v130_v33 = vld [vmem:[%s4783_s0 + $0x3a0] sm:$0xff] }
  0xf9   :  { %1449 = vmatprep.mubr.f32.mxu0 %v47_v35  ;;  %v332_v35 = vld [vmem:[%s4783_s0 + $0x9f0] sm:$0xff] }
  0xfb   :  { %970 = vmatmul.mubr.f32.gmra.mrb[92].mxu1 %v336_v37 }
  0xfc   :  { %1450 = vmatmul.mubr.f32.gmra.mrb[8].mxu0 %v46_v38  ;;  %974 = vmatprep.mubr.f32.mxu1 %v344_v27  ;;  %v138_v38 = vld [vmem:[%s4783_s0 + $0x3e0] sm:$0xff] }
  0xfd   :  { %1454 = vmatprep.mubr.f32.mxu0 %v54_v39  ;;  %v331_v39 = vld [vmem:[%s4783_s0 + $0x9e8] sm:$0xff] }
  0xff   :  { %975 = vmatmul.mubr.f32.gmra.mrb[94].mxu1 %v343_v40  ;;  %v137_v40 = vld [vmem:[%s4783_s0 + $0x3d8] sm:$0xff] }
 0x100   :  { %1455 = vmatmul.mubr.f32.gmra.mrb[10].mxu0 %v53_v36  ;;  %979 = vmatprep.mubr.f32.mxu1 %v351_v42  ;;  %v339_v36 = vld [vmem:[%s4783_s0 + $0xa28] sm:$0xff] }
 0x101   :  { %1459 = vmatprep.mubr.f32.mxu0 %v61_v0  ;;  %v145_v0 = vld [vmem:[%s4783_s0 + $0x418] sm:$0xff] }
 0x103   :  { %980 = vmatmul.mubr.f32.gmra.mrb[96].mxu1 %v350_v34 }
 0x104   :  { %1460 = vmatmul.mubr.f32.gmra.mrb[12].mxu0 %v60_v43  ;;  %984 = vmatprep.mubr.f32.mxu1 %v358_v45  ;;  %v338_v43 = vld [vmem:[%s4783_s0 + $0xa20] sm:$0xff]  ;;  %v144_v45 = vld [vmem:[%s4783_s0 + $0x410] sm:$0xff] }
 0x105   :  { %1464 = vmatprep.mubr.f32.mxu0 %v68_v41  ;;  %v346_v41 = vld [vmem:[%s4783_s0 + $0xa60] sm:$0xff] }
 0x107   :  { %985 = vmatmul.mubr.f32.gmra.mrb[98].mxu1 %v357_v46 }
 0x108   :  { %1465 = vmatmul.mubr.f32.gmra.mrb[14].mxu0 %v67_v47  ;;  %989 = vmatprep.mubr.f32.mxu1 %v365_v48  ;;  %v152_v47 = vld [vmem:[%s4783_s0 + $0x450] sm:$0xff] }
 0x109   :  { %1469 = vmatprep.mubr.f32.mxu0 %v75_v49  ;;  %v345_v49 = vld [vmem:[%s4783_s0 + $0xa58] sm:$0xff] }
 0x10b   :  { %990 = vmatmul.mubr.f32.gmra.mrb[100].mxu1 %v364_v51  ;;  %v151_v51 = vld [vmem:[%s4783_s0 + $0x448] sm:$0xff] }
 0x10c   :  { %1470 = vmatmul.mubr.f32.gmra.mrb[16].mxu0 %v74_v44  ;;  %994 = vmatprep.mubr.f32.mxu1 %v372_v52  ;;  %v353_v44 = vld [vmem:[%s4783_s0 + $0xa98] sm:$0xff] }
 0x10d   :  { %1474 = vmatprep.mubr.f32.mxu0 %v82_v53  ;;  %v159_v53 = vld [vmem:[%s4783_s0 + $0x488] sm:$0xff] }
 0x10f   :  { %995 = vmatmul.mubr.f32.gmra.mrb[102].mxu1 %v371_v54 }
 0x110   :  { %1475 = vmatmul.mubr.f32.gmra.mrb[18].mxu0 %v81_v55  ;;  %999 = vmatprep.mubr.f32.mxu1 %v379_v57  ;;  %v352_v55 = vld [vmem:[%s4783_s0 + $0xa90] sm:$0xff]  ;;  %v158_v57 = vld [vmem:[%s4783_s0 + $0x480] sm:$0xff] }
 0x111   :  { %1479 = vmatprep.mubr.f32.mxu0 %v89_v8  ;;  %v360_v8 = vld [vmem:[%s4783_s0 + $0xad0] sm:$0xff] }
 0x113   :  { %1000 = vmatmul.mubr.f32.gmra.mrb[104].mxu1 %v378_v50 }
 0x114   :  { %1480 = vmatmul.mubr.f32.gmra.mrb[20].mxu0 %v88_v58  ;;  %1004 = vmatprep.mubr.f32.mxu1 %v386_v59  ;;  %v166_v58 = vld [vmem:[%s4783_s0 + $0x4c0] sm:$0xff] }
 0x115   :  { %1484 = vmatprep.mubr.f32.mxu0 %v96_v60  ;;  %v359_v60 = vld [vmem:[%s4783_s0 + $0xac8] sm:$0xff] }
 0x116   :  { %v3809_v56 = vpop.f32.mrb[0].mxu1 }
 0x117   :  { %1005 = vmatmul.mubr.f32.gmra.mrb[106].mxu1 %v385_v61  ;;  %v743_v3 = vpop.f32.mrb[1].mxu1  ;;  %v165_v61 = vld [vmem:[%s4783_s0 + $0x4b8] sm:$0xff] }
 0x118   :  { %1485 = vmatmul.mubr.f32.gmra.mrb[22].mxu0 %v95_v63  ;;  %1009 = vmatprep.mubr.f32.mxu1 %v393_v1  ;;  %v367_v63 = vld [vmem:[%s4783_s0 + $0xb08] sm:$0xff] }
 0x119   :  { %1489 = vmatprep.mubr.f32.mxu0 %v103_v2  ;;  %v173_v2 = vld [vmem:[%s4783_s0 + $0x4f8] sm:$0xff] }
 0x11a   :  { %v3823_v7 = vpop.f32.mrb[2].mxu1 }
 0x11b   :  { %1010 = vmatmul.mubr.f32.gmra.mrb[108].mxu1 %v392_v4  ;;  %v748_v9 = vpop.f32.mrb[3].mxu1  ;;  %v366_v4 = vld [vmem:[%s4783_s0 + $0xb00] sm:$0xff] }
 0x11c   :  { %1490 = vmatmul.mubr.f32.gmra.mrb[24].mxu0 %v102_v6  ;;  %1014 = vmatprep.mubr.f32.mxu1 %v400_v12  ;;  %v172_v6 = vld [vmem:[%s4783_s0 + $0x4f0] sm:$0xff]  ;;  %v374_v12 = vld [vmem:[%s4783_s0 + $0xb40] sm:$0xff] }
 0x11d   :  { %1494 = vmatprep.mubr.f32.mxu0 %v110_v62  ;;  %v180_v9 = vld [vmem:[%s4783_s0 + $0x530] sm:$0xff] }
 0x11e   :  { %v3837_v15 = vpop.f32.mrb[4].mxu1 }
 0x11f   :  { %1015 = vmatmul.mubr.f32.gmra.mrb[110].mxu1 %v399_v10  ;;  %v753_v16 = vpop.f32.mrb[5].mxu1 }
 0x120   :  { %1495 = vmatmul.mubr.f32.gmra.mrb[26].mxu0 %v109_v11  ;;  %1294 = vmatprep.mubr.f32.mxu1 %v311_v14  ;;  %v373_v11 = vld [vmem:[%s4783_s0 + $0xb38] sm:$0xff]  ;;  %v179_v14 = vld [vmem:[%s4783_s0 + $0x528] sm:$0xff] }
 0x121   :  { %1499 = vmatprep.mubr.f32.mxu0 %v117_v18  ;;  %v381_v18 = vld [vmem:[%s4783_s0 + $0xb78] sm:$0xff] }
 0x122   :  { %v3854_v23 = vpop.f32.mrb[6].mxu1 }
 0x123   :  { %1295 = vmatmul.mubr.f32.vlgmr.msra.gmra.mrb[84].mxu1 %v310_v21  ;;  %v758_v26 = vpop.f32.mrb[7].mxu1  ;;  %v380_v21 = vld [vmem:[%s4783_s0 + $0xb70] sm:$0xff] }
 0x124   :  { %1500 = vmatmul.mubr.f32.gmra.mrb[28].mxu0 %v116_v22  ;;  %2506 = vmatpush3.bf16.msra.mxu1 %v3470_v5  ;;  %v131_v5 = vld [vmem:[%s4783_s0 + $0x3a8] sm:$0xff]  ;;  %v186_v22 = vld [vmem:[%s4783_s0 + $0x560] sm:$0xff] }
 0x125   :  { %1299 = vmatprep.mubr.f32.mxu1 %v318_v13  ;;  %1504 = vmatprep.mubr.f32.mxu0 %v124_v24  ;;  %v388_v13 = vld [vmem:[%s4783_s0 + $0xbb0] sm:$0xff] }
 0x126   :  { %v3872_v20 = vpop.f32.mrb[8].mxu1  ;;  %2508 = vmatprep.subr.bf16.mxu1 %v2507_v25 }
 0x127   :  { %1300 = vmatmul.mubr.f32.gmra.mrb[86].mxu1 %v317_v28  ;;  %v763_v32 = vpop.f32.mrb[9].mxu1  ;;  %v387_v28 = vld [vmem:[%s4783_s0 + $0xba8] sm:$0xff] }
 0x128   :  { %1505 = vmatmul.mubr.f32.gmra.mrb[30].mxu0 %v123_v29  ;;  %1304 = vmatprep.mubr.f32.mxu1 %v325_v31  ;;  %v193_v29 = vld [vmem:[%s4783_s0 + $0x598] sm:$0xff]  ;;  %v395_v31 = vld [vmem:[%s4783_s0 + $0xbe8] sm:$0xff] }
 0x129   :  { %1509 = vmatprep.mubr.f32.mxu0 %v131_v5  ;;  %2510 = vmatpush3.bf16.msra.mxu1 %v2507_v25  ;;  %v194_v25 = vld [vmem:[%s4783_s0 + $0x5a0] sm:$0xff]  ;;  %v201_v32 = vld [vmem:[%s4783_s0 + $0x5d8] sm:$0xff] }
 0x12a   :  { %v3886_v37 = vpop.f32.mrb[10].mxu1 }
 0x12b   :  { %1305 = vmatmul.mubr.f32.gmra.mrb[88].mxu1 %v324_v30  ;;  %v768_v27 = vpop.f32.mrb[11].mxu1 }
 0x12c   :  { %1510 = vmatmul.mubr.f32.gmra.mrb[32].mxu0 %v130_v33  ;;  %1309 = vmatprep.mubr.f32.mxu1 %v332_v35  ;;  %v394_v33 = vld [vmem:[%s4783_s0 + $0xbe0] sm:$0xff]  ;;  %v200_v35 = vld [vmem:[%s4783_s0 + $0x5d0] sm:$0xff] }
 0x12d   :  { %1514 = vmatprep.mubr.f32.mxu0 %v138_v38  ;;  %v402_v38 = vld [vmem:[%s4783_s0 + $0xc20] sm:$0xff] }
 0x12e   :  { %v3900_v42 = vpop.f32.mrb[12].mxu1 }
 0x12f   :  { %1310 = vmatmul.mubr.f32.gmra.mrb[90].mxu1 %v331_v39  ;;  %v773_v34 = vpop.f32.mrb[13].mxu1  ;;  %v208_v39 = vld [vmem:[%s4783_s0 + $0x610] sm:$0xff] }
 0x130   :  { %1515 = vmatmul.mubr.f32.gmra.mrb[34].mxu0 %v137_v40  ;;  %1314 = vmatprep.mubr.f32.mxu1 %v339_v36  ;;  %v401_v36 = vld [vmem:[%s4783_s0 + $0xc18] sm:$0xff]  ;;  %v20_v34 = vld [vmem:[%s4783_s0 + $0x30] sm:$0xff] }
 0x131   :  { %1519 = vmatprep.mubr.f32.mxu0 %v145_v0  ;;  %v207_v0 = vld [vmem:[%s4783_s0 + $0x608] sm:$0xff] }
 0x132   :  { %v3914_v46 = vpop.f32.mrb[14].mxu1 }
 0x133   :  { %1315 = vmatmul.mubr.f32.gmra.mrb[92].mxu1 %v338_v43  ;;  %v778_v48 = vpop.f32.mrb[15].mxu1 }
 0x134   :  { %1520 = vmatmul.mubr.f32.gmra.mrb[36].mxu0 %v144_v45  ;;  %1319 = vmatprep.mubr.f32.mxu1 %v346_v41  ;;  %v215_v45 = vld [vmem:[%s4783_s0 + $0x648] sm:$0xff]  ;;  %v214_v48 = vld [vmem:[%s4783_s0 + $0x640] sm:$0xff] }
 0x135   :  { %1524 = vmatprep.mubr.f32.mxu0 %v152_v47  ;;  %v27_v47 = vld [vmem:[%s4783_s0 + $0x68] sm:$0xff] }
 0x136   :  { %v3928_v52 = vpop.f32.mrb[16].mxu1 }
 0x137   :  { %1320 = vmatmul.mubr.f32.gmra.mrb[94].mxu1 %v345_v49  ;;  %v783_v54 = vpop.f32.mrb[17].mxu1  ;;  %v34_v49 = vld [vmem:[%s4783_s0 + $0xa0] sm:$0xff] }
 0x138   :  { %1525 = vmatmul.mubr.f32.gmra.mrb[38].mxu0 %v151_v51  ;;  %1324 = vmatprep.mubr.f32.mxu1 %v353_v44  ;;  %v222_v44 = vld [vmem:[%s4783_s0 + $0x680] sm:$0xff]  ;;  %v41_v54 = vld [vmem:[%s4783_s0 + $0xd8] sm:$0xff] }
 0x139   :  { %1529 = vmatprep.mubr.f32.mxu0 %v159_v53 }
 0x13a   :  { %v3942_v50 = vpop.f32.mrb[18].mxu1 }
 0x13b   :  { %1325 = vmatmul.mubr.f32.gmra.mrb[96].mxu1 %v352_v55  ;;  %v788_v59 = vpop.f32.mrb[19].mxu1  ;;  %v221_v55 = vld [vmem:[%s4783_s0 + $0x678] sm:$0xff] }
 0x13c   :  { %1530 = vmatmul.mubr.f32.gmra.mrb[40].mxu0 %v158_v57  ;;  %1329 = vmatprep.mubr.f32.mxu1 %v360_v8  ;;  %v48_v57 = vld [vmem:[%s4783_s0 + $0x110] sm:$0xff] }
 0x13d   :  { %1534 = vmatprep.mubr.f32.mxu0 %v166_v58  ;;  %v229_v58 = vld [vmem:[%s4783_s0 + $0x6b8] sm:$0xff] }
 0x13e   :  { %v3956_v1 = vpop.f32.mrb[20].mxu1 }
 0x13f   :  { %1330 = vmatmul.mubr.f32.gmra.mrb[98].mxu1 %v359_v60  ;;  %v793_v3 = vpop.f32.mrb[21].mxu1  ;;  %v55_v60 = vld [vmem:[%s4783_s0 + $0x148] sm:$0xff] }
 0x140   :  { %1535 = vmatmul.mubr.f32.gmra.mrb[42].mxu0 %v165_v61  ;;  %1334 = vmatprep.mubr.f32.mxu1 %v367_v63  ;;  %v228_v61 = vld [vmem:[%s4783_s0 + $0x6b0] sm:$0xff]  ;;  %v62_v63 = vld [vmem:[%s4783_s0 + $0x180] sm:$0xff] }
 0x141   :  { %1539 = vmatprep.mubr.f32.mxu0 %v173_v2  ;;  %v236_v3 = vld [vmem:[%s4783_s0 + $0x6f0] sm:$0xff] }
 0x142   :  { %v3970_v62 = vpop.f32.mrb[22].mxu1 }
 0x143   :  { %1335 = vmatmul.mubr.f32.gmra.mrb[100].mxu1 %v366_v4  ;;  %v798_v10 = vpop.f32.mrb[23].mxu1 }
 0x144   :  { %1540 = vmatmul.mubr.f32.gmra.mrb[44].mxu0 %v172_v6  ;;  %1339 = vmatprep.mubr.f32.mxu1 %v374_v12  ;;  %v69_v6 = vld [vmem:[%s4783_s0 + $0x1b8] sm:$0xff]  ;;  %v235_v12 = vld [vmem:[%s4783_s0 + $0x6e8] sm:$0xff] }
 0x145   :  { %1544 = vmatprep.mubr.f32.mxu0 %v180_v9  ;;  %v76_v9 = vld [vmem:[%s4783_s0 + $0x1f0] sm:$0xff] }
 0x146   :  { %v3984_v16 = vpop.f32.mrb[24].mxu1 }
 0x147   :  { %1340 = vmatmul.mubr.f32.gmra.mrb[102].mxu1 %v373_v11  ;;  %v803_v19 = vpop.f32.mrb[25].mxu1  ;;  %v243_v11 = vld [vmem:[%s4783_s0 + $0x728] sm:$0xff] }
 0x148   :  { %1545 = vmatmul.mubr.f32.gmra.mrb[46].mxu0 %v179_v14  ;;  %1344 = vmatprep.mubr.f32.mxu1 %v381_v18  ;;  %v83_v18 = vld [vmem:[%s4783_s0 + $0x228] sm:$0xff]  ;;  %v90_v19 = vld [vmem:[%s4783_s0 + $0x260] sm:$0xff] }
 0x149   :  { %1549 = vmatprep.mubr.f32.mxu0 %v187_v17  ;;  %v242_v17 = vld [vmem:[%s4783_s0 + $0x720] sm:$0xff] }
 0x14a   :  { %v3998_v24 = vpop.f32.mrb[26].mxu1 }
 0x14b   :  { %1345 = vmatmul.mubr.f32.gmra.mrb[104].mxu1 %v380_v21  ;;  %v808_v26 = vpop.f32.mrb[27].mxu1 }
 0x14c   :  { %1550 = vmatmul.mubr.f32.gmra.mrb[48].mxu0 %v186_v22  ;;  %1349 = vmatprep.mubr.f32.mxu1 %v388_v13  ;;  %v250_v22 = vld [vmem:[%s4783_s0 + $0x760] sm:$0xff]  ;;  %v249_v26 = vld [vmem:[%s4783_s0 + $0x758] sm:$0xff] }
 0x14d   :  { %1554 = vmatprep.mubr.f32.mxu0 %v194_v25  ;;  %v97_v25 = vld [vmem:[%s4783_s0 + $0x298] sm:$0xff] }
 0x14e   :  { %v4012_v5 = vpop.f32.mrb[28].mxu1 }
 0x14f   :  { %1350 = vmatmul.mubr.f32.gmra.mrb[106].mxu1 %v387_v28  ;;  %v813_v30 = vpop.f32.mrb[29].mxu1  ;;  %v104_v28 = vld [vmem:[%s4783_s0 + $0x2d0] sm:$0xff] }
 0x150   :  { %1555 = vmatmul.mubr.f32.gmra.mrb[50].mxu0 %v193_v29  ;;  %1354 = vmatprep.mubr.f32.mxu1 %v395_v31  ;;  %v257_v31 = vld [vmem:[%s4783_s0 + $0x798] sm:$0xff]  ;;  %v111_v30 = vld [vmem:[%s4783_s0 + $0x308] sm:$0xff] }
 0x151   :  { %1559 = vmatprep.mubr.f32.mxu0 %v201_v32 }
 0x152   :  { %v4026_v27 = vpop.f32.mrb[30].mxu1 }
 0x153   :  { %1355 = vmatmul.mubr.f32.gmra.mrb[108].mxu1 %v394_v33  ;;  %v818_v40 = vpop.f32.mrb[31].mxu1  ;;  %v256_v33 = vld [vmem:[%s4783_s0 + $0x790] sm:$0xff] }
 0x154   :  { %1560 = vmatmul.mubr.f32.gmra.mrb[52].mxu0 %v200_v35  ;;  %1359 = vmatprep.mubr.f32.mxu1 %v402_v38  ;;  %v118_v35 = vld [vmem:[%s4783_s0 + $0x340] sm:$0xff] }
 0x155   :  { %1564 = vmatprep.mubr.f32.mxu0 %v208_v39  ;;  %v264_v39 = vld [vmem:[%s4783_s0 + $0x7d0] sm:$0xff] }
 0x156   :  { %v4040_v43 = vpop.f32.mrb[32].mxu1 }
 0x157   :  { %1360 = vmatmul.mubr.f32.gmra.mrb[110].mxu1 %v401_v36  ;;  %v823_v41 = vpop.f32.mrb[33].mxu1  ;;  %v125_v36 = vld [vmem:[%s4783_s0 + $0x378] sm:$0xff] }
 0x158   :  { %1565 = vmatmul.mubr.f32.gmra.mrb[54].mxu0 %v207_v0  ;;  %2275 = vmatprep.mubr.msk.f32.mxu1 %vm506_vm0, %v20_v34  ;;  %v263_v0 = vld [vmem:[%s4783_s0 + $0x7c8] sm:$0xff]  ;;  %v132_v34 = vld [vmem:[%s4783_s0 + $0x3b0] sm:$0xff] }
 0x159   :  { %1569 = vmatprep.mubr.f32.mxu0 %v215_v45  ;;  %v271_v41 = vld [vmem:[%s4783_s0 + $0x808] sm:$0xff] }
 0x15a   :  { %v4055_v51 = vpop.f32.mrb[34].mxu1 }
 0x15b   :  { %2276 = vmatmul.mubr.msk.f32.vlgmr.msra.gmra.mrb[112].mxu1 %vm506_vm0, %v27_v47  ;;  %v828_v53 = vpop.f32.mrb[35].mxu1 }
 0x15c   :  { %1570 = vmatmul.mubr.f32.gmra.mrb[56].mxu0 %v214_v48  ;;  %2278 = vmatprep.mubr.msk.f32.mxu1 %vm506_vm0, %v34_v49  ;;  %v139_v48 = vld [vmem:[%s4783_s0 + $0x3e8] sm:$0xff]  ;;  %v270_v49 = vld [vmem:[%s4783_s0 + $0x800] sm:$0xff] }
 0x15d   :  { %1574 = vmatprep.mubr.f32.mxu0 %v222_v44  ;;  %v146_v44 = vld [vmem:[%s4783_s0 + $0x420] sm:$0xff] }
 0x15e   :  { %v4071_v8 = vpop.f32.mrb[36].mxu1 }
 0x15f   :  { %2279 = vmatmul.mubr.msk.f32.gmra.mrb[114].mxu1 %vm506_vm0, %v41_v54  ;;  %v833_v59 = vpop.f32.mrb[37].mxu1  ;;  %v278_v54 = vld [vmem:[%s4783_s0 + $0x840] sm:$0xff] }
 0x160   :  { %1575 = vmatmul.mubr.f32.gmra.mrb[58].mxu0 %v221_v55  ;;  %2281 = vmatprep.mubr.msk.f32.mxu1 %vm506_vm0, %v48_v57  ;;  %v153_v57 = vld [vmem:[%s4783_s0 + $0x458] sm:$0xff]  ;;  %v160_v59 = vld [vmem:[%s4783_s0 + $0x490] sm:$0xff] }
 0x161   :  { %1579 = vmatprep.mubr.f32.mxu0 %v229_v58  ;;  %v277_v58 = vld [vmem:[%s4783_s0 + $0x838] sm:$0xff] }
 0x162   :  { %v4087_v2 = vpop.f32.mrb[38].mxu1 }
 0x163   :  { %2282 = vmatmul.mubr.msk.f32.gmra.mrb[116].mxu1 %vm506_vm0, %v55_v60  ;;  %v838_v4 = vpop.f32.mrb[39].mxu1 }
 0x164   :  { %1580 = vmatmul.mubr.f32.gmra.mrb[60].mxu0 %v228_v61  ;;  %2284 = vmatprep.mubr.msk.f32.mxu1 %vm506_vm0, %v62_v63  ;;  %v285_v61 = vld [vmem:[%s4783_s0 + $0x878] sm:$0xff]  ;;  %v284_v4 = vld [vmem:[%s4783_s0 + $0x870] sm:$0xff] }
 0x165   :  { %1584 = vmatprep.mubr.f32.mxu0 %v236_v3  ;;  %v167_v3 = vld [vmem:[%s4783_s0 + $0x4c8] sm:$0xff] }
 0x166   :  { %v4103_v10 = vpop.f32.mrb[40].mxu1 }
 0x167   :  { %2285 = vmatmul.mubr.msk.f32.gmra.mrb[118].mxu1 %vm506_vm0, %v69_v6  ;;  %v843_v14 = vpop.f32.mrb[41].mxu1  ;;  %v174_v6 = vld [vmem:[%s4783_s0 + $0x500] sm:$0xff] }
 0x168   :  { %1585 = vmatmul.mubr.f32.gmra.mrb[62].mxu0 %v235_v12  ;;  %2287 = vmatprep.mubr.msk.f32.mxu1 %vm506_vm0, %v76_v9  ;;  %v292_v9 = vld [vmem:[%s4783_s0 + $0x8b0] sm:$0xff]  ;;  %v181_v14 = vld [vmem:[%s4783_s0 + $0x538] sm:$0xff] }
 0x169   :  { %1589 = vmatprep.mubr.f32.mxu0 %v243_v11 }
 0x16a   :  { %v4119_v21 = vpop.f32.mrb[42].mxu1 }
 0x16b   :  { %2288 = vmatmul.mubr.msk.f32.gmra.mrb[120].mxu1 %vm506_vm0, %v83_v18  ;;  %v848_v13 = vpop.f32.mrb[43].mxu1  ;;  %v291_v18 = vld [vmem:[%s4783_s0 + $0x8a8] sm:$0xff] }
 0x16c   :  { %1590 = vmatmul.mubr.f32.gmra.mrb[64].mxu0 %v242_v17  ;;  %2290 = vmatprep.mubr.msk.f32.mxu1 %vm506_vm0, %v90_v19  ;;  %v188_v17 = vld [vmem:[%s4783_s0 + $0x570] sm:$0xff] }
 0x16d   :  { %1594 = vmatprep.mubr.f32.mxu0 %v250_v22  ;;  %v299_v22 = vld [vmem:[%s4783_s0 + $0x8e8] sm:$0xff] }
 0x16e   :  { %v4135_v29 = vpop.f32.mrb[44].mxu1 }
 0x16f   :  { %2291 = vmatmul.mubr.msk.f32.gmra.mrb[122].mxu1 %vm506_vm0, %v97_v25  ;;  %v853_v32 = vpop.f32.mrb[45].mxu1  ;;  %v195_v25 = vld [vmem:[%s4783_s0 + $0x5a8] sm:$0xff] }
 0x170   :  { %1595 = vmatmul.mubr.f32.gmra.mrb[66].mxu0 %v249_v26  ;;  %2293 = vmatprep.mubr.msk.f32.mxu1 %vm506_vm0, %v104_v28  ;;  %v298_v26 = vld [vmem:[%s4783_s0 + $0x8e0] sm:$0xff] }
 0x171   :  { %1599 = vmatprep.mubr.f32.mxu0 %v257_v31  ;;  %v202_v28 = vld [vmem:[%s4783_s0 + $0x5e0] sm:$0xff] }
 0x172   :  { %v4151_v38 = vpop.f32.mrb[46].mxu1  ;;  %v306_v32 = vld [vmem:[%s4783_s0 + $0x920] sm:$0xff] }
 0x173   :  { %2294 = vmatmul.mubr.msk.f32.gmra.mrb[124].mxu1 %vm506_vm0, %v111_v30  ;;  %v858_v40 = vpop.f32.mrb[47].mxu1 }
 0x174   :  { %1600 = vmatmul.mubr.f32.gmra.mrb[68].mxu0 %v256_v33  ;;  %2296 = vmatprep.mubr.msk.f32.mxu1 %vm506_vm0, %v118_v35  ;;  %v209_v33 = vld [vmem:[%s4783_s0 + $0x618] sm:$0xff] }
 0x175   :  { %1604 = vmatprep.mubr.f32.mxu0 %v264_v39  ;;  %v305_v35 = vld [vmem:[%s4783_s0 + $0x918] sm:$0xff]  ;;  %v216_v39 = vld [vmem:[%s4783_s0 + $0x650] sm:$0xff] }
 0x176   :  { %v4167_v45 = vpop.f32.mrb[48].mxu1 }
 0x177   :  { %2297 = vmatmul.mubr.msk.f32.gmra.mrb[126].mxu1 %vm506_vm0, %v125_v36  ;;  %v863_v47 = vpop.f32.mrb[49].mxu1  ;;  %v313_v36 = vld [vmem:[%s4783_s0 + $0x958] sm:$0xff] }
 0x178   :  { %1605 = vmatmul.mubr.f32.gmra.mrb[70].mxu0 %v263_v0  ;;  %2299 = vmatprep.mubr.msk.f32.mxu1 %vm506_vm0, %v132_v34  ;;  %v223_v34 = vld [vmem:[%s4783_s0 + $0x688] sm:$0xff]  ;;  %v230_v47 = vld [vmem:[%s4783_s0 + $0x6c0] sm:$0xff] }
 0x179   :  { %1609 = vmatprep.mubr.f32.mxu0 %v271_v41  ;;  %v312_v41 = vld [vmem:[%s4783_s0 + $0x950] sm:$0xff] }
 0x17a   :  { %v4183_v53 = vpop.f32.mrb[50].mxu1 }
 0x17b   :  { %2300 = vmatmul.mubr.msk.f32.gmra.mrb[128].mxu1 %vm506_vm0, %v139_v48  ;;  %v868_v55 = vpop.f32.mrb[51].mxu1 }
 0x17c   :  { %1610 = vmatmul.mubr.f32.gmra.mrb[72].mxu0 %v270_v49  ;;  %2302 = vmatprep.mubr.msk.f32.mxu1 %vm506_vm0, %v146_v44  ;;  %v320_v49 = vld [vmem:[%s4783_s0 + $0x990] sm:$0xff]  ;;  %v319_v55 = vld [vmem:[%s4783_s0 + $0x988] sm:$0xff] }
 0x17d   :  { %1614 = vmatprep.mubr.f32.mxu0 %v278_v54  ;;  %v237_v54 = vld [vmem:[%s4783_s0 + $0x6f8] sm:$0xff] }
 0x17e   :  { %v4199_v60 = vpop.f32.mrb[52].mxu1 }
 0x17f   :  { %2303 = vmatmul.mubr.msk.f32.gmra.mrb[130].mxu1 %vm506_vm0, %v153_v57  ;;  %v873_v63 = vpop.f32.mrb[53].mxu1  ;;  %v244_v57 = vld [vmem:[%s4783_s0 + $0x730] sm:$0xff] }
 0x180   :  { %1615 = vmatmul.mubr.f32.gmra.mrb[74].mxu0 %v277_v58  ;;  %2305 = vmatprep.mubr.msk.f32.mxu1 %vm506_vm0, %v160_v59  ;;  %v327_v59 = vld [vmem:[%s4783_s0 + $0x9c8] sm:$0xff] }
 0x181   :  { %1619 = vmatprep.mubr.f32.mxu0 %v285_v61  ;;  %v251_v63 = vld [vmem:[%s4783_s0 + $0x768] sm:$0xff] }
 0x182   :  { %v4215_v12 = vpop.f32.mrb[54].mxu1 }
 0x183   :  { %2306 = vmatmul.mubr.msk.f32.gmra.mrb[132].mxu1 %vm506_vm0, %v167_v3  ;;  %v878_v11 = vpop.f32.mrb[55].mxu1  ;;  %v326_v3 = vld [vmem:[%s4783_s0 + $0x9c0] sm:$0xff] }
 0x184   :  { %1620 = vmatmul.mubr.f32.gmra.mrb[76].mxu0 %v284_v4  ;;  %2308 = vmatprep.mubr.msk.f32.mxu1 %vm506_vm0, %v174_v6  ;;  %v258_v4 = vld [vmem:[%s4783_s0 + $0x7a0] sm:$0xff] }
 0x185   :  { %1624 = vmatprep.mubr.f32.mxu0 %v292_v9  ;;  %v334_v9 = vld [vmem:[%s4783_s0 + $0xa00] sm:$0xff] }
 0x186   :  { %v4231_v19 = vpop.f32.mrb[56].mxu1 }
 0x187   :  { %2309 = vmatmul.mubr.msk.f32.gmra.mrb[134].mxu1 %vm506_vm0, %v181_v14  ;;  %v883_v13 = vpop.f32.mrb[57].mxu1  ;;  %v265_v14 = vld [vmem:[%s4783_s0 + $0x7d8] sm:$0xff] }
 0x188   :  { %1625 = vmatmul.mubr.f32.gmra.mrb[78].mxu0 %v291_v18  ;;  %2311 = vmatprep.mubr.msk.f32.mxu1 %vm506_vm0, %v188_v17  ;;  %v333_v18 = vld [vmem:[%s4783_s0 + $0x9f8] sm:$0xff]  ;;  %v272_v17 = vld [vmem:[%s4783_s0 + $0x810] sm:$0xff] }
 0x189   :  { %1629 = vmatprep.mubr.f32.mxu0 %v299_v22  ;;  %v341_v13 = vld [vmem:[%s4783_s0 + $0xa38] sm:$0xff] }
 0x18a   :  { %v4247_v31 = vpop.f32.mrb[58].mxu1 }
 0x18b   :  { %2312 = vmatmul.mubr.msk.f32.gmra.mrb[136].mxu1 %vm506_vm0, %v195_v25  ;;  %v888_v30 = vpop.f32.mrb[59].mxu1 }
 0x18c   :  { %1630 = vmatmul.mubr.f32.gmra.mrb[80].mxu0 %v298_v26  ;;  %2314 = vmatprep.mubr.msk.f32.mxu1 %vm506_vm0, %v202_v28  ;;  %v279_v26 = vld [vmem:[%s4783_s0 + $0x848] sm:$0xff]  ;;  %v340_v28 = vld [vmem:[%s4783_s0 + $0xa30] sm:$0xff] }
 0x18d   :  { %1634 = vmatprep.mubr.f32.mxu0 %v306_v32  ;;  %v286_v32 = vld [vmem:[%s4783_s0 + $0x880] sm:$0xff] }
 0x18e   :  { %v4263_v40 = vpop.f32.mrb[60].mxu1 }
 0x18f   :  { %2315 = vmatmul.mubr.msk.f32.gmra.mrb[138].mxu1 %vm506_vm0, %v209_v33  ;;  %v893_v0 = vpop.f32.mrb[61].mxu1  ;;  %v348_v33 = vld [vmem:[%s4783_s0 + $0xa70] sm:$0xff] }
 0x190   :  { %1635 = vmatmul.mubr.f32.gmra.mrb[82].mxu0 %v305_v35  ;;  %2317 = vmatprep.mubr.msk.f32.mxu1 %vm506_vm0, %v216_v39  ;;  %v293_v39 = vld [vmem:[%s4783_s0 + $0x8b8] sm:$0xff]  ;;  %v300_v0 = vld [vmem:[%s4783_s0 + $0x8f0] sm:$0xff] }
 0x191   :  { %1639 = vmatprep.mubr.f32.mxu0 %v313_v36  ;;  %v347_v36 = vld [vmem:[%s4783_s0 + $0xa68] sm:$0xff] }
 0x192   :  { %v4279_v48 = vpop.f32.mrb[62].mxu1 }
 0x193   :  { %2318 = vmatmul.mubr.msk.f32.gmra.mrb[140].mxu1 %vm506_vm0, %v223_v34  ;;  %v898_v44 = vpop.f32.mrb[63].mxu1 }
 0x194   :  { %1640 = vmatmul.mubr.f32.gmra.mrb[84].mxu0 %v312_v41  ;;  %2320 = vmatprep.mubr.msk.f32.mxu1 %vm506_vm0, %v230_v47  ;;  %v355_v41 = vld [vmem:[%s4783_s0 + $0xaa8] sm:$0xff]  ;;  %v354_v44 = vld [vmem:[%s4783_s0 + $0xaa0] sm:$0xff] }
 0x195   :  { %1644 = vmatprep.mubr.f32.mxu0 %v320_v49  ;;  %v307_v49 = vld [vmem:[%s4783_s0 + $0x928] sm:$0xff] }
 0x196   :  { %v4295_v58 = vpop.f32.mrb[64].mxu1 }
 0x197   :  { %2321 = vmatmul.mubr.msk.f32.gmra.mrb[142].mxu1 %vm506_vm0, %v237_v54  ;;  %v903_v61 = vpop.f32.mrb[65].mxu1  ;;  %v314_v54 = vld [vmem:[%s4783_s0 + $0x960] sm:$0xff] }
 0x198   :  { %1645 = vmatmul.mubr.f32.gmra.mrb[86].mxu0 %v319_v55  ;;  %2323 = vmatprep.mubr.msk.f32.mxu1 %vm506_vm0, %v244_v57  ;;  %v362_v57 = vld [vmem:[%s4783_s0 + $0xae0] sm:$0xff]  ;;  %v321_v61 = vld [vmem:[%s4783_s0 + $0x998] sm:$0xff] }
 0x199   :  { %1649 = vmatprep.mubr.f32.mxu0 %v327_v59 }
 0x19a   :  { %v4311_v6 = vpop.f32.mrb[66].mxu1 }
 0x19b   :  { %2324 = vmatmul.mubr.msk.f32.gmra.mrb[144].mxu1 %vm506_vm0, %v251_v63  ;;  %v908_v11 = vpop.f32.mrb[67].mxu1  ;;  %v361_v63 = vld [vmem:[%s4783_s0 + $0xad8] sm:$0xff] }
 0x19c   :  { %1650 = vmatmul.mubr.f32.gmra.mrb[88].mxu0 %v326_v3  ;;  %2326 = vmatprep.mubr.msk.f32.mxu1 %vm506_vm0, %v258_v4  ;;  %v328_v3 = vld [vmem:[%s4783_s0 + $0x9d0] sm:$0xff] }
 0x19d   :  { %1654 = vmatprep.mubr.f32.mxu0 %v334_v9  ;;  %v369_v9 = vld [vmem:[%s4783_s0 + $0xb18] sm:$0xff] }
 0x19e   :  { %v4327_v22 = vpop.f32.mrb[68].mxu1 }
 0x19f   :  { %2327 = vmatmul.mubr.msk.f32.gmra.mrb[146].mxu1 %vm506_vm0, %v265_v14  ;;  %v913_v25 = vpop.f32.mrb[69].mxu1  ;;  %v335_v14 = vld [vmem:[%s4783_s0 + $0xa08] sm:$0xff] }
 0x1a0   :  { %1655 = vmatmul.mubr.f32.gmra.mrb[90].mxu0 %v333_v18  ;;  %2329 = vmatprep.mubr.msk.f32.mxu1 %vm506_vm0, %v272_v17  ;;  %v368_v18 = vld [vmem:[%s4783_s0 + $0xb10] sm:$0xff]  ;;  %v342_v17 = vld [vmem:[%s4783_s0 + $0xa40] sm:$0xff] }
 0x1a1   :  { %1659 = vmatprep.mubr.f32.mxu0 %v341_v13  ;;  %v376_v25 = vld [vmem:[%s4783_s0 + $0xb50] sm:$0xff] }
 0x1a2   :  { %v4343_v30 = vpop.f32.mrb[70].mxu1 }
 0x1a3   :  { %2330 = vmatmul.mubr.msk.f32.gmra.mrb[148].mxu1 %vm506_vm0, %v279_v26  ;;  %v918_v35 = vpop.f32.mrb[71].mxu1 }
 0x1a4   :  { %1660 = vmatmul.mubr.f32.gmra.mrb[92].mxu0 %v340_v28  ;;  %2332 = vmatprep.mubr.msk.f32.mxu1 %vm506_vm0, %v286_v32  ;;  %v349_v28 = vld [vmem:[%s4783_s0 + $0xa78] sm:$0xff]  ;;  %v375_v32 = vld [vmem:[%s4783_s0 + $0xb48] sm:$0xff] }
 0x1a5   :  { %1664 = vmatprep.mubr.f32.mxu0 %v348_v33  ;;  %v356_v33 = vld [vmem:[%s4783_s0 + $0xab0] sm:$0xff] }
 0x1a6   :  { %v4359_v34 = vpop.f32.mrb[72].mxu1 }
 0x1a7   :  { %2333 = vmatmul.mubr.msk.f32.gmra.mrb[150].mxu1 %vm506_vm0, %v293_v39  ;;  %v923_v47 = vpop.f32.mrb[73].mxu1  ;;  %v383_v39 = vld [vmem:[%s4783_s0 + $0xb88] sm:$0xff] }
 0x1a8   :  { %1665 = vmatmul.mubr.f32.gmra.mrb[94].mxu0 %v347_v36  ;;  %2335 = vmatprep.mubr.msk.f32.mxu1 %vm506_vm0, %v300_v0  ;;  %v363_v0 = vld [vmem:[%s4783_s0 + $0xae8] sm:$0xff]  ;;  %v370_v47 = vld [vmem:[%s4783_s0 + $0xb20] sm:$0xff] }
 0x1a9   :  { %1669 = vmatprep.mubr.f32.mxu0 %v355_v41  ;;  %v382_v41 = vld [vmem:[%s4783_s0 + $0xb80] sm:$0xff] }
 0x1aa   :  { %v4375_v55 = vpop.f32.mrb[74].mxu1 }
 0x1ab   :  { %2336 = vmatmul.mubr.msk.f32.gmra.mrb[152].mxu1 %vm506_vm0, %v307_v49  ;;  %v928_v59 = vpop.f32.mrb[75].mxu1 }
 0x1ac   :  { %1670 = vmatmul.mubr.f32.gmra.mrb[96].mxu0 %v354_v44  ;;  %2338 = vmatprep.mubr.msk.f32.mxu1 %vm506_vm0, %v314_v54  ;;  %v390_v44 = vld [vmem:[%s4783_s0 + $0xbc0] sm:$0xff]  ;;  %v389_v59 = vld [vmem:[%s4783_s0 + $0xbb8] sm:$0xff] }
 0x1ad   :  { %1674 = vmatprep.mubr.f32.mxu0 %v362_v57  ;;  %v377_v57 = vld [vmem:[%s4783_s0 + $0xb58] sm:$0xff] }
 0x1ae   :  { %v4391_v4 = vpop.f32.mrb[76].mxu1 }
 0x1af   :  { %2339 = vmatmul.mubr.msk.f32.gmra.mrb[154].mxu1 %vm506_vm0, %v321_v61  ;;  %v933_v11 = vpop.f32.mrb[77].mxu1  ;;  %v384_v61 = vld [vmem:[%s4783_s0 + $0xb90] sm:$0xff] }
 0x1b0   :  { %1675 = vmatmul.mubr.f32.gmra.mrb[98].mxu0 %v361_v63  ;;  %2341 = vmatprep.mubr.msk.f32.mxu1 %vm506_vm0, %v328_v3  ;;  %v397_v63 = vld [vmem:[%s4783_s0 + $0xbf8] sm:$0xff] }
 0x1b1   :  { %1679 = vmatprep.mubr.f32.mxu0 %v369_v9 }
 0x1b2   :  { %v4407_v13 = vpop.f32.mrb[78].mxu1 }
 0x1b3   :  { %2342 = vmatmul.mubr.msk.f32.gmra.mrb[156].mxu1 %vm506_vm0, %v335_v14  ;;  %v938_v26 = vpop.f32.mrb[79].mxu1  ;;  %v391_v14 = vld [vmem:[%s4783_s0 + $0xbc8] sm:$0xff] }
 0x1b4   :  { %1680 = vmatmul.mubr.f32.gmra.mrb[100].mxu0 %v368_v18  ;;  %2344 = vmatprep.mubr.msk.f32.mxu1 %vm506_vm0, %v342_v17  ;;  %v396_v18 = vld [vmem:[%s4783_s0 + $0xbf0] sm:$0xff]  ;;  %v398_v17 = vld [vmem:[%s4783_s0 + $0xc00] sm:$0xff] }
 0x1b5   :  { %1684 = vmatprep.mubr.f32.mxu0 %v376_v25 }
 0x1b6   :  { %v4423_v35 = vpop.f32.mrb[80].mxu1 }
 0x1b7   :  { %2345 = vmatmul.mubr.msk.f32.gmra.mrb[158].mxu1 %vm506_vm0, %v349_v28  ;;  %v943_v36 = vpop.f32.mrb[81].mxu1 }
 0x1b8   :  { %1685 = vmatmul.mubr.f32.gmra.mrb[102].mxu0 %v375_v32  ;;  %2347 = vmatprep.mubr.msk.f32.mxu1 %vm506_vm0, %v356_v33  ;;  %v405_v32 = vld [vmem:[%s4783_s0 + $0xc38] sm:$0xff]  ;;  %v403_v33 = vld [vmem:[%s4783_s0 + $0xc28] sm:$0xff] }
 0x1b9   :  { %1689 = vmatprep.mubr.f32.mxu0 %v383_v39 }
 0x1ba   :  { %v4439_v49 = vpop.f32.mrb[82].mxu1 }
 0x1bb   :  { %2348 = vmatmul.mubr.msk.f32.gmra.mrb[160].mxu1 %vm506_vm0, %v363_v0  ;;  %v948_v54 = vpop.f32.mrb[83].mxu1 }
 0x1bc   :  { %1690 = vmatmul.mubr.f32.gmra.mrb[104].mxu0 %v382_v41  ;;  %2350 = vmatprep.mubr.msk.f32.mxu1 %vm506_vm0, %v370_v47 }
 0x1bd   :  { %1694 = vmatprep.mubr.f32.mxu0 %v390_v44 }
 0x1bf   :  { %v1431_v3 = vpop.f32.mrb[0].mxu0  ;;  %2351 = vmatmul.mubr.msk.f32.gmra.mrb[162].mxu1 %vm506_vm0, %v377_v57 }
 0x1c0   :  { %v4460_v9 = vadd.f32 %v1431_v3, %v3809_v56  ;;  %v1433_v11 = vpop.f32.mrb[1].mxu0  ;;  %1695 = vmatmul.mubr.f32.gmra.mrb[106].mxu0 %v389_v59  ;;  %2353 = vmatprep.mubr.msk.f32.mxu1 %vm506_vm0, %v384_v61  ;;  %v404_v56 = vld [vmem:[%s4783_s0 + $0xc30] sm:$0xff] }
 0x1c1   :  { %1699 = vmatprep.mubr.f32.mxu0 %v397_v63 }
 0x1c3   :  { %v1436_v25 = vpop.f32.mrb[2].mxu0  ;;  %2354 = vmatmul.mubr.msk.f32.gmra.mrb[164].mxu1 %vm506_vm0, %v391_v14 }
 0x1c4   :  { %v4477_v26 = vadd.f32 %v1436_v25, %v3823_v7  ;;  %v1438_v28 = vpop.f32.mrb[3].mxu0  ;;  %1700 = vmatmul.mubr.f32.gmra.mrb[108].mxu0 %v396_v18  ;;  %2356 = vmatprep.mubr.msk.f32.mxu1 %vm506_vm0, %v398_v17 }
 0x1c5   :  { %1704 = vmatprep.mubr.f32.mxu0 %v404_v56 }
 0x1c7   :  { %v1441_v39 = vpop.f32.mrb[4].mxu0  ;;  %2357 = vmatmul.mubr.msk.f32.gmra.mrb[166].mxu1 %vm506_vm0, %v405_v32 }
 0x1c8   :  { %v4488_v36 = vadd.f32 %v1441_v39, %v3837_v15  ;;  %v1443_v7 = vpop.f32.mrb[5].mxu0  ;;  %1705 = vmatmul.mubr.f32.gmra.mrb[110].mxu0 %v403_v33 }
 0x1cb   :  { %v1446_v0 = vpop.f32.mrb[6].mxu0 }
 0x1cc   :  { %v4491_v41 = vadd.f32 %v1446_v0, %v3854_v23  ;;  %v1448_v47 = vpop.f32.mrb[7].mxu0 }
 0x1cf   :  { %v1451_v44 = vpop.f32.mrb[8].mxu0 }
 0x1d0   :  { %v4494_v54 = vadd.f32 %v1451_v44, %v3872_v20  ;;  %v1453_v57 = vpop.f32.mrb[9].mxu0 }
 0x1d3   :  { %v1456_v59 = vpop.f32.mrb[10].mxu0 }
 0x1d4   :  { %v4497_v61 = vadd.f32 %v1456_v59, %v3886_v37  ;;  %v1458_v63 = vpop.f32.mrb[11].mxu0 }
 0x1d7   :  { %v1461_v3 = vpop.f32.mrb[12].mxu0 }
 0x1d8   :  { %v4500_v15 = vadd.f32 %v1461_v3, %v3900_v42  ;;  %v1463_v11 = vpop.f32.mrb[13].mxu0 }
 0x1db   :  { %v1466_v14 = vpop.f32.mrb[14].mxu0 }
 0x1dc   :  { %v4503_v23 = vadd.f32 %v1466_v14, %v3914_v46  ;;  %v1468_v18 = vpop.f32.mrb[15].mxu0 }
 0x1df   :  { %v1471_v17 = vpop.f32.mrb[16].mxu0 }
 0x1e0   :  { %v4506_v20 = vadd.f32 %v1471_v17, %v3928_v52  ;;  %v1473_v56 = vpop.f32.mrb[17].mxu0 }
 0x1e3   :  { %v1476_v25 = vpop.f32.mrb[18].mxu0 }
 0x1e4   :  { %v4509_v37 = vadd.f32 %v1476_v25, %v3942_v50  ;;  %v1478_v28 = vpop.f32.mrb[19].mxu0 }
 0x1e7   :  { %v1481_v32 = vpop.f32.mrb[20].mxu0 }
 0x1e8   :  { %v4512_v42 = vadd.f32 %v1481_v32, %v3956_v1  ;;  %v1483_v33 = vpop.f32.mrb[21].mxu0 }
 0x1eb   :  { %v1486_v39 = vpop.f32.mrb[22].mxu0 }
 0x1ec   :  { %v4515_v46 = vadd.f32 %v1486_v39, %v3970_v62  ;;  %v1488_v7 = vpop.f32.mrb[23].mxu0 }
 0x1ef   :  { %v1491_v0 = vpop.f32.mrb[24].mxu0 }
 0x1f0   :  { %v4518_v52 = vadd.f32 %v1491_v0, %v3984_v16  ;;  %v1493_v47 = vpop.f32.mrb[25].mxu0 }
 0x1f3   :  { %v1496_v44 = vpop.f32.mrb[26].mxu0 }
 0x1f4   :  { %v4521_v50 = vadd.f32 %v1496_v44, %v3998_v24  ;;  %v1498_v57 = vpop.f32.mrb[27].mxu0 }
 0x1f6   :  { %v4523_v59 = vpop.f32.mrb[84].mxu1 }
 0x1f7   :  { %v1501_v1 = vpop.f32.mrb[28].mxu0  ;;  %v1298_v63 = vpop.f32.mrb[85].mxu1 }
 0x1f8   :  { %v4526_v3 = vadd.f32 %v1501_v1, %v4012_v5  ;;  %v1503_v62 = vpop.f32.mrb[29].mxu0 }
 0x1fa   :  { %v4528_v11 = vpop.f32.mrb[86].mxu1 }
 0x1fb   :  { %v1506_v14 = vpop.f32.mrb[30].mxu0  ;;  %v1303_v18 = vpop.f32.mrb[87].mxu1 }
 0x1fc   :  { %v4531_v16 = vadd.f32 %v1506_v14, %v4026_v27  ;;  %v1508_v17 = vpop.f32.mrb[31].mxu0 }
 0x1fe   :  { %v4533_v56 = vpop.f32.mrb[88].mxu1 }
 0x1ff   :  { %v1511_v24 = vpop.f32.mrb[32].mxu0  ;;  %v1308_v25 = vpop.f32.mrb[89].mxu1 }
 0x200   :  { %v4536_v28 = vadd.f32 %v1511_v24, %v4040_v43  ;;  %v1513_v32 = vpop.f32.mrb[33].mxu0 }
 0x202   :  { %v4538_v33 = vpop.f32.mrb[90].mxu1 }
 0x203   :  { %v1516_v5 = vpop.f32.mrb[34].mxu0  ;;  %v1313_v39 = vpop.f32.mrb[91].mxu1 }
 0x204   :  { %v4541_v7 = vadd.f32 %v1516_v5, %v4055_v51  ;;  %v1518_v0 = vpop.f32.mrb[35].mxu0 }
 0x206   :  { %v4543_v47 = vpop.f32.mrb[92].mxu1 }
 0x207   :  { %v1521_v27 = vpop.f32.mrb[36].mxu0  ;;  %v1318_v44 = vpop.f32.mrb[93].mxu1 }
 0x208   :  { %v4546_v57 = vadd.f32 %v1521_v27, %v4071_v8  ;;  %v1523_v1 = vpop.f32.mrb[37].mxu0 }
 0x20a   :  { %v4548_v63 = vpop.f32.mrb[94].mxu1 }
 0x20b   :  { %v1526_v43 = vpop.f32.mrb[38].mxu0  ;;  %v1323_v62 = vpop.f32.mrb[95].mxu1 }
 0x20c   :  { %v4551_v14 = vadd.f32 %v1526_v43, %v4087_v2  ;;  %v1528_v18 = vpop.f32.mrb[39].mxu0 }
 0x20e   :  { %v4553_v17 = vpop.f32.mrb[96].mxu1 }
 0x20f   :  { %v1531_v51 = vpop.f32.mrb[40].mxu0  ;;  %v1328_v24 = vpop.f32.mrb[97].mxu1 }
 0x210   :  { %v4556_v25 = vadd.f32 %v1531_v51, %v4103_v10  ;;  %v1533_v32 = vpop.f32.mrb[41].mxu0 }
 0x212   :  { %v4558_v5 = vpop.f32.mrb[98].mxu1 }
 0x213   :  { %4786 = vst [vmem:[#allocation2_spill] sm:$0xff] %v4558_v5  ;;  %v1536_v8 = vpop.f32.mrb[42].mxu0  ;;  %v1333_v39 = vpop.f32.mrb[99].mxu1 }
 0x214   :  { %v4561_v0 = vadd.f32 %v1536_v8, %v4119_v21  ;;  %v1538_v27 = vpop.f32.mrb[43].mxu0 }
 0x216   :  { %v4563_v44 = vpop.f32.mrb[100].mxu1 }
 0x217   :  { %4787 = vst [vmem:[#allocation3_spill] sm:$0xff] %v4563_v44  ;;  %v1541_v2 = vpop.f32.mrb[44].mxu0  ;;  %v1338_v1 = vpop.f32.mrb[101].mxu1 }
 0x218   :  { %v4566_v43 = vadd.f32 %v1541_v2, %v4135_v29  ;;  %v1543_v62 = vpop.f32.mrb[45].mxu0 }
 0x21a   :  { %v4568_v18 = vpop.f32.mrb[102].mxu1 }
 0x21b   :  { %4788 = vst [vmem:[#allocation4_spill] sm:$0xff] %v4568_v18  ;;  %v1546_v10 = vpop.f32.mrb[46].mxu0  ;;  %v1343_v51 = vpop.f32.mrb[103].mxu1 }
 0x21c   :  { %v4571_v24 = vadd.f32 %v1546_v10, %v4151_v38  ;;  %v1548_v32 = vpop.f32.mrb[47].mxu0 }
 0x21e   :  { %v4573_v39 = vpop.f32.mrb[104].mxu1 }
 0x21f   :  { %4789 = vst [vmem:[#allocation5_spill] sm:$0xff] %v4573_v39  ;;  %v1551_v21 = vpop.f32.mrb[48].mxu0  ;;  %v1348_v8 = vpop.f32.mrb[105].mxu1 }
 0x220   :  { %v4576_v27 = vadd.f32 %v1551_v21, %v4167_v45  ;;  %v1553_v1 = vpop.f32.mrb[49].mxu0 }
 0x222   :  { %v4578_v44 = vpop.f32.mrb[106].mxu1 }
 0x223   :  { %4790 = vst [vmem:[#allocation6_spill] sm:$0xff] %v4578_v44  ;;  %v1556_v29 = vpop.f32.mrb[50].mxu0  ;;  %v1353_v2 = vpop.f32.mrb[107].mxu1 }
 0x224   :  { %v4581_v62 = vadd.f32 %v1556_v29, %v4183_v53  ;;  %v1558_v51 = vpop.f32.mrb[51].mxu0 }
 0x226   :  { %v4583_v18 = vpop.f32.mrb[108].mxu1 }
 0x227   :  { %4791 = vst [vmem:[#allocation7_spill] sm:$0xff] %v4583_v18  ;;  %v1561_v38 = vpop.f32.mrb[52].mxu0  ;;  %v1358_v10 = vpop.f32.mrb[109].mxu1 }
 0x228   :  { %v4586_v32 = vadd.f32 %v1561_v38, %v4199_v60  ;;  %v1563_v8 = vpop.f32.mrb[53].mxu0 }
 0x22a   :  { %v4588_v39 = vpop.f32.mrb[110].mxu1 }
 0x22b   :  { %4792 = vst [vmem:[#allocation8_spill] sm:$0xff] %v4588_v39  ;;  %v1566_v45 = vpop.f32.mrb[54].mxu0  ;;  %v1363_v21 = vpop.f32.mrb[111].mxu1 }
 0x22c   :  { %v4591_v1 = vadd.f32 %v1566_v45, %v4215_v12  ;;  %v1568_v2 = vpop.f32.mrb[55].mxu0 }
 0x22e   :  { %v2277_v44 = vpop.f32.mrb[112].mxu1 }
 0x22f   :  { %v1571_v53 = vpop.f32.mrb[56].mxu0  ;;  %v1782_v29 = vadd.f32 %v4477_v26, %v2277_v44  ;;  %v1776_v51 = vpop.f32.mrb[113].mxu1 }
 0x230   :  { %v4595_v18 = vadd.f32 %v1571_v53, %v4231_v19  ;;  %v1573_v10 = vpop.f32.mrb[57].mxu0  ;;  %v1777_v60 = vadd.f32 %v4460_v9, %v1776_v51 }
 0x232   :  { %v2280_v38 = vpop.f32.mrb[114].mxu1 }
 0x233   :  { %v1576_v8 = vpop.f32.mrb[58].mxu0  ;;  %v4599_v39 = vadd.f32 %v4491_v41, %v2280_v38  ;;  %v1786_v21 = vpop.f32.mrb[115].mxu1 }
 0x234   :  { %v4602_v12 = vadd.f32 %v1576_v8, %v4247_v31  ;;  %v1578_v45 = vpop.f32.mrb[59].mxu0  ;;  %v1787_v2 = vadd.f32 %v4488_v36, %v1786_v21 }
 0x236   :  { %v2283_v26 = vpop.f32.mrb[116].mxu1 }
 0x237   :  { %v1581_v44 = vpop.f32.mrb[60].mxu0  ;;  %v4606_v19 = vadd.f32 %v4497_v61, %v2283_v26  ;;  %v1796_v53 = vpop.f32.mrb[117].mxu1 }
 0x238   :  { %v4609_v9 = vadd.f32 %v1581_v44, %v4263_v40  ;;  %v1583_v51 = vpop.f32.mrb[61].mxu0  ;;  %v4612_v41 = vadd.f32 %v4494_v54, %v1796_v53 }
 0x23a   :  { %v2286_v10 = vpop.f32.mrb[118].mxu1 }
 0x23b   :  { %v1586_v38 = vpop.f32.mrb[62].mxu0  ;;  %v1812_v31 = vadd.f32 %v4503_v23, %v2286_v10  ;;  %v1806_v8 = vpop.f32.mrb[119].mxu1 }
 0x23c   :  { %v4616_v36 = vadd.f32 %v1586_v38, %v4279_v48  ;;  %v1588_v21 = vpop.f32.mrb[63].mxu0  ;;  %v4619_v61 = vadd.f32 %v4500_v15, %v1806_v8 }
 0x23d   :  { %v2055_v45 = vmax.f32 %v1777_v60, %v1812_v31 }
 0x23e   :  { %v2289_v26 = vpop.f32.mrb[120].mxu1 }
 0x23f   :  { %v1591_v40 = vpop.f32.mrb[64].mxu0  ;;  %v1822_v44 = vadd.f32 %v4509_v37, %v2289_v26  ;;  %v1816_v51 = vpop.f32.mrb[121].mxu1 }
 0x240   :  { %v4623_v54 = vadd.f32 %v1591_v40, %v4295_v58  ;;  %v1593_v53 = vpop.f32.mrb[65].mxu0  ;;  %v1817_v23 = vadd.f32 %v4506_v20, %v1816_v51 }
 0x241   :  { %v2061_v10 = vmax.f32 %v1787_v2, %v1822_v44 }
 0x242   :  { %v2058_v5 = vmax.f32 %v1782_v29, %v1817_v23  ;;  %v2292_v48 = vpop.f32.mrb[122].mxu1 }
 0x243   :  { %v1596_v38 = vpop.f32.mrb[66].mxu0  ;;  %v1832_v21 = vadd.f32 %v4515_v46, %v2292_v48  ;;  %v1826_v15 = vpop.f32.mrb[123].mxu1 }
 0x244   :  { %v4628_v60 = vadd.f32 %v1596_v38, %v4311_v6  ;;  %v1598_v31 = vpop.f32.mrb[67].mxu0  ;;  %v1827_v37 = vadd.f32 %v4512_v42, %v1826_v15 }
 0x245   :  { %v2067_v8 = vmax.f32 %v4612_v41, %v1832_v21 }
 0x246   :  { %v2064_v58 = vmax.f32 %v4599_v39, %v1827_v37  ;;  %v2295_v26 = vpop.f32.mrb[124].mxu1 }
 0x247   :  { %v1601_v40 = vpop.f32.mrb[68].mxu0  ;;  %v1842_v20 = vadd.f32 %v4521_v50, %v2295_v26  ;;  %v1836_v29 = vpop.f32.mrb[125].mxu1 }
 0x248   :  { %v4635_v2 = vadd.f32 %v1601_v40, %v4327_v22  ;;  %v1603_v46 = vpop.f32.mrb[69].mxu0  ;;  %v1837_v44 = vadd.f32 %v4518_v52, %v1836_v29 }
 0x249   :  { %v2073_v6 = vmax.f32 %v4619_v61, %v1842_v20 }
 0x24a   :  { %v2070_v51 = vmax.f32 %v4606_v19, %v1837_v44  ;;  %v2298_v42 = vpop.f32.mrb[126].mxu1 }
 0x24b   :  { %v1606_v53 = vpop.f32.mrb[70].mxu0  ;;  %v1852_v41 = vadd.f32 %v4531_v16, %v2298_v42  ;;  %v1846_v39 = vpop.f32.mrb[127].mxu1 }
 0x24c   :  { %v4642_v23 = vadd.f32 %v1606_v53, %v4343_v30  ;;  %v1608_v50 = vpop.f32.mrb[71].mxu0  ;;  %v1847_v48 = vadd.f32 %v4526_v3, %v1846_v39 }
 0x24d   :  { %v2059_v22 = vmax.f32 %v2058_v5, %v1852_v41 }
 0x24e   :  { %v2056_v38 = vmax.f32 %v2055_v45, %v1847_v48  ;;  %v2301_v21 = vpop.f32.mrb[128].mxu1 }
 0x24f   :  { %v1611_v15 = vpop.f32.mrb[72].mxu0  ;;  %v1862_v52 = vadd.f32 %v4541_v7, %v2301_v21  ;;  %v1856_v61 = vpop.f32.mrb[129].mxu1 }
 0x250   :  { %v4647_v19 = vadd.f32 %v1611_v15, %v4359_v34  ;;  %v1613_v31 = vpop.f32.mrb[73].mxu0  ;;  %v1857_v16 = vadd.f32 %v4536_v28, %v1856_v61 }
 0x251   :  { %v2065_v37 = vmax.f32 %v2064_v58, %v1862_v52 }
 0x252   :  { %v2062_v26 = vmax.f32 %v2061_v10, %v1857_v16  ;;  %v2304_v30 = vpop.f32.mrb[130].mxu1 }
 0x253   :  { %v1616_v40 = vpop.f32.mrb[74].mxu0  ;;  %v1872_v20 = vadd.f32 %v4551_v14, %v2304_v30  ;;  %v1866_v3 = vpop.f32.mrb[131].mxu1  ;;  %v4662_v14 = vld [vmem:[%s4784_s2] ss:$0 sm:$0xff] }
 0x254   :  { %v4652_v5 = vadd.f32 %v1616_v40, %v4375_v55  ;;  %v1618_v45 = vpop.f32.mrb[75].mxu0  ;;  %v1867_v7 = vadd.f32 %v4546_v57, %v1866_v3 }
 0x255   :  { %v2071_v29 = vmax.f32 %v2070_v51, %v1872_v20 }
 0x256   :  { %v2068_v46 = vmax.f32 %v2067_v8, %v1867_v7  ;;  %v2307_v34 = vpop.f32.mrb[132].mxu1 }
 0x257   :  { %v1621_v44 = vpop.f32.mrb[76].mxu0  ;;  %v1882_v42 = vadd.f32 %v4561_v0, %v2307_v34  ;;  %v1876_v28 = vpop.f32.mrb[133].mxu1 }
 0x258   :  { %v4657_v10 = vadd.f32 %v1621_v44, %v4391_v4  ;;  %v1623_v55 = vpop.f32.mrb[77].mxu0  ;;  %v1877_v58 = vadd.f32 %v4556_v25, %v1876_v28 }
 0x259   :  { %v2057_v53 = vmax.f32 %v2056_v38, %v1882_v42 }
 0x25a   :  { %v2074_v57 = vmax.f32 %v2073_v6, %v1877_v58  ;;  %v2310_v51 = vpop.f32.mrb[134].mxu1 }
 0x25b   :  { %v2104_v8 = vadd.f32 %v4662_v14, %v2057_v53  ;;  %v1626_v41 = vpop.f32.mrb[78].mxu0  ;;  %v1892_v0 = vadd.f32 %v4571_v24, %v2310_v51  ;;  %v1886_v39 = vpop.f32.mrb[135].mxu1 }
 0x25c   :  { %v4668_v4 = vadd.f32 %v1626_v41, %v4407_v13  ;;  %v1628_v50 = vpop.f32.mrb[79].mxu0  ;;  %v1887_v48 = vadd.f32 %v4566_v43, %v1886_v39 }
 0x25d   :  { %v2118_v21 = vmax.f32 %v2104_v8, 0.0  ;;  %v2063_v15 = vmax.f32 %v2062_v26, %v1892_v0 }
 0x25e   :  { %v2060_v52 = vmax.f32 %v2059_v22, %v1887_v48  ;;  %v2313_v61 = vpop.f32.mrb[136].mxu1 }
 0x25f   :  { %2132 = vst [vmem:[%s4785_s3] sm:$0xff] %v2118_v21  ;;  %v2106_v25 = vadd.f32 %v4662_v14, %v2063_v15  ;;  %v1631_v6 = vpop.f32.mrb[80].mxu0  ;;  %v1902_v24 = vadd.f32 %v4581_v62, %v2313_v61  ;;  %v1896_v38 = vpop.f32.mrb[137].mxu1 }
 0x260   :  { %v2105_v13 = vadd.f32 %v4662_v14, %v2060_v52  ;;  %v4678_v31 = vadd.f32 %v1631_v6, %v4423_v35  ;;  %v1633_v43 = vpop.f32.mrb[81].mxu0  ;;  %v1897_v16 = vadd.f32 %v4576_v27, %v1896_v38 }
 0x261   :  { %v2120_v22 = vmax.f32 %v2106_v25, 0.0  ;;  %v2069_v26 = vmax.f32 %v2068_v46, %v1902_v24 }
 0x262   :  { %v2119_v30 = vmax.f32 %v2105_v13, 0.0  ;;  %v2066_v40 = vmax.f32 %v2065_v37, %v1897_v16  ;;  %v2316_v20 = vpop.f32.mrb[138].mxu1 }
 0x263   :  { %2134 = vst [vmem:[%s4785_s3 + $0x10] sm:$0xff] %v2120_v22  ;;  %v2108_v62 = vadd.f32 %v4662_v14, %v2069_v26  ;;  %v1636_v3 = vpop.f32.mrb[82].mxu0  ;;  %v1912_v45 = vadd.f32 %v4591_v1, %v2316_v20  ;;  %v1906_v7 = vpop.f32.mrb[139].mxu1 }
 0x264   :  { %2133 = vst [vmem:[%s4785_s3 + $0x8] sm:$0xff] %v2119_v30  ;;  %v2107_v35 = vadd.f32 %v4662_v14, %v2066_v40  ;;  %v4691_v27 = vadd.f32 %v1636_v3, %v4439_v49  ;;  %v1638_v37 = vpop.f32.mrb[83].mxu0  ;;  %v1907_v46 = vadd.f32 %v4586_v32, %v1906_v7 }
 0x265   :  { %v2122_v34 = vmax.f32 %v2108_v62, 0.0  ;;  %v2075_v44 = vmax.f32 %v2074_v57, %v1912_v45 }
 0x266   :  { %v2121_v42 = vmax.f32 %v2107_v35, 0.0  ;;  %v2072_v28 = vmax.f32 %v2071_v29, %v1907_v46  ;;  %v2319_v55 = vpop.f32.mrb[140].mxu1 }
 0x267   :  { %2136 = vst [vmem:[%s4785_s3 + $0x20] sm:$0xff] %v2122_v34  ;;  %v2110_v1 = vadd.f32 %v4662_v14, %v2075_v44  ;;  %v1641_v58 = vpop.f32.mrb[84].mxu0  ;;  %v4699_v53 = vadd.f32 %v4602_v12, %v2319_v55  ;;  %v1916_v49 = vpop.f32.mrb[141].mxu1 }
 0x268   :  { %2135 = vst [vmem:[%s4785_s3 + $0x18] sm:$0xff] %v2121_v42  ;;  %v2109_v32 = vadd.f32 %v4662_v14, %v2072_v28  ;;  %v2585_v29 = vadd.f32 %v1641_v58, %v4523_v59  ;;  %v1643_v57 = vpop.f32.mrb[85].mxu0  ;;  %v4707_v51 = vadd.f32 %v4595_v18, %v1916_v49  ;;  %v4793_v49 = vld [vmem:[#allocation2_spill] sm:$0xff] }
 0x269   :  { %v2124_v8 = vmax.f32 %v2110_v1, 0.0 }
 0x26a   :  { %v2123_v41 = vmax.f32 %v2109_v32, 0.0  ;;  %v2322_v0 = vpop.f32.mrb[142].mxu1 }
 0x26b   :  { %2138 = vst [vmem:[%s4785_s3 + $0x30] sm:$0xff] %v2124_v8  ;;  %v1646_v12 = vpop.f32.mrb[86].mxu0  ;;  %v4713_v39 = vadd.f32 %v4616_v36, %v2322_v0  ;;  %v1926_v50 = vpop.f32.mrb[143].mxu1 }
 0x26c   :  { %2137 = vst [vmem:[%s4785_s3 + $0x28] sm:$0xff] %v2123_v41  ;;  %v2586_v59 = vadd.f32 %v1646_v12, %v4528_v11  ;;  %v1648_v18 = vpop.f32.mrb[87].mxu0  ;;  %v1927_v48 = vadd.f32 %v4609_v9, %v1926_v50 }
 0x26e   :  { %v2325_v21 = vpop.f32.mrb[144].mxu1 }
 0x26f   :  { %v1651_v15 = vpop.f32.mrb[88].mxu0  ;;  %v4721_v52 = vadd.f32 %v4628_v60, %v2325_v21  ;;  %v1936_v61 = vpop.f32.mrb[145].mxu1 }
 0x270   :  { %v2587_v25 = vadd.f32 %v1651_v15, %v4533_v56  ;;  %v1653_v36 = vpop.f32.mrb[89].mxu0  ;;  %v4725_v6 = vadd.f32 %v4623_v54, %v1936_v61 }
 0x271   :  { %v4795_v36 = vld [vmem:[#allocation4_spill] sm:$0xff] }
 0x272   :  { %v2328_v24 = vpop.f32.mrb[146].mxu1 }
 0x273   :  { %v1656_v38 = vpop.f32.mrb[90].mxu0  ;;  %v1952_v13 = vadd.f32 %v4642_v23, %v2328_v24  ;;  %v1946_v11 = vpop.f32.mrb[147].mxu1 }
 0x274   :  { %v2588_v43 = vadd.f32 %v1656_v38, %v4538_v33  ;;  %v1658_v9 = vpop.f32.mrb[91].mxu0  ;;  %v4730_v16 = vadd.f32 %v4635_v2, %v1946_v11 }
 0x275   :  { %v2076_v60 = vmax.f32 %v4707_v51, %v1952_v13 }
 0x276   :  { %v2331_v22 = vpop.f32.mrb[148].mxu1 }
 0x277   :  { %v1661_v26 = vpop.f32.mrb[92].mxu0  ;;  %v1962_v56 = vadd.f32 %v4652_v5, %v2331_v22  ;;  %v1956_v30 = vpop.f32.mrb[149].mxu1 }
 0x278   :  { %v2589_v54 = vadd.f32 %v1661_v26, %v4543_v47  ;;  %v1663_v40 = vpop.f32.mrb[93].mxu0  ;;  %v1957_v20 = vadd.f32 %v4647_v19, %v1956_v30 }
 0x279   :  { %v2082_v23 = vmax.f32 %v1927_v48, %v1962_v56 }
 0x27a   :  { %v2079_v62 = vmax.f32 %v4699_v53, %v1957_v20  ;;  %v2334_v33 = vpop.f32.mrb[150].mxu1 }
 0x27b   :  { %v1666_v3 = vpop.f32.mrb[94].mxu0  ;;  %v1972_v2 = vadd.f32 %v4668_v4, %v2334_v33  ;;  %v1966_v45 = vpop.f32.mrb[151].mxu1 }
 0x27c   :  { %v2590_v7 = vadd.f32 %v1666_v3, %v4548_v63  ;;  %v1668_v35 = vpop.f32.mrb[95].mxu0  ;;  %v1967_v37 = vadd.f32 %v4657_v10, %v1966_v45  ;;  %v4797_v3 = vld [vmem:[#allocation6_spill] sm:$0xff] }
 0x27d   :  { %v2088_v5 = vmax.f32 %v4725_v6, %v1972_v2 }
 0x27e   :  { %v2085_v47 = vmax.f32 %v4713_v39, %v1967_v37  ;;  %v2337_v46 = vpop.f32.mrb[152].mxu1  ;;  %v4794_v39 = vld [vmem:[#allocation3_spill] sm:$0xff] }
 0x27f   :  { %v1671_v34 = vpop.f32.mrb[96].mxu0  ;;  %v1982_v19 = vadd.f32 %v4691_v27, %v2337_v46  ;;  %v1976_v44 = vpop.f32.mrb[153].mxu1 }
 0x280   :  { %v2591_v42 = vadd.f32 %v1671_v34, %v4553_v17  ;;  %v1673_v28 = vpop.f32.mrb[97].mxu0  ;;  %v1977_v4 = vadd.f32 %v4678_v31, %v1976_v44 }
 0x281   :  { %v2094_v55 = vmax.f32 %v4730_v16, %v1982_v19 }
 0x282   :  { %v2091_v63 = vmax.f32 %v4721_v52, %v1977_v4  ;;  %v2340_v1 = vpop.f32.mrb[154].mxu1 }
 0x283   :  { %v1676_v10 = vpop.f32.mrb[98].mxu0  ;;  %v1992_v58 = vadd.f32 %v2586_v59, %v2340_v1  ;;  %v1986_v53 = vpop.f32.mrb[155].mxu1 }
 0x284   :  { %v2592_v32 = vadd.f32 %v1676_v10, %v4793_v49  ;;  %v1678_v57 = vpop.f32.mrb[99].mxu0  ;;  %v1987_v51 = vadd.f32 %v2585_v29, %v1986_v53 }
 0x285   :  { %v2080_v8 = vmax.f32 %v2079_v62, %v1992_v58 }
 0x286   :  { %v2077_v27 = vmax.f32 %v2076_v60, %v1987_v51  ;;  %v2343_v41 = vpop.f32.mrb[156].mxu1  ;;  %v4796_v60 = vld [vmem:[#allocation5_spill] sm:$0xff] }
 0x287   :  { %v1681_v0 = vpop.f32.mrb[100].mxu0  ;;  %v2002_v17 = vadd.f32 %v2588_v43, %v2343_v41  ;;  %v1996_v12 = vpop.f32.mrb[157].mxu1 }
 0x288   :  { %v2593_v31 = vadd.f32 %v1681_v0, %v4794_v39  ;;  %v1683_v50 = vpop.f32.mrb[101].mxu0  ;;  %v1997_v18 = vadd.f32 %v2587_v25, %v1996_v12 }
 0x289   :  { %v2086_v48 = vmax.f32 %v2085_v47, %v2002_v17 }
 0x28a   :  { %v2083_v21 = vmax.f32 %v2082_v23, %v1997_v18  ;;  %v2346_v15 = vpop.f32.mrb[158].mxu1 }
 0x28b   :  { %v1686_v52 = vpop.f32.mrb[102].mxu0  ;;  %v2012_v59 = vadd.f32 %v2590_v7, %v2346_v15  ;;  %v2006_v61 = vpop.f32.mrb[159].mxu1 }
 0x28c   :  { %v2594_v6 = vadd.f32 %v1686_v52, %v4795_v36  ;;  %v1688_v24 = vpop.f32.mrb[103].mxu0  ;;  %v2007_v29 = vadd.f32 %v2589_v54, %v2006_v61 }
 0x28d   :  { %v2092_v38 = vmax.f32 %v2091_v63, %v2012_v59 }
 0x28e   :  { %v2089_v13 = vmax.f32 %v2088_v5, %v2007_v29  ;;  %v2349_v11 = vpop.f32.mrb[160].mxu1 }
 0x28f   :  { %v1691_v9 = vpop.f32.mrb[104].mxu0  ;;  %v2022_v43 = vadd.f32 %v2592_v32, %v2349_v11  ;;  %v2016_v16 = vpop.f32.mrb[161].mxu1 }
 0x290   :  { %v2595_v22 = vadd.f32 %v1691_v9, %v4796_v60  ;;  %v1693_v26 = vpop.f32.mrb[105].mxu0  ;;  %v2017_v25 = vadd.f32 %v2591_v42, %v2016_v16  ;;  %v4798_v42 = vld [vmem:[#allocation7_spill] sm:$0xff] }
 0x291   :  { %v2078_v56 = vmax.f32 %v2077_v27, %v2022_v43 }
 0x292   :  { %v2095_v30 = vmax.f32 %v2094_v55, %v2017_v25  ;;  %v2352_v40 = vpop.f32.mrb[162].mxu1 }
 0x293   :  { %v2111_v20 = vadd.f32 %v4662_v14, %v2078_v56  ;;  %v1696_v23 = vpop.f32.mrb[106].mxu0  ;;  %v2032_v62 = vadd.f32 %v2594_v6, %v2352_v40  ;;  %v2026_v33 = vpop.f32.mrb[163].mxu1 }
 0x294   :  { %v2596_v54 = vadd.f32 %v1696_v23, %v4797_v3  ;;  %v1698_v2 = vpop.f32.mrb[107].mxu0  ;;  %v2027_v45 = vadd.f32 %v2593_v31, %v2026_v33 }
 0x295   :  { %v2125_v7 = vmax.f32 %v2111_v20, 0.0  ;;  %v2084_v35 = vmax.f32 %v2083_v21, %v2032_v62 }
 0x296   :  { %v2081_v37 = vmax.f32 %v2080_v8, %v2027_v45  ;;  %v2355_v5 = vpop.f32.mrb[164].mxu1  ;;  %v4799_v8 = vld [vmem:[#allocation8_spill] sm:$0xff] }
 0x297   :  { %2139 = vst [vmem:[%s4785_s3 + $0x38] sm:$0xff] %v2125_v7  ;;  %v2113_v47 = vadd.f32 %v4662_v14, %v2084_v35  ;;  %v1701_v46 = vpop.f32.mrb[108].mxu0  ;;  %v2042_v34 = vadd.f32 %v2596_v54, %v2355_v5  ;;  %v2036_v19 = vpop.f32.mrb[165].mxu1 }
 0x298   :  { %v2112_v44 = vadd.f32 %v4662_v14, %v2081_v37  ;;  %v2597_v28 = vadd.f32 %v1701_v46, %v4798_v42  ;;  %v1703_v4 = vpop.f32.mrb[109].mxu0  ;;  %v2037_v55 = vadd.f32 %v2595_v22, %v2036_v19 }
 0x299   :  { %v2127_v63 = vmax.f32 %v2113_v47, 0.0  ;;  %v2090_v1 = vmax.f32 %v2089_v13, %v2042_v34 }
 0x29a   :  { %v2126_v10 = vmax.f32 %v2112_v44, 0.0  ;;  %v2087_v58 = vmax.f32 %v2086_v48, %v2037_v55  ;;  %v2358_v53 = vpop.f32.mrb[166].mxu1 }
 0x29b   :  { %2141 = vst [vmem:[%s4785_s3 + $0x48] sm:$0xff] %v2127_v63  ;;  %v2115_v49 = vadd.f32 %v4662_v14, %v2090_v1  ;;  %v1706_v32 = vpop.f32.mrb[110].mxu0  ;;  %v2046_v57 = vpop.f32.mrb[167].mxu1 }
 0x29c   :  { %2140 = vst [vmem:[%s4785_s3 + $0x40] sm:$0xff] %v2126_v10  ;;  %v2114_v51 = vadd.f32 %v4662_v14, %v2087_v58  ;;  %v2598_v27 = vadd.f32 %v1706_v32, %v4799_v8  ;;  %v1708_v41 = vpop.f32.mrb[111].mxu0  ;;  %v2047_v0 = vadd.f32 %v2597_v28, %v2046_v57 }
 0x29d   :  { %v2129_v17 = vmax.f32 %v2115_v49, 0.0 }
 0x29e   :  { %v2128_v12 = vmax.f32 %v2114_v51, 0.0  ;;  %v2052_v39 = vadd.f32 %v2598_v27, %v2358_v53  ;;  %v2093_v31 = vmax.f32 %v2092_v38, %v2047_v0 }
 0x29f   :  { %2143 = vst [vmem:[%s4785_s3 + $0x58] sm:$0xff] %v2129_v17 }
 0x2a0   :  { %2142 = vst [vmem:[%s4785_s3 + $0x50] sm:$0xff] %v2128_v12  ;;  %v2096_v50 = vmax.f32 %v2095_v30, %v2052_v39  ;;  %v2116_v18 = vadd.f32 %v4662_v14, %v2093_v31 }
 0x2a2   :  { %v2117_v48 = vadd.f32 %v4662_v14, %v2096_v50  ;;  %v2130_v21 = vmax.f32 %v2116_v18, 0.0 }
 0x2a4   :  { %v2131_v15 = vmax.f32 %v2117_v48, 0.0  ;;  %2144 = vst [vmem:[%s4785_s3 + $0x60] sm:$0xff] %v2130_v21 }
 0x2a6   :  { %2145 = vst [vmem:[%s4785_s3 + $0x68] sm:$0xff] %v2131_v15 }

// kernel: net_forward.5
= control target key start
LH: loop header
LB: loop body
LE: loop exit
PB: predicated region body
PF: predicated region fallthrough
CT: control target
= control target key end

     0   :  { %10 = vsyncpa [#allocation5], 0  ;;  %s4950_s18 = smov 0   ;;  %s4952_s19 = smov 0   ;;  %s7569_s0 = inlined_call_operand.vmem [shape: f32[2,3136], index: 0, kind: input, shape index: {}]   ;;  %s7570_s1 = inlined_call_operand.vmem [shape: f32[3136,1024], index: 1, kind: input, shape index: {}]   ;;  %s7571_s2 = inlined_call_operand.vmem [shape: f32[1,1024], index: 2, kind: input, shape index: {}]   ;;  %s7572_s3 = inlined_call_operand.vmem [shape: f32[1024,10], index: 3, kind: input, shape index: {}]   ;;  %s7573_s4 = inlined_call_operand.vmem [shape: f32[1,10], index: 4, kind: input, shape index: {}]   ;;  %s7574_s5 = inlined_call_operand.hbm [shape: f32[2,10], index: 5, kind: output, shape index: {}]  }
   0x1   :  { %s4954_s20 = smov 0  }
   0x2 LB: > { %s4966_s21 = sadd.s32 4294967295, %s4914_s20   ;;  %s4969_s22 = sadd.s32 1, %s4914_s20   ;;  %s4914_s20 = sphi %s4954_s20, %s7577_s20   ;;  %s4910_s19 = sphi %s4952_s19, %s7576_s19   ;;  %s4906_s18 = sphi %s4950_s18, %s7575_s18  }
   0x3   : > { %s41_s23 = ssub.s32 %s4914_s20, %s4969_s22  ;;  %s44_s24 = sadd.s32 1, %s4910_s19 }
   0x4   : > { %p42_p0 = scmp.eq.s32.totalorder %s41_s23, 0  ;;  %p51_p1 = scmp.ne.s32.totalorder %s4910_s19, %s4906_s18 }
   0x5   : > { %p52_p2 = scmp.eq.s32.totalorder %s4914_s20, 0  ;;  %p3922_p4 = scmp.ge.s32.totalorder %s4914_s20, 4 }
   0x6   : > { %s4978_s25 = scalar_select %p42_p0, %s4910_s19, %s44_s24  }
   0x7   : > { %p53_p3 = por %p52_p2, %p51_p1  ;;  %177 = sbr.rel (%p3922_p4) target bundleno = 410 (0x19a), region = 24 }
   0xe   : > { %180 = sbr.rel (!%p53_p3) target bundleno = 410 (0x19a), region = 28  ;;  %s182_s26 = sand.u32 (%p53_p3), 1, %s4910_s19  }
   0xf   : > { %s3938_s27 = sshll.u32 (%p53_p3), %s4914_s20, 4  ;;  %s4816_s28 = smul.u32 (%p53_p3), 6272, %s182_s26 }
  0x10   : > { %s4986_s6 = scalar_lea.vmem (%p53_p3), %s7570_s1, %s3938_s27 }
  0x11   : > { %v200_v0 = vld [vmem:[%s4986_s6] sm:$0xff] (%p53_p3)  ;;  %v202_v1 = vld [vmem:[%s4986_s6 + $0x8] sm:$0xff] (%p53_p3)  ;;  %s4994_s7 = scalar_lea.vmem (%p53_p3), [#allocation3], %s4816_s28 }
  0x12   : > { %v204_v2 = vld [vmem:[%s4986_s6 + $0x40] sm:$0xff] (%p53_p3)  ;;  %v206_v3 = vld [vmem:[%s4986_s6 + $0x48] sm:$0xff] (%p53_p3)  ;;  %201 = vst [vmem:[%s4994_s7] sm:$0xff] (%p53_p3), %v200_v0  ;;  %203 = vst [vmem:[%s4994_s7 + $0x8] sm:$0xff] (%p53_p3), %v202_v1 }
  0x13   : > { %v208_v4 = vld [vmem:[%s4986_s6 + $0x80] sm:$0xff] (%p53_p3)  ;;  %v210_v5 = vld [vmem:[%s4986_s6 + $0x88] sm:$0xff] (%p53_p3)  ;;  %205 = vst [vmem:[%s4994_s7 + $0x10] sm:$0xff] (%p53_p3), %v204_v2  ;;  %207 = vst [vmem:[%s4994_s7 + $0x18] sm:$0xff] (%p53_p3), %v206_v3 }
  0x14   : > { %209 = vst [vmem:[%s4994_s7 + $0x20] sm:$0xff] (%p53_p3), %v208_v4  ;;  %211 = vst [vmem:[%s4994_s7 + $0x28] sm:$0xff] (%p53_p3), %v210_v5  ;;  %v212_v6 = vld [vmem:[%s4986_s6 + $0xc0] sm:$0xff] (%p53_p3)  ;;  %v214_v7 = vld [vmem:[%s4986_s6 + $0xc8] sm:$0xff] (%p53_p3) }
  0x15   : > { %v216_v8 = vld [vmem:[%s4986_s6 + $0x100] sm:$0xff]  ;;  %213 = vst [vmem:[%s4994_s7 + $0x30] sm:$0xff] %v212_v6  ;;  %215 = vst [vmem:[%s4994_s7 + $0x38] sm:$0xff] %v214_v7  ;;  %v218_v9 = vld [vmem:[%s4986_s6 + $0x108] sm:$0xff] }
  0x16   : > { %217 = vst [vmem:[%s4994_s7 + $0x40] sm:$0xff] %v216_v8  ;;  %v220_v10 = vld [vmem:[%s4986_s6 + $0x140] sm:$0xff]  ;;  %v222_v11 = vld [vmem:[%s4986_s6 + $0x148] sm:$0xff]  ;;  %219 = vst [vmem:[%s4994_s7 + $0x48] sm:$0xff] %v218_v9 }
  0x17   : > { %221 = vst [vmem:[%s4994_s7 + $0x50] sm:$0xff] %v220_v10  ;;  %223 = vst [vmem:[%s4994_s7 + $0x58] sm:$0xff] %v222_v11  ;;  %v224_v12 = vld [vmem:[%s4986_s6 + $0x180] sm:$0xff]  ;;  %v226_v13 = vld [vmem:[%s4986_s6 + $0x188] sm:$0xff] }
  0x18   : > { %v228_v14 = vld [vmem:[%s4986_s6 + $0x1c0] sm:$0xff]  ;;  %225 = vst [vmem:[%s4994_s7 + $0x60] sm:$0xff] %v224_v12  ;;  %227 = vst [vmem:[%s4994_s7 + $0x68] sm:$0xff] %v226_v13  ;;  %v230_v15 = vld [vmem:[%s4986_s6 + $0x1c8] sm:$0xff] }
  0x19   : > { %229 = vst [vmem:[%s4994_s7 + $0x70] sm:$0xff] %v228_v14  ;;  %v232_v16 = vld [vmem:[%s4986_s6 + $0x200] sm:$0xff]  ;;  %v234_v17 = vld [vmem:[%s4986_s6 + $0x208] sm:$0xff]  ;;  %231 = vst [vmem:[%s4994_s7 + $0x78] sm:$0xff] %v230_v15 }
  0x1a   : > { %233 = vst [vmem:[%s4994_s7 + $0x80] sm:$0xff] %v232_v16  ;;  %235 = vst [vmem:[%s4994_s7 + $0x88] sm:$0xff] %v234_v17  ;;  %v236_v18 = vld [vmem:[%s4986_s6 + $0x240] sm:$0xff]  ;;  %v238_v19 = vld [vmem:[%s4986_s6 + $0x248] sm:$0xff] }
  0x1b   : > { %v240_v20 = vld [vmem:[%s4986_s6 + $0x280] sm:$0xff]  ;;  %237 = vst [vmem:[%s4994_s7 + $0x90] sm:$0xff] %v236_v18  ;;  %239 = vst [vmem:[%s4994_s7 + $0x98] sm:$0xff] %v238_v19  ;;  %v242_v21 = vld [vmem:[%s4986_s6 + $0x288] sm:$0xff] }
  0x1c   : > { %241 = vst [vmem:[%s4994_s7 + $0xa0] sm:$0xff] %v240_v20  ;;  %v244_v22 = vld [vmem:[%s4986_s6 + $0x2c0] sm:$0xff]  ;;  %v246_v23 = vld [vmem:[%s4986_s6 + $0x2c8] sm:$0xff]  ;;  %243 = vst [vmem:[%s4994_s7 + $0xa8] sm:$0xff] %v242_v21 }
  0x1d   : > { %245 = vst [vmem:[%s4994_s7 + $0xb0] sm:$0xff] %v244_v22  ;;  %247 = vst [vmem:[%s4994_s7 + $0xb8] sm:$0xff] %v246_v23  ;;  %v248_v24 = vld [vmem:[%s4986_s6 + $0x300] sm:$0xff]  ;;  %v250_v25 = vld [vmem:[%s4986_s6 + $0x308] sm:$0xff] }
  0x1e   : > { %v252_v26 = vld [vmem:[%s4986_s6 + $0x340] sm:$0xff]  ;;  %249 = vst [vmem:[%s4994_s7 + $0xc0] sm:$0xff] %v248_v24  ;;  %251 = vst [vmem:[%s4994_s7 + $0xc8] sm:$0xff] %v250_v25  ;;  %v254_v27 = vld [vmem:[%s4986_s6 + $0x348] sm:$0xff] }
  0x1f   : > { %253 = vst [vmem:[%s4994_s7 + $0xd0] sm:$0xff] %v252_v26  ;;  %v256_v28 = vld [vmem:[%s4986_s6 + $0x380] sm:$0xff]  ;;  %v258_v29 = vld [vmem:[%s4986_s6 + $0x388] sm:$0xff]  ;;  %255 = vst [vmem:[%s4994_s7 + $0xd8] sm:$0xff] %v254_v27 }
  0x20   : > { %257 = vst [vmem:[%s4994_s7 + $0xe0] sm:$0xff] %v256_v28  ;;  %259 = vst [vmem:[%s4994_s7 + $0xe8] sm:$0xff] %v258_v29  ;;  %v260_v30 = vld [vmem:[%s4986_s6 + $0x3c0] sm:$0xff]  ;;  %v262_v31 = vld [vmem:[%s4986_s6 + $0x3c8] sm:$0xff] }
  0x21   : > { %v264_v32 = vld [vmem:[%s4986_s6 + $0x400] sm:$0xff]  ;;  %261 = vst [vmem:[%s4994_s7 + $0xf0] sm:$0xff] %v260_v30  ;;  %263 = vst [vmem:[%s4994_s7 + $0xf8] sm:$0xff] %v262_v31  ;;  %v266_v33 = vld [vmem:[%s4986_s6 + $0x408] sm:$0xff] }
  0x22   : > { %265 = vst [vmem:[%s4994_s7 + $0x100] sm:$0xff] %v264_v32  ;;  %v268_v34 = vld [vmem:[%s4986_s6 + $0x440] sm:$0xff]  ;;  %v270_v35 = vld [vmem:[%s4986_s6 + $0x448] sm:$0xff]  ;;  %267 = vst [vmem:[%s4994_s7 + $0x108] sm:$0xff] %v266_v33 }
  0x23   : > { %269 = vst [vmem:[%s4994_s7 + $0x110] sm:$0xff] %v268_v34  ;;  %271 = vst [vmem:[%s4994_s7 + $0x118] sm:$0xff] %v270_v35  ;;  %v272_v36 = vld [vmem:[%s4986_s6 + $0x480] sm:$0xff]  ;;  %v274_v37 = vld [vmem:[%s4986_s6 + $0x488] sm:$0xff] }
  0x24   : > { %v276_v38 = vld [vmem:[%s4986_s6 + $0x4c0] sm:$0xff]  ;;  %273 = vst [vmem:[%s4994_s7 + $0x120] sm:$0xff] %v272_v36  ;;  %275 = vst [vmem:[%s4994_s7 + $0x128] sm:$0xff] %v274_v37  ;;  %v278_v39 = vld [vmem:[%s4986_s6 + $0x4c8] sm:$0xff] }
  0x25   : > { %277 = vst [vmem:[%s4994_s7 + $0x130] sm:$0xff] %v276_v38  ;;  %v280_v40 = vld [vmem:[%s4986_s6 + $0x500] sm:$0xff]  ;;  %v282_v41 = vld [vmem:[%s4986_s6 + $0x508] sm:$0xff]  ;;  %279 = vst [vmem:[%s4994_s7 + $0x138] sm:$0xff] %v278_v39 }
  0x26   : > { %281 = vst [vmem:[%s4994_s7 + $0x140] sm:$0xff] %v280_v40  ;;  %283 = vst [vmem:[%s4994_s7 + $0x148] sm:$0xff] %v282_v41  ;;  %v284_v42 = vld [vmem:[%s4986_s6 + $0x540] sm:$0xff]  ;;  %v286_v43 = vld [vmem:[%s4986_s6 + $0x548] sm:$0xff] }
  0x27   : > { %v288_v44 = vld [vmem:[%s4986_s6 + $0x580] sm:$0xff]  ;;  %285 = vst [vmem:[%s4994_s7 + $0x150] sm:$0xff] %v284_v42  ;;  %287 = vst [vmem:[%s4994_s7 + $0x158] sm:$0xff] %v286_v43  ;;  %v290_v45 = vld [vmem:[%s4986_s6 + $0x588] sm:$0xff] }
  0x28   : > { %289 = vst [vmem:[%s4994_s7 + $0x160] sm:$0xff] %v288_v44  ;;  %v292_v46 = vld [vmem:[%s4986_s6 + $0x5c0] sm:$0xff]  ;;  %v294_v47 = vld [vmem:[%s4986_s6 + $0x5c8] sm:$0xff]  ;;  %291 = vst [vmem:[%s4994_s7 + $0x168] sm:$0xff] %v290_v45 }
  0x29   : > { %293 = vst [vmem:[%s4994_s7 + $0x170] sm:$0xff] %v292_v46  ;;  %295 = vst [vmem:[%s4994_s7 + $0x178] sm:$0xff] %v294_v47  ;;  %v296_v48 = vld [vmem:[%s4986_s6 + $0x600] sm:$0xff]  ;;  %v298_v49 = vld [vmem:[%s4986_s6 + $0x608] sm:$0xff] }
  0x2a   : > { %v300_v50 = vld [vmem:[%s4986_s6 + $0x640] sm:$0xff]  ;;  %297 = vst [vmem:[%s4994_s7 + $0x180] sm:$0xff] %v296_v48  ;;  %299 = vst [vmem:[%s4994_s7 + $0x188] sm:$0xff] %v298_v49  ;;  %v302_v51 = vld [vmem:[%s4986_s6 + $0x648] sm:$0xff] }
  0x2b   : > { %301 = vst [vmem:[%s4994_s7 + $0x190] sm:$0xff] %v300_v50  ;;  %v304_v52 = vld [vmem:[%s4986_s6 + $0x680] sm:$0xff]  ;;  %v306_v53 = vld [vmem:[%s4986_s6 + $0x688] sm:$0xff]  ;;  %303 = vst [vmem:[%s4994_s7 + $0x198] sm:$0xff] %v302_v51 }
  0x2c   : > { %305 = vst [vmem:[%s4994_s7 + $0x1a0] sm:$0xff] %v304_v52  ;;  %307 = vst [vmem:[%s4994_s7 + $0x1a8] sm:$0xff] %v306_v53  ;;  %v308_v54 = vld [vmem:[%s4986_s6 + $0x6c0] sm:$0xff]  ;;  %v310_v55 = vld [vmem:[%s4986_s6 + $0x6c8] sm:$0xff] }
  0x2d   : > { %v312_v56 = vld [vmem:[%s4986_s6 + $0x700] sm:$0xff]  ;;  %309 = vst [vmem:[%s4994_s7 + $0x1b0] sm:$0xff] %v308_v54  ;;  %311 = vst [vmem:[%s4994_s7 + $0x1b8] sm:$0xff] %v310_v55  ;;  %v314_v57 = vld [vmem:[%s4986_s6 + $0x708] sm:$0xff] }
  0x2e   : > { %313 = vst [vmem:[%s4994_s7 + $0x1c0] sm:$0xff] %v312_v56  ;;  %v316_v58 = vld [vmem:[%s4986_s6 + $0x740] sm:$0xff]  ;;  %v318_v59 = vld [vmem:[%s4986_s6 + $0x748] sm:$0xff]  ;;  %315 = vst [vmem:[%s4994_s7 + $0x1c8] sm:$0xff] %v314_v57 }
  0x2f   : > { %317 = vst [vmem:[%s4994_s7 + $0x1d0] sm:$0xff] %v316_v58  ;;  %319 = vst [vmem:[%s4994_s7 + $0x1d8] sm:$0xff] %v318_v59  ;;  %v320_v60 = vld [vmem:[%s4986_s6 + $0x780] sm:$0xff]  ;;  %v322_v61 = vld [vmem:[%s4986_s6 + $0x788] sm:$0xff] }
  0x30   : > { %v324_v62 = vld [vmem:[%s4986_s6 + $0x7c0] sm:$0xff]  ;;  %321 = vst [vmem:[%s4994_s7 + $0x1e0] sm:$0xff] %v320_v60  ;;  %323 = vst [vmem:[%s4994_s7 + $0x1e8] sm:$0xff] %v322_v61  ;;  %v326_v63 = vld [vmem:[%s4986_s6 + $0x7c8] sm:$0xff] }
  0x31   : > { %325 = vst [vmem:[%s4994_s7 + $0x1f0] sm:$0xff] %v324_v62  ;;  %v328_v0 = vld [vmem:[%s4986_s6 + $0x800] sm:$0xff]  ;;  %v330_v1 = vld [vmem:[%s4986_s6 + $0x808] sm:$0xff]  ;;  %327 = vst [vmem:[%s4994_s7 + $0x1f8] sm:$0xff] %v326_v63 }
  0x32   : > { %329 = vst [vmem:[%s4994_s7 + $0x200] sm:$0xff] %v328_v0  ;;  %331 = vst [vmem:[%s4994_s7 + $0x208] sm:$0xff] %v330_v1  ;;  %v332_v2 = vld [vmem:[%s4986_s6 + $0x840] sm:$0xff]  ;;  %v334_v3 = vld [vmem:[%s4986_s6 + $0x848] sm:$0xff] }
  0x33   : > { %v336_v4 = vld [vmem:[%s4986_s6 + $0x880] sm:$0xff]  ;;  %333 = vst [vmem:[%s4994_s7 + $0x210] sm:$0xff] %v332_v2  ;;  %335 = vst [vmem:[%s4994_s7 + $0x218] sm:$0xff] %v334_v3  ;;  %v338_v5 = vld [vmem:[%s4986_s6 + $0x888] sm:$0xff] }
  0x34   : > { %337 = vst [vmem:[%s4994_s7 + $0x220] sm:$0xff] %v336_v4  ;;  %v340_v6 = vld [vmem:[%s4986_s6 + $0x8c0] sm:$0xff]  ;;  %v342_v7 = vld [vmem:[%s4986_s6 + $0x8c8] sm:$0xff]  ;;  %339 = vst [vmem:[%s4994_s7 + $0x228] sm:$0xff] %v338_v5 }
  0x35   : > { %341 = vst [vmem:[%s4994_s7 + $0x230] sm:$0xff] %v340_v6  ;;  %343 = vst [vmem:[%s4994_s7 + $0x238] sm:$0xff] %v342_v7  ;;  %v344_v8 = vld [vmem:[%s4986_s6 + $0x900] sm:$0xff]  ;;  %v346_v9 = vld [vmem:[%s4986_s6 + $0x908] sm:$0xff] }
  0x36   : > { %v348_v10 = vld [vmem:[%s4986_s6 + $0x940] sm:$0xff]  ;;  %345 = vst [vmem:[%s4994_s7 + $0x240] sm:$0xff] %v344_v8  ;;  %347 = vst [vmem:[%s4994_s7 + $0x248] sm:$0xff] %v346_v9  ;;  %v350_v11 = vld [vmem:[%s4986_s6 + $0x948] sm:$0xff] }
  0x37   : > { %349 = vst [vmem:[%s4994_s7 + $0x250] sm:$0xff] %v348_v10  ;;  %v352_v12 = vld [vmem:[%s4986_s6 + $0x980] sm:$0xff]  ;;  %v354_v13 = vld [vmem:[%s4986_s6 + $0x988] sm:$0xff]  ;;  %351 = vst [vmem:[%s4994_s7 + $0x258] sm:$0xff] %v350_v11 }
  0x38   : > { %353 = vst [vmem:[%s4994_s7 + $0x260] sm:$0xff] %v352_v12  ;;  %355 = vst [vmem:[%s4994_s7 + $0x268] sm:$0xff] %v354_v13  ;;  %v356_v14 = vld [vmem:[%s4986_s6 + $0x9c0] sm:$0xff]  ;;  %v358_v15 = vld [vmem:[%s4986_s6 + $0x9c8] sm:$0xff] }
  0x39   : > { %v360_v16 = vld [vmem:[%s4986_s6 + $0xa00] sm:$0xff]  ;;  %357 = vst [vmem:[%s4994_s7 + $0x270] sm:$0xff] %v356_v14  ;;  %359 = vst [vmem:[%s4994_s7 + $0x278] sm:$0xff] %v358_v15  ;;  %v362_v17 = vld [vmem:[%s4986_s6 + $0xa08] sm:$0xff] }
  0x3a   : > { %361 = vst [vmem:[%s4994_s7 + $0x280] sm:$0xff] %v360_v16  ;;  %v364_v18 = vld [vmem:[%s4986_s6 + $0xa40] sm:$0xff]  ;;  %v366_v19 = vld [vmem:[%s4986_s6 + $0xa48] sm:$0xff]  ;;  %363 = vst [vmem:[%s4994_s7 + $0x288] sm:$0xff] %v362_v17 }
  0x3b   : > { %365 = vst [vmem:[%s4994_s7 + $0x290] sm:$0xff] %v364_v18  ;;  %367 = vst [vmem:[%s4994_s7 + $0x298] sm:$0xff] %v366_v19  ;;  %v368_v20 = vld [vmem:[%s4986_s6 + $0xa80] sm:$0xff]  ;;  %v370_v21 = vld [vmem:[%s4986_s6 + $0xa88] sm:$0xff] }
  0x3c   : > { %v372_v22 = vld [vmem:[%s4986_s6 + $0xac0] sm:$0xff]  ;;  %369 = vst [vmem:[%s4994_s7 + $0x2a0] sm:$0xff] %v368_v20  ;;  %371 = vst [vmem:[%s4994_s7 + $0x2a8] sm:$0xff] %v370_v21  ;;  %v374_v23 = vld [vmem:[%s4986_s6 + $0xac8] sm:$0xff] }
  0x3d   : > { %373 = vst [vmem:[%s4994_s7 + $0x2b0] sm:$0xff] %v372_v22  ;;  %v376_v24 = vld [vmem:[%s4986_s6 + $0xb00] sm:$0xff]  ;;  %v378_v25 = vld [vmem:[%s4986_s6 + $0xb08] sm:$0xff]  ;;  %375 = vst [vmem:[%s4994_s7 + $0x2b8] sm:$0xff] %v374_v23 }
  0x3e   : > { %377 = vst [vmem:[%s4994_s7 + $0x2c0] sm:$0xff] %v376_v24  ;;  %379 = vst [vmem:[%s4994_s7 + $0x2c8] sm:$0xff] %v378_v25  ;;  %v380_v26 = vld [vmem:[%s4986_s6 + $0xb40] sm:$0xff]  ;;  %v382_v27 = vld [vmem:[%s4986_s6 + $0xb48] sm:$0xff] }
  0x3f   : > { %v384_v28 = vld [vmem:[%s4986_s6 + $0xb80] sm:$0xff]  ;;  %381 = vst [vmem:[%s4994_s7 + $0x2d0] sm:$0xff] %v380_v26  ;;  %383 = vst [vmem:[%s4994_s7 + $0x2d8] sm:$0xff] %v382_v27  ;;  %v386_v29 = vld [vmem:[%s4986_s6 + $0xb88] sm:$0xff] }
  0x40   : > { %385 = vst [vmem:[%s4994_s7 + $0x2e0] sm:$0xff] %v384_v28  ;;  %v388_v30 = vld [vmem:[%s4986_s6 + $0xbc0] sm:$0xff]  ;;  %v390_v31 = vld [vmem:[%s4986_s6 + $0xbc8] sm:$0xff]  ;;  %387 = vst [vmem:[%s4994_s7 + $0x2e8] sm:$0xff] %v386_v29 }
  0x41   : > { %389 = vst [vmem:[%s4994_s7 + $0x2f0] sm:$0xff] %v388_v30  ;;  %391 = vst [vmem:[%s4994_s7 + $0x2f8] sm:$0xff] %v390_v31  ;;  %v392_v32 = vld [vmem:[%s4986_s6 + $0xc00] sm:$0xff]  ;;  %v394_v33 = vld [vmem:[%s4986_s6 + $0xc08] sm:$0xff] }
  0x42   : > { %v396_v34 = vld [vmem:[%s4986_s6 + $0xc40] sm:$0xff]  ;;  %393 = vst [vmem:[%s4994_s7 + $0x300] sm:$0xff] %v392_v32  ;;  %395 = vst [vmem:[%s4994_s7 + $0x308] sm:$0xff] %v394_v33  ;;  %v398_v35 = vld [vmem:[%s4986_s6 + $0xc48] sm:$0xff] }
  0x43   : > { %397 = vst [vmem:[%s4994_s7 + $0x310] sm:$0xff] %v396_v34  ;;  %v400_v36 = vld [vmem:[%s4986_s6 + $0xc80] sm:$0xff]  ;;  %v402_v37 = vld [vmem:[%s4986_s6 + $0xc88] sm:$0xff]  ;;  %399 = vst [vmem:[%s4994_s7 + $0x318] sm:$0xff] %v398_v35 }
  0x44   : > { %401 = vst [vmem:[%s4994_s7 + $0x320] sm:$0xff] %v400_v36  ;;  %403 = vst [vmem:[%s4994_s7 + $0x328] sm:$0xff] %v402_v37  ;;  %v404_v38 = vld [vmem:[%s4986_s6 + $0xcc0] sm:$0xff]  ;;  %v406_v39 = vld [vmem:[%s4986_s6 + $0xcc8] sm:$0xff] }
  0x45   : > { %v408_v40 = vld [vmem:[%s4986_s6 + $0xd00] sm:$0xff]  ;;  %405 = vst [vmem:[%s4994_s7 + $0x330] sm:$0xff] %v404_v38  ;;  %407 = vst [vmem:[%s4994_s7 + $0x338] sm:$0xff] %v406_v39  ;;  %v410_v41 = vld [vmem:[%s4986_s6 + $0xd08] sm:$0xff] }
  0x46   : > { %409 = vst [vmem:[%s4994_s7 + $0x340] sm:$0xff] %v408_v40  ;;  %v412_v42 = vld [vmem:[%s4986_s6 + $0xd40] sm:$0xff]  ;;  %v414_v43 = vld [vmem:[%s4986_s6 + $0xd48] sm:$0xff]  ;;  %411 = vst [vmem:[%s4994_s7 + $0x348] sm:$0xff] %v410_v41 }
  0x47   : > { %413 = vst [vmem:[%s4994_s7 + $0x350] sm:$0xff] %v412_v42  ;;  %415 = vst [vmem:[%s4994_s7 + $0x358] sm:$0xff] %v414_v43  ;;  %v416_v44 = vld [vmem:[%s4986_s6 + $0xd80] sm:$0xff]  ;;  %v418_v45 = vld [vmem:[%s4986_s6 + $0xd88] sm:$0xff] }
  0x48   : > { %v420_v46 = vld [vmem:[%s4986_s6 + $0xdc0] sm:$0xff]  ;;  %417 = vst [vmem:[%s4994_s7 + $0x360] sm:$0xff] %v416_v44  ;;  %419 = vst [vmem:[%s4994_s7 + $0x368] sm:$0xff] %v418_v45  ;;  %v422_v47 = vld [vmem:[%s4986_s6 + $0xdc8] sm:$0xff] }
  0x49   : > { %421 = vst [vmem:[%s4994_s7 + $0x370] sm:$0xff] %v420_v46  ;;  %v424_v48 = vld [vmem:[%s4986_s6 + $0xe00] sm:$0xff]  ;;  %v426_v49 = vld [vmem:[%s4986_s6 + $0xe08] sm:$0xff]  ;;  %423 = vst [vmem:[%s4994_s7 + $0x378] sm:$0xff] %v422_v47 }
  0x4a   : > { %425 = vst [vmem:[%s4994_s7 + $0x380] sm:$0xff] %v424_v48  ;;  %427 = vst [vmem:[%s4994_s7 + $0x388] sm:$0xff] %v426_v49  ;;  %v428_v50 = vld [vmem:[%s4986_s6 + $0xe40] sm:$0xff]  ;;  %v430_v51 = vld [vmem:[%s4986_s6 + $0xe48] sm:$0xff] }
  0x4b   : > { %v432_v52 = vld [vmem:[%s4986_s6 + $0xe80] sm:$0xff]  ;;  %429 = vst [vmem:[%s4994_s7 + $0x390] sm:$0xff] %v428_v50  ;;  %431 = vst [vmem:[%s4994_s7 + $0x398] sm:$0xff] %v430_v51  ;;  %v434_v53 = vld [vmem:[%s4986_s6 + $0xe88] sm:$0xff] }
  0x4c   : > { %433 = vst [vmem:[%s4994_s7 + $0x3a0] sm:$0xff] %v432_v52  ;;  %v436_v54 = vld [vmem:[%s4986_s6 + $0xec0] sm:$0xff]  ;;  %v438_v55 = vld [vmem:[%s4986_s6 + $0xec8] sm:$0xff]  ;;  %435 = vst [vmem:[%s4994_s7 + $0x3a8] sm:$0xff] %v434_v53 }
  0x4d   : > { %437 = vst [vmem:[%s4994_s7 + $0x3b0] sm:$0xff] %v436_v54  ;;  %439 = vst [vmem:[%s4994_s7 + $0x3b8] sm:$0xff] %v438_v55  ;;  %v440_v56 = vld [vmem:[%s4986_s6 + $0xf00] sm:$0xff]  ;;  %v442_v57 = vld [vmem:[%s4986_s6 + $0xf08] sm:$0xff] }
  0x4e   : > { %v444_v58 = vld [vmem:[%s4986_s6 + $0xf40] sm:$0xff]  ;;  %441 = vst [vmem:[%s4994_s7 + $0x3c0] sm:$0xff] %v440_v56  ;;  %443 = vst [vmem:[%s4994_s7 + $0x3c8] sm:$0xff] %v442_v57  ;;  %v446_v59 = vld [vmem:[%s4986_s6 + $0xf48] sm:$0xff] }
  0x4f   : > { %445 = vst [vmem:[%s4994_s7 + $0x3d0] sm:$0xff] %v444_v58  ;;  %v448_v60 = vld [vmem:[%s4986_s6 + $0xf80] sm:$0xff]  ;;  %v450_v61 = vld [vmem:[%s4986_s6 + $0xf88] sm:$0xff]  ;;  %447 = vst [vmem:[%s4994_s7 + $0x3d8] sm:$0xff] %v446_v59 }
  0x50   : > { %449 = vst [vmem:[%s4994_s7 + $0x3e0] sm:$0xff] %v448_v60  ;;  %451 = vst [vmem:[%s4994_s7 + $0x3e8] sm:$0xff] %v450_v61  ;;  %v452_v62 = vld [vmem:[%s4986_s6 + $0xfc0] sm:$0xff]  ;;  %v454_v63 = vld [vmem:[%s4986_s6 + $0xfc8] sm:$0xff] }
  0x51   : > { %v456_v0 = vld [vmem:[%s4986_s6 + $0x1000] sm:$0xff]  ;;  %453 = vst [vmem:[%s4994_s7 + $0x3f0] sm:$0xff] %v452_v62  ;;  %455 = vst [vmem:[%s4994_s7 + $0x3f8] sm:$0xff] %v454_v63  ;;  %v458_v1 = vld [vmem:[%s4986_s6 + $0x1008] sm:$0xff] }
  0x52   : > { %457 = vst [vmem:[%s4994_s7 + $0x400] sm:$0xff] %v456_v0  ;;  %v460_v2 = vld [vmem:[%s4986_s6 + $0x1040] sm:$0xff]  ;;  %v462_v3 = vld [vmem:[%s4986_s6 + $0x1048] sm:$0xff]  ;;  %459 = vst [vmem:[%s4994_s7 + $0x408] sm:$0xff] %v458_v1 }
  0x53   : > { %461 = vst [vmem:[%s4994_s7 + $0x410] sm:$0xff] %v460_v2  ;;  %463 = vst [vmem:[%s4994_s7 + $0x418] sm:$0xff] %v462_v3  ;;  %v464_v4 = vld [vmem:[%s4986_s6 + $0x1080] sm:$0xff]  ;;  %v466_v5 = vld [vmem:[%s4986_s6 + $0x1088] sm:$0xff] }
  0x54   : > { %v468_v6 = vld [vmem:[%s4986_s6 + $0x10c0] sm:$0xff]  ;;  %465 = vst [vmem:[%s4994_s7 + $0x420] sm:$0xff] %v464_v4  ;;  %467 = vst [vmem:[%s4994_s7 + $0x428] sm:$0xff] %v466_v5  ;;  %v470_v7 = vld [vmem:[%s4986_s6 + $0x10c8] sm:$0xff] }
  0x55   : > { %469 = vst [vmem:[%s4994_s7 + $0x430] sm:$0xff] %v468_v6  ;;  %v472_v8 = vld [vmem:[%s4986_s6 + $0x1100] sm:$0xff]  ;;  %v474_v9 = vld [vmem:[%s4986_s6 + $0x1108] sm:$0xff]  ;;  %471 = vst [vmem:[%s4994_s7 + $0x438] sm:$0xff] %v470_v7 }
  0x56   : > { %473 = vst [vmem:[%s4994_s7 + $0x440] sm:$0xff] %v472_v8  ;;  %475 = vst [vmem:[%s4994_s7 + $0x448] sm:$0xff] %v474_v9  ;;  %v476_v10 = vld [vmem:[%s4986_s6 + $0x1140] sm:$0xff]  ;;  %v478_v11 = vld [vmem:[%s4986_s6 + $0x1148] sm:$0xff] }
  0x57   : > { %v480_v12 = vld [vmem:[%s4986_s6 + $0x1180] sm:$0xff]  ;;  %477 = vst [vmem:[%s4994_s7 + $0x450] sm:$0xff] %v476_v10  ;;  %479 = vst [vmem:[%s4994_s7 + $0x458] sm:$0xff] %v478_v11  ;;  %v482_v13 = vld [vmem:[%s4986_s6 + $0x1188] sm:$0xff] }
  0x58   : > { %481 = vst [vmem:[%s4994_s7 + $0x460] sm:$0xff] %v480_v12  ;;  %v484_v14 = vld [vmem:[%s4986_s6 + $0x11c0] sm:$0xff]  ;;  %v486_v15 = vld [vmem:[%s4986_s6 + $0x11c8] sm:$0xff]  ;;  %483 = vst [vmem:[%s4994_s7 + $0x468] sm:$0xff] %v482_v13 }
  0x59   : > { %485 = vst [vmem:[%s4994_s7 + $0x470] sm:$0xff] %v484_v14  ;;  %487 = vst [vmem:[%s4994_s7 + $0x478] sm:$0xff] %v486_v15  ;;  %v488_v16 = vld [vmem:[%s4986_s6 + $0x1200] sm:$0xff]  ;;  %v490_v17 = vld [vmem:[%s4986_s6 + $0x1208] sm:$0xff] }
  0x5a   : > { %v492_v18 = vld [vmem:[%s4986_s6 + $0x1240] sm:$0xff]  ;;  %489 = vst [vmem:[%s4994_s7 + $0x480] sm:$0xff] %v488_v16  ;;  %491 = vst [vmem:[%s4994_s7 + $0x488] sm:$0xff] %v490_v17  ;;  %v494_v19 = vld [vmem:[%s4986_s6 + $0x1248] sm:$0xff] }
  0x5b   : > { %493 = vst [vmem:[%s4994_s7 + $0x490] sm:$0xff] %v492_v18  ;;  %v496_v20 = vld [vmem:[%s4986_s6 + $0x1280] sm:$0xff]  ;;  %v498_v21 = vld [vmem:[%s4986_s6 + $0x1288] sm:$0xff]  ;;  %495 = vst [vmem:[%s4994_s7 + $0x498] sm:$0xff] %v494_v19 }
  0x5c   : > { %497 = vst [vmem:[%s4994_s7 + $0x4a0] sm:$0xff] %v496_v20  ;;  %499 = vst [vmem:[%s4994_s7 + $0x4a8] sm:$0xff] %v498_v21  ;;  %v500_v22 = vld [vmem:[%s4986_s6 + $0x12c0] sm:$0xff]  ;;  %v502_v23 = vld [vmem:[%s4986_s6 + $0x12c8] sm:$0xff] }
  0x5d   : > { %v504_v24 = vld [vmem:[%s4986_s6 + $0x1300] sm:$0xff]  ;;  %501 = vst [vmem:[%s4994_s7 + $0x4b0] sm:$0xff] %v500_v22  ;;  %503 = vst [vmem:[%s4994_s7 + $0x4b8] sm:$0xff] %v502_v23  ;;  %v506_v25 = vld [vmem:[%s4986_s6 + $0x1308] sm:$0xff] }
  0x5e   : > { %505 = vst [vmem:[%s4994_s7 + $0x4c0] sm:$0xff] %v504_v24  ;;  %v508_v26 = vld [vmem:[%s4986_s6 + $0x1340] sm:$0xff]  ;;  %v510_v27 = vld [vmem:[%s4986_s6 + $0x1348] sm:$0xff]  ;;  %507 = vst [vmem:[%s4994_s7 + $0x4c8] sm:$0xff] %v506_v25 }
  0x5f   : > { %509 = vst [vmem:[%s4994_s7 + $0x4d0] sm:$0xff] %v508_v26  ;;  %511 = vst [vmem:[%s4994_s7 + $0x4d8] sm:$0xff] %v510_v27  ;;  %v512_v28 = vld [vmem:[%s4986_s6 + $0x1380] sm:$0xff]  ;;  %v514_v29 = vld [vmem:[%s4986_s6 + $0x1388] sm:$0xff] }
  0x60   : > { %v516_v30 = vld [vmem:[%s4986_s6 + $0x13c0] sm:$0xff]  ;;  %513 = vst [vmem:[%s4994_s7 + $0x4e0] sm:$0xff] %v512_v28  ;;  %515 = vst [vmem:[%s4994_s7 + $0x4e8] sm:$0xff] %v514_v29  ;;  %v518_v31 = vld [vmem:[%s4986_s6 + $0x13c8] sm:$0xff] }
  0x61   : > { %517 = vst [vmem:[%s4994_s7 + $0x4f0] sm:$0xff] %v516_v30  ;;  %v520_v32 = vld [vmem:[%s4986_s6 + $0x1400] sm:$0xff]  ;;  %v522_v33 = vld [vmem:[%s4986_s6 + $0x1408] sm:$0xff]  ;;  %519 = vst [vmem:[%s4994_s7 + $0x4f8] sm:$0xff] %v518_v31 }
  0x62   : > { %521 = vst [vmem:[%s4994_s7 + $0x500] sm:$0xff] %v520_v32  ;;  %523 = vst [vmem:[%s4994_s7 + $0x508] sm:$0xff] %v522_v33  ;;  %v524_v34 = vld [vmem:[%s4986_s6 + $0x1440] sm:$0xff]  ;;  %v526_v35 = vld [vmem:[%s4986_s6 + $0x1448] sm:$0xff] }
  0x63   : > { %v528_v36 = vld [vmem:[%s4986_s6 + $0x1480] sm:$0xff]  ;;  %525 = vst [vmem:[%s4994_s7 + $0x510] sm:$0xff] %v524_v34  ;;  %527 = vst [vmem:[%s4994_s7 + $0x518] sm:$0xff] %v526_v35  ;;  %v530_v37 = vld [vmem:[%s4986_s6 + $0x1488] sm:$0xff] }
  0x64   : > { %529 = vst [vmem:[%s4994_s7 + $0x520] sm:$0xff] %v528_v36  ;;  %v532_v38 = vld [vmem:[%s4986_s6 + $0x14c0] sm:$0xff]  ;;  %v534_v39 = vld [vmem:[%s4986_s6 + $0x14c8] sm:$0xff]  ;;  %531 = vst [vmem:[%s4994_s7 + $0x528] sm:$0xff] %v530_v37 }
  0x65   : > { %533 = vst [vmem:[%s4994_s7 + $0x530] sm:$0xff] %v532_v38  ;;  %535 = vst [vmem:[%s4994_s7 + $0x538] sm:$0xff] %v534_v39  ;;  %v536_v40 = vld [vmem:[%s4986_s6 + $0x1500] sm:$0xff]  ;;  %v538_v41 = vld [vmem:[%s4986_s6 + $0x1508] sm:$0xff] }
  0x66   : > { %v540_v42 = vld [vmem:[%s4986_s6 + $0x1540] sm:$0xff]  ;;  %537 = vst [vmem:[%s4994_s7 + $0x540] sm:$0xff] %v536_v40  ;;  %539 = vst [vmem:[%s4994_s7 + $0x548] sm:$0xff] %v538_v41  ;;  %v542_v43 = vld [vmem:[%s4986_s6 + $0x1548] sm:$0xff] }
  0x67   : > { %541 = vst [vmem:[%s4994_s7 + $0x550] sm:$0xff] %v540_v42  ;;  %v544_v44 = vld [vmem:[%s4986_s6 + $0x1580] sm:$0xff]  ;;  %v546_v45 = vld [vmem:[%s4986_s6 + $0x1588] sm:$0xff]  ;;  %543 = vst [vmem:[%s4994_s7 + $0x558] sm:$0xff] %v542_v43 }
  0x68   : > { %545 = vst [vmem:[%s4994_s7 + $0x560] sm:$0xff] %v544_v44  ;;  %547 = vst [vmem:[%s4994_s7 + $0x568] sm:$0xff] %v546_v45  ;;  %v548_v46 = vld [vmem:[%s4986_s6 + $0x15c0] sm:$0xff]  ;;  %v550_v47 = vld [vmem:[%s4986_s6 + $0x15c8] sm:$0xff] }
  0x69   : > { %v552_v48 = vld [vmem:[%s4986_s6 + $0x1600] sm:$0xff]  ;;  %549 = vst [vmem:[%s4994_s7 + $0x570] sm:$0xff] %v548_v46  ;;  %551 = vst [vmem:[%s4994_s7 + $0x578] sm:$0xff] %v550_v47  ;;  %v554_v49 = vld [vmem:[%s4986_s6 + $0x1608] sm:$0xff] }
  0x6a   : > { %553 = vst [vmem:[%s4994_s7 + $0x580] sm:$0xff] %v552_v48  ;;  %v556_v50 = vld [vmem:[%s4986_s6 + $0x1640] sm:$0xff]  ;;  %v558_v51 = vld [vmem:[%s4986_s6 + $0x1648] sm:$0xff]  ;;  %555 = vst [vmem:[%s4994_s7 + $0x588] sm:$0xff] %v554_v49 }
  0x6b   : > { %557 = vst [vmem:[%s4994_s7 + $0x590] sm:$0xff] %v556_v50  ;;  %559 = vst [vmem:[%s4994_s7 + $0x598] sm:$0xff] %v558_v51  ;;  %v560_v52 = vld [vmem:[%s4986_s6 + $0x1680] sm:$0xff]  ;;  %v562_v53 = vld [vmem:[%s4986_s6 + $0x1688] sm:$0xff] }
  0x6c   : > { %v564_v54 = vld [vmem:[%s4986_s6 + $0x16c0] sm:$0xff]  ;;  %561 = vst [vmem:[%s4994_s7 + $0x5a0] sm:$0xff] %v560_v52  ;;  %563 = vst [vmem:[%s4994_s7 + $0x5a8] sm:$0xff] %v562_v53  ;;  %v566_v55 = vld [vmem:[%s4986_s6 + $0x16c8] sm:$0xff] }
  0x6d   : > { %565 = vst [vmem:[%s4994_s7 + $0x5b0] sm:$0xff] %v564_v54  ;;  %v568_v56 = vld [vmem:[%s4986_s6 + $0x1700] sm:$0xff]  ;;  %v570_v57 = vld [vmem:[%s4986_s6 + $0x1708] sm:$0xff]  ;;  %567 = vst [vmem:[%s4994_s7 + $0x5b8] sm:$0xff] %v566_v55 }
  0x6e   : > { %569 = vst [vmem:[%s4994_s7 + $0x5c0] sm:$0xff] %v568_v56  ;;  %571 = vst [vmem:[%s4994_s7 + $0x5c8] sm:$0xff] %v570_v57  ;;  %v572_v58 = vld [vmem:[%s4986_s6 + $0x1740] sm:$0xff]  ;;  %v574_v59 = vld [vmem:[%s4986_s6 + $0x1748] sm:$0xff] }
  0x6f   : > { %v576_v60 = vld [vmem:[%s4986_s6 + $0x1780] sm:$0xff]  ;;  %573 = vst [vmem:[%s4994_s7 + $0x5d0] sm:$0xff] %v572_v58  ;;  %575 = vst [vmem:[%s4994_s7 + $0x5d8] sm:$0xff] %v574_v59  ;;  %v578_v61 = vld [vmem:[%s4986_s6 + $0x1788] sm:$0xff] }
  0x70   : > { %577 = vst [vmem:[%s4994_s7 + $0x5e0] sm:$0xff] %v576_v60  ;;  %v580_v62 = vld [vmem:[%s4986_s6 + $0x17c0] sm:$0xff]  ;;  %v582_v63 = vld [vmem:[%s4986_s6 + $0x17c8] sm:$0xff]  ;;  %579 = vst [vmem:[%s4994_s7 + $0x5e8] sm:$0xff] %v578_v61 }
  0x71   : > { %581 = vst [vmem:[%s4994_s7 + $0x5f0] sm:$0xff] %v580_v62  ;;  %583 = vst [vmem:[%s4994_s7 + $0x5f8] sm:$0xff] %v582_v63  ;;  %v584_v0 = vld [vmem:[%s4986_s6 + $0x1800] sm:$0xff]  ;;  %v586_v1 = vld [vmem:[%s4986_s6 + $0x1808] sm:$0xff] }
  0x72   : > { %v588_v2 = vld [vmem:[%s4986_s6 + $0x1840] sm:$0xff]  ;;  %585 = vst [vmem:[%s4994_s7 + $0x600] sm:$0xff] %v584_v0  ;;  %587 = vst [vmem:[%s4994_s7 + $0x608] sm:$0xff] %v586_v1  ;;  %v590_v3 = vld [vmem:[%s4986_s6 + $0x1848] sm:$0xff] }
  0x73   : > { %589 = vst [vmem:[%s4994_s7 + $0x610] sm:$0xff] %v588_v2  ;;  %v592_v4 = vld [vmem:[%s4986_s6 + $0x1880] sm:$0xff]  ;;  %v594_v5 = vld [vmem:[%s4986_s6 + $0x1888] sm:$0xff]  ;;  %591 = vst [vmem:[%s4994_s7 + $0x618] sm:$0xff] %v590_v3 }
  0x74   : > { %593 = vst [vmem:[%s4994_s7 + $0x620] sm:$0xff] %v592_v4  ;;  %595 = vst [vmem:[%s4994_s7 + $0x628] sm:$0xff] %v594_v5  ;;  %v596_v6 = vld [vmem:[%s4986_s6 + $0x18c0] sm:$0xff]  ;;  %v598_v7 = vld [vmem:[%s4986_s6 + $0x18c8] sm:$0xff] }
  0x75   : > { %v600_v8 = vld [vmem:[%s4986_s6 + $0x1900] sm:$0xff]  ;;  %597 = vst [vmem:[%s4994_s7 + $0x630] sm:$0xff] %v596_v6  ;;  %599 = vst [vmem:[%s4994_s7 + $0x638] sm:$0xff] %v598_v7  ;;  %v602_v9 = vld [vmem:[%s4986_s6 + $0x1908] sm:$0xff] }
  0x76   : > { %601 = vst [vmem:[%s4994_s7 + $0x640] sm:$0xff] %v600_v8  ;;  %v604_v10 = vld [vmem:[%s4986_s6 + $0x1940] sm:$0xff]  ;;  %v606_v11 = vld [vmem:[%s4986_s6 + $0x1948] sm:$0xff]  ;;  %603 = vst [vmem:[%s4994_s7 + $0x648] sm:$0xff] %v602_v9 }
  0x77   : > { %605 = vst [vmem:[%s4994_s7 + $0x650] sm:$0xff] %v604_v10  ;;  %607 = vst [vmem:[%s4994_s7 + $0x658] sm:$0xff] %v606_v11  ;;  %v608_v12 = vld [vmem:[%s4986_s6 + $0x1980] sm:$0xff]  ;;  %v610_v13 = vld [vmem:[%s4986_s6 + $0x1988] sm:$0xff] }
  0x78   : > { %v612_v14 = vld [vmem:[%s4986_s6 + $0x19c0] sm:$0xff]  ;;  %609 = vst [vmem:[%s4994_s7 + $0x660] sm:$0xff] %v608_v12  ;;  %611 = vst [vmem:[%s4994_s7 + $0x668] sm:$0xff] %v610_v13  ;;  %v614_v15 = vld [vmem:[%s4986_s6 + $0x19c8] sm:$0xff] }
  0x79   : > { %613 = vst [vmem:[%s4994_s7 + $0x670] sm:$0xff] %v612_v14  ;;  %v616_v16 = vld [vmem:[%s4986_s6 + $0x1a00] sm:$0xff]  ;;  %v618_v17 = vld [vmem:[%s4986_s6 + $0x1a08] sm:$0xff]  ;;  %615 = vst [vmem:[%s4994_s7 + $0x678] sm:$0xff] %v614_v15 }
  0x7a   : > { %617 = vst [vmem:[%s4994_s7 + $0x680] sm:$0xff] %v616_v16  ;;  %619 = vst [vmem:[%s4994_s7 + $0x688] sm:$0xff] %v618_v17  ;;  %v620_v18 = vld [vmem:[%s4986_s6 + $0x1a40] sm:$0xff]  ;;  %v622_v19 = vld [vmem:[%s4986_s6 + $0x1a48] sm:$0xff] }
  0x7b   : > { %v624_v20 = vld [vmem:[%s4986_s6 + $0x1a80] sm:$0xff]  ;;  %621 = vst [vmem:[%s4994_s7 + $0x690] sm:$0xff] %v620_v18  ;;  %623 = vst [vmem:[%s4994_s7 + $0x698] sm:$0xff] %v622_v19  ;;  %v626_v21 = vld [vmem:[%s4986_s6 + $0x1a88] sm:$0xff] }
  0x7c   : > { %625 = vst [vmem:[%s4994_s7 + $0x6a0] sm:$0xff] %v624_v20  ;;  %v628_v22 = vld [vmem:[%s4986_s6 + $0x1ac0] sm:$0xff]  ;;  %v630_v23 = vld [vmem:[%s4986_s6 + $0x1ac8] sm:$0xff]  ;;  %627 = vst [vmem:[%s4994_s7 + $0x6a8] sm:$0xff] %v626_v21 }
  0x7d   : > { %629 = vst [vmem:[%s4994_s7 + $0x6b0] sm:$0xff] %v628_v22  ;;  %631 = vst [vmem:[%s4994_s7 + $0x6b8] sm:$0xff] %v630_v23  ;;  %v632_v24 = vld [vmem:[%s4986_s6 + $0x1b00] sm:$0xff]  ;;  %v634_v25 = vld [vmem:[%s4986_s6 + $0x1b08] sm:$0xff] }
  0x7e   : > { %v636_v26 = vld [vmem:[%s4986_s6 + $0x1b40] sm:$0xff]  ;;  %633 = vst [vmem:[%s4994_s7 + $0x6c0] sm:$0xff] %v632_v24  ;;  %635 = vst [vmem:[%s4994_s7 + $0x6c8] sm:$0xff] %v634_v25  ;;  %v638_v27 = vld [vmem:[%s4986_s6 + $0x1b48] sm:$0xff] }
  0x7f   : > { %637 = vst [vmem:[%s4994_s7 + $0x6d0] sm:$0xff] %v636_v26  ;;  %v640_v28 = vld [vmem:[%s4986_s6 + $0x1b80] sm:$0xff]  ;;  %v642_v29 = vld [vmem:[%s4986_s6 + $0x1b88] sm:$0xff]  ;;  %639 = vst [vmem:[%s4994_s7 + $0x6d8] sm:$0xff] %v638_v27 }
  0x80   : > { %641 = vst [vmem:[%s4994_s7 + $0x6e0] sm:$0xff] %v640_v28  ;;  %643 = vst [vmem:[%s4994_s7 + $0x6e8] sm:$0xff] %v642_v29  ;;  %v644_v30 = vld [vmem:[%s4986_s6 + $0x1bc0] sm:$0xff]  ;;  %v646_v31 = vld [vmem:[%s4986_s6 + $0x1bc8] sm:$0xff] }
  0x81   : > { %v648_v32 = vld [vmem:[%s4986_s6 + $0x1c00] sm:$0xff]  ;;  %645 = vst [vmem:[%s4994_s7 + $0x6f0] sm:$0xff] %v644_v30  ;;  %647 = vst [vmem:[%s4994_s7 + $0x6f8] sm:$0xff] %v646_v31  ;;  %v650_v33 = vld [vmem:[%s4986_s6 + $0x1c08] sm:$0xff] }
  0x82   : > { %649 = vst [vmem:[%s4994_s7 + $0x700] sm:$0xff] %v648_v32  ;;  %v652_v34 = vld [vmem:[%s4986_s6 + $0x1c40] sm:$0xff]  ;;  %v654_v35 = vld [vmem:[%s4986_s6 + $0x1c48] sm:$0xff]  ;;  %651 = vst [vmem:[%s4994_s7 + $0x708] sm:$0xff] %v650_v33 }
  0x83   : > { %653 = vst [vmem:[%s4994_s7 + $0x710] sm:$0xff] %v652_v34  ;;  %655 = vst [vmem:[%s4994_s7 + $0x718] sm:$0xff] %v654_v35  ;;  %v656_v36 = vld [vmem:[%s4986_s6 + $0x1c80] sm:$0xff]  ;;  %v658_v37 = vld [vmem:[%s4986_s6 + $0x1c88] sm:$0xff] }
  0x84   : > { %v660_v38 = vld [vmem:[%s4986_s6 + $0x1cc0] sm:$0xff]  ;;  %657 = vst [vmem:[%s4994_s7 + $0x720] sm:$0xff] %v656_v36  ;;  %659 = vst [vmem:[%s4994_s7 + $0x728] sm:$0xff] %v658_v37  ;;  %v662_v39 = vld [vmem:[%s4986_s6 + $0x1cc8] sm:$0xff] }
  0x85   : > { %661 = vst [vmem:[%s4994_s7 + $0x730] sm:$0xff] %v660_v38  ;;  %v664_v40 = vld [vmem:[%s4986_s6 + $0x1d00] sm:$0xff]  ;;  %v666_v41 = vld [vmem:[%s4986_s6 + $0x1d08] sm:$0xff]  ;;  %663 = vst [vmem:[%s4994_s7 + $0x738] sm:$0xff] %v662_v39 }
  0x86   : > { %665 = vst [vmem:[%s4994_s7 + $0x740] sm:$0xff] %v664_v40  ;;  %667 = vst [vmem:[%s4994_s7 + $0x748] sm:$0xff] %v666_v41  ;;  %v668_v42 = vld [vmem:[%s4986_s6 + $0x1d40] sm:$0xff]  ;;  %v670_v43 = vld [vmem:[%s4986_s6 + $0x1d48] sm:$0xff] }
  0x87   : > { %v672_v44 = vld [vmem:[%s4986_s6 + $0x1d80] sm:$0xff]  ;;  %669 = vst [vmem:[%s4994_s7 + $0x750] sm:$0xff] %v668_v42  ;;  %671 = vst [vmem:[%s4994_s7 + $0x758] sm:$0xff] %v670_v43  ;;  %v674_v45 = vld [vmem:[%s4986_s6 + $0x1d88] sm:$0xff] }
  0x88   : > { %673 = vst [vmem:[%s4994_s7 + $0x760] sm:$0xff] %v672_v44  ;;  %v676_v46 = vld [vmem:[%s4986_s6 + $0x1dc0] sm:$0xff]  ;;  %v678_v47 = vld [vmem:[%s4986_s6 + $0x1dc8] sm:$0xff]  ;;  %675 = vst [vmem:[%s4994_s7 + $0x768] sm:$0xff] %v674_v45 }
  0x89   : > { %677 = vst [vmem:[%s4994_s7 + $0x770] sm:$0xff] %v676_v46  ;;  %679 = vst [vmem:[%s4994_s7 + $0x778] sm:$0xff] %v678_v47  ;;  %v680_v48 = vld [vmem:[%s4986_s6 + $0x1e00] sm:$0xff]  ;;  %v682_v49 = vld [vmem:[%s4986_s6 + $0x1e08] sm:$0xff] }
  0x8a   : > { %v684_v50 = vld [vmem:[%s4986_s6 + $0x1e40] sm:$0xff]  ;;  %681 = vst [vmem:[%s4994_s7 + $0x780] sm:$0xff] %v680_v48  ;;  %683 = vst [vmem:[%s4994_s7 + $0x788] sm:$0xff] %v682_v49  ;;  %v686_v51 = vld [vmem:[%s4986_s6 + $0x1e48] sm:$0xff] }
  0x8b   : > { %685 = vst [vmem:[%s4994_s7 + $0x790] sm:$0xff] %v684_v50  ;;  %v688_v52 = vld [vmem:[%s4986_s6 + $0x1e80] sm:$0xff]  ;;  %v690_v53 = vld [vmem:[%s4986_s6 + $0x1e88] sm:$0xff]  ;;  %687 = vst [vmem:[%s4994_s7 + $0x798] sm:$0xff] %v686_v51 }
  0x8c   : > { %689 = vst [vmem:[%s4994_s7 + $0x7a0] sm:$0xff] %v688_v52  ;;  %691 = vst [vmem:[%s4994_s7 + $0x7a8] sm:$0xff] %v690_v53  ;;  %v692_v54 = vld [vmem:[%s4986_s6 + $0x1ec0] sm:$0xff]  ;;  %v694_v55 = vld [vmem:[%s4986_s6 + $0x1ec8] sm:$0xff] }
  0x8d   : > { %v696_v56 = vld [vmem:[%s4986_s6 + $0x1f00] sm:$0xff]  ;;  %693 = vst [vmem:[%s4994_s7 + $0x7b0] sm:$0xff] %v692_v54  ;;  %695 = vst [vmem:[%s4994_s7 + $0x7b8] sm:$0xff] %v694_v55  ;;  %v698_v57 = vld [vmem:[%s4986_s6 + $0x1f08] sm:$0xff] }
  0x8e   : > { %697 = vst [vmem:[%s4994_s7 + $0x7c0] sm:$0xff] %v696_v56  ;;  %v700_v58 = vld [vmem:[%s4986_s6 + $0x1f40] sm:$0xff]  ;;  %v702_v59 = vld [vmem:[%s4986_s6 + $0x1f48] sm:$0xff]  ;;  %699 = vst [vmem:[%s4994_s7 + $0x7c8] sm:$0xff] %v698_v57 }
  0x8f   : > { %701 = vst [vmem:[%s4994_s7 + $0x7d0] sm:$0xff] %v700_v58  ;;  %703 = vst [vmem:[%s4994_s7 + $0x7d8] sm:$0xff] %v702_v59  ;;  %v704_v60 = vld [vmem:[%s4986_s6 + $0x1f80] sm:$0xff]  ;;  %v706_v61 = vld [vmem:[%s4986_s6 + $0x1f88] sm:$0xff] }
  0x90   : > { %v708_v62 = vld [vmem:[%s4986_s6 + $0x1fc0] sm:$0xff]  ;;  %705 = vst [vmem:[%s4994_s7 + $0x7e0] sm:$0xff] %v704_v60  ;;  %707 = vst [vmem:[%s4994_s7 + $0x7e8] sm:$0xff] %v706_v61  ;;  %v710_v63 = vld [vmem:[%s4986_s6 + $0x1fc8] sm:$0xff] }
  0x91   : > { %709 = vst [vmem:[%s4994_s7 + $0x7f0] sm:$0xff] %v708_v62  ;;  %v712_v0 = vld [vmem:[%s4986_s6 + $0x2000] sm:$0xff]  ;;  %v714_v1 = vld [vmem:[%s4986_s6 + $0x2008] sm:$0xff]  ;;  %711 = vst [vmem:[%s4994_s7 + $0x7f8] sm:$0xff] %v710_v63 }
  0x92   : > { %713 = vst [vmem:[%s4994_s7 + $0x800] sm:$0xff] %v712_v0  ;;  %715 = vst [vmem:[%s4994_s7 + $0x808] sm:$0xff] %v714_v1  ;;  %v716_v2 = vld [vmem:[%s4986_s6 + $0x2040] sm:$0xff]  ;;  %v718_v3 = vld [vmem:[%s4986_s6 + $0x2048] sm:$0xff] }
  0x93   : > { %v720_v4 = vld [vmem:[%s4986_s6 + $0x2080] sm:$0xff]  ;;  %717 = vst [vmem:[%s4994_s7 + $0x810] sm:$0xff] %v716_v2  ;;  %719 = vst [vmem:[%s4994_s7 + $0x818] sm:$0xff] %v718_v3  ;;  %v722_v5 = vld [vmem:[%s4986_s6 + $0x2088] sm:$0xff] }
  0x94   : > { %721 = vst [vmem:[%s4994_s7 + $0x820] sm:$0xff] %v720_v4  ;;  %v724_v6 = vld [vmem:[%s4986_s6 + $0x20c0] sm:$0xff]  ;;  %v726_v7 = vld [vmem:[%s4986_s6 + $0x20c8] sm:$0xff]  ;;  %723 = vst [vmem:[%s4994_s7 + $0x828] sm:$0xff] %v722_v5 }
  0x95   : > { %725 = vst [vmem:[%s4994_s7 + $0x830] sm:$0xff] %v724_v6  ;;  %727 = vst [vmem:[%s4994_s7 + $0x838] sm:$0xff] %v726_v7  ;;  %v728_v8 = vld [vmem:[%s4986_s6 + $0x2100] sm:$0xff]  ;;  %v730_v9 = vld [vmem:[%s4986_s6 + $0x2108] sm:$0xff] }
  0x96   : > { %v732_v10 = vld [vmem:[%s4986_s6 + $0x2140] sm:$0xff]  ;;  %729 = vst [vmem:[%s4994_s7 + $0x840] sm:$0xff] %v728_v8  ;;  %731 = vst [vmem:[%s4994_s7 + $0x848] sm:$0xff] %v730_v9  ;;  %v734_v11 = vld [vmem:[%s4986_s6 + $0x2148] sm:$0xff] }
  0x97   : > { %733 = vst [vmem:[%s4994_s7 + $0x850] sm:$0xff] %v732_v10  ;;  %v736_v12 = vld [vmem:[%s4986_s6 + $0x2180] sm:$0xff]  ;;  %v738_v13 = vld [vmem:[%s4986_s6 + $0x2188] sm:$0xff]  ;;  %735 = vst [vmem:[%s4994_s7 + $0x858] sm:$0xff] %v734_v11 }
  0x98   : > { %737 = vst [vmem:[%s4994_s7 + $0x860] sm:$0xff] %v736_v12  ;;  %739 = vst [vmem:[%s4994_s7 + $0x868] sm:$0xff] %v738_v13  ;;  %v740_v14 = vld [vmem:[%s4986_s6 + $0x21c0] sm:$0xff]  ;;  %v742_v15 = vld [vmem:[%s4986_s6 + $0x21c8] sm:$0xff] }
  0x99   : > { %v744_v16 = vld [vmem:[%s4986_s6 + $0x2200] sm:$0xff]  ;;  %741 = vst [vmem:[%s4994_s7 + $0x870] sm:$0xff] %v740_v14  ;;  %743 = vst [vmem:[%s4994_s7 + $0x878] sm:$0xff] %v742_v15  ;;  %v746_v17 = vld [vmem:[%s4986_s6 + $0x2208] sm:$0xff] }
  0x9a   : > { %745 = vst [vmem:[%s4994_s7 + $0x880] sm:$0xff] %v744_v16  ;;  %v748_v18 = vld [vmem:[%s4986_s6 + $0x2240] sm:$0xff]  ;;  %v750_v19 = vld [vmem:[%s4986_s6 + $0x2248] sm:$0xff]  ;;  %747 = vst [vmem:[%s4994_s7 + $0x888] sm:$0xff] %v746_v17 }
  0x9b   : > { %749 = vst [vmem:[%s4994_s7 + $0x890] sm:$0xff] %v748_v18  ;;  %751 = vst [vmem:[%s4994_s7 + $0x898] sm:$0xff] %v750_v19  ;;  %v752_v20 = vld [vmem:[%s4986_s6 + $0x2280] sm:$0xff]  ;;  %v754_v21 = vld [vmem:[%s4986_s6 + $0x2288] sm:$0xff] }
  0x9c   : > { %v756_v22 = vld [vmem:[%s4986_s6 + $0x22c0] sm:$0xff]  ;;  %753 = vst [vmem:[%s4994_s7 + $0x8a0] sm:$0xff] %v752_v20  ;;  %755 = vst [vmem:[%s4994_s7 + $0x8a8] sm:$0xff] %v754_v21  ;;  %v758_v23 = vld [vmem:[%s4986_s6 + $0x22c8] sm:$0xff] }
  0x9d   : > { %757 = vst [vmem:[%s4994_s7 + $0x8b0] sm:$0xff] %v756_v22  ;;  %v760_v24 = vld [vmem:[%s4986_s6 + $0x2300] sm:$0xff]  ;;  %v762_v25 = vld [vmem:[%s4986_s6 + $0x2308] sm:$0xff]  ;;  %759 = vst [vmem:[%s4994_s7 + $0x8b8] sm:$0xff] %v758_v23 }
  0x9e   : > { %761 = vst [vmem:[%s4994_s7 + $0x8c0] sm:$0xff] %v760_v24  ;;  %763 = vst [vmem:[%s4994_s7 + $0x8c8] sm:$0xff] %v762_v25  ;;  %v764_v26 = vld [vmem:[%s4986_s6 + $0x2340] sm:$0xff]  ;;  %v766_v27 = vld [vmem:[%s4986_s6 + $0x2348] sm:$0xff] }
  0x9f   : > { %v768_v28 = vld [vmem:[%s4986_s6 + $0x2380] sm:$0xff]  ;;  %765 = vst [vmem:[%s4994_s7 + $0x8d0] sm:$0xff] %v764_v26  ;;  %767 = vst [vmem:[%s4994_s7 + $0x8d8] sm:$0xff] %v766_v27  ;;  %v770_v29 = vld [vmem:[%s4986_s6 + $0x2388] sm:$0xff] }
  0xa0   : > { %769 = vst [vmem:[%s4994_s7 + $0x8e0] sm:$0xff] %v768_v28  ;;  %v772_v30 = vld [vmem:[%s4986_s6 + $0x23c0] sm:$0xff]  ;;  %v774_v31 = vld [vmem:[%s4986_s6 + $0x23c8] sm:$0xff]  ;;  %771 = vst [vmem:[%s4994_s7 + $0x8e8] sm:$0xff] %v770_v29 }
  0xa1   : > { %773 = vst [vmem:[%s4994_s7 + $0x8f0] sm:$0xff] %v772_v30  ;;  %775 = vst [vmem:[%s4994_s7 + $0x8f8] sm:$0xff] %v774_v31  ;;  %v776_v32 = vld [vmem:[%s4986_s6 + $0x2400] sm:$0xff]  ;;  %v778_v33 = vld [vmem:[%s4986_s6 + $0x2408] sm:$0xff] }
  0xa2   : > { %v780_v34 = vld [vmem:[%s4986_s6 + $0x2440] sm:$0xff]  ;;  %777 = vst [vmem:[%s4994_s7 + $0x900] sm:$0xff] %v776_v32  ;;  %779 = vst [vmem:[%s4994_s7 + $0x908] sm:$0xff] %v778_v33  ;;  %v782_v35 = vld [vmem:[%s4986_s6 + $0x2448] sm:$0xff] }
  0xa3   : > { %781 = vst [vmem:[%s4994_s7 + $0x910] sm:$0xff] %v780_v34  ;;  %v784_v36 = vld [vmem:[%s4986_s6 + $0x2480] sm:$0xff]  ;;  %v786_v37 = vld [vmem:[%s4986_s6 + $0x2488] sm:$0xff]  ;;  %783 = vst [vmem:[%s4994_s7 + $0x918] sm:$0xff] %v782_v35 }
  0xa4   : > { %785 = vst [vmem:[%s4994_s7 + $0x920] sm:$0xff] %v784_v36  ;;  %787 = vst [vmem:[%s4994_s7 + $0x928] sm:$0xff] %v786_v37  ;;  %v788_v38 = vld [vmem:[%s4986_s6 + $0x24c0] sm:$0xff]  ;;  %v790_v39 = vld [vmem:[%s4986_s6 + $0x24c8] sm:$0xff] }
  0xa5   : > { %v792_v40 = vld [vmem:[%s4986_s6 + $0x2500] sm:$0xff]  ;;  %789 = vst [vmem:[%s4994_s7 + $0x930] sm:$0xff] %v788_v38  ;;  %791 = vst [vmem:[%s4994_s7 + $0x938] sm:$0xff] %v790_v39  ;;  %v794_v41 = vld [vmem:[%s4986_s6 + $0x2508] sm:$0xff] }
  0xa6   : > { %793 = vst [vmem:[%s4994_s7 + $0x940] sm:$0xff] %v792_v40  ;;  %v796_v42 = vld [vmem:[%s4986_s6 + $0x2540] sm:$0xff]  ;;  %v798_v43 = vld [vmem:[%s4986_s6 + $0x2548] sm:$0xff]  ;;  %795 = vst [vmem:[%s4994_s7 + $0x948] sm:$0xff] %v794_v41 }
  0xa7   : > { %797 = vst [vmem:[%s4994_s7 + $0x950] sm:$0xff] %v796_v42  ;;  %799 = vst [vmem:[%s4994_s7 + $0x958] sm:$0xff] %v798_v43  ;;  %v800_v44 = vld [vmem:[%s4986_s6 + $0x2580] sm:$0xff]  ;;  %v802_v45 = vld [vmem:[%s4986_s6 + $0x2588] sm:$0xff] }
  0xa8   : > { %v804_v46 = vld [vmem:[%s4986_s6 + $0x25c0] sm:$0xff]  ;;  %801 = vst [vmem:[%s4994_s7 + $0x960] sm:$0xff] %v800_v44  ;;  %803 = vst [vmem:[%s4994_s7 + $0x968] sm:$0xff] %v802_v45  ;;  %v806_v47 = vld [vmem:[%s4986_s6 + $0x25c8] sm:$0xff] }
  0xa9   : > { %805 = vst [vmem:[%s4994_s7 + $0x970] sm:$0xff] %v804_v46  ;;  %v808_v48 = vld [vmem:[%s4986_s6 + $0x2600] sm:$0xff]  ;;  %v810_v49 = vld [vmem:[%s4986_s6 + $0x2608] sm:$0xff]  ;;  %807 = vst [vmem:[%s4994_s7 + $0x978] sm:$0xff] %v806_v47 }
  0xaa   : > { %809 = vst [vmem:[%s4994_s7 + $0x980] sm:$0xff] %v808_v48  ;;  %811 = vst [vmem:[%s4994_s7 + $0x988] sm:$0xff] %v810_v49  ;;  %v812_v50 = vld [vmem:[%s4986_s6 + $0x2640] sm:$0xff]  ;;  %v814_v51 = vld [vmem:[%s4986_s6 + $0x2648] sm:$0xff] }
  0xab   : > { %v816_v52 = vld [vmem:[%s4986_s6 + $0x2680] sm:$0xff]  ;;  %813 = vst [vmem:[%s4994_s7 + $0x990] sm:$0xff] %v812_v50  ;;  %815 = vst [vmem:[%s4994_s7 + $0x998] sm:$0xff] %v814_v51  ;;  %v818_v53 = vld [vmem:[%s4986_s6 + $0x2688] sm:$0xff] }
  0xac   : > { %817 = vst [vmem:[%s4994_s7 + $0x9a0] sm:$0xff] %v816_v52  ;;  %v820_v54 = vld [vmem:[%s4986_s6 + $0x26c0] sm:$0xff]  ;;  %v822_v55 = vld [vmem:[%s4986_s6 + $0x26c8] sm:$0xff]  ;;  %819 = vst [vmem:[%s4994_s7 + $0x9a8] sm:$0xff] %v818_v53 }
  0xad   : > { %821 = vst [vmem:[%s4994_s7 + $0x9b0] sm:$0xff] %v820_v54  ;;  %823 = vst [vmem:[%s4994_s7 + $0x9b8] sm:$0xff] %v822_v55  ;;  %v824_v56 = vld [vmem:[%s4986_s6 + $0x2700] sm:$0xff]  ;;  %v826_v57 = vld [vmem:[%s4986_s6 + $0x2708] sm:$0xff] }
  0xae   : > { %v828_v58 = vld [vmem:[%s4986_s6 + $0x2740] sm:$0xff]  ;;  %825 = vst [vmem:[%s4994_s7 + $0x9c0] sm:$0xff] %v824_v56  ;;  %827 = vst [vmem:[%s4994_s7 + $0x9c8] sm:$0xff] %v826_v57  ;;  %v830_v59 = vld [vmem:[%s4986_s6 + $0x2748] sm:$0xff] }
  0xaf   : > { %829 = vst [vmem:[%s4994_s7 + $0x9d0] sm:$0xff] %v828_v58  ;;  %v832_v60 = vld [vmem:[%s4986_s6 + $0x2780] sm:$0xff]  ;;  %v834_v61 = vld [vmem:[%s4986_s6 + $0x2788] sm:$0xff]  ;;  %831 = vst [vmem:[%s4994_s7 + $0x9d8] sm:$0xff] %v830_v59 }
  0xb0   : > { %833 = vst [vmem:[%s4994_s7 + $0x9e0] sm:$0xff] %v832_v60  ;;  %835 = vst [vmem:[%s4994_s7 + $0x9e8] sm:$0xff] %v834_v61  ;;  %v836_v62 = vld [vmem:[%s4986_s6 + $0x27c0] sm:$0xff]  ;;  %v838_v63 = vld [vmem:[%s4986_s6 + $0x27c8] sm:$0xff] }
  0xb1   : > { %v840_v0 = vld [vmem:[%s4986_s6 + $0x2800] sm:$0xff]  ;;  %837 = vst [vmem:[%s4994_s7 + $0x9f0] sm:$0xff] %v836_v62  ;;  %839 = vst [vmem:[%s4994_s7 + $0x9f8] sm:$0xff] %v838_v63  ;;  %v842_v1 = vld [vmem:[%s4986_s6 + $0x2808] sm:$0xff] }
  0xb2   : > { %841 = vst [vmem:[%s4994_s7 + $0xa00] sm:$0xff] %v840_v0  ;;  %v844_v2 = vld [vmem:[%s4986_s6 + $0x2840] sm:$0xff]  ;;  %v846_v3 = vld [vmem:[%s4986_s6 + $0x2848] sm:$0xff]  ;;  %843 = vst [vmem:[%s4994_s7 + $0xa08] sm:$0xff] %v842_v1 }
  0xb3   : > { %845 = vst [vmem:[%s4994_s7 + $0xa10] sm:$0xff] %v844_v2  ;;  %847 = vst [vmem:[%s4994_s7 + $0xa18] sm:$0xff] %v846_v3  ;;  %v848_v4 = vld [vmem:[%s4986_s6 + $0x2880] sm:$0xff]  ;;  %v850_v5 = vld [vmem:[%s4986_s6 + $0x2888] sm:$0xff] }
  0xb4   : > { %v852_v6 = vld [vmem:[%s4986_s6 + $0x28c0] sm:$0xff]  ;;  %849 = vst [vmem:[%s4994_s7 + $0xa20] sm:$0xff] %v848_v4  ;;  %851 = vst [vmem:[%s4994_s7 + $0xa28] sm:$0xff] %v850_v5  ;;  %v854_v7 = vld [vmem:[%s4986_s6 + $0x28c8] sm:$0xff] }
  0xb5   : > { %853 = vst [vmem:[%s4994_s7 + $0xa30] sm:$0xff] %v852_v6  ;;  %v856_v8 = vld [vmem:[%s4986_s6 + $0x2900] sm:$0xff]  ;;  %v858_v9 = vld [vmem:[%s4986_s6 + $0x2908] sm:$0xff]  ;;  %855 = vst [vmem:[%s4994_s7 + $0xa38] sm:$0xff] %v854_v7 }
  0xb6   : > { %857 = vst [vmem:[%s4994_s7 + $0xa40] sm:$0xff] %v856_v8  ;;  %859 = vst [vmem:[%s4994_s7 + $0xa48] sm:$0xff] %v858_v9  ;;  %v860_v10 = vld [vmem:[%s4986_s6 + $0x2940] sm:$0xff]  ;;  %v862_v11 = vld [vmem:[%s4986_s6 + $0x2948] sm:$0xff] }
  0xb7   : > { %v864_v12 = vld [vmem:[%s4986_s6 + $0x2980] sm:$0xff]  ;;  %861 = vst [vmem:[%s4994_s7 + $0xa50] sm:$0xff] %v860_v10  ;;  %863 = vst [vmem:[%s4994_s7 + $0xa58] sm:$0xff] %v862_v11  ;;  %v866_v13 = vld [vmem:[%s4986_s6 + $0x2988] sm:$0xff] }
  0xb8   : > { %865 = vst [vmem:[%s4994_s7 + $0xa60] sm:$0xff] %v864_v12  ;;  %v868_v14 = vld [vmem:[%s4986_s6 + $0x29c0] sm:$0xff]  ;;  %v870_v15 = vld [vmem:[%s4986_s6 + $0x29c8] sm:$0xff]  ;;  %867 = vst [vmem:[%s4994_s7 + $0xa68] sm:$0xff] %v866_v13 }
  0xb9   : > { %869 = vst [vmem:[%s4994_s7 + $0xa70] sm:$0xff] %v868_v14  ;;  %871 = vst [vmem:[%s4994_s7 + $0xa78] sm:$0xff] %v870_v15  ;;  %v872_v16 = vld [vmem:[%s4986_s6 + $0x2a00] sm:$0xff]  ;;  %v874_v17 = vld [vmem:[%s4986_s6 + $0x2a08] sm:$0xff] }
  0xba   : > { %v876_v18 = vld [vmem:[%s4986_s6 + $0x2a40] sm:$0xff]  ;;  %873 = vst [vmem:[%s4994_s7 + $0xa80] sm:$0xff] %v872_v16  ;;  %875 = vst [vmem:[%s4994_s7 + $0xa88] sm:$0xff] %v874_v17  ;;  %v878_v19 = vld [vmem:[%s4986_s6 + $0x2a48] sm:$0xff] }
  0xbb   : > { %877 = vst [vmem:[%s4994_s7 + $0xa90] sm:$0xff] %v876_v18  ;;  %v880_v20 = vld [vmem:[%s4986_s6 + $0x2a80] sm:$0xff]  ;;  %v882_v21 = vld [vmem:[%s4986_s6 + $0x2a88] sm:$0xff]  ;;  %879 = vst [vmem:[%s4994_s7 + $0xa98] sm:$0xff] %v878_v19 }
  0xbc   : > { %881 = vst [vmem:[%s4994_s7 + $0xaa0] sm:$0xff] %v880_v20  ;;  %883 = vst [vmem:[%s4994_s7 + $0xaa8] sm:$0xff] %v882_v21  ;;  %v884_v22 = vld [vmem:[%s4986_s6 + $0x2ac0] sm:$0xff]  ;;  %v886_v23 = vld [vmem:[%s4986_s6 + $0x2ac8] sm:$0xff] }
  0xbd   : > { %v888_v24 = vld [vmem:[%s4986_s6 + $0x2b00] sm:$0xff]  ;;  %885 = vst [vmem:[%s4994_s7 + $0xab0] sm:$0xff] %v884_v22  ;;  %887 = vst [vmem:[%s4994_s7 + $0xab8] sm:$0xff] %v886_v23  ;;  %v890_v25 = vld [vmem:[%s4986_s6 + $0x2b08] sm:$0xff] }
  0xbe   : > { %889 = vst [vmem:[%s4994_s7 + $0xac0] sm:$0xff] %v888_v24  ;;  %v892_v26 = vld [vmem:[%s4986_s6 + $0x2b40] sm:$0xff]  ;;  %v894_v27 = vld [vmem:[%s4986_s6 + $0x2b48] sm:$0xff]  ;;  %891 = vst [vmem:[%s4994_s7 + $0xac8] sm:$0xff] %v890_v25 }
  0xbf   : > { %893 = vst [vmem:[%s4994_s7 + $0xad0] sm:$0xff] %v892_v26  ;;  %895 = vst [vmem:[%s4994_s7 + $0xad8] sm:$0xff] %v894_v27  ;;  %v896_v28 = vld [vmem:[%s4986_s6 + $0x2b80] sm:$0xff]  ;;  %v898_v29 = vld [vmem:[%s4986_s6 + $0x2b88] sm:$0xff] }
  0xc0   : > { %v900_v30 = vld [vmem:[%s4986_s6 + $0x2bc0] sm:$0xff]  ;;  %897 = vst [vmem:[%s4994_s7 + $0xae0] sm:$0xff] %v896_v28  ;;  %899 = vst [vmem:[%s4994_s7 + $0xae8] sm:$0xff] %v898_v29  ;;  %v902_v31 = vld [vmem:[%s4986_s6 + $0x2bc8] sm:$0xff] }
  0xc1   : > { %901 = vst [vmem:[%s4994_s7 + $0xaf0] sm:$0xff] %v900_v30  ;;  %v904_v32 = vld [vmem:[%s4986_s6 + $0x2c00] sm:$0xff]  ;;  %v906_v33 = vld [vmem:[%s4986_s6 + $0x2c08] sm:$0xff]  ;;  %903 = vst [vmem:[%s4994_s7 + $0xaf8] sm:$0xff] %v902_v31 }
  0xc2   : > { %905 = vst [vmem:[%s4994_s7 + $0xb00] sm:$0xff] %v904_v32  ;;  %907 = vst [vmem:[%s4994_s7 + $0xb08] sm:$0xff] %v906_v33  ;;  %v908_v34 = vld [vmem:[%s4986_s6 + $0x2c40] sm:$0xff]  ;;  %v910_v35 = vld [vmem:[%s4986_s6 + $0x2c48] sm:$0xff] }
  0xc3   : > { %v912_v36 = vld [vmem:[%s4986_s6 + $0x2c80] sm:$0xff]  ;;  %909 = vst [vmem:[%s4994_s7 + $0xb10] sm:$0xff] %v908_v34  ;;  %911 = vst [vmem:[%s4994_s7 + $0xb18] sm:$0xff] %v910_v35  ;;  %v914_v37 = vld [vmem:[%s4986_s6 + $0x2c88] sm:$0xff] }
  0xc4   : > { %913 = vst [vmem:[%s4994_s7 + $0xb20] sm:$0xff] %v912_v36  ;;  %v916_v38 = vld [vmem:[%s4986_s6 + $0x2cc0] sm:$0xff]  ;;  %v918_v39 = vld [vmem:[%s4986_s6 + $0x2cc8] sm:$0xff]  ;;  %915 = vst [vmem:[%s4994_s7 + $0xb28] sm:$0xff] %v914_v37 }
  0xc5   : > { %917 = vst [vmem:[%s4994_s7 + $0xb30] sm:$0xff] %v916_v38  ;;  %919 = vst [vmem:[%s4994_s7 + $0xb38] sm:$0xff] %v918_v39  ;;  %v920_v40 = vld [vmem:[%s4986_s6 + $0x2d00] sm:$0xff]  ;;  %v922_v41 = vld [vmem:[%s4986_s6 + $0x2d08] sm:$0xff] }
  0xc6   : > { %v924_v42 = vld [vmem:[%s4986_s6 + $0x2d40] sm:$0xff]  ;;  %921 = vst [vmem:[%s4994_s7 + $0xb40] sm:$0xff] %v920_v40  ;;  %923 = vst [vmem:[%s4994_s7 + $0xb48] sm:$0xff] %v922_v41  ;;  %v926_v43 = vld [vmem:[%s4986_s6 + $0x2d48] sm:$0xff] }
  0xc7   : > { %925 = vst [vmem:[%s4994_s7 + $0xb50] sm:$0xff] %v924_v42  ;;  %v928_v44 = vld [vmem:[%s4986_s6 + $0x2d80] sm:$0xff]  ;;  %v930_v45 = vld [vmem:[%s4986_s6 + $0x2d88] sm:$0xff]  ;;  %927 = vst [vmem:[%s4994_s7 + $0xb58] sm:$0xff] %v926_v43 }
  0xc8   : > { %929 = vst [vmem:[%s4994_s7 + $0xb60] sm:$0xff] %v928_v44  ;;  %931 = vst [vmem:[%s4994_s7 + $0xb68] sm:$0xff] %v930_v45  ;;  %v932_v46 = vld [vmem:[%s4986_s6 + $0x2dc0] sm:$0xff]  ;;  %v934_v47 = vld [vmem:[%s4986_s6 + $0x2dc8] sm:$0xff] }
  0xc9   : > { %v936_v48 = vld [vmem:[%s4986_s6 + $0x2e00] sm:$0xff]  ;;  %933 = vst [vmem:[%s4994_s7 + $0xb70] sm:$0xff] %v932_v46  ;;  %935 = vst [vmem:[%s4994_s7 + $0xb78] sm:$0xff] %v934_v47  ;;  %v938_v49 = vld [vmem:[%s4986_s6 + $0x2e08] sm:$0xff] }
  0xca   : > { %937 = vst [vmem:[%s4994_s7 + $0xb80] sm:$0xff] %v936_v48  ;;  %v940_v50 = vld [vmem:[%s4986_s6 + $0x2e40] sm:$0xff]  ;;  %v942_v51 = vld [vmem:[%s4986_s6 + $0x2e48] sm:$0xff]  ;;  %939 = vst [vmem:[%s4994_s7 + $0xb88] sm:$0xff] %v938_v49 }
  0xcb   : > { %941 = vst [vmem:[%s4994_s7 + $0xb90] sm:$0xff] %v940_v50  ;;  %943 = vst [vmem:[%s4994_s7 + $0xb98] sm:$0xff] %v942_v51  ;;  %v944_v52 = vld [vmem:[%s4986_s6 + $0x2e80] sm:$0xff]  ;;  %v946_v53 = vld [vmem:[%s4986_s6 + $0x2e88] sm:$0xff] }
  0xcc   : > { %v948_v54 = vld [vmem:[%s4986_s6 + $0x2ec0] sm:$0xff]  ;;  %945 = vst [vmem:[%s4994_s7 + $0xba0] sm:$0xff] %v944_v52  ;;  %947 = vst [vmem:[%s4994_s7 + $0xba8] sm:$0xff] %v946_v53  ;;  %v950_v55 = vld [vmem:[%s4986_s6 + $0x2ec8] sm:$0xff] }
  0xcd   : > { %949 = vst [vmem:[%s4994_s7 + $0xbb0] sm:$0xff] %v948_v54  ;;  %v952_v56 = vld [vmem:[%s4986_s6 + $0x2f00] sm:$0xff]  ;;  %v954_v57 = vld [vmem:[%s4986_s6 + $0x2f08] sm:$0xff]  ;;  %951 = vst [vmem:[%s4994_s7 + $0xbb8] sm:$0xff] %v950_v55 }
  0xce   : > { %953 = vst [vmem:[%s4994_s7 + $0xbc0] sm:$0xff] %v952_v56  ;;  %955 = vst [vmem:[%s4994_s7 + $0xbc8] sm:$0xff] %v954_v57  ;;  %v956_v58 = vld [vmem:[%s4986_s6 + $0x2f40] sm:$0xff]  ;;  %v958_v59 = vld [vmem:[%s4986_s6 + $0x2f48] sm:$0xff] }
  0xcf   : > { %v960_v60 = vld [vmem:[%s4986_s6 + $0x2f80] sm:$0xff]  ;;  %957 = vst [vmem:[%s4994_s7 + $0xbd0] sm:$0xff] %v956_v58  ;;  %959 = vst [vmem:[%s4994_s7 + $0xbd8] sm:$0xff] %v958_v59  ;;  %v962_v61 = vld [vmem:[%s4986_s6 + $0x2f88] sm:$0xff] }
  0xd0   : > { %961 = vst [vmem:[%s4994_s7 + $0xbe0] sm:$0xff] %v960_v60  ;;  %v964_v62 = vld [vmem:[%s4986_s6 + $0x2fc0] sm:$0xff]  ;;  %v966_v63 = vld [vmem:[%s4986_s6 + $0x2fc8] sm:$0xff]  ;;  %963 = vst [vmem:[%s4994_s7 + $0xbe8] sm:$0xff] %v962_v61 }
  0xd1   : > { %965 = vst [vmem:[%s4994_s7 + $0xbf0] sm:$0xff] %v964_v62  ;;  %967 = vst [vmem:[%s4994_s7 + $0xbf8] sm:$0xff] %v966_v63  ;;  %v968_v0 = vld [vmem:[%s4986_s6 + $0x3000] sm:$0xff]  ;;  %v970_v1 = vld [vmem:[%s4986_s6 + $0x3008] sm:$0xff] }
  0xd2   : > { %v972_v2 = vld [vmem:[%s4986_s6 + $0x3040] sm:$0xff]  ;;  %969 = vst [vmem:[%s4994_s7 + $0xc00] sm:$0xff] %v968_v0  ;;  %971 = vst [vmem:[%s4994_s7 + $0xc08] sm:$0xff] %v970_v1  ;;  %v974_v3 = vld [vmem:[%s4986_s6 + $0x3048] sm:$0xff] }
  0xd3   : > { %973 = vst [vmem:[%s4994_s7 + $0xc10] sm:$0xff] %v972_v2  ;;  %v976_v4 = vld [vmem:[%s4986_s6 + $0x3080] sm:$0xff]  ;;  %v978_v5 = vld [vmem:[%s4986_s6 + $0x3088] sm:$0xff]  ;;  %975 = vst [vmem:[%s4994_s7 + $0xc18] sm:$0xff] %v974_v3 }
  0xd4   : > { %977 = vst [vmem:[%s4994_s7 + $0xc20] sm:$0xff] %v976_v4  ;;  %979 = vst [vmem:[%s4994_s7 + $0xc28] sm:$0xff] %v978_v5  ;;  %v980_v6 = vld [vmem:[%s4986_s6 + $0x30c0] sm:$0xff]  ;;  %v982_v7 = vld [vmem:[%s4986_s6 + $0x30c8] sm:$0xff] }
  0xd5   : > { %v984_v8 = vld [vmem:[%s4986_s6 + $0x3100] sm:$0xff]  ;;  %981 = vst [vmem:[%s4994_s7 + $0xc30] sm:$0xff] %v980_v6  ;;  %983 = vst [vmem:[%s4994_s7 + $0xc38] sm:$0xff] %v982_v7  ;;  %v986_v9 = vld [vmem:[%s4986_s6 + $0x3108] sm:$0xff] }
  0xd6   : > { %985 = vst [vmem:[%s4994_s7 + $0xc40] sm:$0xff] %v984_v8  ;;  %v988_v10 = vld [vmem:[%s4986_s6 + $0x3140] sm:$0xff]  ;;  %v990_v11 = vld [vmem:[%s4986_s6 + $0x3148] sm:$0xff]  ;;  %987 = vst [vmem:[%s4994_s7 + $0xc48] sm:$0xff] %v986_v9 }
  0xd7   : > { %989 = vst [vmem:[%s4994_s7 + $0xc50] sm:$0xff] %v988_v10  ;;  %991 = vst [vmem:[%s4994_s7 + $0xc58] sm:$0xff] %v990_v11  ;;  %v992_v12 = vld [vmem:[%s4986_s6 + $0x3180] sm:$0xff]  ;;  %v994_v13 = vld [vmem:[%s4986_s6 + $0x3188] sm:$0xff] }
  0xd8   : > { %v996_v14 = vld [vmem:[%s4986_s6 + $0x31c0] sm:$0xff]  ;;  %993 = vst [vmem:[%s4994_s7 + $0xc60] sm:$0xff] %v992_v12  ;;  %995 = vst [vmem:[%s4994_s7 + $0xc68] sm:$0xff] %v994_v13  ;;  %v998_v15 = vld [vmem:[%s4986_s6 + $0x31c8] sm:$0xff] }
  0xd9   : > { %997 = vst [vmem:[%s4994_s7 + $0xc70] sm:$0xff] %v996_v14  ;;  %v1000_v16 = vld [vmem:[%s4986_s6 + $0x3200] sm:$0xff]  ;;  %v1002_v17 = vld [vmem:[%s4986_s6 + $0x3208] sm:$0xff]  ;;  %999 = vst [vmem:[%s4994_s7 + $0xc78] sm:$0xff] %v998_v15 }
  0xda   : > { %1001 = vst [vmem:[%s4994_s7 + $0xc80] sm:$0xff] %v1000_v16  ;;  %1003 = vst [vmem:[%s4994_s7 + $0xc88] sm:$0xff] %v1002_v17  ;;  %v1004_v18 = vld [vmem:[%s4986_s6 + $0x3240] sm:$0xff]  ;;  %v1006_v19 = vld [vmem:[%s4986_s6 + $0x3248] sm:$0xff] }
  0xdb   : > { %v1008_v20 = vld [vmem:[%s4986_s6 + $0x3280] sm:$0xff]  ;;  %1005 = vst [vmem:[%s4994_s7 + $0xc90] sm:$0xff] %v1004_v18  ;;  %1007 = vst [vmem:[%s4994_s7 + $0xc98] sm:$0xff] %v1006_v19  ;;  %v1010_v21 = vld [vmem:[%s4986_s6 + $0x3288] sm:$0xff] }
  0xdc   : > { %1009 = vst [vmem:[%s4994_s7 + $0xca0] sm:$0xff] %v1008_v20  ;;  %v1012_v22 = vld [vmem:[%s4986_s6 + $0x32c0] sm:$0xff]  ;;  %v1014_v23 = vld [vmem:[%s4986_s6 + $0x32c8] sm:$0xff]  ;;  %1011 = vst [vmem:[%s4994_s7 + $0xca8] sm:$0xff] %v1010_v21 }
  0xdd   : > { %1013 = vst [vmem:[%s4994_s7 + $0xcb0] sm:$0xff] %v1012_v22  ;;  %1015 = vst [vmem:[%s4994_s7 + $0xcb8] sm:$0xff] %v1014_v23  ;;  %v1016_v24 = vld [vmem:[%s4986_s6 + $0x3300] sm:$0xff]  ;;  %v1018_v25 = vld [vmem:[%s4986_s6 + $0x3308] sm:$0xff] }
  0xde   : > { %v1020_v26 = vld [vmem:[%s4986_s6 + $0x3340] sm:$0xff]  ;;  %1017 = vst [vmem:[%s4994_s7 + $0xcc0] sm:$0xff] %v1016_v24  ;;  %1019 = vst [vmem:[%s4994_s7 + $0xcc8] sm:$0xff] %v1018_v25  ;;  %v1022_v27 = vld [vmem:[%s4986_s6 + $0x3348] sm:$0xff] }
  0xdf   : > { %1021 = vst [vmem:[%s4994_s7 + $0xcd0] sm:$0xff] %v1020_v26  ;;  %v1024_v28 = vld [vmem:[%s4986_s6 + $0x3380] sm:$0xff]  ;;  %v1026_v29 = vld [vmem:[%s4986_s6 + $0x3388] sm:$0xff]  ;;  %1023 = vst [vmem:[%s4994_s7 + $0xcd8] sm:$0xff] %v1022_v27 }
  0xe0   : > { %1025 = vst [vmem:[%s4994_s7 + $0xce0] sm:$0xff] %v1024_v28  ;;  %1027 = vst [vmem:[%s4994_s7 + $0xce8] sm:$0xff] %v1026_v29  ;;  %v1028_v30 = vld [vmem:[%s4986_s6 + $0x33c0] sm:$0xff]  ;;  %v1030_v31 = vld [vmem:[%s4986_s6 + $0x33c8] sm:$0xff] }
  0xe1   : > { %v1032_v32 = vld [vmem:[%s4986_s6 + $0x3400] sm:$0xff]  ;;  %1029 = vst [vmem:[%s4994_s7 + $0xcf0] sm:$0xff] %v1028_v30  ;;  %1031 = vst [vmem:[%s4994_s7 + $0xcf8] sm:$0xff] %v1030_v31  ;;  %v1034_v33 = vld [vmem:[%s4986_s6 + $0x3408] sm:$0xff] }
  0xe2   : > { %1033 = vst [vmem:[%s4994_s7 + $0xd00] sm:$0xff] %v1032_v32  ;;  %v1036_v34 = vld [vmem:[%s4986_s6 + $0x3440] sm:$0xff]  ;;  %v1038_v35 = vld [vmem:[%s4986_s6 + $0x3448] sm:$0xff]  ;;  %1035 = vst [vmem:[%s4994_s7 + $0xd08] sm:$0xff] %v1034_v33 }
  0xe3   : > { %1037 = vst [vmem:[%s4994_s7 + $0xd10] sm:$0xff] %v1036_v34  ;;  %1039 = vst [vmem:[%s4994_s7 + $0xd18] sm:$0xff] %v1038_v35  ;;  %v1040_v36 = vld [vmem:[%s4986_s6 + $0x3480] sm:$0xff]  ;;  %v1042_v37 = vld [vmem:[%s4986_s6 + $0x3488] sm:$0xff] }
  0xe4   : > { %v1044_v38 = vld [vmem:[%s4986_s6 + $0x34c0] sm:$0xff]  ;;  %1041 = vst [vmem:[%s4994_s7 + $0xd20] sm:$0xff] %v1040_v36  ;;  %1043 = vst [vmem:[%s4994_s7 + $0xd28] sm:$0xff] %v1042_v37  ;;  %v1046_v39 = vld [vmem:[%s4986_s6 + $0x34c8] sm:$0xff] }
  0xe5   : > { %1045 = vst [vmem:[%s4994_s7 + $0xd30] sm:$0xff] %v1044_v38  ;;  %v1048_v40 = vld [vmem:[%s4986_s6 + $0x3500] sm:$0xff]  ;;  %v1050_v41 = vld [vmem:[%s4986_s6 + $0x3508] sm:$0xff]  ;;  %1047 = vst [vmem:[%s4994_s7 + $0xd38] sm:$0xff] %v1046_v39 }
  0xe6   : > { %1049 = vst [vmem:[%s4994_s7 + $0xd40] sm:$0xff] %v1048_v40  ;;  %1051 = vst [vmem:[%s4994_s7 + $0xd48] sm:$0xff] %v1050_v41  ;;  %v1052_v42 = vld [vmem:[%s4986_s6 + $0x3540] sm:$0xff]  ;;  %v1054_v43 = vld [vmem:[%s4986_s6 + $0x3548] sm:$0xff] }
  0xe7   : > { %v1056_v44 = vld [vmem:[%s4986_s6 + $0x3580] sm:$0xff]  ;;  %1053 = vst [vmem:[%s4994_s7 + $0xd50] sm:$0xff] %v1052_v42  ;;  %1055 = vst [vmem:[%s4994_s7 + $0xd58] sm:$0xff] %v1054_v43  ;;  %v1058_v45 = vld [vmem:[%s4986_s6 + $0x3588] sm:$0xff] }
  0xe8   : > { %1057 = vst [vmem:[%s4994_s7 + $0xd60] sm:$0xff] %v1056_v44  ;;  %v1060_v46 = vld [vmem:[%s4986_s6 + $0x35c0] sm:$0xff]  ;;  %v1062_v47 = vld [vmem:[%s4986_s6 + $0x35c8] sm:$0xff]  ;;  %1059 = vst [vmem:[%s4994_s7 + $0xd68] sm:$0xff] %v1058_v45 }
  0xe9   : > { %1061 = vst [vmem:[%s4994_s7 + $0xd70] sm:$0xff] %v1060_v46  ;;  %1063 = vst [vmem:[%s4994_s7 + $0xd78] sm:$0xff] %v1062_v47  ;;  %v1064_v48 = vld [vmem:[%s4986_s6 + $0x3600] sm:$0xff]  ;;  %v1066_v49 = vld [vmem:[%s4986_s6 + $0x3608] sm:$0xff] }
  0xea   : > { %v1068_v50 = vld [vmem:[%s4986_s6 + $0x3640] sm:$0xff]  ;;  %1065 = vst [vmem:[%s4994_s7 + $0xd80] sm:$0xff] %v1064_v48  ;;  %1067 = vst [vmem:[%s4994_s7 + $0xd88] sm:$0xff] %v1066_v49  ;;  %v1070_v51 = vld [vmem:[%s4986_s6 + $0x3648] sm:$0xff] }
  0xeb   : > { %1069 = vst [vmem:[%s4994_s7 + $0xd90] sm:$0xff] %v1068_v50  ;;  %v1072_v52 = vld [vmem:[%s4986_s6 + $0x3680] sm:$0xff]  ;;  %v1074_v53 = vld [vmem:[%s4986_s6 + $0x3688] sm:$0xff]  ;;  %1071 = vst [vmem:[%s4994_s7 + $0xd98] sm:$0xff] %v1070_v51 }
  0xec   : > { %1073 = vst [vmem:[%s4994_s7 + $0xda0] sm:$0xff] %v1072_v52  ;;  %1075 = vst [vmem:[%s4994_s7 + $0xda8] sm:$0xff] %v1074_v53  ;;  %v1076_v54 = vld [vmem:[%s4986_s6 + $0x36c0] sm:$0xff]  ;;  %v1078_v55 = vld [vmem:[%s4986_s6 + $0x36c8] sm:$0xff] }
  0xed   : > { %v1080_v56 = vld [vmem:[%s4986_s6 + $0x3700] sm:$0xff]  ;;  %1077 = vst [vmem:[%s4994_s7 + $0xdb0] sm:$0xff] %v1076_v54  ;;  %1079 = vst [vmem:[%s4994_s7 + $0xdb8] sm:$0xff] %v1078_v55  ;;  %v1082_v57 = vld [vmem:[%s4986_s6 + $0x3708] sm:$0xff] }
  0xee   : > { %1081 = vst [vmem:[%s4994_s7 + $0xdc0] sm:$0xff] %v1080_v56  ;;  %v1084_v58 = vld [vmem:[%s4986_s6 + $0x3740] sm:$0xff]  ;;  %v1086_v59 = vld [vmem:[%s4986_s6 + $0x3748] sm:$0xff]  ;;  %1083 = vst [vmem:[%s4994_s7 + $0xdc8] sm:$0xff] %v1082_v57 }
  0xef   : > { %1085 = vst [vmem:[%s4994_s7 + $0xdd0] sm:$0xff] %v1084_v58  ;;  %1087 = vst [vmem:[%s4994_s7 + $0xdd8] sm:$0xff] %v1086_v59  ;;  %v1088_v60 = vld [vmem:[%s4986_s6 + $0x3780] sm:$0xff]  ;;  %v1090_v61 = vld [vmem:[%s4986_s6 + $0x3788] sm:$0xff] }
  0xf0   : > { %v1092_v62 = vld [vmem:[%s4986_s6 + $0x37c0] sm:$0xff]  ;;  %1089 = vst [vmem:[%s4994_s7 + $0xde0] sm:$0xff] %v1088_v60  ;;  %1091 = vst [vmem:[%s4994_s7 + $0xde8] sm:$0xff] %v1090_v61  ;;  %v1094_v63 = vld [vmem:[%s4986_s6 + $0x37c8] sm:$0xff] }
  0xf1   : > { %1093 = vst [vmem:[%s4994_s7 + $0xdf0] sm:$0xff] %v1092_v62  ;;  %v1096_v0 = vld [vmem:[%s4986_s6 + $0x3800] sm:$0xff]  ;;  %v1098_v1 = vld [vmem:[%s4986_s6 + $0x3808] sm:$0xff]  ;;  %1095 = vst [vmem:[%s4994_s7 + $0xdf8] sm:$0xff] %v1094_v63 }
  0xf2   : > { %1097 = vst [vmem:[%s4994_s7 + $0xe00] sm:$0xff] %v1096_v0  ;;  %1099 = vst [vmem:[%s4994_s7 + $0xe08] sm:$0xff] %v1098_v1  ;;  %v1100_v2 = vld [vmem:[%s4986_s6 + $0x3840] sm:$0xff]  ;;  %v1102_v3 = vld [vmem:[%s4986_s6 + $0x3848] sm:$0xff] }
  0xf3   : > { %v1104_v4 = vld [vmem:[%s4986_s6 + $0x3880] sm:$0xff]  ;;  %1101 = vst [vmem:[%s4994_s7 + $0xe10] sm:$0xff] %v1100_v2  ;;  %1103 = vst [vmem:[%s4994_s7 + $0xe18] sm:$0xff] %v1102_v3  ;;  %v1106_v5 = vld [vmem:[%s4986_s6 + $0x3888] sm:$0xff] }
  0xf4   : > { %1105 = vst [vmem:[%s4994_s7 + $0xe20] sm:$0xff] %v1104_v4  ;;  %v1108_v6 = vld [vmem:[%s4986_s6 + $0x38c0] sm:$0xff]  ;;  %v1110_v7 = vld [vmem:[%s4986_s6 + $0x38c8] sm:$0xff]  ;;  %1107 = vst [vmem:[%s4994_s7 + $0xe28] sm:$0xff] %v1106_v5 }
  0xf5   : > { %1109 = vst [vmem:[%s4994_s7 + $0xe30] sm:$0xff] %v1108_v6  ;;  %1111 = vst [vmem:[%s4994_s7 + $0xe38] sm:$0xff] %v1110_v7  ;;  %v1112_v8 = vld [vmem:[%s4986_s6 + $0x3900] sm:$0xff]  ;;  %v1114_v9 = vld [vmem:[%s4986_s6 + $0x3908] sm:$0xff] }
  0xf6   : > { %v1116_v10 = vld [vmem:[%s4986_s6 + $0x3940] sm:$0xff]  ;;  %1113 = vst [vmem:[%s4994_s7 + $0xe40] sm:$0xff] %v1112_v8  ;;  %1115 = vst [vmem:[%s4994_s7 + $0xe48] sm:$0xff] %v1114_v9  ;;  %v1118_v11 = vld [vmem:[%s4986_s6 + $0x3948] sm:$0xff] }
  0xf7   : > { %1117 = vst [vmem:[%s4994_s7 + $0xe50] sm:$0xff] %v1116_v10  ;;  %v1120_v12 = vld [vmem:[%s4986_s6 + $0x3980] sm:$0xff]  ;;  %v1122_v13 = vld [vmem:[%s4986_s6 + $0x3988] sm:$0xff]  ;;  %1119 = vst [vmem:[%s4994_s7 + $0xe58] sm:$0xff] %v1118_v11 }
  0xf8   : > { %1121 = vst [vmem:[%s4994_s7 + $0xe60] sm:$0xff] %v1120_v12  ;;  %1123 = vst [vmem:[%s4994_s7 + $0xe68] sm:$0xff] %v1122_v13  ;;  %v1124_v14 = vld [vmem:[%s4986_s6 + $0x39c0] sm:$0xff]  ;;  %v1126_v15 = vld [vmem:[%s4986_s6 + $0x39c8] sm:$0xff] }
  0xf9   : > { %v1128_v16 = vld [vmem:[%s4986_s6 + $0x3a00] sm:$0xff]  ;;  %1125 = vst [vmem:[%s4994_s7 + $0xe70] sm:$0xff] %v1124_v14  ;;  %1127 = vst [vmem:[%s4994_s7 + $0xe78] sm:$0xff] %v1126_v15  ;;  %v1130_v17 = vld [vmem:[%s4986_s6 + $0x3a08] sm:$0xff] }
  0xfa   : > { %1129 = vst [vmem:[%s4994_s7 + $0xe80] sm:$0xff] %v1128_v16  ;;  %v1132_v18 = vld [vmem:[%s4986_s6 + $0x3a40] sm:$0xff]  ;;  %v1134_v19 = vld [vmem:[%s4986_s6 + $0x3a48] sm:$0xff]  ;;  %1131 = vst [vmem:[%s4994_s7 + $0xe88] sm:$0xff] %v1130_v17 }
  0xfb   : > { %1133 = vst [vmem:[%s4994_s7 + $0xe90] sm:$0xff] %v1132_v18  ;;  %1135 = vst [vmem:[%s4994_s7 + $0xe98] sm:$0xff] %v1134_v19  ;;  %v1136_v20 = vld [vmem:[%s4986_s6 + $0x3a80] sm:$0xff]  ;;  %v1138_v21 = vld [vmem:[%s4986_s6 + $0x3a88] sm:$0xff] }
  0xfc   : > { %v1140_v22 = vld [vmem:[%s4986_s6 + $0x3ac0] sm:$0xff]  ;;  %1137 = vst [vmem:[%s4994_s7 + $0xea0] sm:$0xff] %v1136_v20  ;;  %1139 = vst [vmem:[%s4994_s7 + $0xea8] sm:$0xff] %v1138_v21  ;;  %v1142_v23 = vld [vmem:[%s4986_s6 + $0x3ac8] sm:$0xff] }
  0xfd   : > { %1141 = vst [vmem:[%s4994_s7 + $0xeb0] sm:$0xff] %v1140_v22  ;;  %v1144_v24 = vld [vmem:[%s4986_s6 + $0x3b00] sm:$0xff]  ;;  %v1146_v25 = vld [vmem:[%s4986_s6 + $0x3b08] sm:$0xff]  ;;  %1143 = vst [vmem:[%s4994_s7 + $0xeb8] sm:$0xff] %v1142_v23 }
  0xfe   : > { %1145 = vst [vmem:[%s4994_s7 + $0xec0] sm:$0xff] %v1144_v24  ;;  %1147 = vst [vmem:[%s4994_s7 + $0xec8] sm:$0xff] %v1146_v25  ;;  %v1148_v26 = vld [vmem:[%s4986_s6 + $0x3b40] sm:$0xff]  ;;  %v1150_v27 = vld [vmem:[%s4986_s6 + $0x3b48] sm:$0xff] }
  0xff   : > { %v1152_v28 = vld [vmem:[%s4986_s6 + $0x3b80] sm:$0xff]  ;;  %1149 = vst [vmem:[%s4994_s7 + $0xed0] sm:$0xff] %v1148_v26  ;;  %1151 = vst [vmem:[%s4994_s7 + $0xed8] sm:$0xff] %v1150_v27  ;;  %v1154_v29 = vld [vmem:[%s4986_s6 + $0x3b88] sm:$0xff] }
 0x100   : > { %1153 = vst [vmem:[%s4994_s7 + $0xee0] sm:$0xff] %v1152_v28  ;;  %v1156_v30 = vld [vmem:[%s4986_s6 + $0x3bc0] sm:$0xff]  ;;  %v1158_v31 = vld [vmem:[%s4986_s6 + $0x3bc8] sm:$0xff]  ;;  %1155 = vst [vmem:[%s4994_s7 + $0xee8] sm:$0xff] %v1154_v29 }
 0x101   : > { %1157 = vst [vmem:[%s4994_s7 + $0xef0] sm:$0xff] %v1156_v30  ;;  %1159 = vst [vmem:[%s4994_s7 + $0xef8] sm:$0xff] %v1158_v31  ;;  %v1160_v32 = vld [vmem:[%s4986_s6 + $0x3c00] sm:$0xff]  ;;  %v1162_v33 = vld [vmem:[%s4986_s6 + $0x3c08] sm:$0xff] }
 0x102   : > { %v1164_v34 = vld [vmem:[%s4986_s6 + $0x3c40] sm:$0xff]  ;;  %1161 = vst [vmem:[%s4994_s7 + $0xf00] sm:$0xff] %v1160_v32  ;;  %1163 = vst [vmem:[%s4994_s7 + $0xf08] sm:$0xff] %v1162_v33  ;;  %v1166_v35 = vld [vmem:[%s4986_s6 + $0x3c48] sm:$0xff] }
 0x103   : > { %1165 = vst [vmem:[%s4994_s7 + $0xf10] sm:$0xff] %v1164_v34  ;;  %v1168_v36 = vld [vmem:[%s4986_s6 + $0x3c80] sm:$0xff]  ;;  %v1170_v37 = vld [vmem:[%s4986_s6 + $0x3c88] sm:$0xff]  ;;  %1167 = vst [vmem:[%s4994_s7 + $0xf18] sm:$0xff] %v1166_v35 }
 0x104   : > { %1169 = vst [vmem:[%s4994_s7 + $0xf20] sm:$0xff] %v1168_v36  ;;  %1171 = vst [vmem:[%s4994_s7 + $0xf28] sm:$0xff] %v1170_v37  ;;  %v1172_v38 = vld [vmem:[%s4986_s6 + $0x3cc0] sm:$0xff]  ;;  %v1174_v39 = vld [vmem:[%s4986_s6 + $0x3cc8] sm:$0xff] }
 0x105   : > { %v1176_v40 = vld [vmem:[%s4986_s6 + $0x3d00] sm:$0xff]  ;;  %1173 = vst [vmem:[%s4994_s7 + $0xf30] sm:$0xff] %v1172_v38  ;;  %1175 = vst [vmem:[%s4994_s7 + $0xf38] sm:$0xff] %v1174_v39  ;;  %v1178_v41 = vld [vmem:[%s4986_s6 + $0x3d08] sm:$0xff] }
 0x106   : > { %1177 = vst [vmem:[%s4994_s7 + $0xf40] sm:$0xff] %v1176_v40  ;;  %v1180_v42 = vld [vmem:[%s4986_s6 + $0x3d40] sm:$0xff]  ;;  %v1182_v43 = vld [vmem:[%s4986_s6 + $0x3d48] sm:$0xff]  ;;  %1179 = vst [vmem:[%s4994_s7 + $0xf48] sm:$0xff] %v1178_v41 }
 0x107   : > { %1181 = vst [vmem:[%s4994_s7 + $0xf50] sm:$0xff] %v1180_v42  ;;  %1183 = vst [vmem:[%s4994_s7 + $0xf58] sm:$0xff] %v1182_v43  ;;  %v1184_v44 = vld [vmem:[%s4986_s6 + $0x3d80] sm:$0xff]  ;;  %v1186_v45 = vld [vmem:[%s4986_s6 + $0x3d88] sm:$0xff] }
 0x108   : > { %v1188_v46 = vld [vmem:[%s4986_s6 + $0x3dc0] sm:$0xff]  ;;  %1185 = vst [vmem:[%s4994_s7 + $0xf60] sm:$0xff] %v1184_v44  ;;  %1187 = vst [vmem:[%s4994_s7 + $0xf68] sm:$0xff] %v1186_v45  ;;  %v1190_v47 = vld [vmem:[%s4986_s6 + $0x3dc8] sm:$0xff] }
 0x109   : > { %1189 = vst [vmem:[%s4994_s7 + $0xf70] sm:$0xff] %v1188_v46  ;;  %v1192_v48 = vld [vmem:[%s4986_s6 + $0x3e00] sm:$0xff]  ;;  %v1194_v49 = vld [vmem:[%s4986_s6 + $0x3e08] sm:$0xff]  ;;  %1191 = vst [vmem:[%s4994_s7 + $0xf78] sm:$0xff] %v1190_v47 }
 0x10a   : > { %1193 = vst [vmem:[%s4994_s7 + $0xf80] sm:$0xff] %v1192_v48  ;;  %1195 = vst [vmem:[%s4994_s7 + $0xf88] sm:$0xff] %v1194_v49  ;;  %v1196_v50 = vld [vmem:[%s4986_s6 + $0x3e40] sm:$0xff]  ;;  %v1198_v51 = vld [vmem:[%s4986_s6 + $0x3e48] sm:$0xff] }
 0x10b   : > { %v1200_v52 = vld [vmem:[%s4986_s6 + $0x3e80] sm:$0xff]  ;;  %1197 = vst [vmem:[%s4994_s7 + $0xf90] sm:$0xff] %v1196_v50  ;;  %1199 = vst [vmem:[%s4994_s7 + $0xf98] sm:$0xff] %v1198_v51  ;;  %v1202_v53 = vld [vmem:[%s4986_s6 + $0x3e88] sm:$0xff] }
 0x10c   : > { %1201 = vst [vmem:[%s4994_s7 + $0xfa0] sm:$0xff] %v1200_v52  ;;  %v1204_v54 = vld [vmem:[%s4986_s6 + $0x3ec0] sm:$0xff]  ;;  %v1206_v55 = vld [vmem:[%s4986_s6 + $0x3ec8] sm:$0xff]  ;;  %1203 = vst [vmem:[%s4994_s7 + $0xfa8] sm:$0xff] %v1202_v53 }
 0x10d   : > { %1205 = vst [vmem:[%s4994_s7 + $0xfb0] sm:$0xff] %v1204_v54  ;;  %1207 = vst [vmem:[%s4994_s7 + $0xfb8] sm:$0xff] %v1206_v55  ;;  %v1208_v56 = vld [vmem:[%s4986_s6 + $0x3f00] sm:$0xff]  ;;  %v1210_v57 = vld [vmem:[%s4986_s6 + $0x3f08] sm:$0xff] }
 0x10e   : > { %v1212_v58 = vld [vmem:[%s4986_s6 + $0x3f40] sm:$0xff]  ;;  %1209 = vst [vmem:[%s4994_s7 + $0xfc0] sm:$0xff] %v1208_v56  ;;  %1211 = vst [vmem:[%s4994_s7 + $0xfc8] sm:$0xff] %v1210_v57  ;;  %v1214_v59 = vld [vmem:[%s4986_s6 + $0x3f48] sm:$0xff] }
 0x10f   : > { %1213 = vst [vmem:[%s4994_s7 + $0xfd0] sm:$0xff] %v1212_v58  ;;  %v1216_v60 = vld [vmem:[%s4986_s6 + $0x3f80] sm:$0xff]  ;;  %v1218_v61 = vld [vmem:[%s4986_s6 + $0x3f88] sm:$0xff]  ;;  %1215 = vst [vmem:[%s4994_s7 + $0xfd8] sm:$0xff] %v1214_v59 }
 0x110   : > { %1217 = vst [vmem:[%s4994_s7 + $0xfe0] sm:$0xff] %v1216_v60  ;;  %1219 = vst [vmem:[%s4994_s7 + $0xfe8] sm:$0xff] %v1218_v61  ;;  %v1220_v62 = vld [vmem:[%s4986_s6 + $0x3fc0] sm:$0xff]  ;;  %v1222_v63 = vld [vmem:[%s4986_s6 + $0x3fc8] sm:$0xff] }
 0x111   : > { %v1224_v0 = vld [vmem:[%s4986_s6 + $0x4000] sm:$0xff]  ;;  %1221 = vst [vmem:[%s4994_s7 + $0xff0] sm:$0xff] %v1220_v62  ;;  %1223 = vst [vmem:[%s4994_s7 + $0xff8] sm:$0xff] %v1222_v63  ;;  %v1226_v1 = vld [vmem:[%s4986_s6 + $0x4008] sm:$0xff] }
 0x112   : > { %1225 = vst [vmem:[%s4994_s7 + $0x1000] sm:$0xff] %v1224_v0  ;;  %v1228_v2 = vld [vmem:[%s4986_s6 + $0x4040] sm:$0xff]  ;;  %v1230_v3 = vld [vmem:[%s4986_s6 + $0x4048] sm:$0xff]  ;;  %1227 = vst [vmem:[%s4994_s7 + $0x1008] sm:$0xff] %v1226_v1 }
 0x113   : > { %1229 = vst [vmem:[%s4994_s7 + $0x1010] sm:$0xff] %v1228_v2  ;;  %1231 = vst [vmem:[%s4994_s7 + $0x1018] sm:$0xff] %v1230_v3  ;;  %v1232_v4 = vld [vmem:[%s4986_s6 + $0x4080] sm:$0xff]  ;;  %v1234_v5 = vld [vmem:[%s4986_s6 + $0x4088] sm:$0xff] }
 0x114   : > { %v1236_v6 = vld [vmem:[%s4986_s6 + $0x40c0] sm:$0xff]  ;;  %1233 = vst [vmem:[%s4994_s7 + $0x1020] sm:$0xff] %v1232_v4  ;;  %1235 = vst [vmem:[%s4994_s7 + $0x1028] sm:$0xff] %v1234_v5  ;;  %v1238_v7 = vld [vmem:[%s4986_s6 + $0x40c8] sm:$0xff] }
 0x115   : > { %1237 = vst [vmem:[%s4994_s7 + $0x1030] sm:$0xff] %v1236_v6  ;;  %v1240_v8 = vld [vmem:[%s4986_s6 + $0x4100] sm:$0xff]  ;;  %v1242_v9 = vld [vmem:[%s4986_s6 + $0x4108] sm:$0xff]  ;;  %1239 = vst [vmem:[%s4994_s7 + $0x1038] sm:$0xff] %v1238_v7 }
 0x116   : > { %1241 = vst [vmem:[%s4994_s7 + $0x1040] sm:$0xff] %v1240_v8  ;;  %1243 = vst [vmem:[%s4994_s7 + $0x1048] sm:$0xff] %v1242_v9  ;;  %v1244_v10 = vld [vmem:[%s4986_s6 + $0x4140] sm:$0xff]  ;;  %v1246_v11 = vld [vmem:[%s4986_s6 + $0x4148] sm:$0xff] }
 0x117   : > { %v1248_v12 = vld [vmem:[%s4986_s6 + $0x4180] sm:$0xff]  ;;  %1245 = vst [vmem:[%s4994_s7 + $0x1050] sm:$0xff] %v1244_v10  ;;  %1247 = vst [vmem:[%s4994_s7 + $0x1058] sm:$0xff] %v1246_v11  ;;  %v1250_v13 = vld [vmem:[%s4986_s6 + $0x4188] sm:$0xff] }
 0x118   : > { %1249 = vst [vmem:[%s4994_s7 + $0x1060] sm:$0xff] %v1248_v12  ;;  %v1252_v14 = vld [vmem:[%s4986_s6 + $0x41c0] sm:$0xff]  ;;  %v1254_v15 = vld [vmem:[%s4986_s6 + $0x41c8] sm:$0xff]  ;;  %1251 = vst [vmem:[%s4994_s7 + $0x1068] sm:$0xff] %v1250_v13 }
 0x119   : > { %1253 = vst [vmem:[%s4994_s7 + $0x1070] sm:$0xff] %v1252_v14  ;;  %1255 = vst [vmem:[%s4994_s7 + $0x1078] sm:$0xff] %v1254_v15  ;;  %v1256_v16 = vld [vmem:[%s4986_s6 + $0x4200] sm:$0xff]  ;;  %v1258_v17 = vld [vmem:[%s4986_s6 + $0x4208] sm:$0xff] }
 0x11a   : > { %v1260_v18 = vld [vmem:[%s4986_s6 + $0x4240] sm:$0xff]  ;;  %1257 = vst [vmem:[%s4994_s7 + $0x1080] sm:$0xff] %v1256_v16  ;;  %1259 = vst [vmem:[%s4994_s7 + $0x1088] sm:$0xff] %v1258_v17  ;;  %v1262_v19 = vld [vmem:[%s4986_s6 + $0x4248] sm:$0xff] }
 0x11b   : > { %1261 = vst [vmem:[%s4994_s7 + $0x1090] sm:$0xff] %v1260_v18  ;;  %v1264_v20 = vld [vmem:[%s4986_s6 + $0x4280] sm:$0xff]  ;;  %v1266_v21 = vld [vmem:[%s4986_s6 + $0x4288] sm:$0xff]  ;;  %1263 = vst [vmem:[%s4994_s7 + $0x1098] sm:$0xff] %v1262_v19 }
 0x11c   : > { %1265 = vst [vmem:[%s4994_s7 + $0x10a0] sm:$0xff] %v1264_v20  ;;  %1267 = vst [vmem:[%s4994_s7 + $0x10a8] sm:$0xff] %v1266_v21  ;;  %v1268_v22 = vld [vmem:[%s4986_s6 + $0x42c0] sm:$0xff]  ;;  %v1270_v23 = vld [vmem:[%s4986_s6 + $0x42c8] sm:$0xff] }
 0x11d   : > { %v1272_v24 = vld [vmem:[%s4986_s6 + $0x4300] sm:$0xff]  ;;  %1269 = vst [vmem:[%s4994_s7 + $0x10b0] sm:$0xff] %v1268_v22  ;;  %1271 = vst [vmem:[%s4994_s7 + $0x10b8] sm:$0xff] %v1270_v23  ;;  %v1274_v25 = vld [vmem:[%s4986_s6 + $0x4308] sm:$0xff] }
 0x11e   : > { %1273 = vst [vmem:[%s4994_s7 + $0x10c0] sm:$0xff] %v1272_v24  ;;  %v1276_v26 = vld [vmem:[%s4986_s6 + $0x4340] sm:$0xff]  ;;  %v1278_v27 = vld [vmem:[%s4986_s6 + $0x4348] sm:$0xff]  ;;  %1275 = vst [vmem:[%s4994_s7 + $0x10c8] sm:$0xff] %v1274_v25 }
 0x11f   : > { %1277 = vst [vmem:[%s4994_s7 + $0x10d0] sm:$0xff] %v1276_v26  ;;  %1279 = vst [vmem:[%s4994_s7 + $0x10d8] sm:$0xff] %v1278_v27  ;;  %v1280_v28 = vld [vmem:[%s4986_s6 + $0x4380] sm:$0xff]  ;;  %v1282_v29 = vld [vmem:[%s4986_s6 + $0x4388] sm:$0xff] }
 0x120   : > { %v1284_v30 = vld [vmem:[%s4986_s6 + $0x43c0] sm:$0xff]  ;;  %1281 = vst [vmem:[%s4994_s7 + $0x10e0] sm:$0xff] %v1280_v28  ;;  %1283 = vst [vmem:[%s4994_s7 + $0x10e8] sm:$0xff] %v1282_v29  ;;  %v1286_v31 = vld [vmem:[%s4986_s6 + $0x43c8] sm:$0xff] }
 0x121   : > { %1285 = vst [vmem:[%s4994_s7 + $0x10f0] sm:$0xff] %v1284_v30  ;;  %v1288_v32 = vld [vmem:[%s4986_s6 + $0x4400] sm:$0xff]  ;;  %v1290_v33 = vld [vmem:[%s4986_s6 + $0x4408] sm:$0xff]  ;;  %1287 = vst [vmem:[%s4994_s7 + $0x10f8] sm:$0xff] %v1286_v31 }
 0x122   : > { %1289 = vst [vmem:[%s4994_s7 + $0x1100] sm:$0xff] %v1288_v32  ;;  %1291 = vst [vmem:[%s4994_s7 + $0x1108] sm:$0xff] %v1290_v33  ;;  %v1292_v34 = vld [vmem:[%s4986_s6 + $0x4440] sm:$0xff]  ;;  %v1294_v35 = vld [vmem:[%s4986_s6 + $0x4448] sm:$0xff] }
 0x123   : > { %v1296_v36 = vld [vmem:[%s4986_s6 + $0x4480] sm:$0xff]  ;;  %1293 = vst [vmem:[%s4994_s7 + $0x1110] sm:$0xff] %v1292_v34  ;;  %1295 = vst [vmem:[%s4994_s7 + $0x1118] sm:$0xff] %v1294_v35  ;;  %v1298_v37 = vld [vmem:[%s4986_s6 + $0x4488] sm:$0xff] }
 0x124   : > { %1297 = vst [vmem:[%s4994_s7 + $0x1120] sm:$0xff] %v1296_v36  ;;  %v1300_v38 = vld [vmem:[%s4986_s6 + $0x44c0] sm:$0xff]  ;;  %v1302_v39 = vld [vmem:[%s4986_s6 + $0x44c8] sm:$0xff]  ;;  %1299 = vst [vmem:[%s4994_s7 + $0x1128] sm:$0xff] %v1298_v37 }
 0x125   : > { %1301 = vst [vmem:[%s4994_s7 + $0x1130] sm:$0xff] %v1300_v38  ;;  %1303 = vst [vmem:[%s4994_s7 + $0x1138] sm:$0xff] %v1302_v39  ;;  %v1304_v40 = vld [vmem:[%s4986_s6 + $0x4500] sm:$0xff]  ;;  %v1306_v41 = vld [vmem:[%s4986_s6 + $0x4508] sm:$0xff] }
 0x126   : > { %v1308_v42 = vld [vmem:[%s4986_s6 + $0x4540] sm:$0xff]  ;;  %1305 = vst [vmem:[%s4994_s7 + $0x1140] sm:$0xff] %v1304_v40  ;;  %1307 = vst [vmem:[%s4994_s7 + $0x1148] sm:$0xff] %v1306_v41  ;;  %v1310_v43 = vld [vmem:[%s4986_s6 + $0x4548] sm:$0xff] }
 0x127   : > { %1309 = vst [vmem:[%s4994_s7 + $0x1150] sm:$0xff] %v1308_v42  ;;  %v1312_v44 = vld [vmem:[%s4986_s6 + $0x4580] sm:$0xff]  ;;  %v1314_v45 = vld [vmem:[%s4986_s6 + $0x4588] sm:$0xff]  ;;  %1311 = vst [vmem:[%s4994_s7 + $0x1158] sm:$0xff] %v1310_v43 }
 0x128   : > { %1313 = vst [vmem:[%s4994_s7 + $0x1160] sm:$0xff] %v1312_v44  ;;  %1315 = vst [vmem:[%s4994_s7 + $0x1168] sm:$0xff] %v1314_v45  ;;  %v1316_v46 = vld [vmem:[%s4986_s6 + $0x45c0] sm:$0xff]  ;;  %v1318_v47 = vld [vmem:[%s4986_s6 + $0x45c8] sm:$0xff] }
 0x129   : > { %v1320_v48 = vld [vmem:[%s4986_s6 + $0x4600] sm:$0xff]  ;;  %1317 = vst [vmem:[%s4994_s7 + $0x1170] sm:$0xff] %v1316_v46  ;;  %1319 = vst [vmem:[%s4994_s7 + $0x1178] sm:$0xff] %v1318_v47  ;;  %v1322_v49 = vld [vmem:[%s4986_s6 + $0x4608] sm:$0xff] }
 0x12a   : > { %1321 = vst [vmem:[%s4994_s7 + $0x1180] sm:$0xff] %v1320_v48  ;;  %v1324_v50 = vld [vmem:[%s4986_s6 + $0x4640] sm:$0xff]  ;;  %v1326_v51 = vld [vmem:[%s4986_s6 + $0x4648] sm:$0xff]  ;;  %1323 = vst [vmem:[%s4994_s7 + $0x1188] sm:$0xff] %v1322_v49 }
 0x12b   : > { %1325 = vst [vmem:[%s4994_s7 + $0x1190] sm:$0xff] %v1324_v50  ;;  %1327 = vst [vmem:[%s4994_s7 + $0x1198] sm:$0xff] %v1326_v51  ;;  %v1328_v52 = vld [vmem:[%s4986_s6 + $0x4680] sm:$0xff]  ;;  %v1330_v53 = vld [vmem:[%s4986_s6 + $0x4688] sm:$0xff] }
 0x12c   : > { %v1332_v54 = vld [vmem:[%s4986_s6 + $0x46c0] sm:$0xff]  ;;  %1329 = vst [vmem:[%s4994_s7 + $0x11a0] sm:$0xff] %v1328_v52  ;;  %1331 = vst [vmem:[%s4994_s7 + $0x11a8] sm:$0xff] %v1330_v53  ;;  %v1334_v55 = vld [vmem:[%s4986_s6 + $0x46c8] sm:$0xff] }
 0x12d   : > { %1333 = vst [vmem:[%s4994_s7 + $0x11b0] sm:$0xff] %v1332_v54  ;;  %v1336_v56 = vld [vmem:[%s4986_s6 + $0x4700] sm:$0xff]  ;;  %v1338_v57 = vld [vmem:[%s4986_s6 + $0x4708] sm:$0xff]  ;;  %1335 = vst [vmem:[%s4994_s7 + $0x11b8] sm:$0xff] %v1334_v55 }
 0x12e   : > { %1337 = vst [vmem:[%s4994_s7 + $0x11c0] sm:$0xff] %v1336_v56  ;;  %1339 = vst [vmem:[%s4994_s7 + $0x11c8] sm:$0xff] %v1338_v57  ;;  %v1340_v58 = vld [vmem:[%s4986_s6 + $0x4740] sm:$0xff]  ;;  %v1342_v59 = vld [vmem:[%s4986_s6 + $0x4748] sm:$0xff] }
 0x12f   : > { %v1344_v60 = vld [vmem:[%s4986_s6 + $0x4780] sm:$0xff]  ;;  %1341 = vst [vmem:[%s4994_s7 + $0x11d0] sm:$0xff] %v1340_v58  ;;  %1343 = vst [vmem:[%s4994_s7 + $0x11d8] sm:$0xff] %v1342_v59  ;;  %v1346_v61 = vld [vmem:[%s4986_s6 + $0x4788] sm:$0xff] }
 0x130   : > { %1345 = vst [vmem:[%s4994_s7 + $0x11e0] sm:$0xff] %v1344_v60  ;;  %v1348_v62 = vld [vmem:[%s4986_s6 + $0x47c0] sm:$0xff]  ;;  %v1350_v63 = vld [vmem:[%s4986_s6 + $0x47c8] sm:$0xff]  ;;  %1347 = vst [vmem:[%s4994_s7 + $0x11e8] sm:$0xff] %v1346_v61 }
 0x131   : > { %1349 = vst [vmem:[%s4994_s7 + $0x11f0] sm:$0xff] %v1348_v62  ;;  %1351 = vst [vmem:[%s4994_s7 + $0x11f8] sm:$0xff] %v1350_v63  ;;  %v1352_v0 = vld [vmem:[%s4986_s6 + $0x4800] sm:$0xff]  ;;  %v1354_v1 = vld [vmem:[%s4986_s6 + $0x4808] sm:$0xff] }
 0x132   : > { %v1356_v2 = vld [vmem:[%s4986_s6 + $0x4840] sm:$0xff]  ;;  %1353 = vst [vmem:[%s4994_s7 + $0x1200] sm:$0xff] %v1352_v0  ;;  %1355 = vst [vmem:[%s4994_s7 + $0x1208] sm:$0xff] %v1354_v1  ;;  %v1358_v3 = vld [vmem:[%s4986_s6 + $0x4848] sm:$0xff] }
 0x133   : > { %1357 = vst [vmem:[%s4994_s7 + $0x1210] sm:$0xff] %v1356_v2  ;;  %v1360_v4 = vld [vmem:[%s4986_s6 + $0x4880] sm:$0xff]  ;;  %v1362_v5 = vld [vmem:[%s4986_s6 + $0x4888] sm:$0xff]  ;;  %1359 = vst [vmem:[%s4994_s7 + $0x1218] sm:$0xff] %v1358_v3 }
 0x134   : > { %1361 = vst [vmem:[%s4994_s7 + $0x1220] sm:$0xff] %v1360_v4  ;;  %1363 = vst [vmem:[%s4994_s7 + $0x1228] sm:$0xff] %v1362_v5  ;;  %v1364_v6 = vld [vmem:[%s4986_s6 + $0x48c0] sm:$0xff]  ;;  %v1366_v7 = vld [vmem:[%s4986_s6 + $0x48c8] sm:$0xff] }
 0x135   : > { %v1368_v8 = vld [vmem:[%s4986_s6 + $0x4900] sm:$0xff]  ;;  %1365 = vst [vmem:[%s4994_s7 + $0x1230] sm:$0xff] %v1364_v6  ;;  %1367 = vst [vmem:[%s4994_s7 + $0x1238] sm:$0xff] %v1366_v7  ;;  %v1370_v9 = vld [vmem:[%s4986_s6 + $0x4908] sm:$0xff] }
 0x136   : > { %1369 = vst [vmem:[%s4994_s7 + $0x1240] sm:$0xff] %v1368_v8  ;;  %v1372_v10 = vld [vmem:[%s4986_s6 + $0x4940] sm:$0xff]  ;;  %v1374_v11 = vld [vmem:[%s4986_s6 + $0x4948] sm:$0xff]  ;;  %1371 = vst [vmem:[%s4994_s7 + $0x1248] sm:$0xff] %v1370_v9 }
 0x137   : > { %1373 = vst [vmem:[%s4994_s7 + $0x1250] sm:$0xff] %v1372_v10  ;;  %1375 = vst [vmem:[%s4994_s7 + $0x1258] sm:$0xff] %v1374_v11  ;;  %v1376_v12 = vld [vmem:[%s4986_s6 + $0x4980] sm:$0xff]  ;;  %v1378_v13 = vld [vmem:[%s4986_s6 + $0x4988] sm:$0xff] }
 0x138   : > { %v1380_v14 = vld [vmem:[%s4986_s6 + $0x49c0] sm:$0xff]  ;;  %1377 = vst [vmem:[%s4994_s7 + $0x1260] sm:$0xff] %v1376_v12  ;;  %1379 = vst [vmem:[%s4994_s7 + $0x1268] sm:$0xff] %v1378_v13  ;;  %v1382_v15 = vld [vmem:[%s4986_s6 + $0x49c8] sm:$0xff] }
 0x139   : > { %1381 = vst [vmem:[%s4994_s7 + $0x1270] sm:$0xff] %v1380_v14  ;;  %v1384_v16 = vld [vmem:[%s4986_s6 + $0x4a00] sm:$0xff]  ;;  %v1386_v17 = vld [vmem:[%s4986_s6 + $0x4a08] sm:$0xff]  ;;  %1383 = vst [vmem:[%s4994_s7 + $0x1278] sm:$0xff] %v1382_v15 }
 0x13a   : > { %1385 = vst [vmem:[%s4994_s7 + $0x1280] sm:$0xff] %v1384_v16  ;;  %1387 = vst [vmem:[%s4994_s7 + $0x1288] sm:$0xff] %v1386_v17  ;;  %v1388_v18 = vld [vmem:[%s4986_s6 + $0x4a40] sm:$0xff]  ;;  %v1390_v19 = vld [vmem:[%s4986_s6 + $0x4a48] sm:$0xff] }
 0x13b   : > { %v1392_v20 = vld [vmem:[%s4986_s6 + $0x4a80] sm:$0xff]  ;;  %1389 = vst [vmem:[%s4994_s7 + $0x1290] sm:$0xff] %v1388_v18  ;;  %1391 = vst [vmem:[%s4994_s7 + $0x1298] sm:$0xff] %v1390_v19  ;;  %v1394_v21 = vld [vmem:[%s4986_s6 + $0x4a88] sm:$0xff] }
 0x13c   : > { %1393 = vst [vmem:[%s4994_s7 + $0x12a0] sm:$0xff] %v1392_v20  ;;  %v1396_v22 = vld [vmem:[%s4986_s6 + $0x4ac0] sm:$0xff]  ;;  %v1398_v23 = vld [vmem:[%s4986_s6 + $0x4ac8] sm:$0xff]  ;;  %1395 = vst [vmem:[%s4994_s7 + $0x12a8] sm:$0xff] %v1394_v21 }
 0x13d   : > { %1397 = vst [vmem:[%s4994_s7 + $0x12b0] sm:$0xff] %v1396_v22  ;;  %1399 = vst [vmem:[%s4994_s7 + $0x12b8] sm:$0xff] %v1398_v23  ;;  %v1400_v24 = vld [vmem:[%s4986_s6 + $0x4b00] sm:$0xff]  ;;  %v1402_v25 = vld [vmem:[%s4986_s6 + $0x4b08] sm:$0xff] }
 0x13e   : > { %v1404_v26 = vld [vmem:[%s4986_s6 + $0x4b40] sm:$0xff]  ;;  %1401 = vst [vmem:[%s4994_s7 + $0x12c0] sm:$0xff] %v1400_v24  ;;  %1403 = vst [vmem:[%s4994_s7 + $0x12c8] sm:$0xff] %v1402_v25  ;;  %v1406_v27 = vld [vmem:[%s4986_s6 + $0x4b48] sm:$0xff] }
 0x13f   : > { %1405 = vst [vmem:[%s4994_s7 + $0x12d0] sm:$0xff] %v1404_v26  ;;  %v1408_v28 = vld [vmem:[%s4986_s6 + $0x4b80] sm:$0xff]  ;;  %v1410_v29 = vld [vmem:[%s4986_s6 + $0x4b88] sm:$0xff]  ;;  %1407 = vst [vmem:[%s4994_s7 + $0x12d8] sm:$0xff] %v1406_v27 }
 0x140   : > { %1409 = vst [vmem:[%s4994_s7 + $0x12e0] sm:$0xff] %v1408_v28  ;;  %1411 = vst [vmem:[%s4994_s7 + $0x12e8] sm:$0xff] %v1410_v29  ;;  %v1412_v30 = vld [vmem:[%s4986_s6 + $0x4bc0] sm:$0xff]  ;;  %v1414_v31 = vld [vmem:[%s4986_s6 + $0x4bc8] sm:$0xff] }
 0x141   : > { %v1416_v32 = vld [vmem:[%s4986_s6 + $0x4c00] sm:$0xff]  ;;  %1413 = vst [vmem:[%s4994_s7 + $0x12f0] sm:$0xff] %v1412_v30  ;;  %1415 = vst [vmem:[%s4994_s7 + $0x12f8] sm:$0xff] %v1414_v31  ;;  %v1418_v33 = vld [vmem:[%s4986_s6 + $0x4c08] sm:$0xff] }
 0x142   : > { %1417 = vst [vmem:[%s4994_s7 + $0x1300] sm:$0xff] %v1416_v32  ;;  %v1420_v34 = vld [vmem:[%s4986_s6 + $0x4c40] sm:$0xff]  ;;  %v1422_v35 = vld [vmem:[%s4986_s6 + $0x4c48] sm:$0xff]  ;;  %1419 = vst [vmem:[%s4994_s7 + $0x1308] sm:$0xff] %v1418_v33 }
 0x143   : > { %1421 = vst [vmem:[%s4994_s7 + $0x1310] sm:$0xff] %v1420_v34  ;;  %1423 = vst [vmem:[%s4994_s7 + $0x1318] sm:$0xff] %v1422_v35  ;;  %v1424_v36 = vld [vmem:[%s4986_s6 + $0x4c80] sm:$0xff]  ;;  %v1426_v37 = vld [vmem:[%s4986_s6 + $0x4c88] sm:$0xff] }
 0x144   : > { %v1428_v38 = vld [vmem:[%s4986_s6 + $0x4cc0] sm:$0xff]  ;;  %1425 = vst [vmem:[%s4994_s7 + $0x1320] sm:$0xff] %v1424_v36  ;;  %1427 = vst [vmem:[%s4994_s7 + $0x1328] sm:$0xff] %v1426_v37  ;;  %v1430_v39 = vld [vmem:[%s4986_s6 + $0x4cc8] sm:$0xff] }
 0x145   : > { %1429 = vst [vmem:[%s4994_s7 + $0x1330] sm:$0xff] %v1428_v38  ;;  %v1432_v40 = vld [vmem:[%s4986_s6 + $0x4d00] sm:$0xff]  ;;  %v1434_v41 = vld [vmem:[%s4986_s6 + $0x4d08] sm:$0xff]  ;;  %1431 = vst [vmem:[%s4994_s7 + $0x1338] sm:$0xff] %v1430_v39 }
 0x146   : > { %1433 = vst [vmem:[%s4994_s7 + $0x1340] sm:$0xff] %v1432_v40  ;;  %1435 = vst [vmem:[%s4994_s7 + $0x1348] sm:$0xff] %v1434_v41  ;;  %v1436_v42 = vld [vmem:[%s4986_s6 + $0x4d40] sm:$0xff]  ;;  %v1438_v43 = vld [vmem:[%s4986_s6 + $0x4d48] sm:$0xff] }
 0x147   : > { %v1440_v44 = vld [vmem:[%s4986_s6 + $0x4d80] sm:$0xff]  ;;  %1437 = vst [vmem:[%s4994_s7 + $0x1350] sm:$0xff] %v1436_v42  ;;  %1439 = vst [vmem:[%s4994_s7 + $0x1358] sm:$0xff] %v1438_v43  ;;  %v1442_v45 = vld [vmem:[%s4986_s6 + $0x4d88] sm:$0xff] }
 0x148   : > { %1441 = vst [vmem:[%s4994_s7 + $0x1360] sm:$0xff] %v1440_v44  ;;  %v1444_v46 = vld [vmem:[%s4986_s6 + $0x4dc0] sm:$0xff]  ;;  %v1446_v47 = vld [vmem:[%s4986_s6 + $0x4dc8] sm:$0xff]  ;;  %1443 = vst [vmem:[%s4994_s7 + $0x1368] sm:$0xff] %v1442_v45 }
 0x149   : > { %1445 = vst [vmem:[%s4994_s7 + $0x1370] sm:$0xff] %v1444_v46  ;;  %1447 = vst [vmem:[%s4994_s7 + $0x1378] sm:$0xff] %v1446_v47  ;;  %v1448_v48 = vld [vmem:[%s4986_s6 + $0x4e00] sm:$0xff]  ;;  %v1450_v49 = vld [vmem:[%s4986_s6 + $0x4e08] sm:$0xff] }
 0x14a   : > { %v1452_v50 = vld [vmem:[%s4986_s6 + $0x4e40] sm:$0xff]  ;;  %1449 = vst [vmem:[%s4994_s7 + $0x1380] sm:$0xff] %v1448_v48  ;;  %1451 = vst [vmem:[%s4994_s7 + $0x1388] sm:$0xff] %v1450_v49  ;;  %v1454_v51 = vld [vmem:[%s4986_s6 + $0x4e48] sm:$0xff] }
 0x14b   : > { %1453 = vst [vmem:[%s4994_s7 + $0x1390] sm:$0xff] %v1452_v50  ;;  %v1456_v52 = vld [vmem:[%s4986_s6 + $0x4e80] sm:$0xff]  ;;  %v1458_v53 = vld [vmem:[%s4986_s6 + $0x4e88] sm:$0xff]  ;;  %1455 = vst [vmem:[%s4994_s7 + $0x1398] sm:$0xff] %v1454_v51 }
 0x14c   : > { %1457 = vst [vmem:[%s4994_s7 + $0x13a0] sm:$0xff] %v1456_v52  ;;  %1459 = vst [vmem:[%s4994_s7 + $0x13a8] sm:$0xff] %v1458_v53  ;;  %v1460_v54 = vld [vmem:[%s4986_s6 + $0x4ec0] sm:$0xff]  ;;  %v1462_v55 = vld [vmem:[%s4986_s6 + $0x4ec8] sm:$0xff] }
 0x14d   : > { %v1464_v56 = vld [vmem:[%s4986_s6 + $0x4f00] sm:$0xff]  ;;  %1461 = vst [vmem:[%s4994_s7 + $0x13b0] sm:$0xff] %v1460_v54  ;;  %1463 = vst [vmem:[%s4994_s7 + $0x13b8] sm:$0xff] %v1462_v55  ;;  %v1466_v57 = vld [vmem:[%s4986_s6 + $0x4f08] sm:$0xff] }
 0x14e   : > { %1465 = vst [vmem:[%s4994_s7 + $0x13c0] sm:$0xff] %v1464_v56  ;;  %v1468_v58 = vld [vmem:[%s4986_s6 + $0x4f40] sm:$0xff]  ;;  %v1470_v59 = vld [vmem:[%s4986_s6 + $0x4f48] sm:$0xff]  ;;  %1467 = vst [vmem:[%s4994_s7 + $0x13c8] sm:$0xff] %v1466_v57 }
 0x14f   : > { %1469 = vst [vmem:[%s4994_s7 + $0x13d0] sm:$0xff] %v1468_v58  ;;  %1471 = vst [vmem:[%s4994_s7 + $0x13d8] sm:$0xff] %v1470_v59  ;;  %v1472_v60 = vld [vmem:[%s4986_s6 + $0x4f80] sm:$0xff]  ;;  %v1474_v61 = vld [vmem:[%s4986_s6 + $0x4f88] sm:$0xff] }
 0x150   : > { %v1476_v62 = vld [vmem:[%s4986_s6 + $0x4fc0] sm:$0xff]  ;;  %1473 = vst [vmem:[%s4994_s7 + $0x13e0] sm:$0xff] %v1472_v60  ;;  %1475 = vst [vmem:[%s4994_s7 + $0x13e8] sm:$0xff] %v1474_v61  ;;  %v1478_v63 = vld [vmem:[%s4986_s6 + $0x4fc8] sm:$0xff] }
 0x151   : > { %1477 = vst [vmem:[%s4994_s7 + $0x13f0] sm:$0xff] %v1476_v62  ;;  %v1480_v0 = vld [vmem:[%s4986_s6 + $0x5000] sm:$0xff]  ;;  %v1482_v1 = vld [vmem:[%s4986_s6 + $0x5008] sm:$0xff]  ;;  %1479 = vst [vmem:[%s4994_s7 + $0x13f8] sm:$0xff] %v1478_v63 }
 0x152   : > { %1481 = vst [vmem:[%s4994_s7 + $0x1400] sm:$0xff] %v1480_v0  ;;  %1483 = vst [vmem:[%s4994_s7 + $0x1408] sm:$0xff] %v1482_v1  ;;  %v1484_v2 = vld [vmem:[%s4986_s6 + $0x5040] sm:$0xff]  ;;  %v1486_v3 = vld [vmem:[%s4986_s6 + $0x5048] sm:$0xff] }
 0x153   : > { %v1488_v4 = vld [vmem:[%s4986_s6 + $0x5080] sm:$0xff]  ;;  %1485 = vst [vmem:[%s4994_s7 + $0x1410] sm:$0xff] %v1484_v2  ;;  %1487 = vst [vmem:[%s4994_s7 + $0x1418] sm:$0xff] %v1486_v3  ;;  %v1490_v5 = vld [vmem:[%s4986_s6 + $0x5088] sm:$0xff] }
 0x154   : > { %1489 = vst [vmem:[%s4994_s7 + $0x1420] sm:$0xff] %v1488_v4  ;;  %v1492_v6 = vld [vmem:[%s4986_s6 + $0x50c0] sm:$0xff]  ;;  %v1494_v7 = vld [vmem:[%s4986_s6 + $0x50c8] sm:$0xff]  ;;  %1491 = vst [vmem:[%s4994_s7 + $0x1428] sm:$0xff] %v1490_v5 }
 0x155   : > { %1493 = vst [vmem:[%s4994_s7 + $0x1430] sm:$0xff] %v1492_v6  ;;  %1495 = vst [vmem:[%s4994_s7 + $0x1438] sm:$0xff] %v1494_v7  ;;  %v1496_v8 = vld [vmem:[%s4986_s6 + $0x5100] sm:$0xff]  ;;  %v1498_v9 = vld [vmem:[%s4986_s6 + $0x5108] sm:$0xff] }
 0x156   : > { %v1500_v10 = vld [vmem:[%s4986_s6 + $0x5140] sm:$0xff]  ;;  %1497 = vst [vmem:[%s4994_s7 + $0x1440] sm:$0xff] %v1496_v8  ;;  %1499 = vst [vmem:[%s4994_s7 + $0x1448] sm:$0xff] %v1498_v9  ;;  %v1502_v11 = vld [vmem:[%s4986_s6 + $0x5148] sm:$0xff] }
 0x157   : > { %1501 = vst [vmem:[%s4994_s7 + $0x1450] sm:$0xff] %v1500_v10  ;;  %v1504_v12 = vld [vmem:[%s4986_s6 + $0x5180] sm:$0xff]  ;;  %v1506_v13 = vld [vmem:[%s4986_s6 + $0x5188] sm:$0xff]  ;;  %1503 = vst [vmem:[%s4994_s7 + $0x1458] sm:$0xff] %v1502_v11 }
 0x158   : > { %1505 = vst [vmem:[%s4994_s7 + $0x1460] sm:$0xff] %v1504_v12  ;;  %1507 = vst [vmem:[%s4994_s7 + $0x1468] sm:$0xff] %v1506_v13  ;;  %v1508_v14 = vld [vmem:[%s4986_s6 + $0x51c0] sm:$0xff]  ;;  %v1510_v15 = vld [vmem:[%s4986_s6 + $0x51c8] sm:$0xff] }
 0x159   : > { %v1512_v16 = vld [vmem:[%s4986_s6 + $0x5200] sm:$0xff]  ;;  %1509 = vst [vmem:[%s4994_s7 + $0x1470] sm:$0xff] %v1508_v14  ;;  %1511 = vst [vmem:[%s4994_s7 + $0x1478] sm:$0xff] %v1510_v15  ;;  %v1514_v17 = vld [vmem:[%s4986_s6 + $0x5208] sm:$0xff] }
 0x15a   : > { %1513 = vst [vmem:[%s4994_s7 + $0x1480] sm:$0xff] %v1512_v16  ;;  %v1516_v18 = vld [vmem:[%s4986_s6 + $0x5240] sm:$0xff]  ;;  %v1518_v19 = vld [vmem:[%s4986_s6 + $0x5248] sm:$0xff]  ;;  %1515 = vst [vmem:[%s4994_s7 + $0x1488] sm:$0xff] %v1514_v17 }
 0x15b   : > { %1517 = vst [vmem:[%s4994_s7 + $0x1490] sm:$0xff] %v1516_v18  ;;  %1519 = vst [vmem:[%s4994_s7 + $0x1498] sm:$0xff] %v1518_v19  ;;  %v1520_v20 = vld [vmem:[%s4986_s6 + $0x5280] sm:$0xff]  ;;  %v1522_v21 = vld [vmem:[%s4986_s6 + $0x5288] sm:$0xff] }
 0x15c   : > { %v1524_v22 = vld [vmem:[%s4986_s6 + $0x52c0] sm:$0xff]  ;;  %1521 = vst [vmem:[%s4994_s7 + $0x14a0] sm:$0xff] %v1520_v20  ;;  %1523 = vst [vmem:[%s4994_s7 + $0x14a8] sm:$0xff] %v1522_v21  ;;  %v1526_v23 = vld [vmem:[%s4986_s6 + $0x52c8] sm:$0xff] }
 0x15d   : > { %1525 = vst [vmem:[%s4994_s7 + $0x14b0] sm:$0xff] %v1524_v22  ;;  %v1528_v24 = vld [vmem:[%s4986_s6 + $0x5300] sm:$0xff]  ;;  %v1530_v25 = vld [vmem:[%s4986_s6 + $0x5308] sm:$0xff]  ;;  %1527 = vst [vmem:[%s4994_s7 + $0x14b8] sm:$0xff] %v1526_v23 }
 0x15e   : > { %1529 = vst [vmem:[%s4994_s7 + $0x14c0] sm:$0xff] %v1528_v24  ;;  %1531 = vst [vmem:[%s4994_s7 + $0x14c8] sm:$0xff] %v1530_v25  ;;  %v1532_v26 = vld [vmem:[%s4986_s6 + $0x5340] sm:$0xff]  ;;  %v1534_v27 = vld [vmem:[%s4986_s6 + $0x5348] sm:$0xff] }
 0x15f   : > { %v1536_v28 = vld [vmem:[%s4986_s6 + $0x5380] sm:$0xff]  ;;  %1533 = vst [vmem:[%s4994_s7 + $0x14d0] sm:$0xff] %v1532_v26  ;;  %1535 = vst [vmem:[%s4994_s7 + $0x14d8] sm:$0xff] %v1534_v27  ;;  %v1538_v29 = vld [vmem:[%s4986_s6 + $0x5388] sm:$0xff] }
 0x160   : > { %1537 = vst [vmem:[%s4994_s7 + $0x14e0] sm:$0xff] %v1536_v28  ;;  %v1540_v30 = vld [vmem:[%s4986_s6 + $0x53c0] sm:$0xff]  ;;  %v1542_v31 = vld [vmem:[%s4986_s6 + $0x53c8] sm:$0xff]  ;;  %1539 = vst [vmem:[%s4994_s7 + $0x14e8] sm:$0xff] %v1538_v29 }
 0x161   : > { %1541 = vst [vmem:[%s4994_s7 + $0x14f0] sm:$0xff] %v1540_v30  ;;  %1543 = vst [vmem:[%s4994_s7 + $0x14f8] sm:$0xff] %v1542_v31  ;;  %v1544_v32 = vld [vmem:[%s4986_s6 + $0x5400] sm:$0xff]  ;;  %v1546_v33 = vld [vmem:[%s4986_s6 + $0x5408] sm:$0xff] }
 0x162   : > { %v1548_v34 = vld [vmem:[%s4986_s6 + $0x5440] sm:$0xff]  ;;  %1545 = vst [vmem:[%s4994_s7 + $0x1500] sm:$0xff] %v1544_v32  ;;  %1547 = vst [vmem:[%s4994_s7 + $0x1508] sm:$0xff] %v1546_v33  ;;  %v1550_v35 = vld [vmem:[%s4986_s6 + $0x5448] sm:$0xff] }
 0x163   : > { %1549 = vst [vmem:[%s4994_s7 + $0x1510] sm:$0xff] %v1548_v34  ;;  %v1552_v36 = vld [vmem:[%s4986_s6 + $0x5480] sm:$0xff]  ;;  %v1554_v37 = vld [vmem:[%s4986_s6 + $0x5488] sm:$0xff]  ;;  %1551 = vst [vmem:[%s4994_s7 + $0x1518] sm:$0xff] %v1550_v35 }
 0x164   : > { %1553 = vst [vmem:[%s4994_s7 + $0x1520] sm:$0xff] %v1552_v36  ;;  %1555 = vst [vmem:[%s4994_s7 + $0x1528] sm:$0xff] %v1554_v37  ;;  %v1556_v38 = vld [vmem:[%s4986_s6 + $0x54c0] sm:$0xff]  ;;  %v1558_v39 = vld [vmem:[%s4986_s6 + $0x54c8] sm:$0xff] }
 0x165   : > { %v1560_v40 = vld [vmem:[%s4986_s6 + $0x5500] sm:$0xff]  ;;  %1557 = vst [vmem:[%s4994_s7 + $0x1530] sm:$0xff] %v1556_v38  ;;  %1559 = vst [vmem:[%s4994_s7 + $0x1538] sm:$0xff] %v1558_v39  ;;  %v1562_v41 = vld [vmem:[%s4986_s6 + $0x5508] sm:$0xff] }
 0x166   : > { %1561 = vst [vmem:[%s4994_s7 + $0x1540] sm:$0xff] %v1560_v40  ;;  %v1564_v42 = vld [vmem:[%s4986_s6 + $0x5540] sm:$0xff]  ;;  %v1566_v43 = vld [vmem:[%s4986_s6 + $0x5548] sm:$0xff]  ;;  %1563 = vst [vmem:[%s4994_s7 + $0x1548] sm:$0xff] %v1562_v41 }
 0x167   : > { %1565 = vst [vmem:[%s4994_s7 + $0x1550] sm:$0xff] %v1564_v42  ;;  %1567 = vst [vmem:[%s4994_s7 + $0x1558] sm:$0xff] %v1566_v43  ;;  %v1568_v44 = vld [vmem:[%s4986_s6 + $0x5580] sm:$0xff]  ;;  %v1570_v45 = vld [vmem:[%s4986_s6 + $0x5588] sm:$0xff] }
 0x168   : > { %v1572_v46 = vld [vmem:[%s4986_s6 + $0x55c0] sm:$0xff]  ;;  %1569 = vst [vmem:[%s4994_s7 + $0x1560] sm:$0xff] %v1568_v44  ;;  %1571 = vst [vmem:[%s4994_s7 + $0x1568] sm:$0xff] %v1570_v45  ;;  %v1574_v47 = vld [vmem:[%s4986_s6 + $0x55c8] sm:$0xff] }
 0x169   : > { %1573 = vst [vmem:[%s4994_s7 + $0x1570] sm:$0xff] %v1572_v46  ;;  %v1576_v48 = vld [vmem:[%s4986_s6 + $0x5600] sm:$0xff]  ;;  %v1578_v49 = vld [vmem:[%s4986_s6 + $0x5608] sm:$0xff]  ;;  %1575 = vst [vmem:[%s4994_s7 + $0x1578] sm:$0xff] %v1574_v47 }
 0x16a   : > { %1577 = vst [vmem:[%s4994_s7 + $0x1580] sm:$0xff] %v1576_v48  ;;  %1579 = vst [vmem:[%s4994_s7 + $0x1588] sm:$0xff] %v1578_v49  ;;  %v1580_v50 = vld [vmem:[%s4986_s6 + $0x5640] sm:$0xff]  ;;  %v1582_v51 = vld [vmem:[%s4986_s6 + $0x5648] sm:$0xff] }
 0x16b   : > { %v1584_v52 = vld [vmem:[%s4986_s6 + $0x5680] sm:$0xff]  ;;  %1581 = vst [vmem:[%s4994_s7 + $0x1590] sm:$0xff] %v1580_v50  ;;  %1583 = vst [vmem:[%s4994_s7 + $0x1598] sm:$0xff] %v1582_v51  ;;  %v1586_v53 = vld [vmem:[%s4986_s6 + $0x5688] sm:$0xff] }
 0x16c   : > { %1585 = vst [vmem:[%s4994_s7 + $0x15a0] sm:$0xff] %v1584_v52  ;;  %v1588_v54 = vld [vmem:[%s4986_s6 + $0x56c0] sm:$0xff]  ;;  %v1590_v55 = vld [vmem:[%s4986_s6 + $0x56c8] sm:$0xff]  ;;  %1587 = vst [vmem:[%s4994_s7 + $0x15a8] sm:$0xff] %v1586_v53 }
 0x16d   : > { %1589 = vst [vmem:[%s4994_s7 + $0x15b0] sm:$0xff] %v1588_v54  ;;  %1591 = vst [vmem:[%s4994_s7 + $0x15b8] sm:$0xff] %v1590_v55  ;;  %v1592_v56 = vld [vmem:[%s4986_s6 + $0x5700] sm:$0xff]  ;;  %v1594_v57 = vld [vmem:[%s4986_s6 + $0x5708] sm:$0xff] }
 0x16e   : > { %v1596_v58 = vld [vmem:[%s4986_s6 + $0x5740] sm:$0xff]  ;;  %1593 = vst [vmem:[%s4994_s7 + $0x15c0] sm:$0xff] %v1592_v56  ;;  %1595 = vst [vmem:[%s4994_s7 + $0x15c8] sm:$0xff] %v1594_v57  ;;  %v1598_v59 = vld [vmem:[%s4986_s6 + $0x5748] sm:$0xff] }
 0x16f   : > { %1597 = vst [vmem:[%s4994_s7 + $0x15d0] sm:$0xff] %v1596_v58  ;;  %v1600_v60 = vld [vmem:[%s4986_s6 + $0x5780] sm:$0xff]  ;;  %v1602_v61 = vld [vmem:[%s4986_s6 + $0x5788] sm:$0xff]  ;;  %1599 = vst [vmem:[%s4994_s7 + $0x15d8] sm:$0xff] %v1598_v59 }
 0x170   : > { %1601 = vst [vmem:[%s4994_s7 + $0x15e0] sm:$0xff] %v1600_v60  ;;  %1603 = vst [vmem:[%s4994_s7 + $0x15e8] sm:$0xff] %v1602_v61  ;;  %v1604_v62 = vld [vmem:[%s4986_s6 + $0x57c0] sm:$0xff]  ;;  %v1606_v63 = vld [vmem:[%s4986_s6 + $0x57c8] sm:$0xff] }
 0x171   : > { %v1608_v0 = vld [vmem:[%s4986_s6 + $0x5800] sm:$0xff]  ;;  %1605 = vst [vmem:[%s4994_s7 + $0x15f0] sm:$0xff] %v1604_v62  ;;  %1607 = vst [vmem:[%s4994_s7 + $0x15f8] sm:$0xff] %v1606_v63  ;;  %v1610_v1 = vld [vmem:[%s4986_s6 + $0x5808] sm:$0xff] }
 0x172   : > { %1609 = vst [vmem:[%s4994_s7 + $0x1600] sm:$0xff] %v1608_v0  ;;  %v1612_v2 = vld [vmem:[%s4986_s6 + $0x5840] sm:$0xff]  ;;  %v1614_v3 = vld [vmem:[%s4986_s6 + $0x5848] sm:$0xff]  ;;  %1611 = vst [vmem:[%s4994_s7 + $0x1608] sm:$0xff] %v1610_v1 }
 0x173   : > { %1613 = vst [vmem:[%s4994_s7 + $0x1610] sm:$0xff] %v1612_v2  ;;  %1615 = vst [vmem:[%s4994_s7 + $0x1618] sm:$0xff] %v1614_v3  ;;  %v1616_v4 = vld [vmem:[%s4986_s6 + $0x5880] sm:$0xff]  ;;  %v1618_v5 = vld [vmem:[%s4986_s6 + $0x5888] sm:$0xff] }
 0x174   : > { %v1620_v6 = vld [vmem:[%s4986_s6 + $0x58c0] sm:$0xff]  ;;  %1617 = vst [vmem:[%s4994_s7 + $0x1620] sm:$0xff] %v1616_v4  ;;  %1619 = vst [vmem:[%s4994_s7 + $0x1628] sm:$0xff] %v1618_v5  ;;  %v1622_v7 = vld [vmem:[%s4986_s6 + $0x58c8] sm:$0xff] }
 0x175   : > { %1621 = vst [vmem:[%s4994_s7 + $0x1630] sm:$0xff] %v1620_v6  ;;  %v1624_v8 = vld [vmem:[%s4986_s6 + $0x5900] sm:$0xff]  ;;  %v1626_v9 = vld [vmem:[%s4986_s6 + $0x5908] sm:$0xff]  ;;  %1623 = vst [vmem:[%s4994_s7 + $0x1638] sm:$0xff] %v1622_v7 }
 0x176   : > { %1625 = vst [vmem:[%s4994_s7 + $0x1640] sm:$0xff] %v1624_v8  ;;  %1627 = vst [vmem:[%s4994_s7 + $0x1648] sm:$0xff] %v1626_v9  ;;  %v1628_v10 = vld [vmem:[%s4986_s6 + $0x5940] sm:$0xff]  ;;  %v1630_v11 = vld [vmem:[%s4986_s6 + $0x5948] sm:$0xff] }
 0x177   : > { %v1632_v12 = vld [vmem:[%s4986_s6 + $0x5980] sm:$0xff]  ;;  %1629 = vst [vmem:[%s4994_s7 + $0x1650] sm:$0xff] %v1628_v10  ;;  %1631 = vst [vmem:[%s4994_s7 + $0x1658] sm:$0xff] %v1630_v11  ;;  %v1634_v13 = vld [vmem:[%s4986_s6 + $0x5988] sm:$0xff] }
 0x178   : > { %1633 = vst [vmem:[%s4994_s7 + $0x1660] sm:$0xff] %v1632_v12  ;;  %v1636_v14 = vld [vmem:[%s4986_s6 + $0x59c0] sm:$0xff]  ;;  %v1638_v15 = vld [vmem:[%s4986_s6 + $0x59c8] sm:$0xff]  ;;  %1635 = vst [vmem:[%s4994_s7 + $0x1668] sm:$0xff] %v1634_v13 }
 0x179   : > { %1637 = vst [vmem:[%s4994_s7 + $0x1670] sm:$0xff] %v1636_v14  ;;  %1639 = vst [vmem:[%s4994_s7 + $0x1678] sm:$0xff] %v1638_v15  ;;  %v1640_v16 = vld [vmem:[%s4986_s6 + $0x5a00] sm:$0xff]  ;;  %v1642_v17 = vld [vmem:[%s4986_s6 + $0x5a08] sm:$0xff] }
 0x17a   : > { %v1644_v18 = vld [vmem:[%s4986_s6 + $0x5a40] sm:$0xff]  ;;  %1641 = vst [vmem:[%s4994_s7 + $0x1680] sm:$0xff] %v1640_v16  ;;  %1643 = vst [vmem:[%s4994_s7 + $0x1688] sm:$0xff] %v1642_v17  ;;  %v1646_v19 = vld [vmem:[%s4986_s6 + $0x5a48] sm:$0xff] }
 0x17b   : > { %1645 = vst [vmem:[%s4994_s7 + $0x1690] sm:$0xff] %v1644_v18  ;;  %v1648_v20 = vld [vmem:[%s4986_s6 + $0x5a80] sm:$0xff]  ;;  %v1650_v21 = vld [vmem:[%s4986_s6 + $0x5a88] sm:$0xff]  ;;  %1647 = vst [vmem:[%s4994_s7 + $0x1698] sm:$0xff] %v1646_v19 }
 0x17c   : > { %1649 = vst [vmem:[%s4994_s7 + $0x16a0] sm:$0xff] %v1648_v20  ;;  %1651 = vst [vmem:[%s4994_s7 + $0x16a8] sm:$0xff] %v1650_v21  ;;  %v1652_v22 = vld [vmem:[%s4986_s6 + $0x5ac0] sm:$0xff]  ;;  %v1654_v23 = vld [vmem:[%s4986_s6 + $0x5ac8] sm:$0xff] }
 0x17d   : > { %v1656_v24 = vld [vmem:[%s4986_s6 + $0x5b00] sm:$0xff]  ;;  %1653 = vst [vmem:[%s4994_s7 + $0x16b0] sm:$0xff] %v1652_v22  ;;  %1655 = vst [vmem:[%s4994_s7 + $0x16b8] sm:$0xff] %v1654_v23  ;;  %v1658_v25 = vld [vmem:[%s4986_s6 + $0x5b08] sm:$0xff] }
 0x17e   : > { %1657 = vst [vmem:[%s4994_s7 + $0x16c0] sm:$0xff] %v1656_v24  ;;  %v1660_v26 = vld [vmem:[%s4986_s6 + $0x5b40] sm:$0xff]  ;;  %v1662_v27 = vld [vmem:[%s4986_s6 + $0x5b48] sm:$0xff]  ;;  %1659 = vst [vmem:[%s4994_s7 + $0x16c8] sm:$0xff] %v1658_v25 }
 0x17f   : > { %1661 = vst [vmem:[%s4994_s7 + $0x16d0] sm:$0xff] %v1660_v26  ;;  %1663 = vst [vmem:[%s4994_s7 + $0x16d8] sm:$0xff] %v1662_v27  ;;  %v1664_v28 = vld [vmem:[%s4986_s6 + $0x5b80] sm:$0xff]  ;;  %v1666_v29 = vld [vmem:[%s4986_s6 + $0x5b88] sm:$0xff] }
 0x180   : > { %v1668_v30 = vld [vmem:[%s4986_s6 + $0x5bc0] sm:$0xff]  ;;  %1665 = vst [vmem:[%s4994_s7 + $0x16e0] sm:$0xff] %v1664_v28  ;;  %1667 = vst [vmem:[%s4994_s7 + $0x16e8] sm:$0xff] %v1666_v29  ;;  %v1670_v31 = vld [vmem:[%s4986_s6 + $0x5bc8] sm:$0xff] }
 0x181   : > { %1669 = vst [vmem:[%s4994_s7 + $0x16f0] sm:$0xff] %v1668_v30  ;;  %v1672_v32 = vld [vmem:[%s4986_s6 + $0x5c00] sm:$0xff]  ;;  %v1674_v33 = vld [vmem:[%s4986_s6 + $0x5c08] sm:$0xff]  ;;  %1671 = vst [vmem:[%s4994_s7 + $0x16f8] sm:$0xff] %v1670_v31 }
 0x182   : > { %1673 = vst [vmem:[%s4994_s7 + $0x1700] sm:$0xff] %v1672_v32  ;;  %1675 = vst [vmem:[%s4994_s7 + $0x1708] sm:$0xff] %v1674_v33  ;;  %v1676_v34 = vld [vmem:[%s4986_s6 + $0x5c40] sm:$0xff]  ;;  %v1678_v35 = vld [vmem:[%s4986_s6 + $0x5c48] sm:$0xff] }
 0x183   : > { %v1680_v36 = vld [vmem:[%s4986_s6 + $0x5c80] sm:$0xff]  ;;  %1677 = vst [vmem:[%s4994_s7 + $0x1710] sm:$0xff] %v1676_v34  ;;  %1679 = vst [vmem:[%s4994_s7 + $0x1718] sm:$0xff] %v1678_v35  ;;  %v1682_v37 = vld [vmem:[%s4986_s6 + $0x5c88] sm:$0xff] }
 0x184   : > { %1681 = vst [vmem:[%s4994_s7 + $0x1720] sm:$0xff] %v1680_v36  ;;  %v1684_v38 = vld [vmem:[%s4986_s6 + $0x5cc0] sm:$0xff]  ;;  %v1686_v39 = vld [vmem:[%s4986_s6 + $0x5cc8] sm:$0xff]  ;;  %1683 = vst [vmem:[%s4994_s7 + $0x1728] sm:$0xff] %v1682_v37 }
 0x185   : > { %1685 = vst [vmem:[%s4994_s7 + $0x1730] sm:$0xff] %v1684_v38  ;;  %1687 = vst [vmem:[%s4994_s7 + $0x1738] sm:$0xff] %v1686_v39  ;;  %v1688_v40 = vld [vmem:[%s4986_s6 + $0x5d00] sm:$0xff]  ;;  %v1690_v41 = vld [vmem:[%s4986_s6 + $0x5d08] sm:$0xff] }
 0x186   : > { %v1692_v42 = vld [vmem:[%s4986_s6 + $0x5d40] sm:$0xff]  ;;  %1689 = vst [vmem:[%s4994_s7 + $0x1740] sm:$0xff] %v1688_v40  ;;  %1691 = vst [vmem:[%s4994_s7 + $0x1748] sm:$0xff] %v1690_v41  ;;  %v1694_v43 = vld [vmem:[%s4986_s6 + $0x5d48] sm:$0xff] }
 0x187   : > { %1693 = vst [vmem:[%s4994_s7 + $0x1750] sm:$0xff] %v1692_v42  ;;  %v1696_v44 = vld [vmem:[%s4986_s6 + $0x5d80] sm:$0xff]  ;;  %v1698_v45 = vld [vmem:[%s4986_s6 + $0x5d88] sm:$0xff]  ;;  %1695 = vst [vmem:[%s4994_s7 + $0x1758] sm:$0xff] %v1694_v43 }
 0x188   : > { %1697 = vst [vmem:[%s4994_s7 + $0x1760] sm:$0xff] %v1696_v44  ;;  %1699 = vst [vmem:[%s4994_s7 + $0x1768] sm:$0xff] %v1698_v45  ;;  %v1700_v46 = vld [vmem:[%s4986_s6 + $0x5dc0] sm:$0xff]  ;;  %v1702_v47 = vld [vmem:[%s4986_s6 + $0x5dc8] sm:$0xff] }
 0x189   : > { %v1704_v48 = vld [vmem:[%s4986_s6 + $0x5e00] sm:$0xff]  ;;  %1701 = vst [vmem:[%s4994_s7 + $0x1770] sm:$0xff] %v1700_v46  ;;  %1703 = vst [vmem:[%s4994_s7 + $0x1778] sm:$0xff] %v1702_v47  ;;  %v1706_v49 = vld [vmem:[%s4986_s6 + $0x5e08] sm:$0xff] }
 0x18a   : > { %1705 = vst [vmem:[%s4994_s7 + $0x1780] sm:$0xff] %v1704_v48  ;;  %v1708_v50 = vld [vmem:[%s4986_s6 + $0x5e40] sm:$0xff]  ;;  %v1710_v51 = vld [vmem:[%s4986_s6 + $0x5e48] sm:$0xff]  ;;  %1707 = vst [vmem:[%s4994_s7 + $0x1788] sm:$0xff] %v1706_v49 }
 0x18b   : > { %1709 = vst [vmem:[%s4994_s7 + $0x1790] sm:$0xff] %v1708_v50  ;;  %1711 = vst [vmem:[%s4994_s7 + $0x1798] sm:$0xff] %v1710_v51  ;;  %v1712_v52 = vld [vmem:[%s4986_s6 + $0x5e80] sm:$0xff]  ;;  %v1714_v53 = vld [vmem:[%s4986_s6 + $0x5e88] sm:$0xff] }
 0x18c   : > { %v1716_v54 = vld [vmem:[%s4986_s6 + $0x5ec0] sm:$0xff]  ;;  %1713 = vst [vmem:[%s4994_s7 + $0x17a0] sm:$0xff] %v1712_v52  ;;  %1715 = vst [vmem:[%s4994_s7 + $0x17a8] sm:$0xff] %v1714_v53  ;;  %v1718_v55 = vld [vmem:[%s4986_s6 + $0x5ec8] sm:$0xff] }
 0x18d   : > { %1717 = vst [vmem:[%s4994_s7 + $0x17b0] sm:$0xff] %v1716_v54  ;;  %v1720_v56 = vld [vmem:[%s4986_s6 + $0x5f00] sm:$0xff]  ;;  %v1722_v57 = vld [vmem:[%s4986_s6 + $0x5f08] sm:$0xff]  ;;  %1719 = vst [vmem:[%s4994_s7 + $0x17b8] sm:$0xff] %v1718_v55 }
 0x18e   : > { %1721 = vst [vmem:[%s4994_s7 + $0x17c0] sm:$0xff] %v1720_v56  ;;  %1723 = vst [vmem:[%s4994_s7 + $0x17c8] sm:$0xff] %v1722_v57  ;;  %v1724_v58 = vld [vmem:[%s4986_s6 + $0x5f40] sm:$0xff]  ;;  %v1726_v59 = vld [vmem:[%s4986_s6 + $0x5f48] sm:$0xff] }
 0x18f   : > { %v1728_v60 = vld [vmem:[%s4986_s6 + $0x5f80] sm:$0xff]  ;;  %1725 = vst [vmem:[%s4994_s7 + $0x17d0] sm:$0xff] %v1724_v58  ;;  %1727 = vst [vmem:[%s4994_s7 + $0x17d8] sm:$0xff] %v1726_v59  ;;  %v1730_v61 = vld [vmem:[%s4986_s6 + $0x5f88] sm:$0xff] }
 0x190   : > { %1729 = vst [vmem:[%s4994_s7 + $0x17e0] sm:$0xff] %v1728_v60  ;;  %v1732_v62 = vld [vmem:[%s4986_s6 + $0x5fc0] sm:$0xff]  ;;  %v1734_v63 = vld [vmem:[%s4986_s6 + $0x5fc8] sm:$0xff]  ;;  %1731 = vst [vmem:[%s4994_s7 + $0x17e8] sm:$0xff] %v1730_v61 }
 0x191   : > { %1733 = vst [vmem:[%s4994_s7 + $0x17f0] sm:$0xff] %v1732_v62  ;;  %1735 = vst [vmem:[%s4994_s7 + $0x17f8] sm:$0xff] %v1734_v63  ;;  %v1736_v0 = vld [vmem:[%s4986_s6 + $0x6000] sm:$0xff]  ;;  %v1738_v1 = vld [vmem:[%s4986_s6 + $0x6008] sm:$0xff] }
 0x192   : > { %v1740_v2 = vld [vmem:[%s4986_s6 + $0x6040] sm:$0xff]  ;;  %1737 = vst [vmem:[%s4994_s7 + $0x1800] sm:$0xff] %v1736_v0  ;;  %1739 = vst [vmem:[%s4994_s7 + $0x1808] sm:$0xff] %v1738_v1  ;;  %v1742_v3 = vld [vmem:[%s4986_s6 + $0x6048] sm:$0xff] }
 0x193   : > { %1741 = vst [vmem:[%s4994_s7 + $0x1810] sm:$0xff] %v1740_v2  ;;  %v1744_v4 = vld [vmem:[%s4986_s6 + $0x6080] sm:$0xff]  ;;  %v1746_v5 = vld [vmem:[%s4986_s6 + $0x6088] sm:$0xff]  ;;  %1743 = vst [vmem:[%s4994_s7 + $0x1818] sm:$0xff] %v1742_v3 }
 0x194   : > { %1745 = vst [vmem:[%s4994_s7 + $0x1820] sm:$0xff] %v1744_v4  ;;  %1747 = vst [vmem:[%s4994_s7 + $0x1828] sm:$0xff] %v1746_v5  ;;  %v1748_v6 = vld [vmem:[%s4986_s6 + $0x60c0] sm:$0xff]  ;;  %v1750_v7 = vld [vmem:[%s4986_s6 + $0x60c8] sm:$0xff] }
 0x195   : > { %v1752_v8 = vld [vmem:[%s4986_s6 + $0x6100] sm:$0xff]  ;;  %1749 = vst [vmem:[%s4994_s7 + $0x1830] sm:$0xff] %v1748_v6  ;;  %1751 = vst [vmem:[%s4994_s7 + $0x1838] sm:$0xff] %v1750_v7  ;;  %v1754_v9 = vld [vmem:[%s4986_s6 + $0x6108] sm:$0xff] }
 0x196   : > { %1753 = vst [vmem:[%s4994_s7 + $0x1840] sm:$0xff] %v1752_v8  ;;  %v1756_v10 = vld [vmem:[%s4986_s6 + $0x6140] sm:$0xff]  ;;  %v1758_v11 = vld [vmem:[%s4986_s6 + $0x6148] sm:$0xff]  ;;  %1755 = vst [vmem:[%s4994_s7 + $0x1848] sm:$0xff] %v1754_v9 }
 0x197   : > { %1757 = vst [vmem:[%s4994_s7 + $0x1850] sm:$0xff] %v1756_v10  ;;  %1759 = vst [vmem:[%s4994_s7 + $0x1858] sm:$0xff] %v1758_v11  ;;  %v1760_v12 = vld [vmem:[%s4986_s6 + $0x6180] sm:$0xff]  ;;  %v1762_v13 = vld [vmem:[%s4986_s6 + $0x6188] sm:$0xff] }
 0x198   : > { %v1764_v14 = vld [vmem:[%s4986_s6 + $0x61c0] sm:$0xff]  ;;  %1761 = vst [vmem:[%s4994_s7 + $0x1860] sm:$0xff] %v1760_v12  ;;  %1763 = vst [vmem:[%s4994_s7 + $0x1868] sm:$0xff] %v1762_v13  ;;  %v1766_v15 = vld [vmem:[%s4986_s6 + $0x61c8] sm:$0xff] }
 0x199   : > { %1765 = vst [vmem:[%s4994_s7 + $0x1870] sm:$0xff] %v1764_v14  ;;  %1767 = vst [vmem:[%s4994_s7 + $0x1878] sm:$0xff] %v1766_v15 }
 0x19a PF: > { %p3925_p5 = scmp.ge.s32.totalorder %s4914_s20, 1  ;;  %p1789_p6 = scmp.lt.s32.totalorder %s4914_s20, 5 }
 0x19c   : > { %p1790_p7 = pnand %p3925_p5, %p1789_p6 }
 0x19d   : > { %s1796_s8 = sand.u32 (!%p1790_p7), 1, %s4906_s18   ;;  %s3926_s9 = sshll.u32 (!%p1790_p7), %s4966_s21, 1 }
 0x19e   : > { %1793 = sbr.rel (%p1790_p7) target bundleno = 1619 (0x653), region = 59  ;;  %p1829_p8 = scmp.lt.s32.totalorder (!%p1790_p7), %s3926_s9, 7 }
 0x19f   : > { %s4817_s10 = smul.u32 (!%p1790_p7), 6272, %s1796_s8  ;;  %s3927_s11 = sshll.u32 (!%p1790_p7), %s4966_s21, 5 }
 0x1a0   : > { %p1834_p9 = scmp.lt.s32.totalorder (!%p1790_p7), %s3927_s11, 127  ;;  %p3929_p10 = scmp.ne.s32.totalorder (!%p1790_p7), %s4966_s21, 0 }
 0x1a1   : > { %s6574_s18 = scalar_lea.vmem (!%p1790_p7), [#allocation3], %s4817_s10 }
 0x1a5   : > { %s7579_s9 = smov (!%p1829_p8, %s3926_s9), 7  ;;  %s7581_s11 = smov (!%p1834_p9, %s3927_s11), 127 }
 0x1a6   : > { %s1831_s14 = scalar_lea.vmem %s7571_s2, %s7579_s9  ;;  %s3928_s15 = sshll.u32 %s7581_s11, 3  ;;  %vm1843_vm0 = vcmask (!%p3929_p10), 74752   ;;  %v4916_v16 = vmov (!%p3929_p10), 0.0  }
 0x1a7   : > { %s6572_s20 = scalar_lea.vmem %s7572_s3, %s3928_s15  ;;  %1842 = sbr.rel (%p3929_p10) target bundleno = 430 (0x1ae), region = 67  ;;  %1844 = vst.msk [vmem:[#allocation2] sm:$0x3] (!%p3929_p10), %vm1843_vm0, %v4916_v16 }
 0x1ae PF: > { %v1853_v17 = vld [vmem:[%s6574_s18 + $0x8] sm:$0xff]  ;;  %v1855_v18 = vld [vmem:[%s6574_s18 + $0x18] sm:$0xff]  ;;  %v1852_v22 = vld [vmem:[%s6574_s18] sm:$0xff]  ;;  %vm2788_vm1 = vcmask 523264   ;;  %vm3820_vm2 = vcmask 74752   ;;  %p3932_p11 = scmp.ne.s32.totalorder %s4966_s21, 3 }
 0x1af   : > { %v2237_v19 = vld [vmem:[%s6574_s18 + $0xc08] sm:$0xff]  ;;  %v3974_v20 = vpack.c.bf16 %v1855_v18, %v1853_v17  ;;  %v2239_v21 = vld [vmem:[%s6574_s18 + $0xc18] sm:$0xff]  ;;  %v1854_v23 = vld [vmem:[%s6574_s18 + $0x10] sm:$0xff] }
 0x1b0   : > { %v4358_v24 = vpack.c.bf16 %v2239_v21, %v2237_v19  ;;  %v3976_v25 = vpack.c.bf16 %v1854_v23, %v1852_v22  ;;  %v2236_v26 = vld [vmem:[%s6574_s18 + $0xc00] sm:$0xff]  ;;  %v2238_v27 = vld [vmem:[%s6574_s18 + $0xc10] sm:$0xff]  ;;  %v1857_v28 = vld [vmem:[%s6574_s18 + $0x28] sm:$0xff] }
 0x1b1   : > { %3975 = vmatprep.subr.bf16.mxu1 %v3974_v20  ;;  %v4360_v29 = vpack.c.bf16 %v2238_v27, %v2236_v26  ;;  %v1859_v30 = vld [vmem:[%s6574_s18 + $0x38] sm:$0xff]  ;;  %v2241_v31 = vld [vmem:[%s6574_s18 + $0xc28] sm:$0xff]  ;;  %v1856_v35 = vld [vmem:[%s6574_s18 + $0x20] sm:$0xff] }
 0x1b2   : > { %v2243_v32 = vld [vmem:[%s6574_s18 + $0xc38] sm:$0xff]  ;;  %4359 = vmatprep.subr.bf16.mxu0 %v4358_v24  ;;  %3977 = vmatpush1.bf16.msra.mxu1 %v3976_v25  ;;  %v3978_v33 = vpack.c.bf16 %v1859_v30, %v1857_v28  ;;  %v1858_v36 = vld [vmem:[%s6574_s18 + $0x30] sm:$0xff]  ;;  %v2240_v37 = vld [vmem:[%s6574_s18 + $0xc20] sm:$0xff] }
 0x1b3   : > { %v4362_v34 = vpack.c.bf16 %v2243_v32, %v2241_v31  ;;  %4361 = vmatpush1.bf16.msra.mxu0 %v4360_v29  ;;  %v3980_v38 = vpack.c.bf16 %v1858_v36, %v1856_v35  ;;  %v2242_v39 = vld [vmem:[%s6574_s18 + $0xc30] sm:$0xff]  ;;  %v1861_v40 = vld [vmem:[%s6574_s18 + $0x48] sm:$0xff]  ;;  %v1863_v41 = vld [vmem:[%s6574_s18 + $0x58] sm:$0xff] }
 0x1b4   : > { %3979 = vmatprep.subr.bf16.mxu1 %v3978_v33  ;;  %v4364_v42 = vpack.c.bf16 %v2242_v39, %v2240_v37  ;;  %v3982_v43 = vpack.c.bf16 %v1863_v41, %v1861_v40  ;;  %v2245_v44 = vld [vmem:[%s6574_s18 + $0xc48] sm:$0xff]  ;;  %v2247_v45 = vld [vmem:[%s6574_s18 + $0xc58] sm:$0xff]  ;;  %v1860_v46 = vld [vmem:[%s6574_s18 + $0x40] sm:$0xff] }
 0x1b5   : > { %4363 = vmatprep.subr.bf16.mxu0 %v4362_v34  ;;  %v4366_v47 = vpack.c.bf16 %v2247_v45, %v2245_v44  ;;  %v1862_v48 = vld [vmem:[%s6574_s18 + $0x50] sm:$0xff]  ;;  %v2244_v49 = vld [vmem:[%s6574_s18 + $0xc40] sm:$0xff]  ;;  %v1865_v52 = vld [vmem:[%s6574_s18 + $0x68] sm:$0xff] }
 0x1b6   : > { %v2246_v50 = vld [vmem:[%s6574_s18 + $0xc50] sm:$0xff]  ;;  %3981 = vmatpush1.bf16.msra.mxu1 %v3980_v38  ;;  %v3984_v51 = vpack.c.bf16 %v1862_v48, %v1860_v46  ;;  %v1867_v53 = vld [vmem:[%s6574_s18 + $0x78] sm:$0xff]  ;;  %v2249_v54 = vld [vmem:[%s6574_s18 + $0xc68] sm:$0xff] }
 0x1b7   : > { %4365 = vmatpush1.bf16.msra.mxu0 %v4364_v42  ;;  %3983 = vmatprep.subr.bf16.mxu1 %v3982_v43  ;;  %v4368_v55 = vpack.c.bf16 %v2246_v50, %v2244_v49  ;;  %v3986_v56 = vpack.c.bf16 %v1867_v53, %v1865_v52  ;;  %v2251_v57 = vld [vmem:[%s6574_s18 + $0xc78] sm:$0xff]  ;;  %v1864_v58 = vld [vmem:[%s6574_s18 + $0x60] sm:$0xff]  ;;  %v1866_v59 = vld [vmem:[%s6574_s18 + $0x70] sm:$0xff] }
 0x1b8   : > { %4367 = vmatprep.subr.bf16.mxu0 %v4366_v47  ;;  %v4370_v60 = vpack.c.bf16 %v2251_v57, %v2249_v54  ;;  %v2248_v61 = vld [vmem:[%s6574_s18 + $0xc60] sm:$0xff]  ;;  %v2250_v62 = vld [vmem:[%s6574_s18 + $0xc70] sm:$0xff]  ;;  %v1869_v63 = vld [vmem:[%s6574_s18 + $0x88] sm:$0xff]  ;;  %v3988_v3 = vpack.c.bf16 %v1866_v59, %v1864_v58 }
 0x1b9   : > { %v1871_v0 = vld [vmem:[%s6574_s18 + $0x98] sm:$0xff]  ;;  %v2253_v1 = vld [vmem:[%s6574_s18 + $0xc88] sm:$0xff]  ;;  %v4372_v4 = vpack.c.bf16 %v2250_v62, %v2248_v61  ;;  %v1868_v6 = vld [vmem:[%s6574_s18 + $0x80] sm:$0xff] }
 0x1ba   : > { %v2255_v2 = vld [vmem:[%s6574_s18 + $0xc98] sm:$0xff]  ;;  %3985 = vmatpush1.bf16.msra.mxu1 %v3984_v51  ;;  %v3990_v5 = vpack.c.bf16 %v1871_v0, %v1869_v63  ;;  %v1870_v7 = vld [vmem:[%s6574_s18 + $0x90] sm:$0xff]  ;;  %v2252_v8 = vld [vmem:[%s6574_s18 + $0xc80] sm:$0xff]  ;;  %v2638_v63 = vlaneseq  ;;  %v4917_v0 = vmov 1983009808  }
 0x1bb   : > { %4369 = vmatpush1.bf16.msra.mxu0 %v4368_v55  ;;  %3987 = vmatprep.subr.bf16.mxu1 %v3986_v56  ;;  %v4374_v9 = vpack.c.bf16 %v2255_v2, %v2253_v1  ;;  %v2254_v10 = vld [vmem:[%s6574_s18 + $0xc90] sm:$0xff]  ;;  %v1873_v11 = vld [vmem:[%s6574_s18 + $0xa8] sm:$0xff]  ;;  %v1875_v12 = vld [vmem:[%s6574_s18 + $0xb8] sm:$0xff]  ;;  %v3992_v15 = vpack.c.bf16 %v1870_v7, %v1868_v6  ;;  %v2657_v1 = vunpack.c.l.s4 %v4917_v0 }
 0x1bc   : > { %4371 = vmatprep.subr.bf16.mxu0 %v4370_v60  ;;  %v2257_v13 = vld [vmem:[%s6574_s18 + $0xca8] sm:$0xff]  ;;  %v2259_v14 = vld [vmem:[%s6574_s18 + $0xcb8] sm:$0xff]  ;;  %v4376_v16 = vpack.c.bf16 %v2254_v10, %v2252_v8  ;;  %v3994_v17 = vpack.c.bf16 %v1875_v12, %v1873_v11  ;;  %v1872_v18 = vld [vmem:[%s6574_s18 + $0xa0] sm:$0xff] }
 0x1bd   : > { %v1874_v19 = vld [vmem:[%s6574_s18 + $0xb0] sm:$0xff]  ;;  %v2256_v20 = vld [vmem:[%s6574_s18 + $0xca0] sm:$0xff]  ;;  %v4378_v21 = vpack.c.bf16 %v2259_v14, %v2257_v13  ;;  %v1877_v23 = vld [vmem:[%s6574_s18 + $0xc8] sm:$0xff]  ;;  %v6661_v14 = vshrl.u32 %v2638_v63, 7 }
 0x1be   : > { %3989 = vmatpush1.bf16.msra.mxu1 %v3988_v3  ;;  %v2258_v22 = vld [vmem:[%s6574_s18 + $0xcb0] sm:$0xff]  ;;  %v1879_v24 = vld [vmem:[%s6574_s18 + $0xd8] sm:$0xff]  ;;  %v2261_v25 = vld [vmem:[%s6574_s18 + $0xcc8] sm:$0xff]  ;;  %v3996_v27 = vpack.c.bf16 %v1874_v19, %v1872_v18 }
 0x1bf   : > { %4373 = vmatpush1.bf16.msra.mxu0 %v4372_v4  ;;  %3991 = vmatprep.subr.bf16.mxu1 %v3990_v5  ;;  %v2263_v26 = vld [vmem:[%s6574_s18 + $0xcd8] sm:$0xff]  ;;  %v4380_v28 = vpack.c.bf16 %v2258_v22, %v2256_v20  ;;  %v3998_v29 = vpack.c.bf16 %v1879_v24, %v1877_v23  ;;  %v1876_v30 = vld [vmem:[%s6574_s18 + $0xc0] sm:$0xff]  ;;  %v1878_v31 = vld [vmem:[%s6574_s18 + $0xd0] sm:$0xff] }
 0x1c0   : > { %4375 = vmatprep.subr.bf16.mxu0 %v4374_v9  ;;  %v2260_v32 = vld [vmem:[%s6574_s18 + $0xcc0] sm:$0xff]  ;;  %v4382_v33 = vpack.c.bf16 %v2263_v26, %v2261_v25  ;;  %v2262_v34 = vld [vmem:[%s6574_s18 + $0xcd0] sm:$0xff]  ;;  %v1881_v35 = vld [vmem:[%s6574_s18 + $0xe8] sm:$0xff]  ;;  %v4000_v39 = vpack.c.bf16 %v1878_v31, %v1876_v30 }
 0x1c1   : > { %v1883_v36 = vld [vmem:[%s6574_s18 + $0xf8] sm:$0xff]  ;;  %v2265_v37 = vld [vmem:[%s6574_s18 + $0xce8] sm:$0xff]  ;;  %v4384_v40 = vpack.c.bf16 %v2262_v34, %v2260_v32  ;;  %v1880_v42 = vld [vmem:[%s6574_s18 + $0xe0] sm:$0xff] }
 0x1c2   : > { %3993 = vmatpush1.bf16.msra.mxu1 %v3992_v15  ;;  %v2267_v38 = vld [vmem:[%s6574_s18 + $0xcf8] sm:$0xff]  ;;  %v4002_v41 = vpack.c.bf16 %v1883_v36, %v1881_v35  ;;  %v1882_v43 = vld [vmem:[%s6574_s18 + $0xf0] sm:$0xff]  ;;  %v2264_v44 = vld [vmem:[%s6574_s18 + $0xce0] sm:$0xff]  ;;  %v2658_v15 = vunpack.c.0.s8 %v2657_v1 }
 0x1c3   : > { %4377 = vmatpush1.bf16.msra.mxu0 %v4376_v16  ;;  %3995 = vmatprep.subr.bf16.mxu1 %v3994_v17  ;;  %v4386_v45 = vpack.c.bf16 %v2267_v38, %v2265_v37  ;;  %v2266_v46 = vld [vmem:[%s6574_s18 + $0xcf0] sm:$0xff]  ;;  %v1885_v47 = vld [vmem:[%s6574_s18 + $0x108] sm:$0xff]  ;;  %v1887_v48 = vld [vmem:[%s6574_s18 + $0x118] sm:$0xff]  ;;  %v4004_v51 = vpack.c.bf16 %v1882_v43, %v1880_v42 }
 0x1c4   : > { %4379 = vmatprep.subr.bf16.mxu0 %v4378_v21  ;;  %v2269_v49 = vld [vmem:[%s6574_s18 + $0xd08] sm:$0xff]  ;;  %v2271_v50 = vld [vmem:[%s6574_s18 + $0xd18] sm:$0xff]  ;;  %v4388_v52 = vpack.c.bf16 %v2266_v46, %v2264_v44  ;;  %v4006_v53 = vpack.c.bf16 %v1887_v48, %v1885_v47  ;;  %v1884_v54 = vld [vmem:[%s6574_s18 + $0x100] sm:$0xff] }
 0x1c5   : > { %v1886_v55 = vld [vmem:[%s6574_s18 + $0x110] sm:$0xff]  ;;  %v2268_v56 = vld [vmem:[%s6574_s18 + $0xd00] sm:$0xff]  ;;  %v4390_v57 = vpack.c.bf16 %v2271_v50, %v2269_v49  ;;  %v1889_v59 = vld [vmem:[%s6574_s18 + $0x128] sm:$0xff] }
 0x1c6   : > { %3997 = vmatpush1.bf16.msra.mxu1 %v3996_v27  ;;  %v2270_v58 = vld [vmem:[%s6574_s18 + $0xd10] sm:$0xff]  ;;  %v1891_v60 = vld [vmem:[%s6574_s18 + $0x138] sm:$0xff]  ;;  %v2273_v61 = vld [vmem:[%s6574_s18 + $0xd28] sm:$0xff]  ;;  %v4008_v2 = vpack.c.bf16 %v1886_v55, %v1884_v54 }
 0x1c7   : > { %4381 = vmatpush1.bf16.msra.mxu0 %v4380_v28  ;;  %3999 = vmatprep.subr.bf16.mxu1 %v3998_v29  ;;  %v2275_v62 = vld [vmem:[%s6574_s18 + $0xd38] sm:$0xff]  ;;  %v4392_v3 = vpack.c.bf16 %v2270_v58, %v2268_v56  ;;  %v4010_v4 = vpack.c.bf16 %v1891_v60, %v1889_v59  ;;  %v1888_v5 = vld [vmem:[%s6574_s18 + $0x120] sm:$0xff]  ;;  %v1890_v6 = vld [vmem:[%s6574_s18 + $0x130] sm:$0xff]  ;;  %v6672_v28 = vsub.s32 %v2658_v15, %v6661_v14 }
 0x1c8   : > { %4383 = vmatprep.subr.bf16.mxu0 %v4382_v33  ;;  %v2272_v7 = vld [vmem:[%s6574_s18 + $0xd20] sm:$0xff]  ;;  %v4394_v8 = vpack.c.bf16 %v2275_v62, %v2273_v61  ;;  %v2274_v9 = vld [vmem:[%s6574_s18 + $0xd30] sm:$0xff]  ;;  %v1893_v10 = vld [vmem:[%s6574_s18 + $0x148] sm:$0xff]  ;;  %v4012_v16 = vpack.c.bf16 %v1890_v6, %v1888_v5 }
 0x1c9   : > { %v1895_v11 = vld [vmem:[%s6574_s18 + $0x158] sm:$0xff]  ;;  %v2277_v12 = vld [vmem:[%s6574_s18 + $0xd48] sm:$0xff]  ;;  %v4396_v17 = vpack.c.bf16 %v2274_v9, %v2272_v7  ;;  %v1892_v19 = vld [vmem:[%s6574_s18 + $0x140] sm:$0xff] }
 0x1ca   : > { %4001 = vmatpush1.bf16.msra.mxu1 %v4000_v39  ;;  %v2279_v13 = vld [vmem:[%s6574_s18 + $0xd58] sm:$0xff]  ;;  %v4014_v18 = vpack.c.bf16 %v1895_v11, %v1893_v10  ;;  %v1894_v20 = vld [vmem:[%s6574_s18 + $0x150] sm:$0xff]  ;;  %v2276_v21 = vld [vmem:[%s6574_s18 + $0xd40] sm:$0xff] }
 0x1cb   : > { %4385 = vmatpush1.bf16.msra.mxu0 %v4384_v40  ;;  %4003 = vmatprep.subr.bf16.mxu1 %v4002_v41  ;;  %v4398_v22 = vpack.c.bf16 %v2279_v13, %v2277_v12  ;;  %v2278_v23 = vld [vmem:[%s6574_s18 + $0xd50] sm:$0xff]  ;;  %v1897_v24 = vld [vmem:[%s6574_s18 + $0x168] sm:$0xff]  ;;  %v1899_v25 = vld [vmem:[%s6574_s18 + $0x178] sm:$0xff]  ;;  %v4016_v29 = vpack.c.bf16 %v1894_v20, %v1892_v19 }
 0x1cc   : > { %4387 = vmatprep.subr.bf16.mxu0 %v4386_v45  ;;  %v2281_v26 = vld [vmem:[%s6574_s18 + $0xd68] sm:$0xff]  ;;  %v2283_v27 = vld [vmem:[%s6574_s18 + $0xd78] sm:$0xff]  ;;  %v1896_v30 = vld [vmem:[%s6574_s18 + $0x160] sm:$0xff]  ;;  %v4400_v31 = vpack.c.bf16 %v2278_v23, %v2276_v21  ;;  %v4018_v32 = vpack.c.bf16 %v1899_v25, %v1897_v24 }
 0x1cd   : > { %v1898_v33 = vld [vmem:[%s6574_s18 + $0x170] sm:$0xff]  ;;  %v2280_v34 = vld [vmem:[%s6574_s18 + $0xd60] sm:$0xff]  ;;  %v4402_v36 = vpack.c.bf16 %v2283_v27, %v2281_v26  ;;  %v1901_v37 = vld [vmem:[%s6574_s18 + $0x188] sm:$0xff] }
 0x1ce   : > { %4005 = vmatpush1.bf16.msra.mxu1 %v4004_v51  ;;  %v2282_v35 = vld [vmem:[%s6574_s18 + $0xd70] sm:$0xff]  ;;  %v1903_v38 = vld [vmem:[%s6574_s18 + $0x198] sm:$0xff]  ;;  %v2285_v40 = vld [vmem:[%s6574_s18 + $0xd88] sm:$0xff]  ;;  %v4020_v44 = vpack.c.bf16 %v1898_v33, %v1896_v30 }
 0x1cf   : > { %4389 = vmatpush1.bf16.msra.mxu0 %v4388_v52  ;;  %4007 = vmatprep.subr.bf16.mxu1 %v4006_v53  ;;  %v6683_v39 = vld [vmem:[%s7569_s0] sm:$0xff]  ;;  %v6694_v43 = vld [vmem:[%s7569_s0 + $0x18] sm:$0xff]  ;;  %v4404_v46 = vpack.c.bf16 %v2282_v35, %v2280_v34  ;;  %v4022_v47 = vpack.c.bf16 %v1903_v38, %v1901_v37  ;;  %v1905_v54 = vld [vmem:[%s6574_s18 + $0x1a8] sm:$0xff] }
 0x1d0   : > { %4391 = vmatprep.subr.bf16.mxu0 %v4390_v57  ;;  %v2287_v41 = vld [vmem:[%s6574_s18 + $0xd98] sm:$0xff]  ;;  %v6689_v42 = vrot.slane %v6683_v39, %v6672_v28  ;;  %v6698_v45 = vrot.slane %v6694_v43, %v6672_v28  ;;  %v1900_v48 = vld [vmem:[%s6574_s18 + $0x180] sm:$0xff]  ;;  %v1902_v49 = vld [vmem:[%s6574_s18 + $0x190] sm:$0xff] }
 0x1d1   : > { %v2284_v50 = vld [vmem:[%s6574_s18 + $0xd80] sm:$0xff]  ;;  %v4406_v52 = vpack.c.bf16 %v2287_v41, %v2285_v40  ;;  %v2286_v53 = vld [vmem:[%s6574_s18 + $0xd90] sm:$0xff]  ;;  %v1907_v55 = vld [vmem:[%s6574_s18 + $0x1b8] sm:$0xff]  ;;  %v4024_v59 = vpack.c.bf16 %v1902_v49, %v1900_v48 }
 0x1d2   : > { %4009 = vmatpush1.bf16.msra.mxu1 %v4008_v2  ;;  %v2670_v51 = vcombine.high %v6689_v42, %v6689_v42  ;;  %v2721_v56 = vcombine.high %v6698_v45, %v6698_v45  ;;  %v2289_v57 = vld [vmem:[%s6574_s18 + $0xda8] sm:$0xff]  ;;  %v2291_v58 = vld [vmem:[%s6574_s18 + $0xdb8] sm:$0xff]  ;;  %v4408_v60 = vpack.c.bf16 %v2286_v53, %v2284_v50  ;;  %v4026_v61 = vpack.c.bf16 %v1907_v55, %v1905_v54  ;;  %v1904_v62 = vld [vmem:[%s6574_s18 + $0x1a0] sm:$0xff] }
 0x1d3   : > { %4393 = vmatpush1.bf16.msra.mxu0 %v4392_v3  ;;  %4011 = vmatprep.subr.bf16.mxu1 %v4010_v4  ;;  %v1906_v63 = vld [vmem:[%s6574_s18 + $0x1b0] sm:$0xff]  ;;  %v2288_v0 = vld [vmem:[%s6574_s18 + $0xda0] sm:$0xff]  ;;  %v4410_v1 = vpack.c.bf16 %v2291_v58, %v2289_v57  ;;  %v1909_v3 = vld [vmem:[%s6574_s18 + $0x1c8] sm:$0xff] }
 0x1d4   : > { %4395 = vmatprep.subr.bf16.mxu0 %v4394_v8  ;;  %2855 = vmatprep.mubr.f32.mxu1 %v2670_v51  ;;  %v2290_v2 = vld [vmem:[%s6574_s18 + $0xdb0] sm:$0xff]  ;;  %v1911_v4 = vld [vmem:[%s6574_s18 + $0x1d8] sm:$0xff]  ;;  %v2293_v5 = vld [vmem:[%s6574_s18 + $0xdc8] sm:$0xff]  ;;  %v4028_v7 = vpack.c.bf16 %v1906_v63, %v1904_v62 }
 0x1d5   : > { %3281 = vmatprep.mubr.f32.mxu0 %v2721_v56  ;;  %v2295_v6 = vld [vmem:[%s6574_s18 + $0xdd8] sm:$0xff]  ;;  %v4412_v8 = vpack.c.bf16 %v2290_v2, %v2288_v0  ;;  %v4030_v9 = vpack.c.bf16 %v1911_v4, %v1909_v3  ;;  %v1908_v10 = vld [vmem:[%s6574_s18 + $0x1c0] sm:$0xff]  ;;  %v1910_v11 = vld [vmem:[%s6574_s18 + $0x1d0] sm:$0xff] }
 0x1d6   : > { %4013 = vmatpush1.bf16.msra.mxu1 %v4012_v16  ;;  %v2292_v12 = vld [vmem:[%s6574_s18 + $0xdc0] sm:$0xff]  ;;  %v4414_v13 = vpack.c.bf16 %v2295_v6, %v2293_v5  ;;  %v2294_v15 = vld [vmem:[%s6574_s18 + $0xdd0] sm:$0xff]  ;;  %v1913_v16 = vld [vmem:[%s6574_s18 + $0x1e8] sm:$0xff]  ;;  %v4032_v20 = vpack.c.bf16 %v1910_v11, %v1908_v10 }
 0x1d7   : > { %4397 = vmatpush1.bf16.msra.mxu0 %v4396_v17  ;;  %4015 = vmatprep.subr.bf16.mxu1 %v4014_v18  ;;  %v1915_v17 = vld [vmem:[%s6574_s18 + $0x1f8] sm:$0xff]  ;;  %v2297_v18 = vld [vmem:[%s6574_s18 + $0xde8] sm:$0xff]  ;;  %v4416_v21 = vpack.c.bf16 %v2294_v15, %v2292_v12  ;;  %v1912_v23 = vld [vmem:[%s6574_s18 + $0x1e0] sm:$0xff] }
 0x1d8   : > { %4399 = vmatprep.subr.bf16.mxu0 %v4398_v22  ;;  %v2299_v19 = vld [vmem:[%s6574_s18 + $0xdf8] sm:$0xff]  ;;  %v4034_v22 = vpack.c.bf16 %v1915_v17, %v1913_v16  ;;  %v1914_v24 = vld [vmem:[%s6574_s18 + $0x1f0] sm:$0xff]  ;;  %v2296_v25 = vld [vmem:[%s6574_s18 + $0xde0] sm:$0xff] }
 0x1d9   : > { %v4418_v26 = vpack.c.bf16 %v2299_v19, %v2297_v18  ;;  %v2298_v27 = vld [vmem:[%s6574_s18 + $0xdf0] sm:$0xff]  ;;  %v1917_v30 = vld [vmem:[%s6574_s18 + $0x208] sm:$0xff]  ;;  %v2303_v34 = vld [vmem:[%s6574_s18 + $0xe18] sm:$0xff]  ;;  %v4036_v35 = vpack.c.bf16 %v1914_v24, %v1912_v23 }
 0x1da   : > { %4017 = vmatpush1.bf16.msra.mxu1 %v4016_v29  ;;  %v2655_v29 = vcombine.high %v6683_v39, %v6683_v39  ;;  %v2301_v33 = vld [vmem:[%s6574_s18 + $0xe08] sm:$0xff]  ;;  %v1916_v38 = vld [vmem:[%s6574_s18 + $0x200] sm:$0xff]  ;;  %v1918_v39 = vld [vmem:[%s6574_s18 + $0x210] sm:$0xff] }
 0x1db   : > { %4401 = vmatpush1.bf16.msra.mxu0 %v4400_v31  ;;  %4019 = vmatprep.subr.bf16.mxu1 %v4018_v32  ;;  %v1919_v31 = vld [vmem:[%s6574_s18 + $0x218] sm:$0xff]  ;;  %v2706_v32 = vcombine.high %v6694_v43, %v6694_v43  ;;  %v2300_v40 = vld [vmem:[%s6574_s18 + $0xe00] sm:$0xff]  ;;  %v4422_v41 = vpack.c.bf16 %v2303_v34, %v2301_v33  ;;  %v2302_v43 = vld [vmem:[%s6574_s18 + $0xe10] sm:$0xff]  ;;  %v4040_v51 = vpack.c.bf16 %v1918_v39, %v1916_v38 }
 0x1dc   : > { %4403 = vmatprep.subr.bf16.mxu0 %v4402_v36  ;;  %v4420_v36 = vpack.c.bf16 %v2298_v27, %v2296_v25  ;;  %v4038_v37 = vpack.c.bf16 %v1919_v31, %v1917_v30  ;;  %v2305_v48 = vld [vmem:[%s6574_s18 + $0xe28] sm:$0xff]  ;;  %v2307_v49 = vld [vmem:[%s6574_s18 + $0xe38] sm:$0xff]  ;;  %v1920_v54 = vld [vmem:[%s6574_s18 + $0x220] sm:$0xff] }
 0x1dd   : > { %v6752_v50 = vrot.slane %v2706_v32, %v6672_v28  ;;  %v1922_v55 = vld [vmem:[%s6574_s18 + $0x230] sm:$0xff]  ;;  %v2304_v56 = vld [vmem:[%s6574_s18 + $0xe20] sm:$0xff]  ;;  %v4426_v57 = vpack.c.bf16 %v2307_v49, %v2305_v48  ;;  %v2309_v62 = vld [vmem:[%s6574_s18 + $0xe48] sm:$0xff] }
 0x1de   : > { %4021 = vmatpush1.bf16.msra.mxu1 %v4020_v44  ;;  %v1921_v44 = vld [vmem:[%s6574_s18 + $0x228] sm:$0xff]  ;;  %v2306_v58 = vld [vmem:[%s6574_s18 + $0xe30] sm:$0xff]  ;;  %v2311_v63 = vld [vmem:[%s6574_s18 + $0xe58] sm:$0xff] }
 0x1df   : > { %4405 = vmatpush1.bf16.msra.mxu0 %v4404_v46  ;;  %4023 = vmatprep.subr.bf16.mxu1 %v4022_v47  ;;  %v1923_v46 = vld [vmem:[%s6574_s18 + $0x238] sm:$0xff]  ;;  %v6747_v47 = vrot.slane %v2655_v29, %v6672_v28  ;;  %v2722_v0 = vcombine.high %v6752_v50, %v6752_v50  ;;  %v4428_v2 = vpack.c.bf16 %v2306_v58, %v2304_v56  ;;  %v1924_v4 = vld [vmem:[%s6574_s18 + $0x240] sm:$0xff]  ;;  %v1930_v16 = vld [vmem:[%s6574_s18 + $0x270] sm:$0xff] }
 0x1e0   : > { %4407 = vmatprep.subr.bf16.mxu0 %v4406_v52  ;;  %v4424_v52 = vpack.c.bf16 %v2302_v43, %v2300_v40  ;;  %v4042_v53 = vpack.c.bf16 %v1923_v46, %v1921_v44  ;;  %v2308_v5 = vld [vmem:[%s6574_s18 + $0xe40] sm:$0xff]  ;;  %v4430_v6 = vpack.c.bf16 %v2311_v63, %v2309_v62  ;;  %v2315_v10 = vld [vmem:[%s6574_s18 + $0xe78] sm:$0xff]  ;;  %v2314_v19 = vld [vmem:[%s6574_s18 + $0xe70] sm:$0xff] }
 0x1e1   : > { %v1928_v15 = vld [vmem:[%s6574_s18 + $0x260] sm:$0xff]  ;;  %v2319_v23 = vld [vmem:[%s6574_s18 + $0xe98] sm:$0xff]  ;;  %v1934_v29 = vld [vmem:[%s6574_s18 + $0x290] sm:$0xff] }
 0x1e2   : > { %4025 = vmatpush1.bf16.msra.mxu1 %v4024_v59  ;;  %v1925_v59 = vld [vmem:[%s6574_s18 + $0x248] sm:$0xff]  ;;  %v2312_v17 = vld [vmem:[%s6574_s18 + $0xe60] sm:$0xff]  ;;  %v4052_v24 = vpack.c.bf16 %v1930_v16, %v1928_v15  ;;  %v2318_v32 = vld [vmem:[%s6574_s18 + $0xe90] sm:$0xff] }
 0x1e3   : > { %4409 = vmatpush1.bf16.msra.mxu0 %v4408_v60  ;;  %4027 = vmatprep.subr.bf16.mxu1 %v4026_v61  ;;  %v1927_v60 = vld [vmem:[%s6574_s18 + $0x258] sm:$0xff]  ;;  %v2671_v61 = vcombine.high %v6747_v47, %v6747_v47  ;;  %v4436_v25 = vpack.c.bf16 %v2314_v19, %v2312_v17  ;;  %v1932_v27 = vld [vmem:[%s6574_s18 + $0x280] sm:$0xff]  ;;  %v1937_v33 = vld [vmem:[%s6574_s18 + $0x2a8] sm:$0xff] }
 0x1e4   : > { %4411 = vmatprep.subr.bf16.mxu0 %v4410_v1  ;;  %v4044_v1 = vpack.c.bf16 %v1922_v55, %v1920_v54  ;;  %v4046_v3 = vpack.c.bf16 %v1927_v60, %v1925_v59  ;;  %v2316_v30 = vld [vmem:[%s6574_s18 + $0xe80] sm:$0xff]  ;;  %v1939_v34 = vld [vmem:[%s6574_s18 + $0x2b8] sm:$0xff]  ;;  %v2322_v46 = vld [vmem:[%s6574_s18 + $0xeb0] sm:$0xff] }
 0x1e5   : > { %v4440_v38 = vpack.c.bf16 %v2318_v32, %v2316_v30  ;;  %v4058_v39 = vpack.c.bf16 %v1939_v34, %v1937_v33  ;;  %v1936_v40 = vld [vmem:[%s6574_s18 + $0x2a0] sm:$0xff]  ;;  %v1941_v48 = vld [vmem:[%s6574_s18 + $0x2c8] sm:$0xff]  ;;  %v1943_v49 = vld [vmem:[%s6574_s18 + $0x2d8] sm:$0xff] }
 0x1e6   : > { %4029 = vmatpush1.bf16.msra.mxu1 %v4028_v7  ;;  %v2310_v7 = vld [vmem:[%s6574_s18 + $0xe50] sm:$0xff]  ;;  %v2320_v43 = vld [vmem:[%s6574_s18 + $0xea0] sm:$0xff]  ;;  %v4062_v55 = vpack.c.bf16 %v1943_v49, %v1941_v48  ;;  %v1947_v62 = vld [vmem:[%s6574_s18 + $0x2f8] sm:$0xff] }
 0x1e7   : > { %4413 = vmatpush1.bf16.msra.mxu0 %v4412_v8  ;;  %4031 = vmatprep.subr.bf16.mxu1 %v4030_v9  ;;  %v1929_v8 = vld [vmem:[%s6574_s18 + $0x268] sm:$0xff]  ;;  %v1931_v9 = vld [vmem:[%s6574_s18 + $0x278] sm:$0xff]  ;;  %v4432_v12 = vpack.c.bf16 %v2310_v7, %v2308_v5  ;;  %v4444_v54 = vpack.c.bf16 %v2322_v46, %v2320_v43  ;;  %v1940_v56 = vld [vmem:[%s6574_s18 + $0x2c0] sm:$0xff] }
 0x1e8   : > { %4415 = vmatprep.subr.bf16.mxu0 %v4414_v13  ;;  %v4050_v13 = vpack.c.bf16 %v1931_v9, %v1929_v8  ;;  %v2324_v58 = vld [vmem:[%s6574_s18 + $0xec0] sm:$0xff]  ;;  %v2326_v60 = vld [vmem:[%s6574_s18 + $0xed0] sm:$0xff]  ;;  %v2329_v63 = vld [vmem:[%s6574_s18 + $0xee8] sm:$0xff] }
 0x1e9   : > { %v2328_v5 = vld [vmem:[%s6574_s18 + $0xee0] sm:$0xff]  ;;  %v2330_v7 = vld [vmem:[%s6574_s18 + $0xef0] sm:$0xff]  ;;  %v1949_v8 = vld [vmem:[%s6574_s18 + $0x308] sm:$0xff] }
 0x1ea   : > { %4033 = vmatpush1.bf16.msra.mxu1 %v4032_v20  ;;  %v1933_v20 = vld [vmem:[%s6574_s18 + $0x288] sm:$0xff]  ;;  %v1951_v9 = vld [vmem:[%s6574_s18 + $0x318] sm:$0xff]  ;;  %v1948_v15 = vld [vmem:[%s6574_s18 + $0x300] sm:$0xff] }
 0x1eb   : > { %4417 = vmatpush1.bf16.msra.mxu0 %v4416_v21  ;;  %4035 = vmatprep.subr.bf16.mxu1 %v4034_v22  ;;  %v1935_v21 = vld [vmem:[%s6574_s18 + $0x298] sm:$0xff]  ;;  %v2317_v22 = vld [vmem:[%s6574_s18 + $0xe88] sm:$0xff]  ;;  %v1950_v16 = vld [vmem:[%s6574_s18 + $0x310] sm:$0xff] }
 0x1ec   : > { %4419 = vmatprep.subr.bf16.mxu0 %v4418_v26  ;;  %v4054_v26 = vpack.c.bf16 %v1935_v21, %v1933_v20  ;;  %v4438_v31 = vpack.c.bf16 %v2319_v23, %v2317_v22  ;;  %v2332_v17 = vld [vmem:[%s6574_s18 + $0xf00] sm:$0xff]  ;;  %v2334_v19 = vld [vmem:[%s6574_s18 + $0xf10] sm:$0xff]  ;;  %v1953_v20 = vld [vmem:[%s6574_s18 + $0x328] sm:$0xff] }
 0x1ed   : > { %v1955_v21 = vld [vmem:[%s6574_s18 + $0x338] sm:$0xff]  ;;  %v2337_v22 = vld [vmem:[%s6574_s18 + $0xf28] sm:$0xff]  ;;  %v2336_v30 = vld [vmem:[%s6574_s18 + $0xf20] sm:$0xff] }
 0x1ee   : > { %4037 = vmatpush1.bf16.msra.mxu1 %v4036_v35  ;;  %v2321_v35 = vld [vmem:[%s6574_s18 + $0xea8] sm:$0xff]  ;;  %v2339_v23 = vld [vmem:[%s6574_s18 + $0xf38] sm:$0xff]  ;;  %v2338_v32 = vld [vmem:[%s6574_s18 + $0xf30] sm:$0xff] }
 0x1ef   : > { %4421 = vmatpush1.bf16.msra.mxu0 %v4420_v36  ;;  %4039 = vmatprep.subr.bf16.mxu1 %v4038_v37  ;;  %v2323_v36 = vld [vmem:[%s6574_s18 + $0xeb8] sm:$0xff]  ;;  %v4056_v37 = vpack.c.bf16 %v1934_v29, %v1932_v27  ;;  %v1952_v27 = vld [vmem:[%s6574_s18 + $0x320] sm:$0xff]  ;;  %v1954_v29 = vld [vmem:[%s6574_s18 + $0x330] sm:$0xff] }
 0x1f0   : > { %4423 = vmatprep.subr.bf16.mxu0 %v4422_v41  ;;  %v1938_v41 = vld [vmem:[%s6574_s18 + $0x2b0] sm:$0xff]  ;;  %v4442_v44 = vpack.c.bf16 %v2323_v36, %v2321_v35  ;;  %v1957_v33 = vld [vmem:[%s6574_s18 + $0x348] sm:$0xff]  ;;  %v1959_v34 = vld [vmem:[%s6574_s18 + $0x358] sm:$0xff] }
 0x1f1   : > { %2856 = vmatmul.mubr.f32.vlgmr.msra.gmra.mrb[0].mxu1 %v6689_v42  ;;  %v1926_v42 = vld [vmem:[%s6574_s18 + $0x250] sm:$0xff]  ;;  %v2341_v35 = vld [vmem:[%s6574_s18 + $0xf48] sm:$0xff]  ;;  %v2343_v36 = vld [vmem:[%s6574_s18 + $0xf58] sm:$0xff] }
 0x1f2   : > { %4041 = vmatpush1.bf16.msra.mxu1 %v4040_v51  ;;  %3282 = vmatmul.mubr.f32.vlgmr.msra.gmra.mrb[0].mxu0 %v6698_v45  ;;  %v2313_v45 = vld [vmem:[%s6574_s18 + $0xe68] sm:$0xff]  ;;  %v4048_v11 = vpack.c.bf16 %v1926_v42, %v1924_v4  ;;  %v1944_v4 = vld [vmem:[%s6574_s18 + $0x2e0] sm:$0xff]  ;;  %v1946_v42 = vld [vmem:[%s6574_s18 + $0x2f0] sm:$0xff] }
 0x1f3   : > { %4425 = vmatpush1.bf16.msra.mxu0 %v4424_v52  ;;  %4043 = vmatprep.subr.bf16.mxu1 %v4042_v53  ;;  %v4434_v18 = vpack.c.bf16 %v2315_v10, %v2313_v45  ;;  %v2325_v51 = vld [vmem:[%s6574_s18 + $0xec8] sm:$0xff]  ;;  %v2327_v52 = vld [vmem:[%s6574_s18 + $0xed8] sm:$0xff]  ;;  %v4060_v53 = vpack.c.bf16 %v1938_v41, %v1936_v40  ;;  %v1956_v40 = vld [vmem:[%s6574_s18 + $0x340] sm:$0xff] }
 0x1f4   : > { %4427 = vmatprep.subr.bf16.mxu0 %v4426_v57  ;;  %2926 = vmatprep.mubr.f32.mxu1 %v2671_v61  ;;  %v1942_v57 = vld [vmem:[%s6574_s18 + $0x2d0] sm:$0xff]  ;;  %v4446_v59 = vpack.c.bf16 %v2327_v52, %v2325_v51  ;;  %v1945_v61 = vld [vmem:[%s6574_s18 + $0x2e8] sm:$0xff]  ;;  %v2335_v10 = vld [vmem:[%s6574_s18 + $0xf18] sm:$0xff] }
 0x1f5   : > { %3352 = vmatprep.mubr.f32.mxu0 %v2722_v0  ;;  %v2331_v0 = vld [vmem:[%s6574_s18 + $0xef8] sm:$0xff]  ;;  %v2333_v45 = vld [vmem:[%s6574_s18 + $0xf08] sm:$0xff]  ;;  %v1958_v41 = vld [vmem:[%s6574_s18 + $0x350] sm:$0xff] }
 0x1f6   : > { %4045 = vmatpush1.bf16.msra.mxu1 %v4044_v1  ;;  %v4064_v1 = vpack.c.bf16 %v1942_v57, %v1940_v56  ;;  %v2340_v43 = vld [vmem:[%s6574_s18 + $0xf40] sm:$0xff]  ;;  %v2342_v46 = vld [vmem:[%s6574_s18 + $0xf50] sm:$0xff]  ;;  %v1961_v48 = vld [vmem:[%s6574_s18 + $0x368] sm:$0xff] }
 0x1f7   : > { %4429 = vmatpush1.bf16.msra.mxu0 %v4428_v2  ;;  %4047 = vmatprep.subr.bf16.mxu1 %v4046_v3  ;;  %v4448_v2 = vpack.c.bf16 %v2326_v60, %v2324_v58  ;;  %v4066_v3 = vpack.c.bf16 %v1947_v62, %v1945_v61  ;;  %v1963_v49 = vld [vmem:[%s6574_s18 + $0x378] sm:$0xff]  ;;  %v2345_v51 = vld [vmem:[%s6574_s18 + $0xf68] sm:$0xff]  ;;  %v1960_v56 = vld [vmem:[%s6574_s18 + $0x360] sm:$0xff] }
 0x1f8   : > { %4431 = vmatprep.subr.bf16.mxu0 %v4430_v6  ;;  %v4450_v6 = vpack.c.bf16 %v2331_v0, %v2329_v63  ;;  %v2347_v52 = vld [vmem:[%s6574_s18 + $0xf78] sm:$0xff]  ;;  %v1962_v57 = vld [vmem:[%s6574_s18 + $0x370] sm:$0xff]  ;;  %v2344_v58 = vld [vmem:[%s6574_s18 + $0xf60] sm:$0xff] }
 0x1f9   : > { %v2346_v60 = vld [vmem:[%s6574_s18 + $0xf70] sm:$0xff]  ;;  %v1965_v61 = vld [vmem:[%s6574_s18 + $0x388] sm:$0xff]  ;;  %v1967_v62 = vld [vmem:[%s6574_s18 + $0x398] sm:$0xff] }
 0x1fa   : > { %4049 = vmatpush1.bf16.msra.mxu1 %v4048_v11  ;;  %v4068_v11 = vpack.c.bf16 %v1946_v42, %v1944_v4  ;;  %v2349_v63 = vld [vmem:[%s6574_s18 + $0xf88] sm:$0xff]  ;;  %v2351_v0 = vld [vmem:[%s6574_s18 + $0xf98] sm:$0xff]  ;;  %v1964_v4 = vld [vmem:[%s6574_s18 + $0x380] sm:$0xff] }
 0x1fb   : > { %4433 = vmatpush1.bf16.msra.mxu0 %v4432_v12  ;;  %4051 = vmatprep.subr.bf16.mxu1 %v4050_v13  ;;  %v4452_v12 = vpack.c.bf16 %v2330_v7, %v2328_v5  ;;  %v4070_v13 = vpack.c.bf16 %v1951_v9, %v1949_v8  ;;  %v1966_v42 = vld [vmem:[%s6574_s18 + $0x390] sm:$0xff]  ;;  %v2348_v5 = vld [vmem:[%s6574_s18 + $0xf80] sm:$0xff]  ;;  %v1969_v8 = vld [vmem:[%s6574_s18 + $0x3a8] sm:$0xff] }
 0x1fc   : > { %4435 = vmatprep.subr.bf16.mxu0 %v4434_v18  ;;  %v4454_v18 = vpack.c.bf16 %v2335_v10, %v2333_v45  ;;  %v2350_v7 = vld [vmem:[%s6574_s18 + $0xf90] sm:$0xff]  ;;  %v1971_v9 = vld [vmem:[%s6574_s18 + $0x3b8] sm:$0xff]  ;;  %v2353_v45 = vld [vmem:[%s6574_s18 + $0xfa8] sm:$0xff] }
 0x1fd   : > { %v2355_v10 = vld [vmem:[%s6574_s18 + $0xfb8] sm:$0xff] }
 0x1fe   : > { %4053 = vmatpush1.bf16.msra.mxu1 %v4052_v24  ;;  %v4072_v24 = vpack.c.bf16 %v1950_v16, %v1948_v15  ;;  %v1968_v15 = vld [vmem:[%s6574_s18 + $0x3a0] sm:$0xff]  ;;  %v1970_v16 = vld [vmem:[%s6574_s18 + $0x3b0] sm:$0xff] }
 0x1ff   : > { %4437 = vmatpush1.bf16.msra.mxu0 %v4436_v25  ;;  %4055 = vmatprep.subr.bf16.mxu1 %v4054_v26  ;;  %v4456_v25 = vpack.c.bf16 %v2334_v19, %v2332_v17  ;;  %v4074_v26 = vpack.c.bf16 %v1955_v21, %v1953_v20  ;;  %v2352_v17 = vld [vmem:[%s6574_s18 + $0xfa0] sm:$0xff]  ;;  %v2354_v19 = vld [vmem:[%s6574_s18 + $0xfb0] sm:$0xff]  ;;  %v1973_v20 = vld [vmem:[%s6574_s18 + $0x3c8] sm:$0xff] }
 0x200   : > { %4439 = vmatprep.subr.bf16.mxu0 %v4438_v31  ;;  %v4458_v31 = vpack.c.bf16 %v2339_v23, %v2337_v22  ;;  %v1975_v21 = vld [vmem:[%s6574_s18 + $0x3d8] sm:$0xff]  ;;  %v2357_v22 = vld [vmem:[%s6574_s18 + $0xfc8] sm:$0xff] }
 0x201   : > { %v2359_v23 = vld [vmem:[%s6574_s18 + $0xfd8] sm:$0xff] }
 0x202   : > { %4057 = vmatpush1.bf16.msra.mxu1 %v4056_v37  ;;  %v4076_v37 = vpack.c.bf16 %v1954_v29, %v1952_v27  ;;  %v1972_v27 = vld [vmem:[%s6574_s18 + $0x3c0] sm:$0xff]  ;;  %v1974_v29 = vld [vmem:[%s6574_s18 + $0x3d0] sm:$0xff] }
 0x203   : > { %4441 = vmatpush1.bf16.msra.mxu0 %v4440_v38  ;;  %4059 = vmatprep.subr.bf16.mxu1 %v4058_v39  ;;  %v4460_v38 = vpack.c.bf16 %v2338_v32, %v2336_v30  ;;  %v4078_v39 = vpack.c.bf16 %v1959_v34, %v1957_v33  ;;  %v2356_v30 = vld [vmem:[%s6574_s18 + $0xfc0] sm:$0xff]  ;;  %v2358_v32 = vld [vmem:[%s6574_s18 + $0xfd0] sm:$0xff]  ;;  %v1977_v33 = vld [vmem:[%s6574_s18 + $0x3e8] sm:$0xff] }
 0x204   : > { %4443 = vmatprep.subr.bf16.mxu0 %v4442_v44  ;;  %v4462_v44 = vpack.c.bf16 %v2343_v36, %v2341_v35  ;;  %v1979_v34 = vld [vmem:[%s6574_s18 + $0x3f8] sm:$0xff]  ;;  %v2361_v35 = vld [vmem:[%s6574_s18 + $0xfe8] sm:$0xff] }
 0x205   : > { %v2363_v36 = vld [vmem:[%s6574_s18 + $0xff8] sm:$0xff] }
 0x206   : > { %4061 = vmatpush1.bf16.msra.mxu1 %v4060_v53  ;;  %v4080_v53 = vpack.c.bf16 %v1958_v41, %v1956_v40  ;;  %v1976_v40 = vld [vmem:[%s6574_s18 + $0x3e0] sm:$0xff]  ;;  %v1978_v41 = vld [vmem:[%s6574_s18 + $0x3f0] sm:$0xff] }
 0x207   : > { %4445 = vmatpush1.bf16.msra.mxu0 %v4444_v54  ;;  %4063 = vmatprep.subr.bf16.mxu1 %v4062_v55  ;;  %v4464_v54 = vpack.c.bf16 %v2342_v46, %v2340_v43  ;;  %v4082_v55 = vpack.c.bf16 %v1963_v49, %v1961_v48  ;;  %v2360_v43 = vld [vmem:[%s6574_s18 + $0xfe0] sm:$0xff]  ;;  %v2362_v46 = vld [vmem:[%s6574_s18 + $0xff0] sm:$0xff]  ;;  %v1981_v48 = vld [vmem:[%s6574_s18 + $0x408] sm:$0xff] }
 0x208   : > { %4447 = vmatprep.subr.bf16.mxu0 %v4446_v59  ;;  %v4466_v59 = vpack.c.bf16 %v2347_v52, %v2345_v51  ;;  %v1983_v49 = vld [vmem:[%s6574_s18 + $0x418] sm:$0xff]  ;;  %v2365_v51 = vld [vmem:[%s6574_s18 + $0x1008] sm:$0xff] }
 0x209   : > { %v2367_v52 = vld [vmem:[%s6574_s18 + $0x1018] sm:$0xff] }
 0x20a   : > { %4065 = vmatpush1.bf16.msra.mxu1 %v4064_v1  ;;  %v4084_v1 = vpack.c.bf16 %v1962_v57, %v1960_v56  ;;  %v1980_v56 = vld [vmem:[%s6574_s18 + $0x400] sm:$0xff]  ;;  %v1982_v57 = vld [vmem:[%s6574_s18 + $0x410] sm:$0xff] }
 0x20b   : > { %4449 = vmatpush1.bf16.msra.mxu0 %v4448_v2  ;;  %4067 = vmatprep.subr.bf16.mxu1 %v4066_v3  ;;  %v4468_v2 = vpack.c.bf16 %v2346_v60, %v2344_v58  ;;  %v4086_v3 = vpack.c.bf16 %v1967_v62, %v1965_v61  ;;  %v2364_v58 = vld [vmem:[%s6574_s18 + $0x1000] sm:$0xff]  ;;  %v2366_v60 = vld [vmem:[%s6574_s18 + $0x1010] sm:$0xff]  ;;  %v1985_v61 = vld [vmem:[%s6574_s18 + $0x428] sm:$0xff] }
 0x20c   : > { %4451 = vmatprep.subr.bf16.mxu0 %v4450_v6  ;;  %v4470_v6 = vpack.c.bf16 %v2351_v0, %v2349_v63  ;;  %v1987_v62 = vld [vmem:[%s6574_s18 + $0x438] sm:$0xff]  ;;  %v2369_v63 = vld [vmem:[%s6574_s18 + $0x1028] sm:$0xff] }
 0x20d   : > { %v2371_v0 = vld [vmem:[%s6574_s18 + $0x1038] sm:$0xff] }
 0x20e   : > { %4069 = vmatpush1.bf16.msra.mxu1 %v4068_v11  ;;  %v4088_v11 = vpack.c.bf16 %v1966_v42, %v1964_v4  ;;  %v4488_v4 = vpack.c.bf16 %v2366_v60, %v2364_v58  ;;  %v4106_v42 = vpack.c.bf16 %v1987_v62, %v1985_v61  ;;  %v2000_v60 = vld [vmem:[%s6574_s18 + $0x4a0] sm:$0xff]  ;;  %v2002_v61 = vld [vmem:[%s6574_s18 + $0x4b0] sm:$0xff] }
 0x20f   : > { %4453 = vmatpush1.bf16.msra.mxu0 %v4452_v12  ;;  %4071 = vmatprep.subr.bf16.mxu1 %v4070_v13  ;;  %v4472_v12 = vpack.c.bf16 %v2350_v7, %v2348_v5  ;;  %v4090_v13 = vpack.c.bf16 %v1971_v9, %v1969_v8  ;;  %v1986_v5 = vld [vmem:[%s6574_s18 + $0x430] sm:$0xff]  ;;  %v6903_v8 = vld [vmem:[%s7569_s0 + $0x20] sm:$0xff]  ;;  %v4490_v9 = vpack.c.bf16 %v2371_v0, %v2369_v63 }
 0x210   : > { %4455 = vmatprep.subr.bf16.mxu0 %v4454_v18  ;;  %v4474_v18 = vpack.c.bf16 %v2355_v10, %v2353_v45  ;;  %v2370_v45 = vld [vmem:[%s6574_s18 + $0x1030] sm:$0xff]  ;;  %v1989_v10 = vld [vmem:[%s6574_s18 + $0x448] sm:$0xff]  ;;  %v2384_v62 = vld [vmem:[%s6574_s18 + $0x10a0] sm:$0xff] }
 0x211   : > { %v2386_v0 = vld [vmem:[%s6574_s18 + $0x10b0] sm:$0xff] }
 0x212   : > { %4073 = vmatpush1.bf16.msra.mxu1 %v4072_v24  ;;  %v4092_v24 = vpack.c.bf16 %v1970_v16, %v1968_v15  ;;  %v2375_v15 = vld [vmem:[%s6574_s18 + $0x1058] sm:$0xff] }
 0x213   : > { %4457 = vmatpush1.bf16.msra.mxu0 %v4456_v25  ;;  %4075 = vmatprep.subr.bf16.mxu1 %v4074_v26  ;;  %v4476_v25 = vpack.c.bf16 %v2354_v19, %v2352_v17  ;;  %v4094_v26 = vpack.c.bf16 %v1975_v21, %v1973_v20  ;;  %v1988_v20 = vld [vmem:[%s6574_s18 + $0x440] sm:$0xff]  ;;  %v1990_v21 = vld [vmem:[%s6574_s18 + $0x450] sm:$0xff] }
 0x214   : > { %4459 = vmatprep.subr.bf16.mxu0 %v4458_v31  ;;  %v4478_v31 = vpack.c.bf16 %v2359_v23, %v2357_v22  ;;  %v2372_v22 = vld [vmem:[%s6574_s18 + $0x1040] sm:$0xff] }
 0x216   : > { %4077 = vmatpush1.bf16.msra.mxu1 %v4076_v37  ;;  %v4096_v37 = vpack.c.bf16 %v1974_v29, %v1972_v27  ;;  %v2379_v27 = vld [vmem:[%s6574_s18 + $0x1078] sm:$0xff]  ;;  %v4112_v29 = vpack.c.bf16 %v1990_v21, %v1988_v20 }
 0x217   : > { %4461 = vmatpush1.bf16.msra.mxu0 %v4460_v38  ;;  %4079 = vmatprep.subr.bf16.mxu1 %v4078_v39  ;;  %v4480_v38 = vpack.c.bf16 %v2358_v32, %v2356_v30  ;;  %v4098_v39 = vpack.c.bf16 %v1979_v34, %v1977_v33  ;;  %v1992_v32 = vld [vmem:[%s6574_s18 + $0x460] sm:$0xff]  ;;  %v1994_v33 = vld [vmem:[%s6574_s18 + $0x470] sm:$0xff] }
 0x218   : > { %4463 = vmatprep.subr.bf16.mxu0 %v4462_v44  ;;  %v4482_v44 = vpack.c.bf16 %v2363_v36, %v2361_v35  ;;  %v2376_v34 = vld [vmem:[%s6574_s18 + $0x1060] sm:$0xff]  ;;  %v2378_v36 = vld [vmem:[%s6574_s18 + $0x1070] sm:$0xff] }
 0x21a   : > { %4081 = vmatpush1.bf16.msra.mxu1 %v4080_v53  ;;  %v4100_v53 = vpack.c.bf16 %v1978_v41, %v1976_v40  ;;  %v2383_v40 = vld [vmem:[%s6574_s18 + $0x1098] sm:$0xff]  ;;  %v4116_v41 = vpack.c.bf16 %v1994_v33, %v1992_v32 }
 0x21b   : > { %4465 = vmatpush1.bf16.msra.mxu0 %v4464_v54  ;;  %4083 = vmatprep.subr.bf16.mxu1 %v4082_v55  ;;  %v4484_v54 = vpack.c.bf16 %v2362_v46, %v2360_v43  ;;  %v4102_v55 = vpack.c.bf16 %v1983_v49, %v1981_v48  ;;  %v4500_v43 = vpack.c.bf16 %v2378_v36, %v2376_v34  ;;  %v1996_v46 = vld [vmem:[%s6574_s18 + $0x480] sm:$0xff]  ;;  %v1998_v48 = vld [vmem:[%s6574_s18 + $0x490] sm:$0xff] }
 0x21c   : > { %4467 = vmatprep.subr.bf16.mxu0 %v4466_v59  ;;  %v4486_v59 = vpack.c.bf16 %v2367_v52, %v2365_v51  ;;  %v2380_v49 = vld [vmem:[%s6574_s18 + $0x1080] sm:$0xff]  ;;  %v2382_v52 = vld [vmem:[%s6574_s18 + $0x1090] sm:$0xff] }
 0x21d   : > { %v4504_v58 = vpack.c.bf16 %v2382_v52, %v2380_v49  ;;  %v2012_v34 = vld [vmem:[%s6574_s18 + $0x500] sm:$0xff] }
 0x21e   : > { %4085 = vmatpush1.bf16.msra.mxu1 %v4084_v1  ;;  %v4104_v1 = vpack.c.bf16 %v1982_v57, %v1980_v56  ;;  %v2387_v56 = vld [vmem:[%s6574_s18 + $0x10b8] sm:$0xff]  ;;  %v4120_v57 = vpack.c.bf16 %v1998_v48, %v1996_v46  ;;  %v2396_v36 = vld [vmem:[%s6574_s18 + $0x1100] sm:$0xff] }
 0x21f   : > { %4469 = vmatpush1.bf16.msra.mxu0 %v4468_v2  ;;  %4087 = vmatprep.subr.bf16.mxu1 %v4086_v3  ;;  %v1984_v2 = vld [vmem:[%s6574_s18 + $0x420] sm:$0xff] }
 0x220   : > { %4471 = vmatprep.subr.bf16.mxu0 %v4470_v6  ;;  %v6892_v3 = vld [vmem:[%s7569_s0 + $0x8] sm:$0xff]  ;;  %v4108_v17 = vpack.c.bf16 %v1986_v5, %v1984_v2  ;;  %v2007_v2 = vld [vmem:[%s6574_s18 + $0x4d8] sm:$0xff]  ;;  %v4124_v5 = vpack.c.bf16 %v2002_v61, %v2000_v60 }
 0x221   : > { %v2368_v6 = vld [vmem:[%s6574_s18 + $0x1020] sm:$0xff]  ;;  %v6898_v7 = vrot.slane %v6892_v3, %v6672_v28 }
 0x222   : > { %4089 = vmatpush1.bf16.msra.mxu1 %v4088_v11  ;;  %v1991_v11 = vld [vmem:[%s6574_s18 + $0x458] sm:$0xff]  ;;  %v2016_v49 = vld [vmem:[%s6574_s18 + $0x520] sm:$0xff] }
 0x223   : > { %4473 = vmatpush1.bf16.msra.mxu0 %v4472_v12  ;;  %4091 = vmatprep.subr.bf16.mxu1 %v4090_v13  ;;  %v6910_v12 = vrot.slane %v6903_v8, %v6672_v28  ;;  %v2373_v13 = vld [vmem:[%s6574_s18 + $0x1048] sm:$0xff]  ;;  %v2687_v16 = vcombine.high %v6898_v7, %v6898_v7  ;;  %v4110_v19 = vpack.c.bf16 %v1991_v11, %v1989_v10  ;;  %v2006_v10 = vld [vmem:[%s6574_s18 + $0x4d0] sm:$0xff]  ;;  %v2388_v11 = vld [vmem:[%s6574_s18 + $0x10c0] sm:$0xff] }
 0x224   : > { %4475 = vmatprep.subr.bf16.mxu0 %v4474_v18  ;;  %v4494_v23 = vpack.c.bf16 %v2375_v15, %v2373_v13  ;;  %v2390_v15 = vld [vmem:[%s6574_s18 + $0x10d0] sm:$0xff]  ;;  %v2400_v52 = vld [vmem:[%s6574_s18 + $0x1120] sm:$0xff] }
 0x225   : > { %v2738_v18 = vcombine.high %v6910_v12, %v6910_v12  ;;  %v4512_v20 = vpack.c.bf16 %v2390_v15, %v2388_v11  ;;  %v2024_v11 = vld [vmem:[%s6574_s18 + $0x560] sm:$0xff] }
 0x226   : > { %4093 = vmatpush1.bf16.msra.mxu1 %v4092_v24  ;;  %v2374_v24 = vld [vmem:[%s6574_s18 + $0x1050] sm:$0xff]  ;;  %v2408_v15 = vld [vmem:[%s6574_s18 + $0x1160] sm:$0xff] }
 0x227   : > { %4477 = vmatpush1.bf16.msra.mxu0 %v4476_v25  ;;  %4095 = vmatprep.subr.bf16.mxu1 %v4094_v26  ;;  %v1995_v25 = vld [vmem:[%s6574_s18 + $0x478] sm:$0xff]  ;;  %v2377_v26 = vld [vmem:[%s6574_s18 + $0x1068] sm:$0xff]  ;;  %v4496_v30 = vpack.c.bf16 %v2374_v24, %v2372_v22  ;;  %v2008_v22 = vld [vmem:[%s6574_s18 + $0x4e0] sm:$0xff] }
 0x228   : > { %4479 = vmatprep.subr.bf16.mxu0 %v4478_v31  ;;  %v4498_v35 = vpack.c.bf16 %v2379_v27, %v2377_v26  ;;  %v2392_v24 = vld [vmem:[%s6574_s18 + $0x10e0] sm:$0xff]  ;;  %v2013_v26 = vld [vmem:[%s6574_s18 + $0x508] sm:$0xff]  ;;  %v2015_v27 = vld [vmem:[%s6574_s18 + $0x518] sm:$0xff] }
 0x229   : > { %v4134_v33 = vpack.c.bf16 %v2015_v27, %v2013_v26  ;;  %v2414_v27 = vld [vmem:[%s6574_s18 + $0x1190] sm:$0xff] }
 0x22a   : > { %4097 = vmatpush1.bf16.msra.mxu1 %v4096_v37  ;;  %v1997_v37 = vld [vmem:[%s6574_s18 + $0x488] sm:$0xff] }
 0x22b   : > { %4481 = vmatpush1.bf16.msra.mxu0 %v4480_v38  ;;  %4099 = vmatprep.subr.bf16.mxu1 %v4098_v39  ;;  %v1999_v38 = vld [vmem:[%s6574_s18 + $0x498] sm:$0xff]  ;;  %v2381_v39 = vld [vmem:[%s6574_s18 + $0x1088] sm:$0xff] }
 0x22c   : > { %4483 = vmatprep.subr.bf16.mxu0 %v4482_v44  ;;  %v4118_v44 = vpack.c.bf16 %v1999_v38, %v1997_v37  ;;  %v4502_v51 = vpack.c.bf16 %v2383_v40, %v2381_v39  ;;  %v2398_v38 = vld [vmem:[%s6574_s18 + $0x1110] sm:$0xff]  ;;  %v2017_v39 = vld [vmem:[%s6574_s18 + $0x528] sm:$0xff]  ;;  %v2019_v40 = vld [vmem:[%s6574_s18 + $0x538] sm:$0xff] }
 0x22d   : > { %v4520_v46 = vpack.c.bf16 %v2398_v38, %v2396_v36  ;;  %v4138_v48 = vpack.c.bf16 %v2019_v40, %v2017_v39  ;;  %v2032_v36 = vld [vmem:[%s6574_s18 + $0x5a0] sm:$0xff]  ;;  %v2418_v40 = vld [vmem:[%s6574_s18 + $0x11b0] sm:$0xff] }
 0x22e   : > { %4101 = vmatpush1.bf16.msra.mxu1 %v4100_v53  ;;  %v2001_v53 = vld [vmem:[%s6574_s18 + $0x4a8] sm:$0xff]  ;;  %v2416_v38 = vld [vmem:[%s6574_s18 + $0x11a0] sm:$0xff] }
 0x22f   : > { %4485 = vmatpush1.bf16.msra.mxu0 %v4484_v54  ;;  %4103 = vmatprep.subr.bf16.mxu1 %v4102_v55  ;;  %v2003_v54 = vld [vmem:[%s6574_s18 + $0x4b8] sm:$0xff]  ;;  %v2385_v55 = vld [vmem:[%s6574_s18 + $0x10a8] sm:$0xff] }
 0x230   : > { %4487 = vmatprep.subr.bf16.mxu0 %v4486_v59  ;;  %v4122_v59 = vpack.c.bf16 %v2003_v54, %v2001_v53  ;;  %v4506_v63 = vpack.c.bf16 %v2387_v56, %v2385_v55  ;;  %v2402_v54 = vld [vmem:[%s6574_s18 + $0x1130] sm:$0xff]  ;;  %v2021_v55 = vld [vmem:[%s6574_s18 + $0x548] sm:$0xff]  ;;  %v2023_v56 = vld [vmem:[%s6574_s18 + $0x558] sm:$0xff] }
 0x231   : > { %2927 = vmatmul.mubr.f32.vlgmr.msra.gmra.mrb[0].mxu1 %v6747_v47  ;;  %v4492_v47 = vpack.c.bf16 %v2370_v45, %v2368_v6  ;;  %v4508_v6 = vpack.c.bf16 %v2386_v0, %v2384_v62  ;;  %v2004_v45 = vld [vmem:[%s6574_s18 + $0x4c0] sm:$0xff]  ;;  %v4524_v60 = vpack.c.bf16 %v2402_v54, %v2400_v52  ;;  %v4142_v61 = vpack.c.bf16 %v2023_v56, %v2021_v55  ;;  %v2422_v56 = vld [vmem:[%s6574_s18 + $0x11d0] sm:$0xff] }
 0x232   : > { %4105 = vmatpush1.bf16.msra.mxu1 %v4104_v1  ;;  %3353 = vmatmul.mubr.f32.vlgmr.msra.gmra.mrb[0].mxu0 %v6752_v50  ;;  %v1993_v50 = vld [vmem:[%s6574_s18 + $0x468] sm:$0xff]  ;;  %v2020_v62 = vld [vmem:[%s6574_s18 + $0x540] sm:$0xff] }
 0x233   : > { %4489 = vmatpush1.bf16.msra.mxu0 %v4488_v4  ;;  %4107 = vmatprep.subr.bf16.mxu1 %v4106_v42  ;;  %v4114_v31 = vpack.c.bf16 %v1995_v25, %v1993_v50  ;;  %v2005_v1 = vld [vmem:[%s6574_s18 + $0x4c8] sm:$0xff]  ;;  %v2391_v42 = vld [vmem:[%s6574_s18 + $0x10d8] sm:$0xff]  ;;  %v2394_v25 = vld [vmem:[%s6574_s18 + $0x10f0] sm:$0xff] }
 0x234   : > { %4491 = vmatprep.subr.bf16.mxu0 %v4490_v9  ;;  %2997 = vmatprep.mubr.f32.mxu1 %v2687_v16  ;;  %v2389_v4 = vld [vmem:[%s6574_s18 + $0x10c8] sm:$0xff]  ;;  %v4126_v9 = vpack.c.bf16 %v2007_v2, %v2005_v1  ;;  %v4516_v32 = vpack.c.bf16 %v2394_v25, %v2392_v24  ;;  %v2404_v0 = vld [vmem:[%s6574_s18 + $0x1140] sm:$0xff]  ;;  %v2406_v2 = vld [vmem:[%s6574_s18 + $0x1150] sm:$0xff] }
 0x235   : > { %3423 = vmatprep.mubr.f32.mxu0 %v2738_v18  ;;  %v4510_v13 = vpack.c.bf16 %v2391_v42, %v2389_v4  ;;  %v2009_v16 = vld [vmem:[%s6574_s18 + $0x4e8] sm:$0xff]  ;;  %v2027_v42 = vld [vmem:[%s6574_s18 + $0x578] sm:$0xff]  ;;  %v2028_v24 = vld [vmem:[%s6574_s18 + $0x580] sm:$0xff] }
 0x236   : > { %4109 = vmatpush1.bf16.msra.mxu1 %v4108_v17  ;;  %v2011_v17 = vld [vmem:[%s6574_s18 + $0x4f8] sm:$0xff]  ;;  %v2393_v18 = vld [vmem:[%s6574_s18 + $0x10e8] sm:$0xff]  ;;  %v2412_v25 = vld [vmem:[%s6574_s18 + $0x1180] sm:$0xff] }
 0x237   : > { %4493 = vmatpush1.bf16.msra.mxu0 %v4492_v47  ;;  %4111 = vmatprep.subr.bf16.mxu1 %v4110_v19  ;;  %v2395_v47 = vld [vmem:[%s6574_s18 + $0x10f8] sm:$0xff]  ;;  %v4128_v19 = vpack.c.bf16 %v2006_v10, %v2004_v45  ;;  %v4130_v21 = vpack.c.bf16 %v2011_v17, %v2009_v16  ;;  %v2025_v4 = vld [vmem:[%s6574_s18 + $0x568] sm:$0xff]  ;;  %v4528_v45 = vpack.c.bf16 %v2406_v2, %v2404_v0  ;;  %v2410_v17 = vld [vmem:[%s6574_s18 + $0x1170] sm:$0xff] }
 0x238   : > { %4495 = vmatprep.subr.bf16.mxu0 %v4494_v23  ;;  %v2010_v23 = vld [vmem:[%s6574_s18 + $0x4f0] sm:$0xff]  ;;  %v4514_v50 = vpack.c.bf16 %v2395_v47, %v2393_v18  ;;  %v4146_v10 = vpack.c.bf16 %v2027_v42, %v2025_v4  ;;  %v2029_v18 = vld [vmem:[%s6574_s18 + $0x588] sm:$0xff]  ;;  %v2031_v47 = vld [vmem:[%s6574_s18 + $0x598] sm:$0xff] }
 0x239   : > { %v2036_v52 = vld [vmem:[%s6574_s18 + $0x5c0] sm:$0xff]  ;;  %v2426_v42 = vld [vmem:[%s6574_s18 + $0x11f0] sm:$0xff] }
 0x23a   : > { %4113 = vmatpush1.bf16.msra.mxu1 %v4112_v29  ;;  %v2397_v29 = vld [vmem:[%s6574_s18 + $0x1108] sm:$0xff]  ;;  %v2420_v54 = vld [vmem:[%s6574_s18 + $0x11c0] sm:$0xff] }
 0x23b   : > { %4497 = vmatpush1.bf16.msra.mxu0 %v4496_v30  ;;  %4115 = vmatprep.subr.bf16.mxu1 %v4114_v31  ;;  %v2399_v30 = vld [vmem:[%s6574_s18 + $0x1118] sm:$0xff]  ;;  %v4132_v31 = vpack.c.bf16 %v2010_v23, %v2008_v22  ;;  %v4532_v22 = vpack.c.bf16 %v2410_v17, %v2408_v15  ;;  %v4150_v23 = vpack.c.bf16 %v2031_v47, %v2029_v18  ;;  %v2040_v0 = vld [vmem:[%s6574_s18 + $0x5e0] sm:$0xff]  ;;  %v2046_v18 = vld [vmem:[%s6574_s18 + $0x610] sm:$0xff] }
 0x23c   : > { %4499 = vmatprep.subr.bf16.mxu0 %v4498_v35  ;;  %v2014_v35 = vld [vmem:[%s6574_s18 + $0x510] sm:$0xff]  ;;  %v4518_v37 = vpack.c.bf16 %v2399_v30, %v2397_v29  ;;  %v2033_v29 = vld [vmem:[%s6574_s18 + $0x5a8] sm:$0xff]  ;;  %v2035_v30 = vld [vmem:[%s6574_s18 + $0x5b8] sm:$0xff] }
 0x23d   : > { %v2424_v2 = vld [vmem:[%s6574_s18 + $0x11e0] sm:$0xff] }
 0x23e   : > { %4117 = vmatpush1.bf16.msra.mxu1 %v4116_v41  ;;  %v2401_v41 = vld [vmem:[%s6574_s18 + $0x1128] sm:$0xff]  ;;  %v4548_v15 = vpack.c.bf16 %v2426_v42, %v2424_v2  ;;  %v2044_v17 = vld [vmem:[%s6574_s18 + $0x600] sm:$0xff] }
 0x23f   : > { %4501 = vmatpush1.bf16.msra.mxu0 %v4500_v43  ;;  %4119 = vmatprep.subr.bf16.mxu1 %v4118_v44  ;;  %v2403_v43 = vld [vmem:[%s6574_s18 + $0x1138] sm:$0xff]  ;;  %v4136_v44 = vpack.c.bf16 %v2014_v35, %v2012_v34  ;;  %v4536_v34 = vpack.c.bf16 %v2414_v27, %v2412_v25  ;;  %v4154_v35 = vpack.c.bf16 %v2035_v30, %v2033_v29  ;;  %v2428_v47 = vld [vmem:[%s6574_s18 + $0x1200] sm:$0xff]  ;;  %v2050_v29 = vld [vmem:[%s6574_s18 + $0x630] sm:$0xff] }
 0x240   : > { %4503 = vmatprep.subr.bf16.mxu0 %v4502_v51  ;;  %v2018_v51 = vld [vmem:[%s6574_s18 + $0x530] sm:$0xff]  ;;  %v4522_v53 = vpack.c.bf16 %v2403_v43, %v2401_v41  ;;  %v2037_v41 = vld [vmem:[%s6574_s18 + $0x5c8] sm:$0xff]  ;;  %v2039_v43 = vld [vmem:[%s6574_s18 + $0x5d8] sm:$0xff] }
 0x241   : > { %v2048_v27 = vld [vmem:[%s6574_s18 + $0x620] sm:$0xff] }
 0x242   : > { %4121 = vmatpush1.bf16.msra.mxu1 %v4120_v57  ;;  %v2405_v57 = vld [vmem:[%s6574_s18 + $0x1148] sm:$0xff]  ;;  %v2432_v30 = vld [vmem:[%s6574_s18 + $0x1220] sm:$0xff] }
 0x243   : > { %4505 = vmatpush1.bf16.msra.mxu0 %v4504_v58  ;;  %4123 = vmatprep.subr.bf16.mxu1 %v4122_v59  ;;  %v2407_v58 = vld [vmem:[%s6574_s18 + $0x1158] sm:$0xff]  ;;  %v4140_v59 = vpack.c.bf16 %v2018_v51, %v2016_v49  ;;  %v4540_v49 = vpack.c.bf16 %v2418_v40, %v2416_v38  ;;  %v4158_v51 = vpack.c.bf16 %v2039_v43, %v2037_v41  ;;  %v2052_v43 = vld [vmem:[%s6574_s18 + $0x640] sm:$0xff] }
 0x244   : > { %4507 = vmatprep.subr.bf16.mxu0 %v4506_v63  ;;  %v2022_v63 = vld [vmem:[%s6574_s18 + $0x550] sm:$0xff]  ;;  %v4526_v1 = vpack.c.bf16 %v2407_v58, %v2405_v57  ;;  %v2041_v57 = vld [vmem:[%s6574_s18 + $0x5e8] sm:$0xff]  ;;  %v2043_v58 = vld [vmem:[%s6574_s18 + $0x5f8] sm:$0xff] }
 0x245   : > { %v2060_v42 = vld [vmem:[%s6574_s18 + $0x680] sm:$0xff] }
 0x246   : > { %4125 = vmatpush1.bf16.msra.mxu1 %v4124_v5  ;;  %v2409_v5 = vld [vmem:[%s6574_s18 + $0x1168] sm:$0xff] }
 0x247   : > { %4509 = vmatpush1.bf16.msra.mxu0 %v4508_v6  ;;  %4127 = vmatprep.subr.bf16.mxu1 %v4126_v9  ;;  %v2411_v6 = vld [vmem:[%s6574_s18 + $0x1178] sm:$0xff]  ;;  %v4144_v9 = vpack.c.bf16 %v2022_v63, %v2020_v62  ;;  %v4544_v62 = vpack.c.bf16 %v2422_v56, %v2420_v54  ;;  %v4162_v63 = vpack.c.bf16 %v2043_v58, %v2041_v57  ;;  %v2056_v56 = vld [vmem:[%s6574_s18 + $0x660] sm:$0xff]  ;;  %v2058_v57 = vld [vmem:[%s6574_s18 + $0x670] sm:$0xff] }
 0x248   : > { %4511 = vmatprep.subr.bf16.mxu0 %v4510_v13  ;;  %v2026_v13 = vld [vmem:[%s6574_s18 + $0x570] sm:$0xff]  ;;  %v4530_v16 = vpack.c.bf16 %v2411_v6, %v2409_v5  ;;  %v2045_v5 = vld [vmem:[%s6574_s18 + $0x608] sm:$0xff]  ;;  %v2047_v6 = vld [vmem:[%s6574_s18 + $0x618] sm:$0xff] }
 0x249   : > { %v2440_v58 = vld [vmem:[%s6574_s18 + $0x1260] sm:$0xff] }
 0x24a   : > { %4129 = vmatpush1.bf16.msra.mxu1 %v4128_v19  ;;  %v2413_v19 = vld [vmem:[%s6574_s18 + $0x1188] sm:$0xff] }
 0x24b   : > { %4513 = vmatpush1.bf16.msra.mxu0 %v4512_v20  ;;  %4131 = vmatprep.subr.bf16.mxu1 %v4130_v21  ;;  %v2415_v20 = vld [vmem:[%s6574_s18 + $0x1198] sm:$0xff]  ;;  %v4148_v21 = vpack.c.bf16 %v2026_v13, %v2024_v11  ;;  %v2723_v11 = vcombine.high %v6903_v8, %v6903_v8 }
 0x24c   : > { %4515 = vmatprep.subr.bf16.mxu0 %v4514_v50  ;;  %v2030_v50 = vld [vmem:[%s6574_s18 + $0x590] sm:$0xff]  ;;  %v4534_v26 = vpack.c.bf16 %v2415_v20, %v2413_v19  ;;  %v2049_v20 = vld [vmem:[%s6574_s18 + $0x628] sm:$0xff] }
 0x24d   : > { %v2430_v19 = vld [vmem:[%s6574_s18 + $0x1210] sm:$0xff] }
 0x24e   : > { %4133 = vmatpush1.bf16.msra.mxu1 %v4132_v31  ;;  %v2417_v31 = vld [vmem:[%s6574_s18 + $0x11a8] sm:$0xff]  ;;  %v4552_v25 = vpack.c.bf16 %v2430_v19, %v2428_v47  ;;  %v2064_v47 = vld [vmem:[%s6574_s18 + $0x6a0] sm:$0xff] }
 0x24f   : > { %4517 = vmatpush1.bf16.msra.mxu0 %v4516_v32  ;;  %4135 = vmatprep.subr.bf16.mxu1 %v4134_v33  ;;  %v2419_v32 = vld [vmem:[%s6574_s18 + $0x11b8] sm:$0xff]  ;;  %v4152_v33 = vpack.c.bf16 %v2030_v50, %v2028_v24  ;;  %v7048_v24 = vrot.slane %v2723_v11, %v6672_v28  ;;  %v4168_v50 = vpack.c.bf16 %v2046_v18, %v2044_v17  ;;  %v2448_v19 = vld [vmem:[%s6574_s18 + $0x12a0] sm:$0xff] }
 0x250   : > { %4519 = vmatprep.subr.bf16.mxu0 %v4518_v37  ;;  %v2034_v37 = vld [vmem:[%s6574_s18 + $0x5b0] sm:$0xff]  ;;  %v4538_v39 = vpack.c.bf16 %v2419_v32, %v2417_v31  ;;  %v2067_v11 = vld [vmem:[%s6574_s18 + $0x6b8] sm:$0xff] }
 0x251   : > { %v2434_v32 = vld [vmem:[%s6574_s18 + $0x1230] sm:$0xff]  ;;  %v2739_v38 = vcombine.high %v7048_v24, %v7048_v24 }
 0x252   : > { %4137 = vmatpush1.bf16.msra.mxu1 %v4136_v44  ;;  %v2421_v44 = vld [vmem:[%s6574_s18 + $0x11c8] sm:$0xff]  ;;  %v4556_v40 = vpack.c.bf16 %v2434_v32, %v2432_v30  ;;  %v2068_v30 = vld [vmem:[%s6574_s18 + $0x6c0] sm:$0xff] }
 0x253   : > { %4521 = vmatpush1.bf16.msra.mxu0 %v4520_v46  ;;  %4139 = vmatprep.subr.bf16.mxu1 %v4138_v48  ;;  %v2423_v46 = vld [vmem:[%s6574_s18 + $0x11d8] sm:$0xff]  ;;  %v4156_v48 = vpack.c.bf16 %v2034_v37, %v2032_v36  ;;  %v2437_v36 = vld [vmem:[%s6574_s18 + $0x1248] sm:$0xff]  ;;  %v2452_v32 = vld [vmem:[%s6574_s18 + $0x12c0] sm:$0xff] }
 0x254   : > { %4523 = vmatprep.subr.bf16.mxu0 %v4522_v53  ;;  %v2038_v53 = vld [vmem:[%s6574_s18 + $0x5d0] sm:$0xff]  ;;  %v4542_v55 = vpack.c.bf16 %v2423_v46, %v2421_v44  ;;  %v2439_v37 = vld [vmem:[%s6574_s18 + $0x1258] sm:$0xff]  ;;  %v2436_v44 = vld [vmem:[%s6574_s18 + $0x1240] sm:$0xff] }
 0x255   : > { %v4558_v46 = vpack.c.bf16 %v2439_v37, %v2437_v36  ;;  %v2075_v36 = vld [vmem:[%s6574_s18 + $0x6f8] sm:$0xff]  ;;  %v2457_v37 = vld [vmem:[%s6574_s18 + $0x12e8] sm:$0xff] }
 0x256   : > { %4141 = vmatpush1.bf16.msra.mxu1 %v4140_v59  ;;  %v2425_v59 = vld [vmem:[%s6574_s18 + $0x11e8] sm:$0xff] }
 0x257   : > { %4525 = vmatpush1.bf16.msra.mxu0 %v4524_v60  ;;  %4143 = vmatprep.subr.bf16.mxu1 %v4142_v61  ;;  %v2427_v60 = vld [vmem:[%s6574_s18 + $0x11f8] sm:$0xff]  ;;  %v4160_v61 = vpack.c.bf16 %v2038_v53, %v2036_v52 }
 0x258   : > { %4527 = vmatprep.subr.bf16.mxu0 %v4526_v1  ;;  %v2042_v1 = vld [vmem:[%s6574_s18 + $0x5f0] sm:$0xff]  ;;  %v4546_v4 = vpack.c.bf16 %v2427_v60, %v2425_v59  ;;  %v2443_v52 = vld [vmem:[%s6574_s18 + $0x1278] sm:$0xff] }
 0x259   : > { %v4164_v13 = vpack.c.bf16 %v2042_v1, %v2040_v0  ;;  %v2442_v60 = vld [vmem:[%s6574_s18 + $0x1270] sm:$0xff]  ;;  %v2447_v0 = vld [vmem:[%s6574_s18 + $0x1298] sm:$0xff]  ;;  %v4180_v1 = vpack.c.bf16 %v2058_v57, %v2056_v56  ;;  %v2076_v56 = vld [vmem:[%s6574_s18 + $0x700] sm:$0xff] }
 0x25a   : > { %4145 = vmatpush1.bf16.msra.mxu1 %v4144_v9  ;;  %v2672_v9 = vcombine.high %v6892_v3, %v6892_v3  ;;  %v4564_v2 = vpack.c.bf16 %v2442_v60, %v2440_v58  ;;  %v2078_v57 = vld [vmem:[%s6574_s18 + $0x710] sm:$0xff]  ;;  %v2460_v58 = vld [vmem:[%s6574_s18 + $0x1300] sm:$0xff] }
 0x25b   : > { %4529 = vmatpush1.bf16.msra.mxu0 %v4528_v45  ;;  %4147 = vmatprep.subr.bf16.mxu1 %v4146_v10  ;;  %v2429_v45 = vld [vmem:[%s6574_s18 + $0x1208] sm:$0xff]  ;;  %v2431_v10 = vld [vmem:[%s6574_s18 + $0x1218] sm:$0xff]  ;;  %v2462_v60 = vld [vmem:[%s6574_s18 + $0x1310] sm:$0xff] }
 0x25c   : > { %4531 = vmatprep.subr.bf16.mxu0 %v4530_v16  ;;  %v4166_v16 = vpack.c.bf16 %v2047_v6, %v2045_v5  ;;  %v4550_v3 = vpack.c.bf16 %v2431_v10, %v2429_v45  ;;  %v7043_v8 = vrot.slane %v2672_v9, %v6672_v28  ;;  %v2062_v5 = vld [vmem:[%s6574_s18 + $0x690] sm:$0xff]  ;;  %v2444_v6 = vld [vmem:[%s6574_s18 + $0x1280] sm:$0xff]  ;;  %v2065_v10 = vld [vmem:[%s6574_s18 + $0x6a8] sm:$0xff] }
 0x25d   : > { %v2446_v45 = vld [vmem:[%s6574_s18 + $0x1290] sm:$0xff]  ;;  %v4186_v18 = vpack.c.bf16 %v2067_v11, %v2065_v10  ;;  %v2085_v10 = vld [vmem:[%s6574_s18 + $0x748] sm:$0xff]  ;;  %v2087_v11 = vld [vmem:[%s6574_s18 + $0x758] sm:$0xff] }
 0x25e   : > { %4149 = vmatpush1.bf16.msra.mxu1 %v4148_v21  ;;  %v2051_v21 = vld [vmem:[%s6574_s18 + $0x638] sm:$0xff]  ;;  %v4568_v17 = vpack.c.bf16 %v2446_v45, %v2444_v6  ;;  %v2464_v6 = vld [vmem:[%s6574_s18 + $0x1320] sm:$0xff]  ;;  %v2466_v45 = vld [vmem:[%s6574_s18 + $0x1330] sm:$0xff] }
 0x25f   : > { %4533 = vmatpush1.bf16.msra.mxu0 %v4532_v22  ;;  %4151 = vmatprep.subr.bf16.mxu1 %v4150_v23  ;;  %v2433_v22 = vld [vmem:[%s6574_s18 + $0x1228] sm:$0xff]  ;;  %v2435_v23 = vld [vmem:[%s6574_s18 + $0x1238] sm:$0xff] }
 0x260   : > { %4535 = vmatprep.subr.bf16.mxu0 %v4534_v26  ;;  %v4170_v26 = vpack.c.bf16 %v2051_v21, %v2049_v20  ;;  %v4554_v31 = vpack.c.bf16 %v2435_v23, %v2433_v22  ;;  %v2450_v21 = vld [vmem:[%s6574_s18 + $0x12b0] sm:$0xff]  ;;  %v2069_v22 = vld [vmem:[%s6574_s18 + $0x6c8] sm:$0xff]  ;;  %v2071_v23 = vld [vmem:[%s6574_s18 + $0x6d8] sm:$0xff] }
 0x262   : > { %4153 = vmatpush1.bf16.msra.mxu1 %v4152_v33  ;;  %v2053_v33 = vld [vmem:[%s6574_s18 + $0x648] sm:$0xff] }
 0x263   : > { %4537 = vmatpush1.bf16.msra.mxu0 %v4536_v34  ;;  %4155 = vmatprep.subr.bf16.mxu1 %v4154_v35  ;;  %v2055_v34 = vld [vmem:[%s6574_s18 + $0x658] sm:$0xff]  ;;  %v2688_v35 = vcombine.high %v7043_v8, %v7043_v8 }
 0x264   : > { %4539 = vmatprep.subr.bf16.mxu0 %v4538_v39  ;;  %v4172_v39 = vpack.c.bf16 %v2050_v29, %v2048_v27  ;;  %v4174_v41 = vpack.c.bf16 %v2055_v34, %v2053_v33  ;;  %v4572_v27 = vpack.c.bf16 %v2450_v21, %v2448_v19  ;;  %v4190_v29 = vpack.c.bf16 %v2071_v23, %v2069_v22  ;;  %v2454_v34 = vld [vmem:[%s6574_s18 + $0x12d0] sm:$0xff]  ;;  %v2468_v19 = vld [vmem:[%s6574_s18 + $0x1340] sm:$0xff]  ;;  %v2089_v22 = vld [vmem:[%s6574_s18 + $0x768] sm:$0xff] }
 0x265   : > { %v2470_v21 = vld [vmem:[%s6574_s18 + $0x1350] sm:$0xff]  ;;  %v2091_v23 = vld [vmem:[%s6574_s18 + $0x778] sm:$0xff] }
 0x266   : > { %4157 = vmatpush1.bf16.msra.mxu1 %v4156_v48  ;;  %v2438_v48 = vld [vmem:[%s6574_s18 + $0x1250] sm:$0xff] }
 0x267   : > { %4541 = vmatpush1.bf16.msra.mxu0 %v4540_v49  ;;  %4159 = vmatprep.subr.bf16.mxu1 %v4158_v51  ;;  %v2057_v49 = vld [vmem:[%s6574_s18 + $0x668] sm:$0xff]  ;;  %v2059_v51 = vld [vmem:[%s6574_s18 + $0x678] sm:$0xff]  ;;  %v4560_v54 = vpack.c.bf16 %v2438_v48, %v2436_v44  ;;  %v2456_v44 = vld [vmem:[%s6574_s18 + $0x12e0] sm:$0xff] }
 0x268   : > { %4543 = vmatprep.subr.bf16.mxu0 %v4542_v55  ;;  %v4178_v55 = vpack.c.bf16 %v2059_v51, %v2057_v49  ;;  %v2458_v48 = vld [vmem:[%s6574_s18 + $0x12f0] sm:$0xff]  ;;  %v2077_v49 = vld [vmem:[%s6574_s18 + $0x708] sm:$0xff]  ;;  %v2079_v51 = vld [vmem:[%s6574_s18 + $0x718] sm:$0xff] }
 0x26a   : > { %4161 = vmatpush1.bf16.msra.mxu1 %v4160_v61  ;;  %v2061_v61 = vld [vmem:[%s6574_s18 + $0x688] sm:$0xff] }
 0x26b   : > { %4545 = vmatpush1.bf16.msra.mxu0 %v4544_v62  ;;  %4163 = vmatprep.subr.bf16.mxu1 %v4162_v63  ;;  %v2063_v62 = vld [vmem:[%s6574_s18 + $0x698] sm:$0xff]  ;;  %v2445_v63 = vld [vmem:[%s6574_s18 + $0x1288] sm:$0xff] }
 0x26c   : > { %4547 = vmatprep.subr.bf16.mxu0 %v4546_v4  ;;  %v4182_v4 = vpack.c.bf16 %v2063_v62, %v2061_v61  ;;  %v4566_v9 = vpack.c.bf16 %v2447_v0, %v2445_v63  ;;  %v2081_v61 = vld [vmem:[%s6574_s18 + $0x728] sm:$0xff]  ;;  %v2083_v62 = vld [vmem:[%s6574_s18 + $0x738] sm:$0xff] }
 0x26d   : > { %v2465_v63 = vld [vmem:[%s6574_s18 + $0x1328] sm:$0xff]  ;;  %v2467_v0 = vld [vmem:[%s6574_s18 + $0x1338] sm:$0xff] }
 0x26e   : > { %4165 = vmatpush1.bf16.msra.mxu1 %v4164_v13  ;;  %v2449_v13 = vld [vmem:[%s6574_s18 + $0x12a8] sm:$0xff] }
 0x26f   : > { %4549 = vmatpush1.bf16.msra.mxu0 %v4548_v15  ;;  %4167 = vmatprep.subr.bf16.mxu1 %v4166_v16  ;;  %v2451_v15 = vld [vmem:[%s6574_s18 + $0x12b8] sm:$0xff]  ;;  %v4184_v16 = vpack.c.bf16 %v2062_v5, %v2060_v42  ;;  %v2080_v42 = vld [vmem:[%s6574_s18 + $0x720] sm:$0xff]  ;;  %v2082_v5 = vld [vmem:[%s6574_s18 + $0x730] sm:$0xff] }
 0x270   : > { %4551 = vmatprep.subr.bf16.mxu0 %v4550_v3  ;;  %v2066_v3 = vld [vmem:[%s6574_s18 + $0x6b0] sm:$0xff]  ;;  %v4570_v20 = vpack.c.bf16 %v2451_v15, %v2449_v13  ;;  %v2469_v13 = vld [vmem:[%s6574_s18 + $0x1348] sm:$0xff]  ;;  %v2471_v15 = vld [vmem:[%s6574_s18 + $0x1358] sm:$0xff] }
 0x271   : > { %2998 = vmatmul.mubr.f32.vlgmr.msra.gmra.mrb[0].mxu1 %v6898_v7  ;;  %v2054_v7 = vld [vmem:[%s6574_s18 + $0x650] sm:$0xff] }
 0x272   : > { %4169 = vmatpush1.bf16.msra.mxu1 %v4168_v50  ;;  %3424 = vmatmul.mubr.f32.vlgmr.msra.gmra.mrb[0].mxu0 %v6910_v12  ;;  %v2441_v12 = vld [vmem:[%s6574_s18 + $0x1268] sm:$0xff]  ;;  %v4176_v53 = vpack.c.bf16 %v2054_v7, %v2052_v43  ;;  %v2072_v43 = vld [vmem:[%s6574_s18 + $0x6e0] sm:$0xff]  ;;  %v2074_v7 = vld [vmem:[%s6574_s18 + $0x6f0] sm:$0xff] }
 0x273   : > { %4553 = vmatpush1.bf16.msra.mxu0 %v4552_v25  ;;  %4171 = vmatprep.subr.bf16.mxu1 %v4170_v26  ;;  %v4562_v59 = vpack.c.bf16 %v2443_v52, %v2441_v12  ;;  %v2453_v50 = vld [vmem:[%s6574_s18 + $0x12c8] sm:$0xff]  ;;  %v2455_v25 = vld [vmem:[%s6574_s18 + $0x12d8] sm:$0xff]  ;;  %v4188_v26 = vpack.c.bf16 %v2066_v3, %v2064_v47  ;;  %v2084_v47 = vld [vmem:[%s6574_s18 + $0x740] sm:$0xff] }
 0x274   : > { %4555 = vmatprep.subr.bf16.mxu0 %v4554_v31  ;;  %3068 = vmatprep.mubr.f32.mxu1 %v2688_v35  ;;  %v2070_v31 = vld [vmem:[%s6574_s18 + $0x6d0] sm:$0xff]  ;;  %v4574_v33 = vpack.c.bf16 %v2455_v25, %v2453_v50  ;;  %v2073_v35 = vld [vmem:[%s6574_s18 + $0x6e8] sm:$0xff]  ;;  %v2463_v52 = vld [vmem:[%s6574_s18 + $0x1318] sm:$0xff] }
 0x275   : > { %3494 = vmatprep.mubr.f32.mxu0 %v2739_v38  ;;  %v2459_v38 = vld [vmem:[%s6574_s18 + $0x12f8] sm:$0xff]  ;;  %v2461_v12 = vld [vmem:[%s6574_s18 + $0x1308] sm:$0xff]  ;;  %v2086_v3 = vld [vmem:[%s6574_s18 + $0x750] sm:$0xff] }
 0x276   : > { %4173 = vmatpush1.bf16.msra.mxu1 %v4172_v39  ;;  %v4192_v39 = vpack.c.bf16 %v2070_v31, %v2068_v30  ;;  %v2473_v50 = vld [vmem:[%s6574_s18 + $0x1368] sm:$0xff]  ;;  %v2475_v25 = vld [vmem:[%s6574_s18 + $0x1378] sm:$0xff]  ;;  %v2088_v30 = vld [vmem:[%s6574_s18 + $0x760] sm:$0xff] }
 0x277   : > { %4557 = vmatpush1.bf16.msra.mxu0 %v4556_v40  ;;  %4175 = vmatprep.subr.bf16.mxu1 %v4174_v41  ;;  %v4576_v40 = vpack.c.bf16 %v2454_v34, %v2452_v32  ;;  %v4194_v41 = vpack.c.bf16 %v2075_v36, %v2073_v35  ;;  %v2090_v31 = vld [vmem:[%s6574_s18 + $0x770] sm:$0xff]  ;;  %v2472_v32 = vld [vmem:[%s6574_s18 + $0x1360] sm:$0xff]  ;;  %v2093_v35 = vld [vmem:[%s6574_s18 + $0x788] sm:$0xff] }
 0x278   : > { %4559 = vmatprep.subr.bf16.mxu0 %v4558_v46  ;;  %v4578_v46 = vpack.c.bf16 %v2459_v38, %v2457_v37  ;;  %v2474_v34 = vld [vmem:[%s6574_s18 + $0x1370] sm:$0xff]  ;;  %v2095_v36 = vld [vmem:[%s6574_s18 + $0x798] sm:$0xff]  ;;  %v2477_v37 = vld [vmem:[%s6574_s18 + $0x1388] sm:$0xff] }
 0x279   : > { %v2479_v38 = vld [vmem:[%s6574_s18 + $0x1398] sm:$0xff] }
 0x27a   : > { %4177 = vmatpush1.bf16.msra.mxu1 %v4176_v53  ;;  %v4196_v53 = vpack.c.bf16 %v2074_v7, %v2072_v43  ;;  %v2092_v43 = vld [vmem:[%s6574_s18 + $0x780] sm:$0xff]  ;;  %v2094_v7 = vld [vmem:[%s6574_s18 + $0x790] sm:$0xff] }
 0x27b   : > { %4561 = vmatpush1.bf16.msra.mxu0 %v4560_v54  ;;  %4179 = vmatprep.subr.bf16.mxu1 %v4178_v55  ;;  %v4580_v54 = vpack.c.bf16 %v2458_v48, %v2456_v44  ;;  %v4198_v55 = vpack.c.bf16 %v2079_v51, %v2077_v49  ;;  %v2476_v44 = vld [vmem:[%s6574_s18 + $0x1380] sm:$0xff]  ;;  %v2478_v48 = vld [vmem:[%s6574_s18 + $0x1390] sm:$0xff]  ;;  %v2097_v49 = vld [vmem:[%s6574_s18 + $0x7a8] sm:$0xff] }
 0x27c   : > { %4563 = vmatprep.subr.bf16.mxu0 %v4562_v59  ;;  %v4582_v59 = vpack.c.bf16 %v2463_v52, %v2461_v12  ;;  %v2099_v51 = vld [vmem:[%s6574_s18 + $0x7b8] sm:$0xff]  ;;  %v2481_v12 = vld [vmem:[%s6574_s18 + $0x13a8] sm:$0xff] }
 0x27d   : > { %v2483_v52 = vld [vmem:[%s6574_s18 + $0x13b8] sm:$0xff] }
 0x27e   : > { %4181 = vmatpush1.bf16.msra.mxu1 %v4180_v1  ;;  %v4200_v1 = vpack.c.bf16 %v2078_v57, %v2076_v56  ;;  %v2096_v56 = vld [vmem:[%s6574_s18 + $0x7a0] sm:$0xff]  ;;  %v2098_v57 = vld [vmem:[%s6574_s18 + $0x7b0] sm:$0xff] }
 0x27f   : > { %4565 = vmatpush1.bf16.msra.mxu0 %v4564_v2  ;;  %4183 = vmatprep.subr.bf16.mxu1 %v4182_v4  ;;  %v4584_v2 = vpack.c.bf16 %v2462_v60, %v2460_v58  ;;  %v4202_v4 = vpack.c.bf16 %v2083_v62, %v2081_v61  ;;  %v2480_v58 = vld [vmem:[%s6574_s18 + $0x13a0] sm:$0xff]  ;;  %v2482_v60 = vld [vmem:[%s6574_s18 + $0x13b0] sm:$0xff]  ;;  %v2101_v61 = vld [vmem:[%s6574_s18 + $0x7c8] sm:$0xff] }
 0x280   : > { %4567 = vmatprep.subr.bf16.mxu0 %v4566_v9  ;;  %v4586_v9 = vpack.c.bf16 %v2467_v0, %v2465_v63  ;;  %v2103_v62 = vld [vmem:[%s6574_s18 + $0x7d8] sm:$0xff]  ;;  %v2485_v63 = vld [vmem:[%s6574_s18 + $0x13c8] sm:$0xff] }
 0x281   : > { %v2487_v0 = vld [vmem:[%s6574_s18 + $0x13d8] sm:$0xff] }
 0x282   : > { %4185 = vmatpush1.bf16.msra.mxu1 %v4184_v16  ;;  %v4204_v16 = vpack.c.bf16 %v2082_v5, %v2080_v42  ;;  %v2100_v42 = vld [vmem:[%s6574_s18 + $0x7c0] sm:$0xff]  ;;  %v2102_v5 = vld [vmem:[%s6574_s18 + $0x7d0] sm:$0xff] }
 0x283   : > { %4569 = vmatpush1.bf16.msra.mxu0 %v4568_v17  ;;  %4187 = vmatprep.subr.bf16.mxu1 %v4186_v18  ;;  %v4588_v17 = vpack.c.bf16 %v2466_v45, %v2464_v6  ;;  %v4206_v18 = vpack.c.bf16 %v2087_v11, %v2085_v10  ;;  %v2484_v6 = vld [vmem:[%s6574_s18 + $0x13c0] sm:$0xff]  ;;  %v2486_v45 = vld [vmem:[%s6574_s18 + $0x13d0] sm:$0xff]  ;;  %v2105_v10 = vld [vmem:[%s6574_s18 + $0x7e8] sm:$0xff] }
 0x284   : > { %4571 = vmatprep.subr.bf16.mxu0 %v4570_v20  ;;  %v4590_v20 = vpack.c.bf16 %v2471_v15, %v2469_v13  ;;  %v2107_v11 = vld [vmem:[%s6574_s18 + $0x7f8] sm:$0xff]  ;;  %v2489_v13 = vld [vmem:[%s6574_s18 + $0x13e8] sm:$0xff] }
 0x285   : > { %v2491_v15 = vld [vmem:[%s6574_s18 + $0x13f8] sm:$0xff] }
 0x286   : > { %4189 = vmatpush1.bf16.msra.mxu1 %v4188_v26  ;;  %v4208_v26 = vpack.c.bf16 %v2086_v3, %v2084_v47  ;;  %v2104_v47 = vld [vmem:[%s6574_s18 + $0x7e0] sm:$0xff]  ;;  %v2106_v3 = vld [vmem:[%s6574_s18 + $0x7f0] sm:$0xff] }
 0x287   : > { %4573 = vmatpush1.bf16.msra.mxu0 %v4572_v27  ;;  %4191 = vmatprep.subr.bf16.mxu1 %v4190_v29  ;;  %v4592_v27 = vpack.c.bf16 %v2470_v21, %v2468_v19  ;;  %v4210_v29 = vpack.c.bf16 %v2091_v23, %v2089_v22  ;;  %v2488_v19 = vld [vmem:[%s6574_s18 + $0x13e0] sm:$0xff]  ;;  %v2490_v21 = vld [vmem:[%s6574_s18 + $0x13f0] sm:$0xff]  ;;  %v2109_v22 = vld [vmem:[%s6574_s18 + $0x808] sm:$0xff] }
 0x288   : > { %4575 = vmatprep.subr.bf16.mxu0 %v4574_v33  ;;  %v4594_v33 = vpack.c.bf16 %v2475_v25, %v2473_v50  ;;  %v2111_v23 = vld [vmem:[%s6574_s18 + $0x818] sm:$0xff]  ;;  %v2493_v50 = vld [vmem:[%s6574_s18 + $0x1408] sm:$0xff] }
 0x289   : > { %v2495_v25 = vld [vmem:[%s6574_s18 + $0x1418] sm:$0xff] }
 0x28a   : > { %4193 = vmatpush1.bf16.msra.mxu1 %v4192_v39  ;;  %v4212_v39 = vpack.c.bf16 %v2090_v31, %v2088_v30  ;;  %v4612_v30 = vpack.c.bf16 %v2490_v21, %v2488_v19  ;;  %v4230_v31 = vpack.c.bf16 %v2111_v23, %v2109_v22  ;;  %v2124_v21 = vld [vmem:[%s6574_s18 + $0x880] sm:$0xff]  ;;  %v2126_v22 = vld [vmem:[%s6574_s18 + $0x890] sm:$0xff] }
 0x28b   : > { %4577 = vmatpush1.bf16.msra.mxu0 %v4576_v40  ;;  %4195 = vmatprep.subr.bf16.mxu1 %v4194_v41  ;;  %v4596_v40 = vpack.c.bf16 %v2474_v34, %v2472_v32  ;;  %v4214_v41 = vpack.c.bf16 %v2095_v36, %v2093_v35  ;;  %v2108_v32 = vld [vmem:[%s6574_s18 + $0x800] sm:$0xff]  ;;  %v4614_v35 = vpack.c.bf16 %v2495_v25, %v2493_v50  ;;  %v2494_v36 = vld [vmem:[%s6574_s18 + $0x1410] sm:$0xff] }
 0x28c   : > { %4579 = vmatprep.subr.bf16.mxu0 %v4578_v46  ;;  %v4598_v46 = vpack.c.bf16 %v2479_v38, %v2477_v37  ;;  %v2492_v34 = vld [vmem:[%s6574_s18 + $0x1400] sm:$0xff]  ;;  %v2113_v37 = vld [vmem:[%s6574_s18 + $0x828] sm:$0xff]  ;;  %v2115_v38 = vld [vmem:[%s6574_s18 + $0x838] sm:$0xff] }
 0x28d   : > { %v2508_v23 = vld [vmem:[%s6574_s18 + $0x1480] sm:$0xff]  ;;  %v2510_v25 = vld [vmem:[%s6574_s18 + $0x1490] sm:$0xff] }
 0x28e   : > { %4197 = vmatpush1.bf16.msra.mxu1 %v4196_v53  ;;  %v4216_v53 = vpack.c.bf16 %v2094_v7, %v2092_v43 }
 0x28f   : > { %4581 = vmatpush1.bf16.msra.mxu0 %v4580_v54  ;;  %4199 = vmatprep.subr.bf16.mxu1 %v4198_v55  ;;  %v4600_v54 = vpack.c.bf16 %v2478_v48, %v2476_v44  ;;  %v4218_v55 = vpack.c.bf16 %v2099_v51, %v2097_v49  ;;  %v4616_v44 = vpack.c.bf16 %v2494_v36, %v2492_v34  ;;  %v2112_v48 = vld [vmem:[%s6574_s18 + $0x820] sm:$0xff]  ;;  %v2114_v49 = vld [vmem:[%s6574_s18 + $0x830] sm:$0xff] }
 0x290   : > { %4583 = vmatprep.subr.bf16.mxu0 %v4582_v59  ;;  %v4602_v59 = vpack.c.bf16 %v2483_v52, %v2481_v12  ;;  %v2496_v51 = vld [vmem:[%s6574_s18 + $0x1420] sm:$0xff]  ;;  %v2498_v52 = vld [vmem:[%s6574_s18 + $0x1430] sm:$0xff]  ;;  %v4632_v34 = vpack.c.bf16 %v2510_v25, %v2508_v23 }
 0x291   : > { %v2128_v36 = vld [vmem:[%s6574_s18 + $0x8a0] sm:$0xff] }
 0x292   : > { %4201 = vmatpush1.bf16.msra.mxu1 %v4200_v1  ;;  %v4220_v1 = vpack.c.bf16 %v2098_v57, %v2096_v56  ;;  %v2501_v56 = vld [vmem:[%s6574_s18 + $0x1448] sm:$0xff]  ;;  %v2503_v57 = vld [vmem:[%s6574_s18 + $0x1458] sm:$0xff]  ;;  %v2144_v23 = vld [vmem:[%s6574_s18 + $0x920] sm:$0xff] }
 0x293   : > { %4585 = vmatpush1.bf16.msra.mxu0 %v4584_v2  ;;  %4203 = vmatprep.subr.bf16.mxu1 %v4202_v4  ;;  %v4604_v2 = vpack.c.bf16 %v2482_v60, %v2480_v58  ;;  %v4222_v4 = vpack.c.bf16 %v2103_v62, %v2101_v61  ;;  %v4620_v60 = vpack.c.bf16 %v2498_v52, %v2496_v51  ;;  %v2116_v62 = vld [vmem:[%s6574_s18 + $0x840] sm:$0xff] }
 0x294   : > { %4587 = vmatprep.subr.bf16.mxu0 %v4586_v9  ;;  %v4606_v9 = vpack.c.bf16 %v2487_v0, %v2485_v63  ;;  %v2500_v63 = vld [vmem:[%s6574_s18 + $0x1440] sm:$0xff]  ;;  %v4622_v0 = vpack.c.bf16 %v2503_v57, %v2501_v56  ;;  %v2518_v56 = vld [vmem:[%s6574_s18 + $0x14d0] sm:$0xff]  ;;  %v2137_v57 = vld [vmem:[%s6574_s18 + $0x8e8] sm:$0xff] }
 0x295   : > { %v2132_v52 = vld [vmem:[%s6574_s18 + $0x8c0] sm:$0xff] }
 0x296   : > { %4205 = vmatpush1.bf16.msra.mxu1 %v4204_v16  ;;  %v4224_v16 = vpack.c.bf16 %v2102_v5, %v2100_v42  ;;  %v2507_v42 = vld [vmem:[%s6574_s18 + $0x1478] sm:$0xff]  ;;  %v2528_v25 = vld [vmem:[%s6574_s18 + $0x1520] sm:$0xff] }
 0x297   : > { %4589 = vmatpush1.bf16.msra.mxu0 %v4588_v17  ;;  %4207 = vmatprep.subr.bf16.mxu1 %v4206_v18  ;;  %v4608_v17 = vpack.c.bf16 %v2486_v45, %v2484_v6  ;;  %v4226_v18 = vpack.c.bf16 %v2107_v11, %v2105_v10  ;;  %v2120_v45 = vld [vmem:[%s6574_s18 + $0x860] sm:$0xff]  ;;  %v2122_v10 = vld [vmem:[%s6574_s18 + $0x870] sm:$0xff] }
 0x298   : > { %4591 = vmatprep.subr.bf16.mxu0 %v4590_v20  ;;  %v4610_v20 = vpack.c.bf16 %v2491_v15, %v2489_v13  ;;  %v2504_v11 = vld [vmem:[%s6574_s18 + $0x1460] sm:$0xff]  ;;  %v2506_v15 = vld [vmem:[%s6574_s18 + $0x1470] sm:$0xff] }
 0x299   : > { %v4628_v19 = vpack.c.bf16 %v2506_v15, %v2504_v11  ;;  %v2140_v11 = vld [vmem:[%s6574_s18 + $0x900] sm:$0xff] }
 0x29a   : > { %4209 = vmatpush1.bf16.msra.mxu1 %v4208_v26  ;;  %v7179_v26 = vld [vmem:[%s7569_s0 + $0x10] sm:$0xff]  ;;  %v2524_v15 = vld [vmem:[%s6574_s18 + $0x1500] sm:$0xff] }
 0x29b   : > { %4593 = vmatpush1.bf16.msra.mxu0 %v4592_v27  ;;  %4211 = vmatprep.subr.bf16.mxu1 %v4210_v29  ;;  %v4228_v27 = vpack.c.bf16 %v2106_v3, %v2104_v47  ;;  %v7184_v29 = vld [vmem:[%s7569_s0 + $0x28] sm:$0xff]  ;;  %v2511_v47 = vld [vmem:[%s6574_s18 + $0x1498] sm:$0xff]  ;;  %v4244_v3 = vpack.c.bf16 %v2122_v10, %v2120_v45 }
 0x29c   : > { %4595 = vmatprep.subr.bf16.mxu0 %v4594_v33  ;;  %v2110_v33 = vld [vmem:[%s6574_s18 + $0x810] sm:$0xff]  ;;  %v7200_v43 = vrot.slane %v7184_v29, %v6672_v28 }
 0x29d   : > { %v4232_v7 = vpack.c.bf16 %v2110_v33, %v2108_v32  ;;  %v2515_v32 = vld [vmem:[%s6574_s18 + $0x14b8] sm:$0xff]  ;;  %v4248_v33 = vpack.c.bf16 %v2126_v22, %v2124_v21 }
 0x29e   : > { %4213 = vmatpush1.bf16.msra.mxu1 %v4212_v39  ;;  %v7194_v39 = vrot.slane %v7179_v26, %v6672_v28  ;;  %v2755_v58 = vcombine.high %v7200_v43, %v7200_v43 }
 0x29f   : > { %4597 = vmatpush1.bf16.msra.mxu0 %v4596_v40  ;;  %4215 = vmatprep.subr.bf16.mxu1 %v4214_v41  ;;  %v2497_v40 = vld [vmem:[%s6574_s18 + $0x1428] sm:$0xff]  ;;  %v2499_v41 = vld [vmem:[%s6574_s18 + $0x1438] sm:$0xff] }
 0x2a0   : > { %4599 = vmatprep.subr.bf16.mxu0 %v4598_v46  ;;  %v4234_v46 = vpack.c.bf16 %v2115_v38, %v2113_v37  ;;  %v4618_v12 = vpack.c.bf16 %v2499_v41, %v2497_v40  ;;  %v2130_v37 = vld [vmem:[%s6574_s18 + $0x8b0] sm:$0xff]  ;;  %v2512_v38 = vld [vmem:[%s6574_s18 + $0x14a0] sm:$0xff] }
 0x2a1   : > { %v2514_v41 = vld [vmem:[%s6574_s18 + $0x14b0] sm:$0xff] }
 0x2a2   : > { %4217 = vmatpush1.bf16.msra.mxu1 %v4216_v53  ;;  %v2117_v53 = vld [vmem:[%s6574_s18 + $0x848] sm:$0xff]  ;;  %v4636_v51 = vpack.c.bf16 %v2514_v41, %v2512_v38  ;;  %v2148_v38 = vld [vmem:[%s6574_s18 + $0x940] sm:$0xff] }
 0x2a3   : > { %4601 = vmatpush1.bf16.msra.mxu0 %v4600_v54  ;;  %4219 = vmatprep.subr.bf16.mxu1 %v4218_v55  ;;  %v2119_v54 = vld [vmem:[%s6574_s18 + $0x858] sm:$0xff]  ;;  %v2704_v55 = vcombine.high %v7194_v39, %v7194_v39  ;;  %v2532_v41 = vld [vmem:[%s6574_s18 + $0x1540] sm:$0xff] }
 0x2a4   : > { %4603 = vmatprep.subr.bf16.mxu0 %v4602_v59  ;;  %v4236_v59 = vpack.c.bf16 %v2114_v49, %v2112_v48  ;;  %v4238_v61 = vpack.c.bf16 %v2119_v54, %v2117_v53  ;;  %v2519_v48 = vld [vmem:[%s6574_s18 + $0x14d8] sm:$0xff]  ;;  %v4252_v49 = vpack.c.bf16 %v2130_v37, %v2128_v36  ;;  %v2134_v53 = vld [vmem:[%s6574_s18 + $0x8d0] sm:$0xff]  ;;  %v2516_v54 = vld [vmem:[%s6574_s18 + $0x14c0] sm:$0xff] }
 0x2a6   : > { %4221 = vmatpush1.bf16.msra.mxu1 %v4220_v1  ;;  %v2502_v1 = vld [vmem:[%s6574_s18 + $0x1450] sm:$0xff] }
 0x2a7   : > { %4605 = vmatpush1.bf16.msra.mxu0 %v4604_v2  ;;  %4223 = vmatprep.subr.bf16.mxu1 %v4222_v4  ;;  %v2121_v2 = vld [vmem:[%s6574_s18 + $0x868] sm:$0xff]  ;;  %v2123_v4 = vld [vmem:[%s6574_s18 + $0x878] sm:$0xff]  ;;  %v4624_v6 = vpack.c.bf16 %v2502_v1, %v2500_v63  ;;  %v2136_v63 = vld [vmem:[%s6574_s18 + $0x8e0] sm:$0xff] }
 0x2a8   : > { %4607 = vmatprep.subr.bf16.mxu0 %v4606_v9  ;;  %v4242_v9 = vpack.c.bf16 %v2123_v4, %v2121_v2  ;;  %v2520_v1 = vld [vmem:[%s6574_s18 + $0x14e0] sm:$0xff]  ;;  %v2522_v4 = vld [vmem:[%s6574_s18 + $0x14f0] sm:$0xff] }
 0x2a9   : > { %v4644_v45 = vpack.c.bf16 %v2522_v4, %v2520_v1  ;;  %v2156_v1 = vld [vmem:[%s6574_s18 + $0x980] sm:$0xff] }
 0x2aa   : > { %4225 = vmatpush1.bf16.msra.mxu1 %v4224_v16  ;;  %v2125_v16 = vld [vmem:[%s6574_s18 + $0x888] sm:$0xff]  ;;  %v2540_v4 = vld [vmem:[%s6574_s18 + $0x1580] sm:$0xff] }
 0x2ab   : > { %4609 = vmatpush1.bf16.msra.mxu0 %v4608_v17  ;;  %4227 = vmatprep.subr.bf16.mxu1 %v4226_v18  ;;  %v2127_v17 = vld [vmem:[%s6574_s18 + $0x898] sm:$0xff]  ;;  %v2509_v18 = vld [vmem:[%s6574_s18 + $0x1488] sm:$0xff] }
 0x2ac   : > { %4611 = vmatprep.subr.bf16.mxu0 %v4610_v20  ;;  %v4246_v20 = vpack.c.bf16 %v2127_v17, %v2125_v16  ;;  %v4630_v50 = vpack.c.bf16 %v2511_v47, %v2509_v18  ;;  %v2526_v17 = vld [vmem:[%s6574_s18 + $0x1510] sm:$0xff]  ;;  %v2145_v18 = vld [vmem:[%s6574_s18 + $0x928] sm:$0xff]  ;;  %v2147_v47 = vld [vmem:[%s6574_s18 + $0x938] sm:$0xff] }
 0x2ad   : > { %v4648_v21 = vpack.c.bf16 %v2526_v17, %v2524_v15  ;;  %v4266_v22 = vpack.c.bf16 %v2147_v47, %v2145_v18  ;;  %v2160_v15 = vld [vmem:[%s6574_s18 + $0x9a0] sm:$0xff]  ;;  %v2546_v47 = vld [vmem:[%s6574_s18 + $0x15b0] sm:$0xff] }
 0x2ae   : > { %4229 = vmatpush1.bf16.msra.mxu1 %v4228_v27  ;;  %v2129_v27 = vld [vmem:[%s6574_s18 + $0x8a8] sm:$0xff]  ;;  %v2544_v17 = vld [vmem:[%s6574_s18 + $0x15a0] sm:$0xff] }
 0x2af   : > { %4613 = vmatpush1.bf16.msra.mxu0 %v4612_v30  ;;  %4231 = vmatprep.subr.bf16.mxu1 %v4230_v31  ;;  %v2131_v30 = vld [vmem:[%s6574_s18 + $0x8b8] sm:$0xff]  ;;  %v2513_v31 = vld [vmem:[%s6574_s18 + $0x14a8] sm:$0xff] }
 0x2b0   : > { %4615 = vmatprep.subr.bf16.mxu0 %v4614_v35  ;;  %v4250_v35 = vpack.c.bf16 %v2131_v30, %v2129_v27  ;;  %v4634_v40 = vpack.c.bf16 %v2515_v32, %v2513_v31  ;;  %v2530_v30 = vld [vmem:[%s6574_s18 + $0x1530] sm:$0xff]  ;;  %v2149_v31 = vld [vmem:[%s6574_s18 + $0x948] sm:$0xff]  ;;  %v2151_v32 = vld [vmem:[%s6574_s18 + $0x958] sm:$0xff] }
 0x2b1   : > { %3069 = vmatmul.mubr.f32.vlgmr.msra.gmra.mrb[0].mxu1 %v7043_v8  ;;  %v2118_v8 = vld [vmem:[%s6574_s18 + $0x850] sm:$0xff]  ;;  %v4652_v36 = vpack.c.bf16 %v2530_v30, %v2528_v25  ;;  %v4270_v37 = vpack.c.bf16 %v2151_v32, %v2149_v31  ;;  %v2164_v25 = vld [vmem:[%s6574_s18 + $0x9c0] sm:$0xff] }
 0x2b2   : > { %4233 = vmatpush1.bf16.msra.mxu1 %v4232_v7  ;;  %3495 = vmatmul.mubr.f32.vlgmr.msra.gmra.mrb[0].mxu0 %v7048_v24  ;;  %v2505_v24 = vld [vmem:[%s6574_s18 + $0x1468] sm:$0xff]  ;;  %v4240_v5 = vpack.c.bf16 %v2118_v8, %v2116_v62  ;;  %v4640_v62 = vpack.c.bf16 %v2518_v56, %v2516_v54  ;;  %v2152_v54 = vld [vmem:[%s6574_s18 + $0x960] sm:$0xff]  ;;  %v2550_v32 = vld [vmem:[%s6574_s18 + $0x15d0] sm:$0xff] }
 0x2b3   : > { %4617 = vmatpush1.bf16.msra.mxu0 %v4616_v44  ;;  %4235 = vmatprep.subr.bf16.mxu1 %v4234_v46  ;;  %v4626_v13 = vpack.c.bf16 %v2507_v42, %v2505_v24  ;;  %v2133_v7 = vld [vmem:[%s6574_s18 + $0x8c8] sm:$0xff]  ;;  %v2135_v44 = vld [vmem:[%s6574_s18 + $0x8d8] sm:$0xff]  ;;  %v2536_v56 = vld [vmem:[%s6574_s18 + $0x1560] sm:$0xff] }
 0x2b4   : > { %4619 = vmatprep.subr.bf16.mxu0 %v4618_v12  ;;  %3139 = vmatprep.mubr.f32.mxu1 %v2704_v55  ;;  %v2517_v46 = vld [vmem:[%s6574_s18 + $0x14c8] sm:$0xff]  ;;  %v4254_v12 = vpack.c.bf16 %v2135_v44, %v2133_v7  ;;  %v2143_v42 = vld [vmem:[%s6574_s18 + $0x918] sm:$0xff]  ;;  %v2534_v44 = vld [vmem:[%s6574_s18 + $0x1550] sm:$0xff] }
 0x2b5   : > { %3565 = vmatprep.mubr.f32.mxu0 %v2755_v58  ;;  %v4638_v55 = vpack.c.bf16 %v2519_v48, %v2517_v46  ;;  %v2139_v58 = vld [vmem:[%s6574_s18 + $0x8f8] sm:$0xff]  ;;  %v2141_v24 = vld [vmem:[%s6574_s18 + $0x908] sm:$0xff]  ;;  %v2548_v30 = vld [vmem:[%s6574_s18 + $0x15c0] sm:$0xff] }
 0x2b6   : > { %4237 = vmatpush1.bf16.msra.mxu1 %v4236_v59  ;;  %v2521_v59 = vld [vmem:[%s6574_s18 + $0x14e8] sm:$0xff]  ;;  %v4258_v8 = vpack.c.bf16 %v2139_v58, %v2137_v57  ;;  %v4262_v10 = vpack.c.bf16 %v2143_v42, %v2141_v24  ;;  %v2155_v48 = vld [vmem:[%s6574_s18 + $0x978] sm:$0xff]  ;;  %v2538_v58 = vld [vmem:[%s6574_s18 + $0x1570] sm:$0xff] }
 0x2b7   : > { %4621 = vmatpush1.bf16.msra.mxu0 %v4620_v60  ;;  %4239 = vmatprep.subr.bf16.mxu1 %v4238_v61  ;;  %v2523_v60 = vld [vmem:[%s6574_s18 + $0x14f8] sm:$0xff]  ;;  %v4256_v61 = vpack.c.bf16 %v2134_v53, %v2132_v52  ;;  %v2153_v46 = vld [vmem:[%s6574_s18 + $0x968] sm:$0xff]  ;;  %v4656_v52 = vpack.c.bf16 %v2534_v44, %v2532_v41  ;;  %v2542_v42 = vld [vmem:[%s6574_s18 + $0x1590] sm:$0xff] }
 0x2b8   : > { %4623 = vmatprep.subr.bf16.mxu0 %v4622_v0  ;;  %v2138_v0 = vld [vmem:[%s6574_s18 + $0x8f0] sm:$0xff]  ;;  %v4642_v2 = vpack.c.bf16 %v2523_v60, %v2521_v59  ;;  %v4274_v53 = vpack.c.bf16 %v2155_v48, %v2153_v46  ;;  %v2157_v59 = vld [vmem:[%s6574_s18 + $0x988] sm:$0xff]  ;;  %v2159_v60 = vld [vmem:[%s6574_s18 + $0x998] sm:$0xff] }
 0x2b9   : > { %v2168_v41 = vld [vmem:[%s6574_s18 + $0x9e0] sm:$0xff]  ;;  %v2554_v48 = vld [vmem:[%s6574_s18 + $0x15f0] sm:$0xff] }
 0x2ba   : > { %4241 = vmatpush1.bf16.msra.mxu1 %v4240_v5  ;;  %v2525_v5 = vld [vmem:[%s6574_s18 + $0x1508] sm:$0xff]  ;;  %v2552_v44 = vld [vmem:[%s6574_s18 + $0x15e0] sm:$0xff] }
 0x2bb   : > { %4625 = vmatpush1.bf16.msra.mxu0 %v4624_v6  ;;  %4243 = vmatprep.subr.bf16.mxu1 %v4242_v9  ;;  %v2527_v6 = vld [vmem:[%s6574_s18 + $0x1518] sm:$0xff]  ;;  %v4260_v9 = vpack.c.bf16 %v2138_v0, %v2136_v63  ;;  %v4660_v63 = vpack.c.bf16 %v2538_v58, %v2536_v56  ;;  %v4278_v0 = vpack.c.bf16 %v2159_v60, %v2157_v59  ;;  %v2172_v58 = vld [vmem:[%s6574_s18 + $0xa00] sm:$0xff]  ;;  %v2174_v59 = vld [vmem:[%s6574_s18 + $0xa10] sm:$0xff] }
 0x2bc   : > { %4627 = vmatprep.subr.bf16.mxu0 %v4626_v13  ;;  %v2142_v13 = vld [vmem:[%s6574_s18 + $0x910] sm:$0xff]  ;;  %v4646_v16 = vpack.c.bf16 %v2527_v6, %v2525_v5  ;;  %v2161_v5 = vld [vmem:[%s6574_s18 + $0x9a8] sm:$0xff]  ;;  %v2163_v6 = vld [vmem:[%s6574_s18 + $0x9b8] sm:$0xff]  ;;  %v4676_v56 = vpack.c.bf16 %v2554_v48, %v2552_v44 }
 0x2bd   : > { %v2556_v60 = vld [vmem:[%s6574_s18 + $0x1600] sm:$0xff]  ;;  %v2190_v48 = vld [vmem:[%s6574_s18 + $0xa90] sm:$0xff] }
 0x2be   : > { %4245 = vmatpush1.bf16.msra.mxu1 %v4244_v3  ;;  %v2529_v3 = vld [vmem:[%s6574_s18 + $0x1528] sm:$0xff] }
 0x2bf   : > { %4629 = vmatpush1.bf16.msra.mxu0 %v4628_v19  ;;  %4247 = vmatprep.subr.bf16.mxu1 %v4246_v20  ;;  %v2531_v19 = vld [vmem:[%s6574_s18 + $0x1538] sm:$0xff]  ;;  %v4264_v20 = vpack.c.bf16 %v2142_v13, %v2140_v11  ;;  %v4664_v11 = vpack.c.bf16 %v2542_v42, %v2540_v4  ;;  %v4282_v13 = vpack.c.bf16 %v2163_v6, %v2161_v5  ;;  %v2176_v42 = vld [vmem:[%s6574_s18 + $0xa20] sm:$0xff]  ;;  %v2178_v5 = vld [vmem:[%s6574_s18 + $0xa30] sm:$0xff] }
 0x2c0   : > { %4631 = vmatprep.subr.bf16.mxu0 %v4630_v50  ;;  %v2146_v50 = vld [vmem:[%s6574_s18 + $0x930] sm:$0xff]  ;;  %v4650_v27 = vpack.c.bf16 %v2531_v19, %v2529_v3  ;;  %v2165_v3 = vld [vmem:[%s6574_s18 + $0x9c8] sm:$0xff]  ;;  %v2167_v19 = vld [vmem:[%s6574_s18 + $0x9d8] sm:$0xff] }
 0x2c1   : > { %v2560_v6 = vld [vmem:[%s6574_s18 + $0x1620] sm:$0xff] }
 0x2c2   : > { %4249 = vmatpush1.bf16.msra.mxu1 %v4248_v33  ;;  %v2533_v33 = vld [vmem:[%s6574_s18 + $0x1548] sm:$0xff] }
 0x2c3   : > { %4633 = vmatpush1.bf16.msra.mxu0 %v4632_v34  ;;  %4251 = vmatprep.subr.bf16.mxu1 %v4250_v35  ;;  %v2535_v34 = vld [vmem:[%s6574_s18 + $0x1558] sm:$0xff]  ;;  %v4268_v35 = vpack.c.bf16 %v2146_v50, %v2144_v23  ;;  %v4668_v23 = vpack.c.bf16 %v2546_v47, %v2544_v17  ;;  %v4286_v50 = vpack.c.bf16 %v2167_v19, %v2165_v3  ;;  %v2180_v3 = vld [vmem:[%s6574_s18 + $0xa40] sm:$0xff] }
 0x2c4   : > { %4635 = vmatprep.subr.bf16.mxu0 %v4634_v40  ;;  %v2150_v40 = vld [vmem:[%s6574_s18 + $0x950] sm:$0xff]  ;;  %v4654_v7 = vpack.c.bf16 %v2535_v34, %v2533_v33  ;;  %v2169_v33 = vld [vmem:[%s6574_s18 + $0x9e8] sm:$0xff]  ;;  %v2171_v34 = vld [vmem:[%s6574_s18 + $0x9f8] sm:$0xff]  ;;  %v4300_v17 = vpack.c.bf16 %v2178_v5, %v2176_v42 }
 0x2c5   : > { %v2564_v19 = vld [vmem:[%s6574_s18 + $0x1640] sm:$0xff] }
 0x2c6   : > { %4253 = vmatpush1.bf16.msra.mxu1 %v4252_v49  ;;  %v2537_v49 = vld [vmem:[%s6574_s18 + $0x1568] sm:$0xff]  ;;  %v2196_v5 = vld [vmem:[%s6574_s18 + $0xac0] sm:$0xff] }
 0x2c7   : > { %4637 = vmatpush1.bf16.msra.mxu0 %v4636_v51  ;;  %4255 = vmatprep.subr.bf16.mxu1 %v4254_v12  ;;  %v2539_v51 = vld [vmem:[%s6574_s18 + $0x1578] sm:$0xff]  ;;  %v4272_v12 = vpack.c.bf16 %v2150_v40, %v2148_v38  ;;  %v4672_v38 = vpack.c.bf16 %v2550_v32, %v2548_v30  ;;  %v4290_v40 = vpack.c.bf16 %v2171_v34, %v2169_v33  ;;  %v2186_v32 = vld [vmem:[%s6574_s18 + $0xa70] sm:$0xff]  ;;  %v2568_v33 = vld [vmem:[%s6574_s18 + $0x1660] sm:$0xff] }
 0x2c8   : > { %4639 = vmatprep.subr.bf16.mxu0 %v4638_v55  ;;  %v2154_v55 = vld [vmem:[%s6574_s18 + $0x970] sm:$0xff]  ;;  %v4658_v57 = vpack.c.bf16 %v2539_v51, %v2537_v49  ;;  %v2173_v49 = vld [vmem:[%s6574_s18 + $0xa08] sm:$0xff]  ;;  %v2175_v51 = vld [vmem:[%s6574_s18 + $0xa18] sm:$0xff] }
 0x2ca   : > { %4257 = vmatpush1.bf16.msra.mxu1 %v4256_v61  ;;  %v2541_v61 = vld [vmem:[%s6574_s18 + $0x1588] sm:$0xff] }
 0x2cb   : > { %4641 = vmatpush1.bf16.msra.mxu0 %v4640_v62  ;;  %4259 = vmatprep.subr.bf16.mxu1 %v4258_v8  ;;  %v2543_v62 = vld [vmem:[%s6574_s18 + $0x1598] sm:$0xff]  ;;  %v4276_v8 = vpack.c.bf16 %v2154_v55, %v2152_v54  ;;  %v2740_v54 = vcombine.high %v7184_v29, %v7184_v29 }
 0x2cc   : > { %4643 = vmatprep.subr.bf16.mxu0 %v4642_v2  ;;  %v2158_v2 = vld [vmem:[%s6574_s18 + $0x990] sm:$0xff]  ;;  %v4662_v24 = vpack.c.bf16 %v2543_v62, %v2541_v61  ;;  %v2177_v62 = vld [vmem:[%s6574_s18 + $0xa28] sm:$0xff] }
 0x2cd   : > { %v2558_v61 = vld [vmem:[%s6574_s18 + $0x1610] sm:$0xff] }
 0x2ce   : > { %4261 = vmatpush1.bf16.msra.mxu1 %v4260_v9  ;;  %v2545_v9 = vld [vmem:[%s6574_s18 + $0x15a8] sm:$0xff]  ;;  %v4680_v4 = vpack.c.bf16 %v2558_v61, %v2556_v60  ;;  %v2194_v60 = vld [vmem:[%s6574_s18 + $0xab0] sm:$0xff] }
 0x2cf   : > { %4645 = vmatpush1.bf16.msra.mxu0 %v4644_v45  ;;  %4263 = vmatprep.subr.bf16.mxu1 %v4262_v10  ;;  %v2547_v45 = vld [vmem:[%s6574_s18 + $0x15b8] sm:$0xff]  ;;  %v4280_v10 = vpack.c.bf16 %v2158_v2, %v2156_v1  ;;  %v7344_v1 = vrot.slane %v2740_v54, %v6672_v28  ;;  %v4296_v2 = vpack.c.bf16 %v2174_v59, %v2172_v58  ;;  %v2577_v54 = vld [vmem:[%s6574_s18 + $0x16a8] sm:$0xff]  ;;  %v2192_v59 = vld [vmem:[%s6574_s18 + $0xaa0] sm:$0xff] }
 0x2d0   : > { %4647 = vmatprep.subr.bf16.mxu0 %v4646_v16  ;;  %v2162_v16 = vld [vmem:[%s6574_s18 + $0x9b0] sm:$0xff]  ;;  %v4666_v18 = vpack.c.bf16 %v2547_v45, %v2545_v9 }
 0x2d1   : > { %v2562_v45 = vld [vmem:[%s6574_s18 + $0x1630] sm:$0xff] }
 0x2d2   : > { %4265 = vmatpush1.bf16.msra.mxu1 %v4264_v20  ;;  %v2549_v20 = vld [vmem:[%s6574_s18 + $0x15c8] sm:$0xff] }
 0x2d3   : > { %4649 = vmatpush1.bf16.msra.mxu0 %v4648_v21  ;;  %4267 = vmatprep.subr.bf16.mxu1 %v4266_v22  ;;  %v2551_v21 = vld [vmem:[%s6574_s18 + $0x15d8] sm:$0xff]  ;;  %v4284_v22 = vpack.c.bf16 %v2162_v16, %v2160_v15  ;;  %v2756_v16 = vcombine.high %v7344_v1, %v7344_v1 }
 0x2d4   : > { %4651 = vmatprep.subr.bf16.mxu0 %v4650_v27  ;;  %v2166_v27 = vld [vmem:[%s6574_s18 + $0x9d0] sm:$0xff]  ;;  %v4670_v31 = vpack.c.bf16 %v2551_v21, %v2549_v20  ;;  %v2567_v15 = vld [vmem:[%s6574_s18 + $0x1658] sm:$0xff] }
 0x2d5   : > { %v2566_v21 = vld [vmem:[%s6574_s18 + $0x1650] sm:$0xff] }
 0x2d6   : > { %4269 = vmatpush1.bf16.msra.mxu1 %v4268_v35  ;;  %v2553_v35 = vld [vmem:[%s6574_s18 + $0x15e8] sm:$0xff] }
 0x2d7   : > { %4653 = vmatpush1.bf16.msra.mxu0 %v4652_v36  ;;  %4271 = vmatprep.subr.bf16.mxu1 %v4270_v37  ;;  %v2555_v36 = vld [vmem:[%s6574_s18 + $0x15f8] sm:$0xff]  ;;  %v4288_v37 = vpack.c.bf16 %v2166_v27, %v2164_v25  ;;  %v4688_v27 = vpack.c.bf16 %v2566_v21, %v2564_v19  ;;  %v2205_v21 = vld [vmem:[%s6574_s18 + $0xb08] sm:$0xff] }
 0x2d8   : > { %4655 = vmatprep.subr.bf16.mxu0 %v4654_v7  ;;  %v2170_v7 = vld [vmem:[%s6574_s18 + $0x9f0] sm:$0xff]  ;;  %v4674_v46 = vpack.c.bf16 %v2555_v36, %v2553_v35  ;;  %v2189_v36 = vld [vmem:[%s6574_s18 + $0xa88] sm:$0xff] }
 0x2d9   : > { %v4292_v55 = vpack.c.bf16 %v2170_v7, %v2168_v41  ;;  %v2570_v35 = vld [vmem:[%s6574_s18 + $0x1670] sm:$0xff] }
 0x2da   : > { %4273 = vmatpush1.bf16.msra.mxu1 %v4272_v12  ;;  %v2689_v12 = vcombine.high %v7179_v26, %v7179_v26  ;;  %v4692_v7 = vpack.c.bf16 %v2570_v35, %v2568_v33  ;;  %v2209_v35 = vld [vmem:[%s6574_s18 + $0xb28] sm:$0xff] }
 0x2db   : > { %4657 = vmatpush1.bf16.msra.mxu0 %v4656_v52  ;;  %4275 = vmatprep.subr.bf16.mxu1 %v4274_v53  ;;  %v2557_v52 = vld [vmem:[%s6574_s18 + $0x1608] sm:$0xff]  ;;  %v2559_v53 = vld [vmem:[%s6574_s18 + $0x1618] sm:$0xff] }
 0x2dc   : > { %4659 = vmatprep.subr.bf16.mxu0 %v4658_v57  ;;  %v4294_v57 = vpack.c.bf16 %v2175_v51, %v2173_v49  ;;  %v4678_v26 = vpack.c.bf16 %v2559_v53, %v2557_v52  ;;  %v7339_v29 = vrot.slane %v2689_v12, %v6672_v28  ;;  %v2183_v28 = vld [vmem:[%s6574_s18 + $0xa58] sm:$0xff]  ;;  %v2572_v49 = vld [vmem:[%s6574_s18 + $0x1680] sm:$0xff]  ;;  %v2574_v12 = vld [vmem:[%s6574_s18 + $0x1690] sm:$0xff] }
 0x2dd   : > { %v2193_v52 = vld [vmem:[%s6574_s18 + $0xaa8] sm:$0xff]  ;;  %v2195_v53 = vld [vmem:[%s6574_s18 + $0xab8] sm:$0xff] }
 0x2de   : > { %4277 = vmatpush1.bf16.msra.mxu1 %v4276_v8  ;;  %v2179_v8 = vld [vmem:[%s6574_s18 + $0xa38] sm:$0xff]  ;;  %v4314_v58 = vpack.c.bf16 %v2195_v53, %v2193_v52  ;;  %v2597_v53 = vld [vmem:[%s6574_s18 + $0x1748] sm:$0xff] }
 0x2df   : > { %4661 = vmatpush1.bf16.msra.mxu0 %v4660_v63  ;;  %4279 = vmatprep.subr.bf16.mxu1 %v4278_v0  ;;  %v2561_v63 = vld [vmem:[%s6574_s18 + $0x1628] sm:$0xff]  ;;  %v2563_v0 = vld [vmem:[%s6574_s18 + $0x1638] sm:$0xff] }
 0x2e0   : > { %4663 = vmatprep.subr.bf16.mxu0 %v4662_v24  ;;  %v4298_v24 = vpack.c.bf16 %v2179_v8, %v2177_v62  ;;  %v4682_v9 = vpack.c.bf16 %v2563_v0, %v2561_v63  ;;  %v2578_v62 = vld [vmem:[%s6574_s18 + $0x16b0] sm:$0xff]  ;;  %v2197_v8 = vld [vmem:[%s6574_s18 + $0xac8] sm:$0xff]  ;;  %v2199_v63 = vld [vmem:[%s6574_s18 + $0xad8] sm:$0xff] }
 0x2e1   : > { %v2581_v0 = vld [vmem:[%s6574_s18 + $0x16c8] sm:$0xff]  ;;  %v4318_v42 = vpack.c.bf16 %v2199_v63, %v2197_v8  ;;  %v2215_v52 = vld [vmem:[%s6574_s18 + $0xb58] sm:$0xff] }
 0x2e2   : > { %4281 = vmatpush1.bf16.msra.mxu1 %v4280_v10  ;;  %v2181_v10 = vld [vmem:[%s6574_s18 + $0xa48] sm:$0xff]  ;;  %v2219_v8 = vld [vmem:[%s6574_s18 + $0xb78] sm:$0xff] }
 0x2e3   : > { %4665 = vmatpush1.bf16.msra.mxu0 %v4664_v11  ;;  %4283 = vmatprep.subr.bf16.mxu1 %v4282_v13  ;;  %v2705_v11 = vcombine.high %v7339_v29, %v7339_v29  ;;  %v2565_v13 = vld [vmem:[%s6574_s18 + $0x1648] sm:$0xff]  ;;  %v4302_v47 = vpack.c.bf16 %v2183_v28, %v2181_v10  ;;  %v2582_v10 = vld [vmem:[%s6574_s18 + $0x16d0] sm:$0xff] }
 0x2e4   : > { %4667 = vmatprep.subr.bf16.mxu0 %v4666_v18  ;;  %v4684_v18 = vpack.c.bf16 %v2562_v45, %v2560_v6  ;;  %v4686_v20 = vpack.c.bf16 %v2567_v15, %v2565_v13  ;;  %v2198_v6 = vld [vmem:[%s6574_s18 + $0xad0] sm:$0xff]  ;;  %v2201_v28 = vld [vmem:[%s6574_s18 + $0xae8] sm:$0xff]  ;;  %v2587_v15 = vld [vmem:[%s6574_s18 + $0x16f8] sm:$0xff] }
 0x2e5   : > { %v2585_v13 = vld [vmem:[%s6574_s18 + $0x16e8] sm:$0xff] }
 0x2e6   : > { %4285 = vmatpush1.bf16.msra.mxu1 %v4284_v22  ;;  %v2185_v22 = vld [vmem:[%s6574_s18 + $0xa68] sm:$0xff]  ;;  %v4706_v19 = vpack.c.bf16 %v2587_v15, %v2585_v13  ;;  %v2607_v13 = vld [vmem:[%s6574_s18 + $0x1798] sm:$0xff] }
 0x2e7   : > { %4669 = vmatpush1.bf16.msra.mxu0 %v4668_v23  ;;  %4287 = vmatprep.subr.bf16.mxu1 %v4286_v50  ;;  %v2187_v23 = vld [vmem:[%s6574_s18 + $0xa78] sm:$0xff]  ;;  %v2601_v63 = vld [vmem:[%s6574_s18 + $0x1768] sm:$0xff] }
 0x2e8   : > { %4671 = vmatprep.subr.bf16.mxu0 %v4670_v31  ;;  %v2571_v50 = vld [vmem:[%s6574_s18 + $0x1678] sm:$0xff]  ;;  %v4306_v30 = vpack.c.bf16 %v2187_v23, %v2185_v22  ;;  %v2184_v31 = vld [vmem:[%s6574_s18 + $0xa60] sm:$0xff]  ;;  %v2589_v23 = vld [vmem:[%s6574_s18 + $0x1708] sm:$0xff] }
 0x2e9   : > { %v4308_v41 = vpack.c.bf16 %v2186_v32, %v2184_v31  ;;  %v2207_v22 = vld [vmem:[%s6574_s18 + $0xb18] sm:$0xff]  ;;  %v2206_v31 = vld [vmem:[%s6574_s18 + $0xb10] sm:$0xff]  ;;  %v2588_v32 = vld [vmem:[%s6574_s18 + $0x1700] sm:$0xff] }
 0x2ea   : > { %4289 = vmatpush1.bf16.msra.mxu1 %v4288_v37  ;;  %v2191_v37 = vld [vmem:[%s6574_s18 + $0xa98] sm:$0xff] }
 0x2eb   : > { %4673 = vmatpush1.bf16.msra.mxu0 %v4672_v38  ;;  %4291 = vmatprep.subr.bf16.mxu1 %v4290_v40  ;;  %v2573_v38 = vld [vmem:[%s6574_s18 + $0x1688] sm:$0xff]  ;;  %v2575_v40 = vld [vmem:[%s6574_s18 + $0x1698] sm:$0xff]  ;;  %v4310_v44 = vpack.c.bf16 %v2191_v37, %v2189_v36 }
 0x2ec   : > { %4675 = vmatprep.subr.bf16.mxu0 %v4674_v46  ;;  %v2188_v46 = vld [vmem:[%s6574_s18 + $0xa80] sm:$0xff]  ;;  %v4694_v51 = vpack.c.bf16 %v2575_v40, %v2573_v38  ;;  %v2211_v36 = vld [vmem:[%s6574_s18 + $0xb38] sm:$0xff]  ;;  %v2593_v37 = vld [vmem:[%s6574_s18 + $0x1728] sm:$0xff] }
 0x2ed   : > { %v2595_v38 = vld [vmem:[%s6574_s18 + $0x1738] sm:$0xff] }
 0x2ee   : > { %4293 = vmatpush1.bf16.msra.mxu1 %v4292_v55  ;;  %v2579_v55 = vld [vmem:[%s6574_s18 + $0x16b8] sm:$0xff] }
 0x2ef   : > { %4677 = vmatpush1.bf16.msra.mxu0 %v4676_v56  ;;  %4295 = vmatprep.subr.bf16.mxu1 %v4294_v57  ;;  %v4312_v56 = vpack.c.bf16 %v2190_v48, %v2188_v46  ;;  %v4696_v57 = vpack.c.bf16 %v2574_v12, %v2572_v49  ;;  %v4698_v61 = vpack.c.bf16 %v2579_v55, %v2577_v54  ;;  %v2210_v46 = vld [vmem:[%s6574_s18 + $0xb30] sm:$0xff]  ;;  %v2592_v48 = vld [vmem:[%s6574_s18 + $0x1720] sm:$0xff]  ;;  %v2213_v12 = vld [vmem:[%s6574_s18 + $0xb48] sm:$0xff] }
 0x2f0   : > { %4679 = vmatprep.subr.bf16.mxu0 %v4678_v26  ;;  %v2576_v26 = vld [vmem:[%s6574_s18 + $0x16a0] sm:$0xff]  ;;  %v4714_v49 = vpack.c.bf16 %v2595_v38, %v2593_v37  ;;  %v2599_v54 = vld [vmem:[%s6574_s18 + $0x1758] sm:$0xff] }
 0x2f1   : > { %3140 = vmatmul.mubr.f32.vlgmr.msra.gmra.mrb[0].mxu1 %v7194_v39  ;;  %v2182_v39 = vld [vmem:[%s6574_s18 + $0xa50] sm:$0xff]  ;;  %v2615_v37 = vld [vmem:[%s6574_s18 + $0x17d8] sm:$0xff] }
 0x2f2   : > { %4297 = vmatpush1.bf16.msra.mxu1 %v4296_v2  ;;  %3566 = vmatmul.mubr.f32.vlgmr.msra.gmra.mrb[0].mxu0 %v7200_v43  ;;  %v2569_v43 = vld [vmem:[%s6574_s18 + $0x1668] sm:$0xff]  ;;  %v4304_v25 = vpack.c.bf16 %v2182_v39, %v2180_v3  ;;  %v2583_v2 = vld [vmem:[%s6574_s18 + $0x16d8] sm:$0xff]  ;;  %v2202_v3 = vld [vmem:[%s6574_s18 + $0xaf0] sm:$0xff] }
 0x2f3   : > { %4681 = vmatpush1.bf16.msra.mxu0 %v4680_v4  ;;  %4299 = vmatprep.subr.bf16.mxu1 %v4298_v24  ;;  %v4690_v34 = vpack.c.bf16 %v2571_v50, %v2569_v43  ;;  %v4316_v4 = vpack.c.bf16 %v2194_v60, %v2192_v59  ;;  %v4700_v24 = vpack.c.bf16 %v2578_v62, %v2576_v26  ;;  %v2584_v39 = vld [vmem:[%s6574_s18 + $0x16e0] sm:$0xff]  ;;  %v2591_v43 = vld [vmem:[%s6574_s18 + $0x1718] sm:$0xff]  ;;  %v2214_v59 = vld [vmem:[%s6574_s18 + $0xb50] sm:$0xff] }
 0x2f4   : > { %4683 = vmatprep.subr.bf16.mxu0 %v4682_v9  ;;  %3210 = vmatprep.mubr.f32.mxu1 %v2705_v11  ;;  %v2580_v9 = vld [vmem:[%s6574_s18 + $0x16c0] sm:$0xff]  ;;  %v4702_v45 = vpack.c.bf16 %v2583_v2, %v2581_v0  ;;  %v2203_v11 = vld [vmem:[%s6574_s18 + $0xaf8] sm:$0xff]  ;;  %v4710_v33 = vpack.c.bf16 %v2591_v43, %v2589_v23  ;;  %v4718_v26 = vpack.c.bf16 %v2599_v54, %v2597_v53  ;;  %v2217_v62 = vld [vmem:[%s6574_s18 + $0xb68] sm:$0xff] }
 0x2f5   : > { %3636 = vmatprep.mubr.f32.mxu0 %v2756_v16  ;;  %v4320_v16 = vpack.c.bf16 %v2198_v6, %v2196_v5  ;;  %v2596_v60 = vld [vmem:[%s6574_s18 + $0x1740] sm:$0xff]  ;;  %v2603_v0 = vld [vmem:[%s6574_s18 + $0x1778] sm:$0xff]  ;;  %v2218_v5 = vld [vmem:[%s6574_s18 + $0xb70] sm:$0xff] }
 0x2f6   : > { %4301 = vmatpush1.bf16.msra.mxu1 %v4300_v17  ;;  %v4704_v17 = vpack.c.bf16 %v2582_v10, %v2580_v9  ;;  %v2600_v6 = vld [vmem:[%s6574_s18 + $0x1760] sm:$0xff]  ;;  %v4722_v9 = vpack.c.bf16 %v2603_v0, %v2601_v63  ;;  %v2221_v10 = vld [vmem:[%s6574_s18 + $0xb88] sm:$0xff]  ;;  %v2611_v23 = vld [vmem:[%s6574_s18 + $0x17b8] sm:$0xff] }
 0x2f7   : > { %4685 = vmatpush1.bf16.msra.mxu0 %v4684_v18  ;;  %4303 = vmatprep.subr.bf16.mxu1 %v4302_v47  ;;  %v4322_v18 = vpack.c.bf16 %v2203_v11, %v2201_v28  ;;  %v2200_v47 = vld [vmem:[%s6574_s18 + $0xae0] sm:$0xff]  ;;  %v2223_v28 = vld [vmem:[%s6574_s18 + $0xb98] sm:$0xff]  ;;  %v2605_v11 = vld [vmem:[%s6574_s18 + $0x1788] sm:$0xff] }
 0x2f8   : > { %4687 = vmatprep.subr.bf16.mxu0 %v4686_v20  ;;  %v2586_v20 = vld [vmem:[%s6574_s18 + $0x16f0] sm:$0xff]  ;;  %v4324_v50 = vpack.c.bf16 %v2202_v3, %v2200_v47  ;;  %v2604_v3 = vld [vmem:[%s6574_s18 + $0x1780] sm:$0xff]  ;;  %v2619_v53 = vld [vmem:[%s6574_s18 + $0x17f8] sm:$0xff] }
 0x2f9   : > { %v2222_v47 = vld [vmem:[%s6574_s18 + $0xb90] sm:$0xff]  ;;  %v2623_v63 = vld [vmem:[%s6574_s18 + $0x1818] sm:$0xff] }
 0x2fa   : > { %4305 = vmatpush1.bf16.msra.mxu1 %v4304_v25  ;;  %v4708_v25 = vpack.c.bf16 %v2586_v20, %v2584_v39  ;;  %v4726_v39 = vpack.c.bf16 %v2607_v13, %v2605_v11  ;;  %v2225_v20 = vld [vmem:[%s6574_s18 + $0xba8] sm:$0xff]  ;;  %v3736_v11 = vld [vmem:[%s6572_s20 + $0x98] sm:$0xff] }
 0x2fb   : > { %4689 = vmatpush1.bf16.msra.mxu0 %v4688_v27  ;;  %4307 = vmatprep.subr.bf16.mxu1 %v4306_v30  ;;  %v4326_v27 = vpack.c.bf16 %v2207_v22, %v2205_v21  ;;  %v2204_v30 = vld [vmem:[%s6574_s18 + $0xb00] sm:$0xff]  ;;  %v2227_v21 = vld [vmem:[%s6574_s18 + $0xbb8] sm:$0xff]  ;;  %v2609_v22 = vld [vmem:[%s6574_s18 + $0x17a8] sm:$0xff] }
 0x2fc   : > { %4691 = vmatprep.subr.bf16.mxu0 %v4690_v34  ;;  %v2590_v34 = vld [vmem:[%s6574_s18 + $0x1710] sm:$0xff]  ;;  %v4328_v40 = vpack.c.bf16 %v2206_v31, %v2204_v30  ;;  %v2608_v31 = vld [vmem:[%s6574_s18 + $0x17a0] sm:$0xff] }
 0x2fd   : > { %v2226_v30 = vld [vmem:[%s6574_s18 + $0xbb0] sm:$0xff] }
 0x2fe   : > { %4309 = vmatpush1.bf16.msra.mxu1 %v4308_v41  ;;  %v4712_v41 = vpack.c.bf16 %v2590_v34, %v2588_v32  ;;  %v4730_v32 = vpack.c.bf16 %v2611_v23, %v2609_v22  ;;  %v2229_v34 = vld [vmem:[%s6574_s18 + $0xbc8] sm:$0xff]  ;;  %v2631_v22 = vld [vmem:[%s6574_s18 + $0x1858] sm:$0xff] }
 0x2ff   : > { %4693 = vmatpush1.bf16.msra.mxu0 %v4692_v7  ;;  %4311 = vmatprep.subr.bf16.mxu1 %v4310_v44  ;;  %v4330_v7 = vpack.c.bf16 %v2211_v36, %v2209_v35  ;;  %v2208_v44 = vld [vmem:[%s6574_s18 + $0xb20] sm:$0xff]  ;;  %v2231_v35 = vld [vmem:[%s6574_s18 + $0xbd8] sm:$0xff]  ;;  %v2613_v36 = vld [vmem:[%s6574_s18 + $0x17c8] sm:$0xff] }
 0x300   : > { %4695 = vmatprep.subr.bf16.mxu0 %v4694_v51  ;;  %v2594_v51 = vld [vmem:[%s6574_s18 + $0x1730] sm:$0xff]  ;;  %v4332_v55 = vpack.c.bf16 %v2210_v46, %v2208_v44  ;;  %v2612_v46 = vld [vmem:[%s6574_s18 + $0x17c0] sm:$0xff] }
 0x301   : > { %v2230_v44 = vld [vmem:[%s6574_s18 + $0xbd0] sm:$0xff] }
 0x302   : > { %4313 = vmatpush1.bf16.msra.mxu1 %v4312_v56  ;;  %v4716_v56 = vpack.c.bf16 %v2594_v51, %v2592_v48  ;;  %v4734_v48 = vpack.c.bf16 %v2615_v37, %v2613_v36  ;;  %v2233_v51 = vld [vmem:[%s6574_s18 + $0xbe8] sm:$0xff] }
 0x303   : > { %4697 = vmatpush1.bf16.msra.mxu0 %v4696_v57  ;;  %4315 = vmatprep.subr.bf16.mxu1 %v4314_v58  ;;  %v4334_v57 = vpack.c.bf16 %v2215_v52, %v2213_v12  ;;  %v2212_v58 = vld [vmem:[%s6574_s18 + $0xb40] sm:$0xff]  ;;  %v2235_v12 = vld [vmem:[%s6574_s18 + $0xbf8] sm:$0xff]  ;;  %v2617_v52 = vld [vmem:[%s6574_s18 + $0x17e8] sm:$0xff] }
 0x304   : > { %4699 = vmatprep.subr.bf16.mxu0 %v4698_v61  ;;  %v2598_v61 = vld [vmem:[%s6574_s18 + $0x1750] sm:$0xff]  ;;  %v4336_v2 = vpack.c.bf16 %v2214_v59, %v2212_v58  ;;  %v2616_v59 = vld [vmem:[%s6574_s18 + $0x17e0] sm:$0xff]  ;;  %v3930_v37 = vld.sshfl [vmem:[%s7569_s0 + $0x30] sm:$0x3 pattern:$0x76325410] }
 0x305   : > { %v2234_v58 = vld [vmem:[%s6574_s18 + $0xbf0] sm:$0xff] }
 0x306   : > { %4317 = vmatpush1.bf16.msra.mxu1 %v4316_v4  ;;  %v4720_v4 = vpack.c.bf16 %v2598_v61, %v2596_v60  ;;  %v4738_v60 = vpack.c.bf16 %v2619_v53, %v2617_v52  ;;  %v3733_v61 = vld [vmem:[%s6572_s20 + $0x80] sm:$0xff]  ;;  %v3742_v52 = vld [vmem:[%s6572_s20 + $0xc8] sm:$0xff] }
 0x307   : > { %4701 = vmatpush1.bf16.msra.mxu0 %v4700_v24  ;;  %4319 = vmatprep.subr.bf16.mxu1 %v4318_v42  ;;  %v4338_v24 = vpack.c.bf16 %v2219_v8, %v2217_v62  ;;  %v2216_v42 = vld [vmem:[%s6574_s18 + $0xb60] sm:$0xff]  ;;  %v2621_v8 = vld [vmem:[%s6574_s18 + $0x1808] sm:$0xff] }
 0x308   : > { %4703 = vmatprep.subr.bf16.mxu0 %v4702_v45  ;;  %v2602_v45 = vld [vmem:[%s6574_s18 + $0x1770] sm:$0xff]  ;;  %v4340_v15 = vpack.c.bf16 %v2218_v5, %v2216_v42  ;;  %v3734_v62 = vld [vmem:[%s6572_s20 + $0x88] sm:$0xff]  ;;  %v4742_v5 = vpack.c.bf16 %v2623_v63, %v2621_v8  ;;  %v3725_v53 = vld [vmem:[%s6572_s20 + $0x40] sm:$0xff] }
 0x309   : > { %v3718_v42 = vld [vmem:[%s6572_s20 + $0x8] sm:$0xff] }
 0x30a   : > { %4321 = vmatpush1.bf16.msra.mxu1 %v4320_v16  ;;  %v4724_v16 = vpack.c.bf16 %v2602_v45, %v2600_v6  ;;  %v2620_v6 = vld [vmem:[%s6574_s18 + $0x1800] sm:$0xff]  ;;  %v2625_v45 = vld [vmem:[%s6574_s18 + $0x1828] sm:$0xff] }
 0x30b   : > { %4705 = vmatpush1.bf16.msra.mxu0 %v4704_v17  ;;  %4323 = vmatprep.subr.bf16.mxu1 %v4322_v18  ;;  %v4342_v17 = vpack.c.bf16 %v2223_v28, %v2221_v10  ;;  %v2220_v18 = vld [vmem:[%s6574_s18 + $0xb80] sm:$0xff]  ;;  %v2627_v10 = vld [vmem:[%s6574_s18 + $0x1838] sm:$0xff]  ;;  %v3735_v28 = vld [vmem:[%s6572_s20 + $0x90] sm:$0xff] }
 0x30c   : > { %4707 = vmatprep.subr.bf16.mxu0 %v4706_v19  ;;  %v2606_v19 = vld [vmem:[%s6574_s18 + $0x1790] sm:$0xff]  ;;  %v4344_v43 = vpack.c.bf16 %v2222_v47, %v2220_v18  ;;  %v4746_v47 = vpack.c.bf16 %v2627_v10, %v2625_v45 }
 0x30d   : > { %v3720_v18 = vld [vmem:[%s6572_s20 + $0x18] sm:$0xff] }
 0x30e   : > { %4325 = vmatpush1.bf16.msra.mxu1 %v4324_v50  ;;  %v4728_v50 = vpack.c.bf16 %v2606_v19, %v2604_v3  ;;  %v2626_v3 = vld [vmem:[%s6574_s18 + $0x1830] sm:$0xff]  ;;  %v3737_v19 = vld [vmem:[%s6572_s20 + $0xa0] sm:$0xff] }
 0x30f   : > { %4709 = vmatpush1.bf16.msra.mxu0 %v4708_v25  ;;  %4327 = vmatprep.subr.bf16.mxu1 %v4326_v27  ;;  %v4346_v25 = vpack.c.bf16 %v2227_v21, %v2225_v20  ;;  %v2224_v27 = vld [vmem:[%s6574_s18 + $0xba0] sm:$0xff]  ;;  %v2629_v21 = vld [vmem:[%s6574_s18 + $0x1848] sm:$0xff] }
 0x310   : > { %4711 = vmatprep.subr.bf16.mxu0 %v4710_v33  ;;  %v2610_v33 = vld [vmem:[%s6574_s18 + $0x17b0] sm:$0xff]  ;;  %v4348_v38 = vpack.c.bf16 %v2226_v30, %v2224_v27  ;;  %v3738_v20 = vld [vmem:[%s6572_s20 + $0xa8] sm:$0xff]  ;;  %v4750_v27 = vpack.c.bf16 %v2631_v22, %v2629_v21 }
 0x311   : > { %v2628_v30 = vld [vmem:[%s6574_s18 + $0x1840] sm:$0xff] }
 0x312   : > { %4329 = vmatpush1.bf16.msra.mxu1 %v4328_v40  ;;  %v4732_v40 = vpack.c.bf16 %v2610_v33, %v2608_v31  ;;  %v2630_v31 = vld [vmem:[%s6574_s18 + $0x1850] sm:$0xff] }
 0x313   : > { %4713 = vmatpush1.bf16.msra.mxu0 %v4712_v41  ;;  %4331 = vmatprep.subr.bf16.mxu1 %v4330_v7  ;;  %v4350_v41 = vpack.c.bf16 %v2231_v35, %v2229_v34  ;;  %v2228_v7 = vld [vmem:[%s6574_s18 + $0xbc0] sm:$0xff]  ;;  %v2634_v35 = vld [vmem:[%s6574_s18 + $0x1870] sm:$0xff] }
 0x314   : > { %4715 = vmatprep.subr.bf16.mxu0 %v4714_v49  ;;  %v2614_v49 = vld [vmem:[%s6574_s18 + $0x17d0] sm:$0xff]  ;;  %v4352_v54 = vpack.c.bf16 %v2230_v44, %v2228_v7  ;;  %v2632_v34 = vld [vmem:[%s6574_s18 + $0x1860] sm:$0xff] }
 0x315   : > { %v4756_v36 = vpack.c.bf16 %v2634_v35, %v2632_v34  ;;  %v3739_v7 = vld [vmem:[%s6572_s20 + $0xb0] sm:$0xff]  ;;  %v3740_v44 = vld [vmem:[%s6572_s20 + $0xb8] sm:$0xff] }
 0x316   : > { %4333 = vmatpush1.bf16.msra.mxu1 %v4332_v55  ;;  %v4736_v55 = vpack.c.bf16 %v2614_v49, %v2612_v46  ;;  %v4770_v46 = vpack.c.bf16 %v3740_v44, %v3739_v7  ;;  %v3724_v49 = vld [vmem:[%s6572_s20 + $0x38] sm:$0xff] }
 0x317   : > { %4717 = vmatpush1.bf16.msra.mxu0 %v4716_v56  ;;  %4335 = vmatprep.subr.bf16.mxu1 %v4334_v57  ;;  %v4354_v56 = vpack.c.bf16 %v2235_v12, %v2233_v51  ;;  %v2232_v57 = vld [vmem:[%s6574_s18 + $0xbe0] sm:$0xff] }
 0x318   : > { %4719 = vmatprep.subr.bf16.mxu0 %v4718_v26  ;;  %v2618_v26 = vld [vmem:[%s6574_s18 + $0x17f0] sm:$0xff]  ;;  %v4356_v0 = vpack.c.bf16 %v2234_v58, %v2232_v57  ;;  %v3741_v51 = vld [vmem:[%s6572_s20 + $0xc0] sm:$0xff] }
 0x319   : > { %v3744_v57 = vld [vmem:[%s6572_s20 + $0xd8] sm:$0xff] }
 0x31a   : > { %4337 = vmatpush1.bf16.msra.mxu1 %v4336_v2  ;;  %v4740_v2 = vpack.c.bf16 %v2618_v26, %v2616_v59  ;;  %v3728_v26 = vld [vmem:[%s6572_s20 + $0x58] sm:$0xff] }
 0x31b   : > { %4721 = vmatpush1.bf16.msra.mxu0 %v4720_v4  ;;  %4339 = vmatprep.subr.bf16.mxu1 %v4338_v24  ;;  %v4758_v4 = vpack.c.bf16 %v3734_v62, %v3733_v61  ;;  %v3717_v24 = vld [vmem:[%s6572_s20] sm:$0xff]  ;;  %v3746_v62 = vld [vmem:[%s6572_s20 + $0xe8] sm:$0xff] }
 0x31c   : > { %4723 = vmatprep.subr.bf16.mxu0 %v4722_v9  ;;  %v2622_v9 = vld [vmem:[%s6574_s18 + $0x1810] sm:$0xff]  ;;  %v4760_v13 = vpack.c.bf16 %v3718_v42, %v3717_v24  ;;  %v3745_v61 = vld [vmem:[%s6572_s20 + $0xe0] sm:$0xff] }
 0x31d   : > { %v4782_v63 = vpack.c.bf16 %v3746_v62, %v3745_v61  ;;  %v3747_v24 = vld [vmem:[%s6572_s20 + $0xf0] sm:$0xff]  ;;  %v3748_v42 = vld [vmem:[%s6572_s20 + $0xf8] sm:$0xff] }
 0x31e   : > { %4341 = vmatpush1.bf16.msra.mxu1 %v4340_v15  ;;  %v4744_v15 = vpack.c.bf16 %v2622_v9, %v2620_v6  ;;  %v3731_v6 = vld [vmem:[%s6572_s20 + $0x70] sm:$0xff]  ;;  %v3732_v9 = vld [vmem:[%s6572_s20 + $0x78] sm:$0xff] }
 0x31f   : > { %4725 = vmatpush1.bf16.msra.mxu0 %v4724_v16  ;;  %4343 = vmatprep.subr.bf16.mxu1 %v4342_v17  ;;  %v2624_v16 = vld [vmem:[%s6574_s18 + $0x1820] sm:$0xff]  ;;  %v3719_v17 = vld [vmem:[%s6572_s20 + $0x10] sm:$0xff]  ;;  %v4788_v45 = vpack.c.bf16 %v3732_v9, %v3731_v6 }
 0x320   : > { %4727 = vmatprep.subr.bf16.mxu0 %v4726_v39  ;;  %v4762_v39 = vpack.c.bf16 %v3736_v11, %v3735_v28  ;;  %v4764_v23 = vpack.c.bf16 %v3720_v18, %v3719_v17  ;;  %v2640_v11 = vsub.s32 0, %v6661_v14 }
 0x322   : > { %4345 = vmatpush1.bf16.msra.mxu1 %v4344_v43  ;;  %v4748_v43 = vpack.c.bf16 %v2626_v3, %v2624_v16 }
 0x323   : > { %4729 = vmatpush1.bf16.msra.mxu0 %v4728_v50  ;;  %4347 = vmatprep.subr.bf16.mxu1 %v4346_v25  ;;  %v4918_v50 = vmov 0.0   ;;  %v4766_v25 = vpack.c.bf16 %v3738_v20, %v3737_v19 }
 0x324   : > { %4731 = vmatprep.subr.bf16.mxu0 %v4730_v32  ;;  %v2635_v32 = vld [vmem:[%s6574_s18 + $0x1878] sm:$0xff] }
 0x326   : > { %4349 = vmatpush1.bf16.msra.mxu1 %v4348_v38  ;;  %v3721_v38 = vld [vmem:[%s6572_s20 + $0x20] sm:$0xff] }
 0x327   : > { %4733 = vmatpush1.bf16.msra.mxu0 %v4732_v40  ;;  %4351 = vmatprep.subr.bf16.mxu1 %v4350_v41  ;;  %v3722_v40 = vld [vmem:[%s6572_s20 + $0x28] sm:$0xff] }
 0x328   : > { %4735 = vmatprep.subr.bf16.mxu0 %v4734_v48  ;;  %v4768_v41 = vpack.c.bf16 %v3722_v40, %v3721_v38  ;;  %v3723_v48 = vld [vmem:[%s6572_s20 + $0x30] sm:$0xff] }
 0x329   : > { %v4772_v12 = vpack.c.bf16 %v3724_v49, %v3723_v48 }
 0x32a   : > { %4353 = vmatpush1.bf16.msra.mxu1 %v4352_v54  ;;  %v3726_v54 = vld [vmem:[%s6572_s20 + $0x48] sm:$0xff] }
 0x32b   : > { %4737 = vmatpush1.bf16.msra.mxu0 %v4736_v55  ;;  %4355 = vmatprep.subr.bf16.mxu1 %v4354_v56  ;;  %v4774_v55 = vpack.c.bf16 %v3742_v52, %v3741_v51  ;;  %v3743_v56 = vld [vmem:[%s6572_s20 + $0xd0] sm:$0xff]  ;;  %v4776_v58 = vpack.c.bf16 %v3726_v54, %v3725_v53 }
 0x32c   : > { %4739 = vmatprep.subr.bf16.mxu0 %v4738_v60  ;;  %v4778_v59 = vpack.c.bf16 %v3744_v57, %v3743_v56  ;;  %v3727_v60 = vld [vmem:[%s6572_s20 + $0x50] sm:$0xff] }
 0x32d   : > { %v4780_v8 = vpack.c.bf16 %v3728_v26, %v3727_v60 }
 0x32e   : > { %4357 = vmatpush1.bf16.msra.mxu1 %v4356_v0  ;;  %v3729_v0 = vld [vmem:[%s6572_s20 + $0x60] sm:$0xff] }
 0x32f   : > { %4741 = vmatpush1.bf16.msra.mxu0 %v4740_v2  ;;  %4759 = vmatprep.subr.bf16.mxu1 %v4758_v4  ;;  %v3730_v2 = vld [vmem:[%s6572_s20 + $0x68] sm:$0xff] }
 0x330   : > { %4743 = vmatprep.subr.bf16.mxu0 %v4742_v5  ;;  %v4784_v4 = vpack.c.bf16 %v3730_v2, %v3729_v0  ;;  %v4786_v5 = vpack.c.bf16 %v3748_v42, %v3747_v24 }
 0x331   : > { %3211 = vmatmul.mubr.f32.vlgmr.msra.gmra.mrb[0].mxu1 %v7339_v29  ;;  %v2633_v29 = vld [vmem:[%s6574_s18 + $0x1868] sm:$0xff] }
 0x332   : > { %3637 = vmatmul.mubr.f32.vlgmr.msra.gmra.mrb[0].mxu0 %v7344_v1  ;;  %4761 = vmatpush3.bf16.msra.mxu1 %v4760_v13  ;;  %v4752_v1 = vpack.c.bf16 %v2630_v31, %v2628_v30  ;;  %v4754_v33 = vpack.c.bf16 %v2635_v32, %v2633_v29  ;;  %v2636_v13 = vld [vmem:[%s1831_s14] sm:$0x3] }
 0x333   : > { %4745 = vmatpush1.bf16.msra.mxu0 %v4744_v15  ;;  %3707 = vmatprep.mubr.f32.mxu0 %v4918_v50  ;;  %v2644_v15 = vsub.s32 1, %v6661_v14  ;;  %v2641_v16 = vrot.slane %v2636_v13, %v2640_v11  ;;  %v3933_v30 = vld [vmem:[%s7573_s4] ss:$0 sm:$0xff] (!%p3932_p11) }
 0x334   : > { %4747 = vmatprep.subr.bf16.mxu0 %v4746_v47  ;;  %4763 = vmatprep.subr.bf16.mxu1 %v4762_v39 }
 0x335   : > { %v2645_v17 = vrot.slane %v2636_v13, %v2644_v15 }
 0x336   : > { %4765 = vmatpush3.bf16.msra.mxu1 %v4764_v23 }
 0x337   : > { %4749 = vmatpush1.bf16.msra.mxu0 %v4748_v43  ;;  %4767 = vmatprep.subr.bf16.mxu1 %v4766_v25  ;;  %v3716_v43 = vld [vmem:[#allocation2] sm:$0x3] }
 0x338   : > { %4751 = vmatprep.subr.bf16.mxu0 %v4750_v27 }
 0x33a   : > { %4769 = vmatpush3.bf16.msra.mxu1 %v4768_v41 }
 0x33b   : > { %4753 = vmatpush1.bf16.msra.mxu0 %v4752_v1  ;;  %4771 = vmatprep.subr.bf16.mxu1 %v4770_v46 }
 0x33c   : > { %4755 = vmatprep.subr.bf16.mxu0 %v4754_v33 }
 0x33e   : > { %4773 = vmatpush3.bf16.msra.mxu1 %v4772_v12 }
 0x33f   : > { %4757 = vmatpush1.bf16.msra.mxu0 %v4756_v36  ;;  %4775 = vmatprep.subr.bf16.mxu1 %v4774_v55 }
 0x342   : > { %3931 = vmatmul.mubr.msk.f32.vlgmr.msra.gmra.mrb[0].mxu0 %vm2788_vm1, %v3930_v37  ;;  %4777 = vmatpush3.bf16.msra.mxu1 %v4776_v58 }
 0x343   : > { %4779 = vmatprep.subr.bf16.mxu1 %v4778_v59 }
 0x346   : > { %4781 = vmatpush3.bf16.msra.mxu1 %v4780_v8 }
 0x347   : > { %4783 = vmatprep.subr.bf16.mxu1 %v4782_v63 }
 0x34a   : > { %4785 = vmatpush3.bf16.msra.mxu1 %v4784_v4 }
 0x34b   : > { %4787 = vmatprep.subr.bf16.mxu1 %v4786_v5 }
 0x34e   : > { %4789 = vmatpush3.bf16.msra.mxu1 %v4788_v45 }
 0x404   : > { %v3212_v10 = vpop.f32.mrb[0].mxu1 }
 0x405   : > { %v3214_v28 = vpop.f32.mrb[1].mxu1  ;;  %v4790_v18 = vadd.f32 %v3212_v10, %v2641_v16 }
 0x406   : > { %v4792_v47 = vadd.f32 %v3214_v28, %v2645_v17 }
 0x415   : > { %v3709_v3 = vpop.f32.mrb[0].mxu0 }
 0x416   : > { %v4791_v39 = vadd.f32 %v4790_v18, %v3709_v3  ;;  %v3711_v19 = vpop.f32.mrb[1].mxu0 }
 0x417   : > { %v4793_v20 = vadd.f32 %v4792_v47, %v3711_v19 }
 0x418   : > { %v3714_v22 = vmax.f32 %v4791_v39, 0.0 }
 0x419   : > { %v3715_v21 = vmax.f32 %v4793_v20, 0.0 }
 0x41b   : > { %3813 = vmatprep.mubr.f32.mxu1 %v3715_v21 }
 0x41c   : > { %3814 = vmatmul.mubr.f32.vlgmr.msra.gmra.mrb[2].mxu1 %v3714_v22 }
 0x4ef   : > { %v3971_v23 = vpop.f32.mrb[2].mxu1  ;;  %3825 = sbr.rel (%p3932_p11) target bundleno = 1594 (0x63a), region = 71 }
 0x4f0   : > { %v3972_v50 = vpop.f32.mrb[3].mxu1 }
 0x4f1   : > { %v3973_v25 = vadd.f32 %v3972_v50, %v3971_v23 }
 0x4f3   : > { %v3819_v27 = vadd.f32 %v3973_v25, %v3716_v43 }
 0x4f5   : > { %3821 = vst.msk [vmem:[#allocation2] sm:$0x3] %vm3820_vm2, %v3819_v27 }
 0x4fc   : > { %v3826_v14 = vld [vmem:[#allocation2] sm:$0x3] }
 0x4fd   : > { %v3834_v31 = vadd.f32 %v3933_v30, %v3826_v14 }
 0x4ff   : > { %v3835_v29 = vsel %vm3820_vm2, %v3834_v31, -inf }
 0x500   : > { %3836 = vmax.xlane.f32.xlu0 %v3835_v29 }
 0x58d   : > { %v3837_v32 = vpop.xlane.xlu0 %3836 }
 0x58e   : > { %v3838_v1 = vsub.f32 %v3834_v31, %v3837_v32 }
 0x590   : > { %v3839_v33 = vmul.f32 1.442695, %v3838_v1 }
 0x592   : > { %4858 = vpow2.f32 %v3839_v33 }
 0x59c   : > { %v4859_v34 = vpop.eup %4858 }
 0x59d   : > { %v3841_v35 = vsel %vm3820_vm2, %v4859_v34, 0.0 }
 0x59e   : > { %3842 = vadd.xlane.f32.xlu0 %v3841_v35 }
 0x62b   : > { %v3843_v36 = vpop.xlane.xlu0 %3842 }
 0x62c   : > { %4860 = vrcp.f32 %v3843_v36 }
 0x636   : > { %v4861_v37 = vpop.eup %4860 }
 0x637   : > { %v3845_v38 = vmul.f32 %v4861_v37, %v4859_v34 }
 0x639   : > { %3846 = vst.msk [vmem:[#allocation4] sm:$0x3] %vm3820_vm2, %v3845_v38 }
 0x63a PF: > { %p4822_p12 = scmp.eq.s32.totalorder %s4966_s21, 3  ;;  %s4919_s17 = smov [#allocation4]  }
 0x63b   : > { %s3854_s20 = sshll.u32 %s4919_s17, 4  ;;  %s3855_s20 = int_to_ptr.vmem [resolvable:$true] %s3854_s20 }
 0x63c   : > { %s4862_s18 = scalar_lea.vmem %s3855_s20, 32  ;;  %p4869_p2 = scmp.lt.s32.totalorder %s3855_s20, %s3855_s20 }
 0x63d   : > { %p4863_p13 = scmp.ne.s32.totalorder %s3855_s20, %s4862_s18  ;;  %p4870_p3 = scmp.lt.s32.totalorder %s4862_s18, %s4862_s18 }
 0x63f   : > { %p4864_p0 = pnand %p4863_p13, %p4822_p12  ;;  %p4871_p4 = por %p4870_p3, %p4869_p2 }
 0x641   : > { %p4865_p1 = pneg %p4864_p0 }
 0x643   : > { %p4872_p5 = pnand %p4871_p4, %p4865_p1 }
 0x645   : > { %4875 = shalt.err (!%p4872_p5)
}
 0x646   : > { %s4876_s26 = scalar_lea.hbm %s7574_s5, 32 }
 0x647   : > { %p4877_p6 = scmp.ne.s32.totalorder %s7574_s5, %s4876_s26  ;;  %p4882_p9 = scmp.lt.u32.totalorder %s4876_s26, %s7574_s5 }
 0x649   : > { %p4878_p7 = pnand %p4877_p6, %p4822_p12 }
 0x64b   : > { %p4879_p8 = pneg %p4878_p7 }
 0x64d   : > { %p4884_p10 = pnand %p4882_p9, %p4879_p8 }
 0x64f   : > { %4887 = shalt.err (!%p4884_p10)
}
 0x650   : > { %4819 = dma.vmem_to_hbm [thread:$0]  (%p4822_p12), %s3855_s20, 32, %s7574_s5, [#allocation5]  }
 0x651   : > { %4901 = dma.done.wait (%p4822_p12), [#allocation5], 32  }
 0x652   : > { %4903 = vsyncadd (%p4822_p12), [#allocation5], 4294967264 }
 0x653 PF: > { %p13_p11 = scmp.ge.s32.totalorder %s4969_s22, 6   ;;  %s7575_s18 = smov %s4910_s19 }
 0x654   : > { %s7576_s19 = smov %s4978_s25  ;;  %s7577_s20 = smov %s4969_s22 }
 0x655   :  { %15 = sbr.rel (!%p13_p11) target bundleno = 2 (0x2), region = 109 }
 0x65c   :  { %3867 = vsyncpa [#allocation5], 1 }
 0x65d   :  { %3869 = vsyncpa [#allocation5 + $0x1], 1 }

</bundles_post_ra>
